<compile_context>
chip_gen: v7x
topology: tpu7x:2x2x1
jax: 0.10.0
libtpu: 0.0.40
codegen_flags: <defaults>
</compile_context>

<pallas_src>
import functools

import jax
import jax.numpy as jnp
from jax import lax
from jax.experimental import pallas as pl
from jax.experimental.pallas import tpu as pltpu

EPS = 1e-5
LRELU_SLOPE = 0.2


def _round_up(n, m):
    return ((n + m - 1) // m) * m


@functools.lru_cache(maxsize=None)
def _is_megacore():
    """True on parts with 2 TensorCores per chip (v7x-class) -> split M across cores."""
    try:
        kind = jax.devices()[0].device_kind.lower()
    except Exception:
        return False
    return ("v7" in kind) or ("7x" in kind)


# ----------------------------- Pallas kernels -------------------------------

def _matmul_act_kernel(a_ref, w_ref, o_ref, *, alpha):
    """out = leaky_relu(A @ W); bf16 MXU operands, f32 accumulate, bf16 store."""
    y = jnp.dot(a_ref[...], w_ref[...], preferred_element_type=jnp.float32)
    o_ref[...] = jnp.maximum(y, alpha * y).astype(o_ref.dtype)


def _matmul_bias_act_kernel(a_ref, w_ref, b_ref, o_ref, *, alpha):
    """out = leaky_relu(A @ W + bias); BN scale is pre-folded into W's columns."""
    y = jnp.dot(a_ref[...], w_ref[...], preferred_element_type=jnp.float32) + b_ref[...]
    o_ref[...] = jnp.maximum(y, alpha * y).astype(o_ref.dtype)


def _tail_kernel(p4_ref, w4_ref, b4_ref, wt_ref, fb_ref, s_ref, b_ref, o_ref,
                 *, alpha, bp, ns):
    """Fused conv4 -> BN(folded) -> LeakyReLU -> (conv5+Linear folded) -> LeakyReLU -> BN1d.

    p4_ref : (ns*bp, K4)   conv4 im2col patches, rows ordered (spatial s, padded batch b)
    w4_ref : (K4, C4)      conv4 weights with BN scale folded in (bf16)
    b4_ref : (1, C4)       folded BN bias
    wt_ref : (ns, C4, Np)  f32 folded tail weight  W5_mat @ fc_w.T  (emb padded to Np)
    fb_ref/s_ref/b_ref : (1, Np)  fc bias / BN1d scale / BN1d bias
    o_ref  : (bp, Np)
    """
    h = jnp.dot(p4_ref[...], w4_ref[...], preferred_element_type=jnp.float32)
    h = h + b4_ref[...]
    h = jnp.maximum(h, alpha * h)                     # conv4 activation, f32 (ns*bp, C4)

    acc = jnp.zeros(o_ref.shape, jnp.float32)
    for s in range(ns):                               # (bp,C4) @ (C4,Np), full f32
        acc = acc + jnp.dot(h[s * bp:(s + 1) * bp, :], wt_ref[s],
                            preferred_element_type=jnp.float32)
    y = acc + fb_ref[...]                             # Linear bias
    y = jnp.maximum(y, alpha * y)                     # LeakyReLU
    o_ref[...] = y * s_ref[...] + b_ref[...]          # BatchNorm1d (affine=False)


# ------------------------------ conv-as-matmul -------------------------------

def _matmul_act(a, w, bias, alpha):
    """leaky_relu(a @ w (+ bias)) via a single-K-block Pallas matmul."""
    M, K = a.shape
    N = w.shape[1]
    nblk = 2 if (_is_megacore() and M >= 256) else 1  # split M only on 2-TC chips
    bm = M // nblk

    in_specs = [pl.BlockSpec((bm, K), lambda i: (i, 0)),
                pl.BlockSpec((K, N), lambda i: (0, 0))]
    args = [a.astype(jnp.bfloat16), w]
    if bias is None:
        kern = functools.partial(_matmul_act_kernel, alpha=alpha)
    else:
        kern = functools.partial(_matmul_bias_act_kernel, alpha=alpha)
        in_specs.append(pl.BlockSpec((1, N), lambda i: (0, 0)))
        args.append(bias)

    return pl.pallas_call(
        kern,
        out_shape=jax.ShapeDtypeStruct((M, N), jnp.bfloat16),
        grid=(nblk,),
        in_specs=in_specs,
        out_specs=pl.BlockSpec((bm, N), lambda i: (i, 0)),
        compiler_params=pltpu.CompilerParams(dimension_semantics=("parallel",)),
    )(*args)


def _im2col(x_nhwc, k, stride, pad):
    """(B,H,W,C) -> (B,Ho,Wo,k*k*C) patches, feature order (kh, kw, Cin)."""
    if pad:
        x_nhwc = jnp.pad(x_nhwc, ((0, 0), (pad, pad), (pad, pad), (0, 0)))
    B, H, W, C = x_nhwc.shape
    Ho = (H - k) // stride + 1
    Wo = (W - k) // stride + 1
    cols = []
    for i in range(k):
        for j in range(k):
            cols.append(x_nhwc[:, i:i + Ho * stride:stride, j:j + Wo * stride:stride, :])
    patches = jnp.stack(cols, axis=3)
    return patches.reshape(B, Ho, Wo, k * k * C), Ho, Wo


# ------------------------- one-time weight preparation ------------------------

def prepare_params(params):
    """All weight prep hoisted out of the per-call forward (run once)."""
    def conv_w_mat(w_oihw, scale=None):
        cout, cin, k, _ = w_oihw.shape
        m = jnp.transpose(w_oihw, (2, 3, 1, 0)).reshape(k * k * cin, cout).astype(jnp.float32)
        if scale is not None:                      # fold BN scale in f32 before bf16 cast
            m = m * scale[None, :]
        return m.astype(jnp.bfloat16)

    prep = {}
    # conv1: pad Cin 3 -> 8 so K = 16*8 = 128 (lane-dense A loads); padded rows are zero.
    w1 = params["w1"]
    cin1 = w1.shape[1]
    cin1_pad = _round_up(cin1, 8)
    prep["w1"] = conv_w_mat(jnp.pad(w1, ((0, 0), (0, cin1_pad - cin1), (0, 0), (0, 0))))

    for idx, wk, bnk in ((2, "w2", "bn2"), (3, "w3", "bn3"), (4, "w4", "bn4")):
        gamma, beta, rm, rv = params[bnk]
        s = gamma / jnp.sqrt(rv + EPS)
        prep[f"w{idx}"] = conv_w_mat(params[wk], s)
        prep[f"b{idx}"] = (beta - rm * s).astype(jnp.float32).reshape(1, -1)

    # conv5 and the Linear compose (no nonlinearity in between): fold offline in f32.
    cout5, cin5, k5, _ = params["w5"].shape
    w5_mat = jnp.transpose(params["w5"], (2, 3, 1, 0)).reshape(k5 * k5 * cin5, cout5)
    w_tail = w5_mat.astype(jnp.float32) @ params["fc_w"].T.astype(jnp.float32)  # (k5*k5*cin5, emb)
    emb = w_tail.shape[1]
    npad = _round_up(emb, 128)                         # lane-dense tiny output
    w_tail = jnp.pad(w_tail, ((0, 0), (0, npad - emb)))
    prep["w_tail"] = w_tail.reshape(k5 * k5, cin5, npad)           # f32 (16, 128, 128)
    prep["fc_b"] = jnp.pad(params["fc_b"].astype(jnp.float32), (0, npad - emb)).reshape(1, npad)
    post_s = 1.0 / jnp.sqrt(params["bn_out_rv"].astype(jnp.float32) + EPS)
    post_b = -params["bn_out_rm"].astype(jnp.float32) * post_s
    prep["post_s"] = jnp.pad(post_s, (0, npad - emb)).reshape(1, npad)
    prep["post_b"] = jnp.pad(post_b, (0, npad - emb)).reshape(1, npad)
    return prep


# ---------------------------------- forward ----------------------------------

def celeba_encoder_forward(prep, x_nchw, *, embedding_dim=2):
    x = jnp.transpose(x_nchw, (0, 2, 3, 1)).astype(jnp.bfloat16)   # NHWC, bf16 activations
    B = x.shape[0]
    c_in = x.shape[-1]
    c_pad = _round_up(c_in, 8)
    if c_pad != c_in:                                  # match the padded conv1 weight rows
        x = jnp.pad(x, ((0, 0), (0, 0), (0, 0), (0, c_pad - c_in)))

    # conv1 -> LeakyReLU (Dropout: eval-mode identity)
    p, Ho, Wo = _im2col(x, 4, 2, 1)
    x = _matmul_act(p.reshape(B * Ho * Wo, -1), prep["w1"], None,
                    LRELU_SLOPE).reshape(B, Ho, Wo, -1)

    # conv2, conv3 -> folded BatchNorm2d -> LeakyReLU
    for idx in (2, 3):
        p, Ho, Wo = _im2col(x, 4, 2, 1)
        x = _matmul_act(p.reshape(B * Ho * Wo, -1), prep[f"w{idx}"], prep[f"b{idx}"],
                        LRELU_SLOPE).reshape(B, Ho, Wo, -1)

    # fused tail: conv4 -> BN -> LeakyReLU -> (conv5+Linear folded) -> LeakyReLU -> BN1d
    p, Ho, Wo = _im2col(x, 4, 2, 1)                    # (B, 4, 4, 16*C3)
    ns = Ho * Wo                                       # 16 spatial positions feed conv5
    Bp = _round_up(B, 8)                               # pad batch to a full sublane tile
    p = jnp.transpose(p, (1, 2, 0, 3)).reshape(ns, B, -1)
    p = jnp.pad(p, ((0, 0), (0, Bp - B), (0, 0))).reshape(ns * Bp, -1)

    npad = prep["w_tail"].shape[-1]
    out = pl.pallas_call(
        functools.partial(_tail_kernel, alpha=LRELU_SLOPE, bp=Bp, ns=ns),
        out_shape=jax.ShapeDtypeStruct((Bp, npad), jnp.float32),
    )(p, prep["w4"], prep["b4"], prep["w_tail"], prep["fc_b"],
      prep["post_s"], prep["post_b"])
    return out[:B, :embedding_dim]


# --------------------------- deterministic params ----------------------------

def init_params(key, nf=16, nc=3, embedding_dim=2):
    keys = iter(jax.random.split(key, 32))

    def conv_w(cout, cin, k=4):
        fan_in = cin * k * k
        return jax.random.normal(next(keys), (cout, cin, k, k), jnp.float32) / jnp.sqrt(fan_in)

    def bn(c):
        gamma = 1.0 + 0.1 * jax.random.normal(next(keys), (c,), jnp.float32)
        beta = 0.1 * jax.random.normal(next(keys), (c,), jnp.float32)
        rm = 0.1 * jax.random.normal(next(keys), (c,), jnp.float32)
        rv = 1.0 + 0.1 * jax.random.uniform(next(keys), (c,), jnp.float32)
        return gamma, beta, rm, rv

    p = {}
    p["w1"] = conv_w(nf, nc)
    p["w2"] = conv_w(nf * 2, nf)
    p["bn2"] = bn(nf * 2)
    p["w3"] = conv_w(nf * 4, nf * 2)
    p["bn3"] = bn(nf * 4)
    p["w4"] = conv_w(nf * 8, nf * 4)
    p["bn4"] = bn(nf * 8)
    p["w5"] = conv_w(nf * 8, nf * 8)
    p["fc_w"] = jax.random.normal(next(keys), (embedding_dim, nf * 8), jnp.float32) / jnp.sqrt(nf * 8)
    p["fc_b"] = 0.1 * jax.random.normal(next(keys), (embedding_dim,), jnp.float32)
    p["bn_out_rm"] = 0.1 * jax.random.normal(next(keys), (embedding_dim,), jnp.float32)
    p["bn_out_rv"] = 1.0 + 0.1 * jax.random.uniform(next(keys), (embedding_dim,), jnp.float32)
    return p


# ----------------------------- pure-JAX reference ----------------------------

def reference_forward(params, x_nchw):
    def conv(x, w, pad):
        return lax.conv_general_dilated(
            x, w, (2, 2), [(pad, pad), (pad, pad)],
            dimension_numbers=("NCHW", "OIHW", "NCHW"))

    def lrelu(x):
        return jnp.where(x >= 0, x, LRELU_SLOPE * x)

    def bn(x, bnp):
        gamma, beta, rm, rv = (t[None, :, None, None] for t in bnp)
        return (x - rm) / jnp.sqrt(rv + EPS) * gamma + beta

    x = lrelu(conv(x_nchw, params["w1"], 1))
    x = lrelu(bn(conv(x, params["w2"], 1), params["bn2"]))
    x = lrelu(bn(conv(x, params["w3"], 1), params["bn3"]))
    x = lrelu(bn(conv(x, params["w4"], 1), params["bn4"]))
    x = conv(x, params["w5"], 0)
    x = x.reshape(x.shape[0], -1)
    x = lrelu(x @ params["fc_w"].T + params["fc_b"])
    return (x - params["bn_out_rm"]) / jnp.sqrt(params["bn_out_rv"] + EPS)


# ----------------------------------- main ------------------------------------

if __name__ == "__main__":
    key = jax.random.PRNGKey(0)
    kp, kx = jax.random.split(key)
    params = init_params(kp)
    # 64x64 input is required so the 5 stride-2 convs reach 1x1 spatial.
    x = jax.random.normal(kx, (2, 3, 64, 64), jnp.float32)  # NCHW

    prep = prepare_params(params)                      # one-time weight prep (hoisted)
    emb = params["fc_w"].shape[0]
    fwd = jax.jit(functools.partial(celeba_encoder_forward, embedding_dim=emb))
    out = fwd(prep, x)
    jax.block_until_ready(out)

    assert out.shape == (2, emb), out.shape
    ref = reference_forward(params, x)
    # bf16 MXU inputs / bf16 inter-layer activations -> looser tolerance than pure f32.
    assert jnp.allclose(out, ref, atol=1e-1, rtol=1e-1), (out, ref)
    print("KERNEL_OK")
</pallas_src>

<mosaic_0001>
module attributes {stable_mosaic.version = 11 : i64} {
  func.func @_matmul_act_kernel(%arg0: i32, %arg1: memref<2048x128xbf16, #tpu.memory_space<vmem>>, %arg2: memref<128x16xbf16, #tpu.memory_space<vmem>>, %arg3: memref<2048x16xbf16, #tpu.memory_space<vmem>>) attributes {dimension_semantics = [#tpu.dimension_semantics<parallel>], iteration_bounds = array<i64: 1>, scalar_prefetch = 0 : i64, scratch_operands = 0 : i64, tpu.core_type = #tpu.core_type<tc>, window_params = [{transform_indices = @transform_0, window_bounds = array<i64: 2048, 128>}, {pipeline_mode = #tpu.pipeline_mode<synchronous>, transform_indices = @transform_1, window_bounds = array<i64: 128, 16>}, {transform_indices = @transform_2, window_bounds = array<i64: 2048, 16>}]} {
    %c0 = arith.constant 0 : index
    %c0_0 = arith.constant 0 : index
    %0 = vector.load %arg1[%c0, %c0_0] : memref<2048x128xbf16, #tpu.memory_space<vmem>>, vector<2048x128xbf16>
    %c0_1 = arith.constant 0 : index
    %c0_2 = arith.constant 0 : index
    %1 = vector.load %arg2[%c0_1, %c0_2] : memref<128x16xbf16, #tpu.memory_space<vmem>>, vector<128x16xbf16>
    %cst = arith.constant dense<0.000000e+00> : vector<2048x16xf32>
    %2 = tpu.matmul %0, %1, %cst {dimension_numbers = #tpu.dot_dimension_numbers<[1], [0], [0], [1], [0, 0, 1, 1], [], []>} : vector<2048x128xbf16>, vector<128x16xbf16>, vector<2048x16xf32> -> vector<2048x16xf32>
    %cst_3 = arith.constant 2.000000e-01 : f32
    %3 = vector.broadcast %cst_3 : f32 to vector<2048x16xf32>
    %4 = arith.mulf %3, %2 : vector<2048x16xf32>
    %5 = arith.maximumf %2, %4 : vector<2048x16xf32>
    %6 = arith.truncf %5 : vector<2048x16xf32> to vector<2048x16xbf16>
    %c0_4 = arith.constant 0 : index
    %c0_5 = arith.constant 0 : index
    %7 = vector.load %arg3[%c0_4, %c0_5] : memref<2048x16xbf16, #tpu.memory_space<vmem>>, vector<2048x16xbf16>
    tpu.vector_store %arg3[%c0_4, %c0_5], %6 {strides = array<i32>} : memref<2048x16xbf16, #tpu.memory_space<vmem>>, vector<2048x16xbf16>,
    return
  }
  func.func @transform_0(%arg0: i32) -> (i32, i32) {
    %c0_i32 = arith.constant 0 : i32
    %c0_i32_0 = arith.constant 0 : i32
    return %arg0, %c0_i32 : i32, i32
  }
  func.func @transform_1(%arg0: i32) -> (i32, i32) {
    %c0_i32 = arith.constant 0 : i32
    %c0_i32_0 = arith.constant 0 : i32
    %c0_i32_1 = arith.constant 0 : i32
    return %c0_i32, %c0_i32_0 : i32, i32
  }
  func.func @transform_2(%arg0: i32) -> (i32, i32) {
    %c0_i32 = arith.constant 0 : i32
    %c0_i32_0 = arith.constant 0 : i32
    return %arg0, %c0_i32 : i32, i32
  }
}

module attributes {stable_mosaic.version = 11 : i64} {
  func.func @_matmul_bias_act_kernel(%arg0: i32, %arg1: memref<512x256xbf16, #tpu.memory_space<vmem>>, %arg2: memref<256x32xbf16, #tpu.memory_space<vmem>>, %arg3: memref<1x32xf32, #tpu.memory_space<vmem>>, %arg4: memref<512x32xbf16, #tpu.memory_space<vmem>>) attributes {dimension_semantics = [#tpu.dimension_semantics<parallel>], iteration_bounds = array<i64: 1>, scalar_prefetch = 0 : i64, scratch_operands = 0 : i64, tpu.core_type = #tpu.core_type<tc>, window_params = [{transform_indices = @transform_0, window_bounds = array<i64: 512, 256>}, {pipeline_mode = #tpu.pipeline_mode<synchronous>, transform_indices = @transform_1, window_bounds = array<i64: 256, 32>}, {pipeline_mode = #tpu.pipeline_mode<synchronous>, transform_indices = @transform_2, window_bounds = array<i64: 1, 32>}, {transform_indices = @transform_3, window_bounds = array<i64: 512, 32>}]} {
    %c0 = arith.constant 0 : index
    %c0_0 = arith.constant 0 : index
    %0 = vector.load %arg1[%c0, %c0_0] : memref<512x256xbf16, #tpu.memory_space<vmem>>, vector<512x256xbf16>
    %c0_1 = arith.constant 0 : index
    %c0_2 = arith.constant 0 : index
    %1 = vector.load %arg2[%c0_1, %c0_2] : memref<256x32xbf16, #tpu.memory_space<vmem>>, vector<256x32xbf16>
    %cst = arith.constant dense<0.000000e+00> : vector<512x32xf32>
    %2 = tpu.matmul %0, %1, %cst {dimension_numbers = #tpu.dot_dimension_numbers<[1], [0], [0], [1], [0, 0, 1, 1], [], []>} : vector<512x256xbf16>, vector<256x32xbf16>, vector<512x32xf32> -> vector<512x32xf32>
    %c0_3 = arith.constant 0 : index
    %c0_4 = arith.constant 0 : index
    %3 = vector.load %arg3[%c0_3, %c0_4] : memref<1x32xf32, #tpu.memory_space<vmem>>, vector<1x32xf32>
    %4 = vector.broadcast %3 : vector<1x32xf32> to vector<512x32xf32>
    %5 = arith.addf %2, %4 : vector<512x32xf32>
    %cst_5 = arith.constant 2.000000e-01 : f32
    %6 = vector.broadcast %cst_5 : f32 to vector<512x32xf32>
    %7 = arith.mulf %6, %5 : vector<512x32xf32>
    %8 = arith.maximumf %5, %7 : vector<512x32xf32>
    %9 = arith.truncf %8 : vector<512x32xf32> to vector<512x32xbf16>
    %c0_6 = arith.constant 0 : index
    %c0_7 = arith.constant 0 : index
    %10 = vector.load %arg4[%c0_6, %c0_7] : memref<512x32xbf16, #tpu.memory_space<vmem>>, vector<512x32xbf16>
    tpu.vector_store %arg4[%c0_6, %c0_7], %9 {strides = array<i32>} : memref<512x32xbf16, #tpu.memory_space<vmem>>, vector<512x32xbf16>,
    return
  }
  func.func @transform_0(%arg0: i32) -> (i32, i32) {
    %c0_i32 = arith.constant 0 : i32
    %c0_i32_0 = arith.constant 0 : i32
    return %arg0, %c0_i32 : i32, i32
  }
  func.func @transform_1(%arg0: i32) -> (i32, i32) {
    %c0_i32 = arith.constant 0 : i32
    %c0_i32_0 = arith.constant 0 : i32
    %c0_i32_1 = arith.constant 0 : i32
    return %c0_i32, %c0_i32_0 : i32, i32
  }
  func.func @transform_2(%arg0: i32) -> (i32, i32) {
    %c0_i32 = arith.constant 0 : i32
    %c0_i32_0 = arith.constant 0 : i32
    %c0_i32_1 = arith.constant 0 : i32
    return %c0_i32, %c0_i32_0 : i32, i32
  }
  func.func @transform_3(%arg0: i32) -> (i32, i32) {
    %c0_i32 = arith.constant 0 : i32
    %c0_i32_0 = arith.constant 0 : i32
    return %arg0, %c0_i32 : i32, i32
  }
}

module attributes {stable_mosaic.version = 11 : i64} {
  func.func @_matmul_bias_act_kernel(%arg0: i32, %arg1: memref<128x512xbf16, #tpu.memory_space<vmem>>, %arg2: memref<512x64xbf16, #tpu.memory_space<vmem>>, %arg3: memref<1x64xf32, #tpu.memory_space<vmem>>, %arg4: memref<128x64xbf16, #tpu.memory_space<vmem>>) attributes {dimension_semantics = [#tpu.dimension_semantics<parallel>], iteration_bounds = array<i64: 1>, scalar_prefetch = 0 : i64, scratch_operands = 0 : i64, tpu.core_type = #tpu.core_type<tc>, window_params = [{transform_indices = @transform_0, window_bounds = array<i64: 128, 512>}, {pipeline_mode = #tpu.pipeline_mode<synchronous>, transform_indices = @transform_1, window_bounds = array<i64: 512, 64>}, {pipeline_mode = #tpu.pipeline_mode<synchronous>, transform_indices = @transform_2, window_bounds = array<i64: 1, 64>}, {transform_indices = @transform_3, window_bounds = array<i64: 128, 64>}]} {
    %c0 = arith.constant 0 : index
    %c0_0 = arith.constant 0 : index
    %0 = vector.load %arg1[%c0, %c0_0] : memref<128x512xbf16, #tpu.memory_space<vmem>>, vector<128x512xbf16>
    %c0_1 = arith.constant 0 : index
    %c0_2 = arith.constant 0 : index
    %1 = vector.load %arg2[%c0_1, %c0_2] : memref<512x64xbf16, #tpu.memory_space<vmem>>, vector<512x64xbf16>
    %cst = arith.constant dense<0.000000e+00> : vector<128x64xf32>
    %2 = tpu.matmul %0, %1, %cst {dimension_numbers = #tpu.dot_dimension_numbers<[1], [0], [0], [1], [0, 0, 1, 1], [], []>} : vector<128x512xbf16>, vector<512x64xbf16>, vector<128x64xf32> -> vector<128x64xf32>
    %c0_3 = arith.constant 0 : index
    %c0_4 = arith.constant 0 : index
    %3 = vector.load %arg3[%c0_3, %c0_4] : memref<1x64xf32, #tpu.memory_space<vmem>>, vector<1x64xf32>
    %4 = vector.broadcast %3 : vector<1x64xf32> to vector<128x64xf32>
    %5 = arith.addf %2, %4 : vector<128x64xf32>
    %cst_5 = arith.constant 2.000000e-01 : f32
    %6 = vector.broadcast %cst_5 : f32 to vector<128x64xf32>
    %7 = arith.mulf %6, %5 : vector<128x64xf32>
    %8 = arith.maximumf %5, %7 : vector<128x64xf32>
    %9 = arith.truncf %8 : vector<128x64xf32> to vector<128x64xbf16>
    %c0_6 = arith.constant 0 : index
    %c0_7 = arith.constant 0 : index
    %10 = vector.load %arg4[%c0_6, %c0_7] : memref<128x64xbf16, #tpu.memory_space<vmem>>, vector<128x64xbf16>
    tpu.vector_store %arg4[%c0_6, %c0_7], %9 {strides = array<i32>} : memref<128x64xbf16, #tpu.memory_space<vmem>>, vector<128x64xbf16>,
    return
  }
  func.func @transform_0(%arg0: i32) -> (i32, i32) {
    %c0_i32 = arith.constant 0 : i32
    %c0_i32_0 = arith.constant 0 : i32
    return %arg0, %c0_i32 : i32, i32
  }
  func.func @transform_1(%arg0: i32) -> (i32, i32) {
    %c0_i32 = arith.constant 0 : i32
    %c0_i32_0 = arith.constant 0 : i32
    %c0_i32_1 = arith.constant 0 : i32
    return %c0_i32, %c0_i32_0 : i32, i32
  }
  func.func @transform_2(%arg0: i32) -> (i32, i32) {
    %c0_i32 = arith.constant 0 : i32
    %c0_i32_0 = arith.constant 0 : i32
    %c0_i32_1 = arith.constant 0 : i32
    return %c0_i32, %c0_i32_0 : i32, i32
  }
  func.func @transform_3(%arg0: i32) -> (i32, i32) {
    %c0_i32 = arith.constant 0 : i32
    %c0_i32_0 = arith.constant 0 : i32
    return %arg0, %c0_i32 : i32, i32
  }
}

module attributes {stable_mosaic.version = 11 : i64} {
  func.func @_tail_kernel(%arg0: memref<128x1024xbf16, #tpu.memory_space<vmem>>, %arg1: memref<1024x128xbf16, #tpu.memory_space<vmem>>, %arg2: memref<1x128xf32, #tpu.memory_space<vmem>>, %arg3: memref<16x128x128xf32, #tpu.memory_space<vmem>>, %arg4: memref<1x128xf32, #tpu.memory_space<vmem>>, %arg5: memref<1x128xf32, #tpu.memory_space<vmem>>, %arg6: memref<1x128xf32, #tpu.memory_space<vmem>>, %arg7: memref<8x128xf32, #tpu.memory_space<vmem>>) attributes {dimension_semantics = [], scalar_prefetch = 0 : i64, scratch_operands = 0 : i64, tpu.core_type = #tpu.core_type<tc>} {
    %c0 = arith.constant 0 : index
    %c0_0 = arith.constant 0 : index
    %0 = vector.load %arg0[%c0, %c0_0] : memref<128x1024xbf16, #tpu.memory_space<vmem>>, vector<128x1024xbf16>
    %c0_1 = arith.constant 0 : index
    %c0_2 = arith.constant 0 : index
    %1 = vector.load %arg1[%c0_1, %c0_2] : memref<1024x128xbf16, #tpu.memory_space<vmem>>, vector<1024x128xbf16>
    %cst = arith.constant dense<0.000000e+00> : vector<128x128xf32>
    %2 = tpu.matmul %0, %1, %cst {dimension_numbers = #tpu.dot_dimension_numbers<[1], [0], [0], [1], [0, 0, 1, 1], [], []>} : vector<128x1024xbf16>, vector<1024x128xbf16>, vector<128x128xf32> -> vector<128x128xf32>
    %c0_3 = arith.constant 0 : index
    %c0_4 = arith.constant 0 : index
    %3 = vector.load %arg2[%c0_3, %c0_4] : memref<1x128xf32, #tpu.memory_space<vmem>>, vector<1x128xf32>
    %4 = vector.broadcast %3 : vector<1x128xf32> to vector<128x128xf32>
    %5 = arith.addf %2, %4 : vector<128x128xf32>
    %cst_5 = arith.constant 2.000000e-01 : f32
    %6 = vector.broadcast %cst_5 : f32 to vector<128x128xf32>
    %7 = arith.mulf %6, %5 : vector<128x128xf32>
    %8 = arith.maximumf %5, %7 : vector<128x128xf32>
    %cst_6 = arith.constant 0.000000e+00 : f32
    %9 = vector.broadcast %cst_6 : f32 to vector<8x128xf32>
    %10 = vector.extract_strided_slice %8 {offsets = [0, 0], sizes = [8, 128], strides = [1, 1]} : vector<128x128xf32> to vector<8x128xf32>
    %c0_7 = arith.constant 0 : index
    %c0_8 = arith.constant 0 : index
    %c0_9 = arith.constant 0 : index
    %11 = vector.load %arg3[%c0_7, %c0_8, %c0_9] : memref<16x128x128xf32, #tpu.memory_space<vmem>>, vector<1x128x128xf32>
    %12 = vector.shape_cast %11 : vector<1x128x128xf32> to vector<128x128xf32>
    %cst_10 = arith.constant dense<0.000000e+00> : vector<8x128xf32>
    %13 = tpu.matmul %10, %12, %cst_10 {dimension_numbers = #tpu.dot_dimension_numbers<[1], [0], [0], [1], [0, 0, 1, 1], [], []>} : vector<8x128xf32>, vector<128x128xf32>, vector<8x128xf32> -> vector<8x128xf32>
    %14 = arith.addf %9, %13 : vector<8x128xf32>
    %15 = vector.extract_strided_slice %8 {offsets = [8, 0], sizes = [8, 128], strides = [1, 1]} : vector<128x128xf32> to vector<8x128xf32>
    %c1 = arith.constant 1 : index
    %c0_11 = arith.constant 0 : index
    %c0_12 = arith.constant 0 : index
    %16 = vector.load %arg3[%c1, %c0_11, %c0_12] : memref<16x128x128xf32, #tpu.memory_space<vmem>>, vector<1x128x128xf32>
    %17 = vector.shape_cast %16 : vector<1x128x128xf32> to vector<128x128xf32>
    %cst_13 = arith.constant dense<0.000000e+00> : vector<8x128xf32>
    %18 = tpu.matmul %15, %17, %cst_13 {dimension_numbers = #tpu.dot_dimension_numbers<[1], [0], [0], [1], [0, 0, 1, 1], [], []>} : vector<8x128xf32>, vector<128x128xf32>, vector<8x128xf32> -> vector<8x128xf32>
    %19 = arith.addf %14, %18 : vector<8x128xf32>
    %20 = vector.extract_strided_slice %8 {offsets = [16, 0], sizes = [8, 128], strides = [1, 1]} : vector<128x128xf32> to vector<8x128xf32>
    %c2 = arith.constant 2 : index
    %c0_14 = arith.constant 0 : index
    %c0_15 = arith.constant 0 : index
    %21 = vector.load %arg3[%c2, %c0_14, %c0_15] : memref<16x128x128xf32, #tpu.memory_space<vmem>>, vector<1x128x128xf32>
    %22 = vector.shape_cast %21 : vector<1x128x128xf32> to vector<128x128xf32>
    %cst_16 = arith.constant dense<0.000000e+00> : vector<8x128xf32>
    %23 = tpu.matmul %20, %22, %cst_16 {dimension_numbers = #tpu.dot_dimension_numbers<[1], [0], [0], [1], [0, 0, 1, 1], [], []>} : vector<8x128xf32>, vector<128x128xf32>, vector<8x128xf32> -> vector<8x128xf32>
    %24 = arith.addf %19, %23 : vector<8x128xf32>
    %25 = vector.extract_strided_slice %8 {offsets = [24, 0], sizes = [8, 128], strides = [1, 1]} : vector<128x128xf32> to vector<8x128xf32>
    %c3 = arith.constant 3 : index
    %c0_17 = arith.constant 0 : index
    %c0_18 = arith.constant 0 : index
    %26 = vector.load %arg3[%c3, %c0_17, %c0_18] : memref<16x128x128xf32, #tpu.memory_space<vmem>>, vector<1x128x128xf32>
    %27 = vector.shape_cast %26 : vector<1x128x128xf32> to vector<128x128xf32>
    %cst_19 = arith.constant dense<0.000000e+00> : vector<8x128xf32>
    %28 = tpu.matmul %25, %27, %cst_19 {dimension_numbers = #tpu.dot_dimension_numbers<[1], [0], [0], [1], [0, 0, 1, 1], [], []>} : vector<8x128xf32>, vector<128x128xf32>, vector<8x128xf32> -> vector<8x128xf32>
    %29 = arith.addf %24, %28 : vector<8x128xf32>
    %30 = vector.extract_strided_slice %8 {offsets = [32, 0], sizes = [8, 128], strides = [1, 1]} : vector<128x128xf32> to vector<8x128xf32>
    %c4 = arith.constant 4 : index
    %c0_20 = arith.constant 0 : index
    %c0_21 = arith.constant 0 : index
    %31 = vector.load %arg3[%c4, %c0_20, %c0_21] : memref<16x128x128xf32, #tpu.memory_space<vmem>>, vector<1x128x128xf32>
    %32 = vector.shape_cast %31 : vector<1x128x128xf32> to vector<128x128xf32>
    %cst_22 = arith.constant dense<0.000000e+00> : vector<8x128xf32>
    %33 = tpu.matmul %30, %32, %cst_22 {dimension_numbers = #tpu.dot_dimension_numbers<[1], [0], [0], [1], [0, 0, 1, 1], [], []>} : vector<8x128xf32>, vector<128x128xf32>, vector<8x128xf32> -> vector<8x128xf32>
    %34 = arith.addf %29, %33 : vector<8x128xf32>
    %35 = vector.extract_strided_slice %8 {offsets = [40, 0], sizes = [8, 128], strides = [1, 1]} : vector<128x128xf32> to vector<8x128xf32>
    %c5 = arith.constant 5 : index
    %c0_23 = arith.constant 0 : index
    %c0_24 = arith.constant 0 : index
    %36 = vector.load %arg3[%c5, %c0_23, %c0_24] : memref<16x128x128xf32, #tpu.memory_space<vmem>>, vector<1x128x128xf32>
    %37 = vector.shape_cast %36 : vector<1x128x128xf32> to vector<128x128xf32>
    %cst_25 = arith.constant dense<0.000000e+00> : vector<8x128xf32>
    %38 = tpu.matmul %35, %37, %cst_25 {dimension_numbers = #tpu.dot_dimension_numbers<[1], [0], [0], [1], [0, 0, 1, 1], [], []>} : vector<8x128xf32>, vector<128x128xf32>, vector<8x128xf32> -> vector<8x128xf32>
    %39 = arith.addf %34, %38 : vector<8x128xf32>
    %40 = vector.extract_strided_slice %8 {offsets = [48, 0], sizes = [8, 128], strides = [1, 1]} : vector<128x128xf32> to vector<8x128xf32>
    %c6 = arith.constant 6 : index
    %c0_26 = arith.constant 0 : index
    %c0_27 = arith.constant 0 : index
    %41 = vector.load %arg3[%c6, %c0_26, %c0_27] : memref<16x128x128xf32, #tpu.memory_space<vmem>>, vector<1x128x128xf32>
    %42 = vector.shape_cast %41 : vector<1x128x128xf32> to vector<128x128xf32>
    %cst_28 = arith.constant dense<0.000000e+00> : vector<8x128xf32>
    %43 = tpu.matmul %40, %42, %cst_28 {dimension_numbers = #tpu.dot_dimension_numbers<[1], [0], [0], [1], [0, 0, 1, 1], [], []>} : vector<8x128xf32>, vector<128x128xf32>, vector<8x128xf32> -> vector<8x128xf32>
    %44 = arith.addf %39, %43 : vector<8x128xf32>
    %45 = vector.extract_strided_slice %8 {offsets = [56, 0], sizes = [8, 128], strides = [1, 1]} : vector<128x128xf32> to vector<8x128xf32>
    %c7 = arith.constant 7 : index
    %c0_29 = arith.constant 0 : index
    %c0_30 = arith.constant 0 : index
    %46 = vector.load %arg3[%c7, %c0_29, %c0_30] : memref<16x128x128xf32, #tpu.memory_space<vmem>>, vector<1x128x128xf32>
    %47 = vector.shape_cast %46 : vector<1x128x128xf32> to vector<128x128xf32>
    %cst_31 = arith.constant dense<0.000000e+00> : vector<8x128xf32>
    %48 = tpu.matmul %45, %47, %cst_31 {dimension_numbers = #tpu.dot_dimension_numbers<[1], [0], [0], [1], [0, 0, 1, 1], [], []>} : vector<8x128xf32>, vector<128x128xf32>, vector<8x128xf32> -> vector<8x128xf32>
    %49 = arith.addf %44, %48 : vector<8x128xf32>
    %50 = vector.extract_strided_slice %8 {offsets = [64, 0], sizes = [8, 128], strides = [1, 1]} : vector<128x128xf32> to vector<8x128xf32>
    %c8 = arith.constant 8 : index
    %c0_32 = arith.constant 0 : index
    %c0_33 = arith.constant 0 : index
    %51 = vector.load %arg3[%c8, %c0_32, %c0_33] : memref<16x128x128xf32, #tpu.memory_space<vmem>>, vector<1x128x128xf32>
    %52 = vector.shape_cast %51 : vector<1x128x128xf32> to vector<128x128xf32>
    %cst_34 = arith.constant dense<0.000000e+00> : vector<8x128xf32>
    %53 = tpu.matmul %50, %52, %cst_34 {dimension_numbers = #tpu.dot_dimension_numbers<[1], [0], [0], [1], [0, 0, 1, 1], [], []>} : vector<8x128xf32>, vector<128x128xf32>, vector<8x128xf32> -> vector<8x128xf32>
    %54 = arith.addf %49, %53 : vector<8x128xf32>
    %55 = vector.extract_strided_slice %8 {offsets = [72, 0], sizes = [8, 128], strides = [1, 1]} : vector<128x128xf32> to vector<8x128xf32>
    %c9 = arith.constant 9 : index
    %c0_35 = arith.constant 0 : index
    %c0_36 = arith.constant 0 : index
    %56 = vector.load %arg3[%c9, %c0_35, %c0_36] : memref<16x128x128xf32, #tpu.memory_space<vmem>>, vector<1x128x128xf32>
    %57 = vector.shape_cast %56 : vector<1x128x128xf32> to vector<128x128xf32>
    %cst_37 = arith.constant dense<0.000000e+00> : vector<8x128xf32>
    %58 = tpu.matmul %55, %57, %cst_37 {dimension_numbers = #tpu.dot_dimension_numbers<[1], [0], [0], [1], [0, 0, 1, 1], [], []>} : vector<8x128xf32>, vector<128x128xf32>, vector<8x128xf32> -> vector<8x128xf32>
    %59 = arith.addf %54, %58 : vector<8x128xf32>
    %60 = vector.extract_strided_slice %8 {offsets = [80, 0], sizes = [8, 128], strides = [1, 1]} : vector<128x128xf32> to vector<8x128xf32>
    %c10 = arith.constant 10 : index
    %c0_38 = arith.constant 0 : index
    %c0_39 = arith.constant 0 : index
    %61 = vector.load %arg3[%c10, %c0_38, %c0_39] : memref<16x128x128xf32, #tpu.memory_space<vmem>>, vector<1x128x128xf32>
    %62 = vector.shape_cast %61 : vector<1x128x128xf32> to vector<128x128xf32>
    %cst_40 = arith.constant dense<0.000000e+00> : vector<8x128xf32>
    %63 = tpu.matmul %60, %62, %cst_40 {dimension_numbers = #tpu.dot_dimension_numbers<[1], [0], [0], [1], [0, 0, 1, 1], [], []>} : vector<8x128xf32>, vector<128x128xf32>, vector<8x128xf32> -> vector<8x128xf32>
    %64 = arith.addf %59, %63 : vector<8x128xf32>
    %65 = vector.extract_strided_slice %8 {offsets = [88, 0], sizes = [8, 128], strides = [1, 1]} : vector<128x128xf32> to vector<8x128xf32>
    %c11 = arith.constant 11 : index
    %c0_41 = arith.constant 0 : index
    %c0_42 = arith.constant 0 : index
    %66 = vector.load %arg3[%c11, %c0_41, %c0_42] : memref<16x128x128xf32, #tpu.memory_space<vmem>>, vector<1x128x128xf32>
    %67 = vector.shape_cast %66 : vector<1x128x128xf32> to vector<128x128xf32>
    %cst_43 = arith.constant dense<0.000000e+00> : vector<8x128xf32>
    %68 = tpu.matmul %65, %67, %cst_43 {dimension_numbers = #tpu.dot_dimension_numbers<[1], [0], [0], [1], [0, 0, 1, 1], [], []>} : vector<8x128xf32>, vector<128x128xf32>, vector<8x128xf32> -> vector<8x128xf32>
    %69 = arith.addf %64, %68 : vector<8x128xf32>
    %70 = vector.extract_strided_slice %8 {offsets = [96, 0], sizes = [8, 128], strides = [1, 1]} : vector<128x128xf32> to vector<8x128xf32>
    %c12 = arith.constant 12 : index
    %c0_44 = arith.constant 0 : index
    %c0_45 = arith.constant 0 : index
    %71 = vector.load %arg3[%c12, %c0_44, %c0_45] : memref<16x128x128xf32, #tpu.memory_space<vmem>>, vector<1x128x128xf32>
    %72 = vector.shape_cast %71 : vector<1x128x128xf32> to vector<128x128xf32>
    %cst_46 = arith.constant dense<0.000000e+00> : vector<8x128xf32>
    %73 = tpu.matmul %70, %72, %cst_46 {dimension_numbers = #tpu.dot_dimension_numbers<[1], [0], [0], [1], [0, 0, 1, 1], [], []>} : vector<8x128xf32>, vector<128x128xf32>, vector<8x128xf32> -> vector<8x128xf32>
    %74 = arith.addf %69, %73 : vector<8x128xf32>
    %75 = vector.extract_strided_slice %8 {offsets = [104, 0], sizes = [8, 128], strides = [1, 1]} : vector<128x128xf32> to vector<8x128xf32>
    %c13 = arith.constant 13 : index
    %c0_47 = arith.constant 0 : index
    %c0_48 = arith.constant 0 : index
    %76 = vector.load %arg3[%c13, %c0_47, %c0_48] : memref<16x128x128xf32, #tpu.memory_space<vmem>>, vector<1x128x128xf32>
    %77 = vector.shape_cast %76 : vector<1x128x128xf32> to vector<128x128xf32>
    %cst_49 = arith.constant dense<0.000000e+00> : vector<8x128xf32>
    %78 = tpu.matmul %75, %77, %cst_49 {dimension_numbers = #tpu.dot_dimension_numbers<[1], [0], [0], [1], [0, 0, 1, 1], [], []>} : vector<8x128xf32>, vector<128x128xf32>, vector<8x128xf32> -> vector<8x128xf32>
    %79 = arith.addf %74, %78 : vector<8x128xf32>
    %80 = vector.extract_strided_slice %8 {offsets = [112, 0], sizes = [8, 128], strides = [1, 1]} : vector<128x128xf32> to vector<8x128xf32>
    %c14 = arith.constant 14 : index
    %c0_50 = arith.constant 0 : index
    %c0_51 = arith.constant 0 : index
    %81 = vector.load %arg3[%c14, %c0_50, %c0_51] : memref<16x128x128xf32, #tpu.memory_space<vmem>>, vector<1x128x128xf32>
    %82 = vector.shape_cast %81 : vector<1x128x128xf32> to vector<128x128xf32>
    %cst_52 = arith.constant dense<0.000000e+00> : vector<8x128xf32>
    %83 = tpu.matmul %80, %82, %cst_52 {dimension_numbers = #tpu.dot_dimension_numbers<[1], [0], [0], [1], [0, 0, 1, 1], [], []>} : vector<8x128xf32>, vector<128x128xf32>, vector<8x128xf32> -> vector<8x128xf32>
    %84 = arith.addf %79, %83 : vector<8x128xf32>
    %85 = vector.extract_strided_slice %8 {offsets = [120, 0], sizes = [8, 128], strides = [1, 1]} : vector<128x128xf32> to vector<8x128xf32>
    %c15 = arith.constant 15 : index
    %c0_53 = arith.constant 0 : index
    %c0_54 = arith.constant 0 : index
    %86 = vector.load %arg3[%c15, %c0_53, %c0_54] : memref<16x128x128xf32, #tpu.memory_space<vmem>>, vector<1x128x128xf32>
    %87 = vector.shape_cast %86 : vector<1x128x128xf32> to vector<128x128xf32>
    %cst_55 = arith.constant dense<0.000000e+00> : vector<8x128xf32>
    %88 = tpu.matmul %85, %87, %cst_55 {dimension_numbers = #tpu.dot_dimension_numbers<[1], [0], [0], [1], [0, 0, 1, 1], [], []>} : vector<8x128xf32>, vector<128x128xf32>, vector<8x128xf32> -> vector<8x128xf32>
    %89 = arith.addf %84, %88 : vector<8x128xf32>
    %c0_56 = arith.constant 0 : index
    %c0_57 = arith.constant 0 : index
    %90 = vector.load %arg4[%c0_56, %c0_57] : memref<1x128xf32, #tpu.memory_space<vmem>>, vector<1x128xf32>
    %91 = vector.broadcast %90 : vector<1x128xf32> to vector<8x128xf32>
    %92 = arith.addf %89, %91 : vector<8x128xf32>
    %cst_58 = arith.constant 2.000000e-01 : f32
    %93 = vector.broadcast %cst_58 : f32 to vector<8x128xf32>
    %94 = arith.mulf %93, %92 : vector<8x128xf32>
    %95 = arith.maximumf %92, %94 : vector<8x128xf32>
    %c0_59 = arith.constant 0 : index
    %c0_60 = arith.constant 0 : index
    %96 = vector.load %arg5[%c0_59, %c0_60] : memref<1x128xf32, #tpu.memory_space<vmem>>, vector<1x128xf32>
    %97 = vector.broadcast %96 : vector<1x128xf32> to vector<8x128xf32>
    %98 = arith.mulf %95, %97 : vector<8x128xf32>
    %c0_61 = arith.constant 0 : index
    %c0_62 = arith.constant 0 : index
    %99 = vector.load %arg6[%c0_61, %c0_62] : memref<1x128xf32, #tpu.memory_space<vmem>>, vector<1x128xf32>
    %100 = vector.broadcast %99 : vector<1x128xf32> to vector<8x128xf32>
    %101 = arith.addf %98, %100 : vector<8x128xf32>
    %c0_63 = arith.constant 0 : index
    %c0_64 = arith.constant 0 : index
    %102 = vector.load %arg7[%c0_63, %c0_64] : memref<8x128xf32, #tpu.memory_space<vmem>>, vector<8x128xf32>
    tpu.vector_store %arg7[%c0_63, %c0_64], %101 {strides = array<i32>} : memref<8x128xf32, #tpu.memory_space<vmem>>, vector<8x128xf32>,
    return
  }
}

</mosaic_0001>

<bundles_post_ra>
// kernel: celeba_encoder_forward.4
= control target key start
LH: loop header
LB: loop body
LE: loop exit
PB: predicated region body
PF: predicated region fallthrough
CT: control target
= control target key end

     0   :  { %vm3693_vm0 = vcmask 125952   ;;  %s6609_s1 = inlined_call_operand.vmem [shape: bf16[128,16], index: 1, kind: input, shape index: {}]   ;;  %s6610_s0 = inlined_call_operand.vmem [shape: bf16[2048,128], index: 0, kind: input, shape index: {}]   ;;  %s6611_s2 = inlined_call_operand.vmem [shape: bf16[2048,16], index: 2, kind: output, shape index: {}]  }
   0x1   :  { %v5026_v0 = vld [vmem:[%s6609_s1] sm:$0xff]   ;;  %v5027_v1 = vld [vmem:[%s6609_s1 + $0x8] sm:$0xff]   ;;  %v5028_v2 = vld [vmem:[%s6609_s1 + $0x10] sm:$0xff]  }
   0x2   :  { %4738 = vmatprep.subr.bf16.mxu0 %v5026_v0  ;;  %5010 = vmatprep.subr.bf16.mxu1 %v5026_v0  ;;  %v5029_v3 = vld [vmem:[%s6609_s1 + $0x18] sm:$0xff]   ;;  %v5034_v4 = vld [vmem:[%s6610_s0] sm:$0xff]   ;;  %v5031_v7 = vld [vmem:[%s6609_s1 + $0x28] sm:$0xff]  }
   0x3   :  { %4739 = vmatpush3.bf16.msra.mxu0 %v5026_v0  ;;  %5018 = vmatpush3.bf16.msra.mxu1 %v5026_v0  ;;  %v5035_v5 = vld [vmem:[%s6610_s0 + $0x200] sm:$0xff]   ;;  %v5032_v8 = vld [vmem:[%s6609_s1 + $0x30] sm:$0xff]   ;;  %v5033_v9 = vld [vmem:[%s6609_s1 + $0x38] sm:$0xff]  }
   0x4   :  { %4740 = vmatprep.subr.bf16.mxu0 %v5027_v1  ;;  %5011 = vmatprep.subr.bf16.mxu1 %v5027_v1  ;;  %v5030_v6 = vld [vmem:[%s6609_s1 + $0x20] sm:$0xff]   ;;  %v5036_v10 = vld [vmem:[%s6610_s0 + $0x8] sm:$0xff]   ;;  %v5038_v12 = vld [vmem:[%s6610_s0 + $0x10] sm:$0xff]  }
   0x5   :  { %4754 = vmatprep.mubr.bf16.mxu0 %v5034_v4  ;;  %4882 = vmatprep.mubr.bf16.mxu1 %v5035_v5  ;;  %v5037_v11 = vld [vmem:[%s6610_s0 + $0x208] sm:$0xff]   ;;  %v5039_v13 = vld [vmem:[%s6610_s0 + $0x210] sm:$0xff]   ;;  %v5040_v14 = vld [vmem:[%s6610_s0 + $0x18] sm:$0xff]  }
   0x6   :  { %v5041_v15 = vld [vmem:[%s6610_s0 + $0x218] sm:$0xff]   ;;  %v5042_v16 = vld [vmem:[%s6610_s0 + $0x20] sm:$0xff]   ;;  %v5044_v18 = vld [vmem:[%s6610_s0 + $0x28] sm:$0xff]  }
   0x7   :  { %4741 = vmatpush3.bf16.msra.mxu0 %v5027_v1  ;;  %5019 = vmatpush3.bf16.msra.mxu1 %v5027_v1  ;;  %v5043_v17 = vld [vmem:[%s6610_s0 + $0x220] sm:$0xff]   ;;  %v5045_v19 = vld [vmem:[%s6610_s0 + $0x228] sm:$0xff]   ;;  %v5046_v20 = vld [vmem:[%s6610_s0 + $0x30] sm:$0xff]  }
   0x8   :  { %4742 = vmatprep.subr.bf16.mxu0 %v5028_v2  ;;  %5012 = vmatprep.subr.bf16.mxu1 %v5028_v2  ;;  %v5047_v21 = vld [vmem:[%s6610_s0 + $0x230] sm:$0xff]   ;;  %v5048_v22 = vld [vmem:[%s6610_s0 + $0x38] sm:$0xff]   ;;  %v5050_v24 = vld [vmem:[%s6610_s0 + $0x40] sm:$0xff]  }
   0x9   :  { %v5049_v23 = vld [vmem:[%s6610_s0 + $0x238] sm:$0xff]   ;;  %v5051_v25 = vld [vmem:[%s6610_s0 + $0x240] sm:$0xff]   ;;  %v5052_v26 = vld [vmem:[%s6610_s0 + $0x48] sm:$0xff]  }
   0xa   :  { %v5053_v27 = vld [vmem:[%s6610_s0 + $0x248] sm:$0xff]   ;;  %v5054_v28 = vld [vmem:[%s6610_s0 + $0x50] sm:$0xff]   ;;  %v5056_v30 = vld [vmem:[%s6610_s0 + $0x58] sm:$0xff]  }
   0xb   :  { %4743 = vmatpush3.bf16.msra.mxu0 %v5028_v2  ;;  %5020 = vmatpush3.bf16.msra.mxu1 %v5028_v2  ;;  %v5055_v29 = vld [vmem:[%s6610_s0 + $0x250] sm:$0xff]   ;;  %v5057_v31 = vld [vmem:[%s6610_s0 + $0x258] sm:$0xff]   ;;  %v5058_v32 = vld [vmem:[%s6610_s0 + $0x60] sm:$0xff]  }
   0xc   :  { %4744 = vmatprep.subr.bf16.mxu0 %v5029_v3  ;;  %5013 = vmatprep.subr.bf16.mxu1 %v5029_v3  ;;  %v5059_v33 = vld [vmem:[%s6610_s0 + $0x260] sm:$0xff]   ;;  %v5060_v34 = vld [vmem:[%s6610_s0 + $0x68] sm:$0xff]   ;;  %v5062_v36 = vld [vmem:[%s6610_s0 + $0x70] sm:$0xff]  }
   0xd   :  { %v5061_v35 = vld [vmem:[%s6610_s0 + $0x268] sm:$0xff]   ;;  %v5063_v37 = vld [vmem:[%s6610_s0 + $0x270] sm:$0xff]   ;;  %v5064_v38 = vld [vmem:[%s6610_s0 + $0x78] sm:$0xff]  }
   0xe   :  { %v5065_v39 = vld [vmem:[%s6610_s0 + $0x278] sm:$0xff]   ;;  %v5066_v40 = vld [vmem:[%s6610_s0 + $0x80] sm:$0xff]   ;;  %v5068_v42 = vld [vmem:[%s6610_s0 + $0x88] sm:$0xff]  }
   0xf   :  { %4745 = vmatpush3.bf16.msra.mxu0 %v5029_v3  ;;  %5021 = vmatpush3.bf16.msra.mxu1 %v5029_v3  ;;  %v5067_v41 = vld [vmem:[%s6610_s0 + $0x280] sm:$0xff]   ;;  %v5069_v43 = vld [vmem:[%s6610_s0 + $0x288] sm:$0xff]   ;;  %v5070_v44 = vld [vmem:[%s6610_s0 + $0x90] sm:$0xff]  }
  0x10   :  { %4746 = vmatprep.subr.bf16.mxu0 %v5030_v6  ;;  %5014 = vmatprep.subr.bf16.mxu1 %v5030_v6  ;;  %v5071_v45 = vld [vmem:[%s6610_s0 + $0x290] sm:$0xff]   ;;  %v5072_v46 = vld [vmem:[%s6610_s0 + $0x98] sm:$0xff]   ;;  %v5074_v48 = vld [vmem:[%s6610_s0 + $0xa0] sm:$0xff]  }
  0x11   :  { %v5073_v47 = vld [vmem:[%s6610_s0 + $0x298] sm:$0xff]   ;;  %v5075_v49 = vld [vmem:[%s6610_s0 + $0x2a0] sm:$0xff]   ;;  %v5076_v50 = vld [vmem:[%s6610_s0 + $0xa8] sm:$0xff]  }
  0x12   :  { %v5077_v51 = vld [vmem:[%s6610_s0 + $0x2a8] sm:$0xff]   ;;  %v5078_v52 = vld [vmem:[%s6610_s0 + $0xb0] sm:$0xff]   ;;  %v5080_v54 = vld [vmem:[%s6610_s0 + $0xb8] sm:$0xff]  }
  0x13   :  { %4747 = vmatpush3.bf16.msra.mxu0 %v5030_v6  ;;  %5022 = vmatpush3.bf16.msra.mxu1 %v5030_v6  ;;  %v5079_v53 = vld [vmem:[%s6610_s0 + $0x2b0] sm:$0xff]   ;;  %v5081_v55 = vld [vmem:[%s6610_s0 + $0x2b8] sm:$0xff]   ;;  %v5082_v56 = vld [vmem:[%s6610_s0 + $0xc0] sm:$0xff]  }
  0x14   :  { %4748 = vmatprep.subr.bf16.mxu0 %v5031_v7  ;;  %5015 = vmatprep.subr.bf16.mxu1 %v5031_v7  ;;  %v5083_v57 = vld [vmem:[%s6610_s0 + $0x2c0] sm:$0xff]   ;;  %v5084_v58 = vld [vmem:[%s6610_s0 + $0xc8] sm:$0xff]   ;;  %v5086_v60 = vld [vmem:[%s6610_s0 + $0xd0] sm:$0xff]  }
  0x15   :  { %v5085_v59 = vld [vmem:[%s6610_s0 + $0x2c8] sm:$0xff]   ;;  %v5087_v61 = vld [vmem:[%s6610_s0 + $0x2d0] sm:$0xff]   ;;  %v5088_v62 = vld [vmem:[%s6610_s0 + $0xd8] sm:$0xff]  }
  0x16   :  { %v5089_v63 = vld [vmem:[%s6610_s0 + $0x2d8] sm:$0xff]   ;;  %v5090_v0 = vld [vmem:[%s6610_s0 + $0xe0] sm:$0xff]   ;;  %v5092_v2 = vld [vmem:[%s6610_s0 + $0xe8] sm:$0xff]  }
  0x17   :  { %4749 = vmatpush3.bf16.msra.mxu0 %v5031_v7  ;;  %5023 = vmatpush3.bf16.msra.mxu1 %v5031_v7  ;;  %v5091_v1 = vld [vmem:[%s6610_s0 + $0x2e0] sm:$0xff]   ;;  %v5093_v3 = vld [vmem:[%s6610_s0 + $0x2e8] sm:$0xff]   ;;  %v5094_v4 = vld [vmem:[%s6610_s0 + $0xf0] sm:$0xff]  }
  0x18   :  { %4750 = vmatprep.subr.bf16.mxu0 %v5032_v8  ;;  %5016 = vmatprep.subr.bf16.mxu1 %v5032_v8  ;;  %v5095_v5 = vld [vmem:[%s6610_s0 + $0x2f0] sm:$0xff]   ;;  %v5096_v6 = vld [vmem:[%s6610_s0 + $0xf8] sm:$0xff]  }
  0x19   :  { %v5097_v7 = vld [vmem:[%s6610_s0 + $0x2f8] sm:$0xff]  }
  0x1b   :  { %4751 = vmatpush3.bf16.msra.mxu0 %v5032_v8  ;;  %5024 = vmatpush3.bf16.msra.mxu1 %v5032_v8  ;;  %v5098_v8 = vld [vmem:[%s6610_s0 + $0x100] sm:$0xff]  }
  0x1c   :  { %4752 = vmatprep.subr.bf16.mxu0 %v5033_v9  ;;  %5017 = vmatprep.subr.bf16.mxu1 %v5033_v9 }
  0x1f   :  { %4753 = vmatpush3.bf16.msra.mxu0 %v5033_v9  ;;  %5025 = vmatpush3.bf16.msra.mxu1 %v5033_v9  ;;  %v5099_v9 = vld [vmem:[%s6610_s0 + $0x300] sm:$0xff]  }
  0x22   :  { %4755 = vmatmul.mubr.bf16.vlgmr.msra.gmra.mrb[0].mxu0 %v5036_v10  ;;  %4883 = vmatmul.mubr.bf16.vlgmr.msra.gmra.mrb[0].mxu1 %v5037_v11  ;;  %v5100_v10 = vld [vmem:[%s6610_s0 + $0x108] sm:$0xff]  }
  0x23   :  { %4758 = vmatprep.mubr.bf16.mxu0 %v5038_v12  ;;  %4886 = vmatprep.mubr.bf16.mxu1 %v5039_v13  ;;  %v5101_v11 = vld [vmem:[%s6610_s0 + $0x308] sm:$0xff]   ;;  %v5102_v12 = vld [vmem:[%s6610_s0 + $0x110] sm:$0xff]  }
  0x24   :  { %v5103_v13 = vld [vmem:[%s6610_s0 + $0x310] sm:$0xff]  }
  0x2a   :  { %4759 = vmatmul.mubr.bf16.gmra.mrb[4].mxu0 %v5040_v14  ;;  %4887 = vmatmul.mubr.bf16.gmra.mrb[4].mxu1 %v5041_v15  ;;  %v5104_v14 = vld [vmem:[%s6610_s0 + $0x118] sm:$0xff]  }
  0x2b   :  { %4762 = vmatprep.mubr.bf16.mxu0 %v5042_v16  ;;  %4890 = vmatprep.mubr.bf16.mxu1 %v5043_v17  ;;  %v5105_v15 = vld [vmem:[%s6610_s0 + $0x318] sm:$0xff]   ;;  %v5106_v16 = vld [vmem:[%s6610_s0 + $0x120] sm:$0xff]  }
  0x2c   :  { %v5107_v17 = vld [vmem:[%s6610_s0 + $0x320] sm:$0xff]  }
  0x32   :  { %4763 = vmatmul.mubr.bf16.gmra.mrb[8].mxu0 %v5044_v18  ;;  %4891 = vmatmul.mubr.bf16.gmra.mrb[8].mxu1 %v5045_v19  ;;  %v5108_v18 = vld [vmem:[%s6610_s0 + $0x128] sm:$0xff]  }
  0x33   :  { %4766 = vmatprep.mubr.bf16.mxu0 %v5046_v20  ;;  %4894 = vmatprep.mubr.bf16.mxu1 %v5047_v21  ;;  %v5109_v19 = vld [vmem:[%s6610_s0 + $0x328] sm:$0xff]   ;;  %v5110_v20 = vld [vmem:[%s6610_s0 + $0x130] sm:$0xff]  }
  0x34   :  { %v5111_v21 = vld [vmem:[%s6610_s0 + $0x330] sm:$0xff]  }
  0x3a   :  { %4767 = vmatmul.mubr.bf16.gmra.mrb[12].mxu0 %v5048_v22  ;;  %4895 = vmatmul.mubr.bf16.gmra.mrb[12].mxu1 %v5049_v23  ;;  %v5112_v22 = vld [vmem:[%s6610_s0 + $0x138] sm:$0xff]  }
  0x3b   :  { %4770 = vmatprep.mubr.bf16.mxu0 %v5050_v24  ;;  %4898 = vmatprep.mubr.bf16.mxu1 %v5051_v25  ;;  %v5113_v23 = vld [vmem:[%s6610_s0 + $0x338] sm:$0xff]   ;;  %v5114_v24 = vld [vmem:[%s6610_s0 + $0x140] sm:$0xff]  }
  0x3c   :  { %v5115_v25 = vld [vmem:[%s6610_s0 + $0x340] sm:$0xff]  }
  0x42   :  { %4771 = vmatmul.mubr.bf16.gmra.mrb[16].mxu0 %v5052_v26  ;;  %4899 = vmatmul.mubr.bf16.gmra.mrb[16].mxu1 %v5053_v27  ;;  %v5116_v26 = vld [vmem:[%s6610_s0 + $0x148] sm:$0xff]  }
  0x43   :  { %4774 = vmatprep.mubr.bf16.mxu0 %v5054_v28  ;;  %4902 = vmatprep.mubr.bf16.mxu1 %v5055_v29  ;;  %v5117_v27 = vld [vmem:[%s6610_s0 + $0x348] sm:$0xff]   ;;  %v5118_v28 = vld [vmem:[%s6610_s0 + $0x150] sm:$0xff]  }
  0x44   :  { %v5119_v29 = vld [vmem:[%s6610_s0 + $0x350] sm:$0xff]  }
  0x4a   :  { %4775 = vmatmul.mubr.bf16.gmra.mrb[20].mxu0 %v5056_v30  ;;  %4903 = vmatmul.mubr.bf16.gmra.mrb[20].mxu1 %v5057_v31  ;;  %v5120_v30 = vld [vmem:[%s6610_s0 + $0x158] sm:$0xff]  }
  0x4b   :  { %4778 = vmatprep.mubr.bf16.mxu0 %v5058_v32  ;;  %4906 = vmatprep.mubr.bf16.mxu1 %v5059_v33  ;;  %v5121_v31 = vld [vmem:[%s6610_s0 + $0x358] sm:$0xff]   ;;  %v5122_v32 = vld [vmem:[%s6610_s0 + $0x160] sm:$0xff]  }
  0x4c   :  { %v5123_v33 = vld [vmem:[%s6610_s0 + $0x360] sm:$0xff]  }
  0x52   :  { %4779 = vmatmul.mubr.bf16.gmra.mrb[24].mxu0 %v5060_v34  ;;  %4907 = vmatmul.mubr.bf16.gmra.mrb[24].mxu1 %v5061_v35  ;;  %v5124_v34 = vld [vmem:[%s6610_s0 + $0x168] sm:$0xff]  }
  0x53   :  { %4782 = vmatprep.mubr.bf16.mxu0 %v5062_v36  ;;  %4910 = vmatprep.mubr.bf16.mxu1 %v5063_v37  ;;  %v5125_v35 = vld [vmem:[%s6610_s0 + $0x368] sm:$0xff]   ;;  %v5126_v36 = vld [vmem:[%s6610_s0 + $0x170] sm:$0xff]  }
  0x54   :  { %v5127_v37 = vld [vmem:[%s6610_s0 + $0x370] sm:$0xff]  }
  0x5a   :  { %4783 = vmatmul.mubr.bf16.gmra.mrb[28].mxu0 %v5064_v38  ;;  %4911 = vmatmul.mubr.bf16.gmra.mrb[28].mxu1 %v5065_v39  ;;  %v5128_v38 = vld [vmem:[%s6610_s0 + $0x178] sm:$0xff]  }
  0x5b   :  { %4786 = vmatprep.mubr.bf16.mxu0 %v5066_v40  ;;  %4914 = vmatprep.mubr.bf16.mxu1 %v5067_v41  ;;  %v5129_v39 = vld [vmem:[%s6610_s0 + $0x378] sm:$0xff]   ;;  %v5130_v40 = vld [vmem:[%s6610_s0 + $0x180] sm:$0xff]  }
  0x5c   :  { %v5131_v41 = vld [vmem:[%s6610_s0 + $0x380] sm:$0xff]  }
  0x62   :  { %4787 = vmatmul.mubr.bf16.gmra.mrb[32].mxu0 %v5068_v42  ;;  %4915 = vmatmul.mubr.bf16.gmra.mrb[32].mxu1 %v5069_v43  ;;  %v5132_v42 = vld [vmem:[%s6610_s0 + $0x188] sm:$0xff]  }
  0x63   :  { %4790 = vmatprep.mubr.bf16.mxu0 %v5070_v44  ;;  %4918 = vmatprep.mubr.bf16.mxu1 %v5071_v45  ;;  %v5133_v43 = vld [vmem:[%s6610_s0 + $0x388] sm:$0xff]   ;;  %v5134_v44 = vld [vmem:[%s6610_s0 + $0x190] sm:$0xff]  }
  0x64   :  { %v5135_v45 = vld [vmem:[%s6610_s0 + $0x390] sm:$0xff]  }
  0x6a   :  { %4791 = vmatmul.mubr.bf16.gmra.mrb[36].mxu0 %v5072_v46  ;;  %4919 = vmatmul.mubr.bf16.gmra.mrb[36].mxu1 %v5073_v47  ;;  %v5136_v46 = vld [vmem:[%s6610_s0 + $0x198] sm:$0xff]  }
  0x6b   :  { %4794 = vmatprep.mubr.bf16.mxu0 %v5074_v48  ;;  %4922 = vmatprep.mubr.bf16.mxu1 %v5075_v49  ;;  %v5137_v47 = vld [vmem:[%s6610_s0 + $0x398] sm:$0xff]   ;;  %v5138_v48 = vld [vmem:[%s6610_s0 + $0x1a0] sm:$0xff]  }
  0x6c   :  { %v5139_v49 = vld [vmem:[%s6610_s0 + $0x3a0] sm:$0xff]  }
  0x72   :  { %4795 = vmatmul.mubr.bf16.gmra.mrb[40].mxu0 %v5076_v50  ;;  %4923 = vmatmul.mubr.bf16.gmra.mrb[40].mxu1 %v5077_v51  ;;  %v5140_v50 = vld [vmem:[%s6610_s0 + $0x1a8] sm:$0xff]  }
  0x73   :  { %4798 = vmatprep.mubr.bf16.mxu0 %v5078_v52  ;;  %4926 = vmatprep.mubr.bf16.mxu1 %v5079_v53  ;;  %v5141_v51 = vld [vmem:[%s6610_s0 + $0x3a8] sm:$0xff]   ;;  %v5142_v52 = vld [vmem:[%s6610_s0 + $0x1b0] sm:$0xff]  }
  0x74   :  { %v5143_v53 = vld [vmem:[%s6610_s0 + $0x3b0] sm:$0xff]  }
  0x7a   :  { %4799 = vmatmul.mubr.bf16.gmra.mrb[44].mxu0 %v5080_v54  ;;  %4927 = vmatmul.mubr.bf16.gmra.mrb[44].mxu1 %v5081_v55 }
  0x7b   :  { %4802 = vmatprep.mubr.bf16.mxu0 %v5082_v56  ;;  %4930 = vmatprep.mubr.bf16.mxu1 %v5083_v57  ;;  %v5144_v56 = vld [vmem:[%s6610_s0 + $0x1b8] sm:$0xff]  }
  0x7c   :  { %v5145_v57 = vld [vmem:[%s6610_s0 + $0x3b8] sm:$0xff]  }
  0x82   :  { %4803 = vmatmul.mubr.bf16.gmra.mrb[48].mxu0 %v5084_v58  ;;  %4931 = vmatmul.mubr.bf16.gmra.mrb[48].mxu1 %v5085_v59 }
  0x83   :  { %4806 = vmatprep.mubr.bf16.mxu0 %v5086_v60  ;;  %4934 = vmatprep.mubr.bf16.mxu1 %v5087_v61 }
  0x8a   :  { %4807 = vmatmul.mubr.bf16.gmra.mrb[52].mxu0 %v5088_v62  ;;  %4935 = vmatmul.mubr.bf16.gmra.mrb[52].mxu1 %v5089_v63  ;;  %v5146_v62 = vld [vmem:[%s6610_s0 + $0x1c0] sm:$0xff]  }
  0x8b   :  { %4810 = vmatprep.mubr.bf16.mxu0 %v5090_v0  ;;  %4938 = vmatprep.mubr.bf16.mxu1 %v5091_v1  ;;  %v5147_v63 = vld [vmem:[%s6610_s0 + $0x3c0] sm:$0xff]  }
  0x92   :  { %4811 = vmatmul.mubr.bf16.gmra.mrb[56].mxu0 %v5092_v2  ;;  %4939 = vmatmul.mubr.bf16.gmra.mrb[56].mxu1 %v5093_v3 }
  0x93   :  { %4814 = vmatprep.mubr.bf16.mxu0 %v5094_v4  ;;  %4942 = vmatprep.mubr.bf16.mxu1 %v5095_v5 }
  0x9a   :  { %4815 = vmatmul.mubr.bf16.gmra.mrb[60].mxu0 %v5096_v6  ;;  %4943 = vmatmul.mubr.bf16.gmra.mrb[60].mxu1 %v5097_v7 }
  0x9b   :  { %4818 = vmatprep.mubr.bf16.mxu0 %v5098_v8  ;;  %4946 = vmatprep.mubr.bf16.mxu1 %v5099_v9 }
  0xa2   :  { %4819 = vmatmul.mubr.bf16.gmra.mrb[64].mxu0 %v5100_v10  ;;  %4947 = vmatmul.mubr.bf16.gmra.mrb[64].mxu1 %v5101_v11 }
  0xa3   :  { %4822 = vmatprep.mubr.bf16.mxu0 %v5102_v12  ;;  %4950 = vmatprep.mubr.bf16.mxu1 %v5103_v13 }
  0xaa   :  { %4823 = vmatmul.mubr.bf16.gmra.mrb[68].mxu0 %v5104_v14  ;;  %4951 = vmatmul.mubr.bf16.gmra.mrb[68].mxu1 %v5105_v15 }
  0xab   :  { %4826 = vmatprep.mubr.bf16.mxu0 %v5106_v16  ;;  %4954 = vmatprep.mubr.bf16.mxu1 %v5107_v17 }
  0xb2   :  { %4827 = vmatmul.mubr.bf16.gmra.mrb[72].mxu0 %v5108_v18  ;;  %4955 = vmatmul.mubr.bf16.gmra.mrb[72].mxu1 %v5109_v19 }
  0xb3   :  { %4830 = vmatprep.mubr.bf16.mxu0 %v5110_v20  ;;  %4958 = vmatprep.mubr.bf16.mxu1 %v5111_v21 }
  0xba   :  { %4831 = vmatmul.mubr.bf16.gmra.mrb[76].mxu0 %v5112_v22  ;;  %4959 = vmatmul.mubr.bf16.gmra.mrb[76].mxu1 %v5113_v23 }
  0xbb   :  { %4834 = vmatprep.mubr.bf16.mxu0 %v5114_v24  ;;  %4962 = vmatprep.mubr.bf16.mxu1 %v5115_v25 }
  0xc2   :  { %4835 = vmatmul.mubr.bf16.gmra.mrb[80].mxu0 %v5116_v26  ;;  %4963 = vmatmul.mubr.bf16.gmra.mrb[80].mxu1 %v5117_v27 }
  0xc3   :  { %4838 = vmatprep.mubr.bf16.mxu0 %v5118_v28  ;;  %4966 = vmatprep.mubr.bf16.mxu1 %v5119_v29  ;;  %v5148_v28 = vld [vmem:[%s6610_s0 + $0x1c8] sm:$0xff]  }
  0xc4   :  { %v5149_v29 = vld [vmem:[%s6610_s0 + $0x3c8] sm:$0xff]  }
  0xca   :  { %4839 = vmatmul.mubr.bf16.gmra.mrb[84].mxu0 %v5120_v30  ;;  %4967 = vmatmul.mubr.bf16.gmra.mrb[84].mxu1 %v5121_v31 }
  0xcb   :  { %4842 = vmatprep.mubr.bf16.mxu0 %v5122_v32  ;;  %4970 = vmatprep.mubr.bf16.mxu1 %v5123_v33 }
  0xd2   :  { %4843 = vmatmul.mubr.bf16.gmra.mrb[88].mxu0 %v5124_v34  ;;  %4971 = vmatmul.mubr.bf16.gmra.mrb[88].mxu1 %v5125_v35  ;;  %v5150_v34 = vld [vmem:[%s6610_s0 + $0x1d0] sm:$0xff]  }
  0xd3   :  { %4846 = vmatprep.mubr.bf16.mxu0 %v5126_v36  ;;  %4974 = vmatprep.mubr.bf16.mxu1 %v5127_v37  ;;  %v5151_v35 = vld [vmem:[%s6610_s0 + $0x3d0] sm:$0xff]  }
  0xda   :  { %4847 = vmatmul.mubr.bf16.gmra.mrb[92].mxu0 %v5128_v38  ;;  %4975 = vmatmul.mubr.bf16.gmra.mrb[92].mxu1 %v5129_v39 }
  0xdb   :  { %4850 = vmatprep.mubr.bf16.mxu0 %v5130_v40  ;;  %4978 = vmatprep.mubr.bf16.mxu1 %v5131_v41 }
  0xe2   :  { %4851 = vmatmul.mubr.bf16.gmra.mrb[96].mxu0 %v5132_v42  ;;  %4979 = vmatmul.mubr.bf16.gmra.mrb[96].mxu1 %v5133_v43 }
  0xe3   :  { %4854 = vmatprep.mubr.bf16.mxu0 %v5134_v44  ;;  %4982 = vmatprep.mubr.bf16.mxu1 %v5135_v45 }
  0xea   :  { %4855 = vmatmul.mubr.bf16.gmra.mrb[100].mxu0 %v5136_v46  ;;  %4983 = vmatmul.mubr.bf16.gmra.mrb[100].mxu1 %v5137_v47 }
  0xeb   :  { %4858 = vmatprep.mubr.bf16.mxu0 %v5138_v48  ;;  %4986 = vmatprep.mubr.bf16.mxu1 %v5139_v49 }
  0xf2   :  { %4859 = vmatmul.mubr.bf16.gmra.mrb[104].mxu0 %v5140_v50  ;;  %4987 = vmatmul.mubr.bf16.gmra.mrb[104].mxu1 %v5141_v51 }
  0xf3   :  { %4862 = vmatprep.mubr.bf16.mxu0 %v5142_v52  ;;  %4990 = vmatprep.mubr.bf16.mxu1 %v5143_v53 }
  0xf5   :  { %v4756_v54 = vpop.f32.mrb[0].mxu0  ;;  %v4884_v55 = vpop.f32.mrb[0].mxu1 }
  0xf6   :  { %v2159_v58 = vmul.f32 0.2, %v4756_v54  ;;  %v2287_v59 = vmul.f32 0.2, %v4884_v55  ;;  %v1134_v60 = vpop.f32.mrb[1].mxu0  ;;  %v1646_v61 = vpop.f32.mrb[1].mxu1 }
  0xf7   :  { %v2157_v0 = vmul.f32 0.2, %v1134_v60  ;;  %v2285_v1 = vmul.f32 0.2, %v1646_v61  ;;  %v4757_v2 = vpop.f32.mrb[2].mxu0  ;;  %v4885_v3 = vpop.f32.mrb[2].mxu1 }
  0xf8   :  { %v2415_v4 = vmax.f32 %v4756_v54, %v2159_v58  ;;  %v2543_v5 = vmax.f32 %v4884_v55, %v2287_v59  ;;  %v2160_v6 = vmul.f32 0.2, %v4757_v2  ;;  %v2288_v7 = vmul.f32 0.2, %v4885_v3  ;;  %v1137_v8 = vpop.f32.mrb[3].mxu0  ;;  %v1649_v9 = vpop.f32.mrb[3].mxu1 }
  0xf9   :  { %v2413_v10 = vmax.f32 %v1134_v60, %v2157_v0  ;;  %v2541_v11 = vmax.f32 %v1646_v61, %v2285_v1  ;;  %v2158_v12 = vmul.f32 0.2, %v1137_v8  ;;  %v2286_v13 = vmul.f32 0.2, %v1649_v9  ;;  %v5152_v0 = vld [vmem:[%s6610_s0 + $0x1d8] sm:$0xff]  }
  0xfa   :  { %v4348_v14 = vpack.c.bf16 %v2415_v4, %v2415_v4  ;;  %v4476_v15 = vpack.c.bf16 %v2543_v5, %v2543_v5  ;;  %v2416_v16 = vmax.f32 %v4757_v2, %v2160_v6  ;;  %v2544_v17 = vmax.f32 %v4885_v3, %v2288_v7  ;;  %4863 = vmatmul.mubr.bf16.gmra.mrb[108].mxu0 %v5144_v56  ;;  %v5153_v1 = vld [vmem:[%s6610_s0 + $0x3d8] sm:$0xff]   ;;  %v5154_v6 = vld [vmem:[%s6610_s0 + $0x1e0] sm:$0xff]  }
  0xfb   :  { %v4346_v18 = vpack.c.bf16 %v2413_v10, %v2413_v10  ;;  %v4474_v19 = vpack.c.bf16 %v2541_v11, %v2541_v11  ;;  %v2414_v20 = vmax.f32 %v1137_v8, %v2158_v12  ;;  %v2542_v21 = vmax.f32 %v1649_v9, %v2286_v13  ;;  %4991 = vmatmul.mubr.bf16.gmra.mrb[108].mxu1 %v5145_v57  ;;  %v5155_v7 = vld [vmem:[%s6610_s0 + $0x3e0] sm:$0xff]  }
  0xfc   :  { %3696 = vst.msk [vmem:[%s6611_s2 + $0x8] sm:$0xf] %vm3693_vm0, %v4348_v14  ;;  %3824 = vst.msk [vmem:[%s6611_s2 + $0x208] sm:$0xf] %vm3693_vm0, %v4476_v15  ;;  %v4349_v22 = vpack.c.bf16 %v2416_v16, %v2416_v16  ;;  %v4477_v23 = vpack.c.bf16 %v2544_v17, %v2544_v17  ;;  %4866 = vmatprep.mubr.bf16.mxu0 %v5146_v62  ;;  %4994 = vmatprep.mubr.bf16.mxu1 %v5147_v63 }
  0xfd   :  { %3694 = vst.msk [vmem:[%s6611_s2] sm:$0xf] %vm3693_vm0, %v4346_v18  ;;  %3822 = vst.msk [vmem:[%s6611_s2 + $0x200] sm:$0xf] %vm3693_vm0, %v4474_v19  ;;  %v4347_v24 = vpack.c.bf16 %v2414_v20, %v2414_v20  ;;  %v4475_v25 = vpack.c.bf16 %v2542_v21, %v2542_v21  ;;  %v4760_v26 = vpop.f32.mrb[4].mxu0  ;;  %v4888_v27 = vpop.f32.mrb[4].mxu1 }
  0xfe   :  { %3697 = vst.msk [vmem:[%s6611_s2 + $0xc] sm:$0xf] %vm3693_vm0, %v4349_v22  ;;  %3825 = vst.msk [vmem:[%s6611_s2 + $0x20c] sm:$0xf] %vm3693_vm0, %v4477_v23  ;;  %v2163_v30 = vmul.f32 0.2, %v4760_v26 }
  0xff   :  { %v2291_v31 = vmul.f32 0.2, %v4888_v27  ;;  %v1150_v32 = vpop.f32.mrb[5].mxu0  ;;  %v1662_v33 = vpop.f32.mrb[5].mxu1  ;;  %3695 = vst.msk [vmem:[%s6611_s2 + $0x4] sm:$0xf] %vm3693_vm0, %v4347_v24 }
 0x100   :  { %3823 = vst.msk [vmem:[%s6611_s2 + $0x204] sm:$0xf] %vm3693_vm0, %v4475_v25  ;;  %v2161_v36 = vmul.f32 0.2, %v1150_v32  ;;  %v2289_v37 = vmul.f32 0.2, %v1662_v33  ;;  %v2419_v40 = vmax.f32 %v4760_v26, %v2163_v30 }
 0x101   :  { %v4761_v38 = vpop.f32.mrb[6].mxu0  ;;  %v4889_v39 = vpop.f32.mrb[6].mxu1  ;;  %v2547_v41 = vmax.f32 %v4888_v27, %v2291_v31 }
 0x102   :  { %v2164_v42 = vmul.f32 0.2, %v4761_v38  ;;  %v2292_v43 = vmul.f32 0.2, %v4889_v39  ;;  %v1153_v44 = vpop.f32.mrb[7].mxu0  ;;  %v1665_v45 = vpop.f32.mrb[7].mxu1  ;;  %v2417_v46 = vmax.f32 %v1150_v32, %v2161_v36  ;;  %v2545_v47 = vmax.f32 %v1662_v33, %v2289_v37  ;;  %4867 = vmatmul.mubr.bf16.gmra.mrb[112].mxu0 %v5148_v28 }
 0x103   :  { %v2162_v48 = vmul.f32 0.2, %v1153_v44  ;;  %v2290_v49 = vmul.f32 0.2, %v1665_v45  ;;  %v4352_v50 = vpack.c.bf16 %v2419_v40, %v2419_v40  ;;  %v4480_v51 = vpack.c.bf16 %v2547_v41, %v2547_v41  ;;  %4995 = vmatmul.mubr.bf16.gmra.mrb[112].mxu1 %v5149_v29  ;;  %4870 = vmatprep.mubr.bf16.mxu0 %v5150_v34  ;;  %v5156_v36 = vld [vmem:[%s6610_s0 + $0x1e8] sm:$0xff]  }
 0x104   :  { %v2420_v52 = vmax.f32 %v4761_v38, %v2164_v42  ;;  %v2548_v53 = vmax.f32 %v4889_v39, %v2292_v43  ;;  %v4350_v54 = vpack.c.bf16 %v2417_v46, %v2417_v46  ;;  %v4478_v55 = vpack.c.bf16 %v2545_v47, %v2545_v47  ;;  %4998 = vmatprep.mubr.bf16.mxu1 %v5151_v35  ;;  %v5157_v37 = vld [vmem:[%s6610_s0 + $0x3e8] sm:$0xff]   ;;  %v5158_v42 = vld [vmem:[%s6610_s0 + $0x1f0] sm:$0xff]  }
 0x105   :  { %v2418_v56 = vmax.f32 %v1153_v44, %v2162_v48  ;;  %v2546_v57 = vmax.f32 %v1665_v45, %v2290_v49  ;;  %3700 = vst.msk [vmem:[%s6611_s2 + $0x18] sm:$0xf] %vm3693_vm0, %v4352_v50  ;;  %3828 = vst.msk [vmem:[%s6611_s2 + $0x218] sm:$0xf] %vm3693_vm0, %v4480_v51  ;;  %v4764_v62 = vpop.f32.mrb[8].mxu0  ;;  %v4892_v63 = vpop.f32.mrb[8].mxu1 }
 0x106   :  { %v4353_v58 = vpack.c.bf16 %v2420_v52, %v2420_v52  ;;  %v4481_v59 = vpack.c.bf16 %v2548_v53, %v2548_v53  ;;  %3698 = vst.msk [vmem:[%s6611_s2 + $0x10] sm:$0xf] %vm3693_vm0, %v4350_v54  ;;  %3826 = vst.msk [vmem:[%s6611_s2 + $0x210] sm:$0xf] %vm3693_vm0, %v4478_v55  ;;  %v2167_v2 = vmul.f32 0.2, %v4764_v62 }
 0x107   :  { %v4351_v60 = vpack.c.bf16 %v2418_v56, %v2418_v56  ;;  %v4479_v61 = vpack.c.bf16 %v2546_v57, %v2546_v57  ;;  %v2295_v3 = vmul.f32 0.2, %v4892_v63  ;;  %v1166_v4 = vpop.f32.mrb[9].mxu0  ;;  %v1678_v5 = vpop.f32.mrb[9].mxu1  ;;  %v5159_v43 = vld [vmem:[%s6610_s0 + $0x3f0] sm:$0xff]  }
 0x108   :  { %3701 = vst.msk [vmem:[%s6611_s2 + $0x1c] sm:$0xf] %vm3693_vm0, %v4353_v58  ;;  %3829 = vst.msk [vmem:[%s6611_s2 + $0x21c] sm:$0xf] %vm3693_vm0, %v4481_v59  ;;  %v2165_v8 = vmul.f32 0.2, %v1166_v4  ;;  %v2423_v12 = vmax.f32 %v4764_v62, %v2167_v2 }
 0x109   :  { %3699 = vst.msk [vmem:[%s6611_s2 + $0x14] sm:$0xf] %vm3693_vm0, %v4351_v60  ;;  %3827 = vst.msk [vmem:[%s6611_s2 + $0x214] sm:$0xf] %vm3693_vm0, %v4479_v61  ;;  %v2293_v9 = vmul.f32 0.2, %v1678_v5  ;;  %v2551_v13 = vmax.f32 %v4892_v63, %v2295_v3 }
 0x10a   :  { %v4765_v10 = vpop.f32.mrb[10].mxu0  ;;  %v4893_v11 = vpop.f32.mrb[10].mxu1  ;;  %v2421_v18 = vmax.f32 %v1166_v4, %v2165_v8  ;;  %v4356_v22 = vpack.c.bf16 %v2423_v12, %v2423_v12  ;;  %4871 = vmatmul.mubr.bf16.gmra.mrb[116].mxu0 %v5152_v0  ;;  %v5160_v8 = vld [vmem:[%s6610_s0 + $0x1f8] sm:$0xff]  }
 0x10b   :  { %v2168_v14 = vmul.f32 0.2, %v4765_v10  ;;  %v2296_v15 = vmul.f32 0.2, %v4893_v11  ;;  %v1169_v16 = vpop.f32.mrb[11].mxu0  ;;  %v1681_v17 = vpop.f32.mrb[11].mxu1  ;;  %v2549_v19 = vmax.f32 %v1678_v5, %v2293_v9  ;;  %v4484_v23 = vpack.c.bf16 %v2551_v13, %v2551_v13  ;;  %4999 = vmatmul.mubr.bf16.gmra.mrb[116].mxu1 %v5153_v1  ;;  %4874 = vmatprep.mubr.bf16.mxu0 %v5154_v6 }
 0x10c   :  { %v2166_v20 = vmul.f32 0.2, %v1169_v16  ;;  %v2294_v21 = vmul.f32 0.2, %v1681_v17  ;;  %v4354_v26 = vpack.c.bf16 %v2421_v18, %v2421_v18  ;;  %3704 = vst.msk [vmem:[%s6611_s2 + $0x28] sm:$0xf] %vm3693_vm0, %v4356_v22  ;;  %5002 = vmatprep.mubr.bf16.mxu1 %v5155_v7 }
 0x10d   :  { %v2424_v24 = vmax.f32 %v4765_v10, %v2168_v14  ;;  %v2552_v25 = vmax.f32 %v4893_v11, %v2296_v15  ;;  %v4482_v27 = vpack.c.bf16 %v2549_v19, %v2549_v19  ;;  %3832 = vst.msk [vmem:[%s6611_s2 + $0x228] sm:$0xf] %vm3693_vm0, %v4484_v23  ;;  %v4768_v34 = vpop.f32.mrb[12].mxu0  ;;  %v4896_v35 = vpop.f32.mrb[12].mxu1  ;;  %v5161_v9 = vld [vmem:[%s6610_s0 + $0x3f8] sm:$0xff]  }
 0x10e   :  { %v2422_v28 = vmax.f32 %v1169_v16, %v2166_v20  ;;  %v2550_v29 = vmax.f32 %v1681_v17, %v2294_v21  ;;  %3702 = vst.msk [vmem:[%s6611_s2 + $0x20] sm:$0xf] %vm3693_vm0, %v4354_v26  ;;  %v2171_v38 = vmul.f32 0.2, %v4768_v34  ;;  %v2299_v39 = vmul.f32 0.2, %v4896_v35 }
 0x10f   :  { %v4357_v30 = vpack.c.bf16 %v2424_v24, %v2424_v24  ;;  %v4485_v31 = vpack.c.bf16 %v2552_v25, %v2552_v25  ;;  %3830 = vst.msk [vmem:[%s6611_s2 + $0x220] sm:$0xf] %vm3693_vm0, %v4482_v27  ;;  %v1182_v40 = vpop.f32.mrb[13].mxu0  ;;  %v1694_v41 = vpop.f32.mrb[13].mxu1 }
 0x110   :  { %v4355_v32 = vpack.c.bf16 %v2422_v28, %v2422_v28  ;;  %v4483_v33 = vpack.c.bf16 %v2550_v29, %v2550_v29  ;;  %v2169_v44 = vmul.f32 0.2, %v1182_v40  ;;  %v2297_v45 = vmul.f32 0.2, %v1694_v41  ;;  %v4769_v46 = vpop.f32.mrb[14].mxu0  ;;  %v4897_v47 = vpop.f32.mrb[14].mxu1 }
 0x111   :  { %3705 = vst.msk [vmem:[%s6611_s2 + $0x2c] sm:$0xf] %vm3693_vm0, %v4357_v30  ;;  %3833 = vst.msk [vmem:[%s6611_s2 + $0x22c] sm:$0xf] %vm3693_vm0, %v4485_v31  ;;  %v2427_v48 = vmax.f32 %v4768_v34, %v2171_v38  ;;  %v2555_v49 = vmax.f32 %v4896_v35, %v2299_v39  ;;  %v2172_v50 = vmul.f32 0.2, %v4769_v46 }
 0x112   :  { %3703 = vst.msk [vmem:[%s6611_s2 + $0x24] sm:$0xf] %vm3693_vm0, %v4355_v32  ;;  %3831 = vst.msk [vmem:[%s6611_s2 + $0x224] sm:$0xf] %vm3693_vm0, %v4483_v33  ;;  %v2300_v51 = vmul.f32 0.2, %v4897_v47  ;;  %v2425_v54 = vmax.f32 %v1182_v40, %v2169_v44  ;;  %v2553_v55 = vmax.f32 %v1694_v41, %v2297_v45  ;;  %4875 = vmatmul.mubr.bf16.gmra.mrb[120].mxu0 %v5156_v36 }
 0x113   :  { %v1185_v52 = vpop.f32.mrb[15].mxu0  ;;  %v1697_v53 = vpop.f32.mrb[15].mxu1  ;;  %v4360_v58 = vpack.c.bf16 %v2427_v48, %v2427_v48  ;;  %v4488_v59 = vpack.c.bf16 %v2555_v49, %v2555_v49  ;;  %v2428_v60 = vmax.f32 %v4769_v46, %v2172_v50  ;;  %5003 = vmatmul.mubr.bf16.gmra.mrb[120].mxu1 %v5157_v37  ;;  %4878 = vmatprep.mubr.bf16.mxu0 %v5158_v42 }
 0x114   :  { %v2170_v56 = vmul.f32 0.2, %v1185_v52  ;;  %v2298_v57 = vmul.f32 0.2, %v1697_v53  ;;  %v2556_v61 = vmax.f32 %v4897_v47, %v2300_v51  ;;  %v4358_v62 = vpack.c.bf16 %v2425_v54, %v2425_v54  ;;  %5006 = vmatprep.mubr.bf16.mxu1 %v5159_v43 }
 0x115   :  { %v4486_v63 = vpack.c.bf16 %v2553_v55, %v2553_v55  ;;  %3708 = vst.msk [vmem:[%s6611_s2 + $0x38] sm:$0xf] %vm3693_vm0, %v4360_v58  ;;  %3836 = vst.msk [vmem:[%s6611_s2 + $0x238] sm:$0xf] %vm3693_vm0, %v4488_v59  ;;  %v4361_v2 = vpack.c.bf16 %v2428_v60, %v2428_v60  ;;  %v4772_v6 = vpop.f32.mrb[16].mxu0  ;;  %v4900_v7 = vpop.f32.mrb[16].mxu1 }
 0x116   :  { %v2426_v0 = vmax.f32 %v1185_v52, %v2170_v56  ;;  %v2554_v1 = vmax.f32 %v1697_v53, %v2298_v57  ;;  %v4489_v3 = vpack.c.bf16 %v2556_v61, %v2556_v61  ;;  %3706 = vst.msk [vmem:[%s6611_s2 + $0x30] sm:$0xf] %vm3693_vm0, %v4358_v62  ;;  %v2175_v10 = vmul.f32 0.2, %v4772_v6  ;;  %v1198_v12 = vpop.f32.mrb[17].mxu0  ;;  %v1710_v13 = vpop.f32.mrb[17].mxu1 }
 0x117   :  { %3834 = vst.msk [vmem:[%s6611_s2 + $0x230] sm:$0xf] %vm3693_vm0, %v4486_v63  ;;  %3709 = vst.msk [vmem:[%s6611_s2 + $0x3c] sm:$0xf] %vm3693_vm0, %v4361_v2  ;;  %v2303_v11 = vmul.f32 0.2, %v4900_v7 }
 0x118   :  { %v4359_v4 = vpack.c.bf16 %v2426_v0, %v2426_v0  ;;  %v4487_v5 = vpack.c.bf16 %v2554_v1, %v2554_v1  ;;  %3837 = vst.msk [vmem:[%s6611_s2 + $0x23c] sm:$0xf] %vm3693_vm0, %v4489_v3  ;;  %v2173_v14 = vmul.f32 0.2, %v1198_v12  ;;  %v2301_v15 = vmul.f32 0.2, %v1710_v13 }
 0x119   :  { %v4773_v16 = vpop.f32.mrb[18].mxu0  ;;  %v4901_v17 = vpop.f32.mrb[18].mxu1  ;;  %v2431_v18 = vmax.f32 %v4772_v6, %v2175_v10  ;;  %v2559_v19 = vmax.f32 %v4900_v7, %v2303_v11 }
 0x11a   :  { %3707 = vst.msk [vmem:[%s6611_s2 + $0x34] sm:$0xf] %vm3693_vm0, %v4359_v4  ;;  %3835 = vst.msk [vmem:[%s6611_s2 + $0x234] sm:$0xf] %vm3693_vm0, %v4487_v5  ;;  %v2176_v20 = vmul.f32 0.2, %v4773_v16  ;;  %v2429_v24 = vmax.f32 %v1198_v12, %v2173_v14  ;;  %v2557_v25 = vmax.f32 %v1710_v13, %v2301_v15  ;;  %4879 = vmatmul.mubr.bf16.gmra.mrb[124].mxu0 %v5160_v8 }
 0x11b   :  { %v2304_v21 = vmul.f32 0.2, %v4901_v17  ;;  %v1201_v22 = vpop.f32.mrb[19].mxu0  ;;  %v1713_v23 = vpop.f32.mrb[19].mxu1  ;;  %v4364_v28 = vpack.c.bf16 %v2431_v18, %v2431_v18  ;;  %v4492_v29 = vpack.c.bf16 %v2559_v19, %v2559_v19  ;;  %5007 = vmatmul.mubr.bf16.gmra.mrb[124].mxu1 %v5161_v9 }
 0x11c   :  { %v2174_v26 = vmul.f32 0.2, %v1201_v22  ;;  %v2302_v27 = vmul.f32 0.2, %v1713_v23  ;;  %v2432_v30 = vmax.f32 %v4773_v16, %v2176_v20  ;;  %v4362_v32 = vpack.c.bf16 %v2429_v24, %v2429_v24 }
 0x11d   :  { %v2560_v31 = vmax.f32 %v4901_v17, %v2304_v21  ;;  %v4490_v33 = vpack.c.bf16 %v2557_v25, %v2557_v25  ;;  %3712 = vst.msk [vmem:[%s6611_s2 + $0x48] sm:$0xf] %vm3693_vm0, %v4364_v28  ;;  %3840 = vst.msk [vmem:[%s6611_s2 + $0x248] sm:$0xf] %vm3693_vm0, %v4492_v29  ;;  %v4776_v40 = vpop.f32.mrb[20].mxu0  ;;  %v4904_v41 = vpop.f32.mrb[20].mxu1 }
 0x11e   :  { %v2430_v34 = vmax.f32 %v1201_v22, %v2174_v26  ;;  %v2558_v35 = vmax.f32 %v1713_v23, %v2302_v27  ;;  %v4365_v36 = vpack.c.bf16 %v2432_v30, %v2432_v30  ;;  %3710 = vst.msk [vmem:[%s6611_s2 + $0x40] sm:$0xf] %vm3693_vm0, %v4362_v32  ;;  %v2179_v42 = vmul.f32 0.2, %v4776_v40  ;;  %v1214_v44 = vpop.f32.mrb[21].mxu0  ;;  %v1726_v45 = vpop.f32.mrb[21].mxu1 }
 0x11f   :  { %v4493_v37 = vpack.c.bf16 %v2560_v31, %v2560_v31  ;;  %3838 = vst.msk [vmem:[%s6611_s2 + $0x240] sm:$0xf] %vm3693_vm0, %v4490_v33  ;;  %v2307_v43 = vmul.f32 0.2, %v4904_v41  ;;  %v2177_v46 = vmul.f32 0.2, %v1214_v44 }
 0x120   :  { %v4363_v38 = vpack.c.bf16 %v2430_v34, %v2430_v34  ;;  %v4491_v39 = vpack.c.bf16 %v2558_v35, %v2558_v35  ;;  %3713 = vst.msk [vmem:[%s6611_s2 + $0x4c] sm:$0xf] %vm3693_vm0, %v4365_v36  ;;  %v2305_v47 = vmul.f32 0.2, %v1726_v45  ;;  %v4777_v48 = vpop.f32.mrb[22].mxu0  ;;  %v4905_v49 = vpop.f32.mrb[22].mxu1  ;;  %v2435_v50 = vmax.f32 %v4776_v40, %v2179_v42 }
 0x121   :  { %3841 = vst.msk [vmem:[%s6611_s2 + $0x24c] sm:$0xf] %vm3693_vm0, %v4493_v37  ;;  %v2563_v51 = vmax.f32 %v4904_v41, %v2307_v43  ;;  %v2180_v52 = vmul.f32 0.2, %v4777_v48  ;;  %v2308_v53 = vmul.f32 0.2, %v4905_v49  ;;  %v2433_v56 = vmax.f32 %v1214_v44, %v2177_v46 }
 0x122   :  { %3711 = vst.msk [vmem:[%s6611_s2 + $0x44] sm:$0xf] %vm3693_vm0, %v4363_v38  ;;  %3839 = vst.msk [vmem:[%s6611_s2 + $0x244] sm:$0xf] %vm3693_vm0, %v4491_v39  ;;  %v1217_v54 = vpop.f32.mrb[23].mxu0  ;;  %v1729_v55 = vpop.f32.mrb[23].mxu1  ;;  %v2561_v57 = vmax.f32 %v1726_v45, %v2305_v47  ;;  %v4368_v60 = vpack.c.bf16 %v2435_v50, %v2435_v50 }
 0x123   :  { %v2178_v58 = vmul.f32 0.2, %v1217_v54  ;;  %v2306_v59 = vmul.f32 0.2, %v1729_v55  ;;  %v4496_v61 = vpack.c.bf16 %v2563_v51, %v2563_v51  ;;  %v2436_v62 = vmax.f32 %v4777_v48, %v2180_v52 }
 0x124   :  { %v2564_v63 = vmax.f32 %v4905_v49, %v2308_v53  ;;  %v4366_v0 = vpack.c.bf16 %v2433_v56, %v2433_v56  ;;  %v4494_v1 = vpack.c.bf16 %v2561_v57, %v2561_v57  ;;  %3716 = vst.msk [vmem:[%s6611_s2 + $0x58] sm:$0xf] %vm3693_vm0, %v4368_v60 }
 0x125   :  { %v2434_v2 = vmax.f32 %v1217_v54, %v2178_v58  ;;  %v2562_v3 = vmax.f32 %v1729_v55, %v2306_v59  ;;  %3844 = vst.msk [vmem:[%s6611_s2 + $0x258] sm:$0xf] %vm3693_vm0, %v4496_v61  ;;  %v4369_v4 = vpack.c.bf16 %v2436_v62, %v2436_v62  ;;  %v4780_v8 = vpop.f32.mrb[24].mxu0  ;;  %v4908_v9 = vpop.f32.mrb[24].mxu1 }
 0x126   :  { %v4497_v5 = vpack.c.bf16 %v2564_v63, %v2564_v63  ;;  %3714 = vst.msk [vmem:[%s6611_s2 + $0x50] sm:$0xf] %vm3693_vm0, %v4366_v0  ;;  %3842 = vst.msk [vmem:[%s6611_s2 + $0x250] sm:$0xf] %vm3693_vm0, %v4494_v1  ;;  %v2183_v10 = vmul.f32 0.2, %v4780_v8 }
 0x127   :  { %v4367_v6 = vpack.c.bf16 %v2434_v2, %v2434_v2  ;;  %v4495_v7 = vpack.c.bf16 %v2562_v3, %v2562_v3  ;;  %3717 = vst.msk [vmem:[%s6611_s2 + $0x5c] sm:$0xf] %vm3693_vm0, %v4369_v4  ;;  %v2311_v11 = vmul.f32 0.2, %v4908_v9  ;;  %v1230_v12 = vpop.f32.mrb[25].mxu0  ;;  %v1742_v13 = vpop.f32.mrb[25].mxu1 }
 0x128   :  { %3845 = vst.msk [vmem:[%s6611_s2 + $0x25c] sm:$0xf] %vm3693_vm0, %v4497_v5  ;;  %v2181_v14 = vmul.f32 0.2, %v1230_v12  ;;  %v2309_v15 = vmul.f32 0.2, %v1742_v13  ;;  %v2439_v18 = vmax.f32 %v4780_v8, %v2183_v10 }
 0x129   :  { %3715 = vst.msk [vmem:[%s6611_s2 + $0x54] sm:$0xf] %vm3693_vm0, %v4367_v6  ;;  %3843 = vst.msk [vmem:[%s6611_s2 + $0x254] sm:$0xf] %vm3693_vm0, %v4495_v7  ;;  %v4781_v16 = vpop.f32.mrb[26].mxu0  ;;  %v4909_v17 = vpop.f32.mrb[26].mxu1  ;;  %v2567_v19 = vmax.f32 %v4908_v9, %v2311_v11 }
 0x12a   :  { %v2184_v20 = vmul.f32 0.2, %v4781_v16  ;;  %v2312_v21 = vmul.f32 0.2, %v4909_v17  ;;  %v1233_v22 = vpop.f32.mrb[27].mxu0  ;;  %v1745_v23 = vpop.f32.mrb[27].mxu1  ;;  %v2437_v24 = vmax.f32 %v1230_v12, %v2181_v14  ;;  %v2565_v25 = vmax.f32 %v1742_v13, %v2309_v15 }
 0x12b   :  { %v2182_v26 = vmul.f32 0.2, %v1233_v22  ;;  %v2310_v27 = vmul.f32 0.2, %v1745_v23  ;;  %v4372_v28 = vpack.c.bf16 %v2439_v18, %v2439_v18  ;;  %v4500_v29 = vpack.c.bf16 %v2567_v19, %v2567_v19 }
 0x12c   :  { %v2440_v30 = vmax.f32 %v4781_v16, %v2184_v20  ;;  %v2568_v31 = vmax.f32 %v4909_v17, %v2312_v21  ;;  %v4370_v32 = vpack.c.bf16 %v2437_v24, %v2437_v24  ;;  %v4498_v33 = vpack.c.bf16 %v2565_v25, %v2565_v25 }
 0x12d   :  { %v2438_v34 = vmax.f32 %v1233_v22, %v2182_v26  ;;  %v2566_v35 = vmax.f32 %v1745_v23, %v2310_v27  ;;  %3720 = vst.msk [vmem:[%s6611_s2 + $0x68] sm:$0xf] %vm3693_vm0, %v4372_v28  ;;  %3848 = vst.msk [vmem:[%s6611_s2 + $0x268] sm:$0xf] %vm3693_vm0, %v4500_v29  ;;  %v4784_v40 = vpop.f32.mrb[28].mxu0  ;;  %v4912_v41 = vpop.f32.mrb[28].mxu1 }
 0x12e   :  { %v4373_v36 = vpack.c.bf16 %v2440_v30, %v2440_v30  ;;  %v4501_v37 = vpack.c.bf16 %v2568_v31, %v2568_v31  ;;  %3718 = vst.msk [vmem:[%s6611_s2 + $0x60] sm:$0xf] %vm3693_vm0, %v4370_v32  ;;  %3846 = vst.msk [vmem:[%s6611_s2 + $0x260] sm:$0xf] %vm3693_vm0, %v4498_v33  ;;  %v2187_v42 = vmul.f32 0.2, %v4784_v40 }
 0x12f   :  { %v4371_v38 = vpack.c.bf16 %v2438_v34, %v2438_v34  ;;  %v4499_v39 = vpack.c.bf16 %v2566_v35, %v2566_v35  ;;  %v2315_v43 = vmul.f32 0.2, %v4912_v41  ;;  %v1246_v44 = vpop.f32.mrb[29].mxu0  ;;  %v1758_v45 = vpop.f32.mrb[29].mxu1 }
 0x130   :  { %3721 = vst.msk [vmem:[%s6611_s2 + $0x6c] sm:$0xf] %vm3693_vm0, %v4373_v36  ;;  %3849 = vst.msk [vmem:[%s6611_s2 + $0x26c] sm:$0xf] %vm3693_vm0, %v4501_v37  ;;  %v2185_v46 = vmul.f32 0.2, %v1246_v44  ;;  %v2443_v50 = vmax.f32 %v4784_v40, %v2187_v42 }
 0x131   :  { %3719 = vst.msk [vmem:[%s6611_s2 + $0x64] sm:$0xf] %vm3693_vm0, %v4371_v38  ;;  %3847 = vst.msk [vmem:[%s6611_s2 + $0x264] sm:$0xf] %vm3693_vm0, %v4499_v39  ;;  %v2313_v47 = vmul.f32 0.2, %v1758_v45  ;;  %v2571_v51 = vmax.f32 %v4912_v41, %v2315_v43 }
 0x132   :  { %v4785_v48 = vpop.f32.mrb[30].mxu0  ;;  %v4913_v49 = vpop.f32.mrb[30].mxu1  ;;  %v2441_v56 = vmax.f32 %v1246_v44, %v2185_v46  ;;  %v4376_v60 = vpack.c.bf16 %v2443_v50, %v2443_v50 }
 0x133   :  { %v2188_v52 = vmul.f32 0.2, %v4785_v48  ;;  %v2316_v53 = vmul.f32 0.2, %v4913_v49  ;;  %v1249_v54 = vpop.f32.mrb[31].mxu0  ;;  %v1761_v55 = vpop.f32.mrb[31].mxu1  ;;  %v2569_v57 = vmax.f32 %v1758_v45, %v2313_v47  ;;  %v4504_v61 = vpack.c.bf16 %v2571_v51, %v2571_v51 }
 0x134   :  { %v2186_v58 = vmul.f32 0.2, %v1249_v54  ;;  %v2314_v59 = vmul.f32 0.2, %v1761_v55  ;;  %v4374_v0 = vpack.c.bf16 %v2441_v56, %v2441_v56  ;;  %3724 = vst.msk [vmem:[%s6611_s2 + $0x78] sm:$0xf] %vm3693_vm0, %v4376_v60 }
 0x135   :  { %v2444_v62 = vmax.f32 %v4785_v48, %v2188_v52  ;;  %v2572_v63 = vmax.f32 %v4913_v49, %v2316_v53  ;;  %v4502_v1 = vpack.c.bf16 %v2569_v57, %v2569_v57  ;;  %3852 = vst.msk [vmem:[%s6611_s2 + $0x278] sm:$0xf] %vm3693_vm0, %v4504_v61  ;;  %v4788_v8 = vpop.f32.mrb[32].mxu0  ;;  %v4916_v9 = vpop.f32.mrb[32].mxu1 }
 0x136   :  { %v2442_v2 = vmax.f32 %v1249_v54, %v2186_v58  ;;  %v2570_v3 = vmax.f32 %v1761_v55, %v2314_v59  ;;  %3722 = vst.msk [vmem:[%s6611_s2 + $0x70] sm:$0xf] %vm3693_vm0, %v4374_v0  ;;  %v2191_v10 = vmul.f32 0.2, %v4788_v8  ;;  %v2319_v11 = vmul.f32 0.2, %v4916_v9 }
 0x137   :  { %v4377_v4 = vpack.c.bf16 %v2444_v62, %v2444_v62  ;;  %v4505_v5 = vpack.c.bf16 %v2572_v63, %v2572_v63  ;;  %3850 = vst.msk [vmem:[%s6611_s2 + $0x270] sm:$0xf] %vm3693_vm0, %v4502_v1  ;;  %v1262_v12 = vpop.f32.mrb[33].mxu0  ;;  %v1774_v13 = vpop.f32.mrb[33].mxu1 }
 0x138   :  { %v4375_v6 = vpack.c.bf16 %v2442_v2, %v2442_v2  ;;  %v4503_v7 = vpack.c.bf16 %v2570_v3, %v2570_v3  ;;  %v2189_v14 = vmul.f32 0.2, %v1262_v12  ;;  %v2317_v15 = vmul.f32 0.2, %v1774_v13  ;;  %v4789_v16 = vpop.f32.mrb[34].mxu0  ;;  %v4917_v17 = vpop.f32.mrb[34].mxu1 }
 0x139   :  { %3725 = vst.msk [vmem:[%s6611_s2 + $0x7c] sm:$0xf] %vm3693_vm0, %v4377_v4  ;;  %3853 = vst.msk [vmem:[%s6611_s2 + $0x27c] sm:$0xf] %vm3693_vm0, %v4505_v5  ;;  %v2447_v18 = vmax.f32 %v4788_v8, %v2191_v10  ;;  %v2575_v19 = vmax.f32 %v4916_v9, %v2319_v11  ;;  %v2192_v20 = vmul.f32 0.2, %v4789_v16 }
 0x13a   :  { %3723 = vst.msk [vmem:[%s6611_s2 + $0x74] sm:$0xf] %vm3693_vm0, %v4375_v6  ;;  %3851 = vst.msk [vmem:[%s6611_s2 + $0x274] sm:$0xf] %vm3693_vm0, %v4503_v7  ;;  %v2320_v21 = vmul.f32 0.2, %v4917_v17  ;;  %v2445_v24 = vmax.f32 %v1262_v12, %v2189_v14  ;;  %v2573_v25 = vmax.f32 %v1774_v13, %v2317_v15 }
 0x13b   :  { %v1265_v22 = vpop.f32.mrb[35].mxu0  ;;  %v1777_v23 = vpop.f32.mrb[35].mxu1  ;;  %v4380_v28 = vpack.c.bf16 %v2447_v18, %v2447_v18  ;;  %v4508_v29 = vpack.c.bf16 %v2575_v19, %v2575_v19  ;;  %v2448_v30 = vmax.f32 %v4789_v16, %v2192_v20 }
 0x13c   :  { %v2190_v26 = vmul.f32 0.2, %v1265_v22  ;;  %v2318_v27 = vmul.f32 0.2, %v1777_v23  ;;  %v2576_v31 = vmax.f32 %v4917_v17, %v2320_v21  ;;  %v4378_v32 = vpack.c.bf16 %v2445_v24, %v2445_v24 }
 0x13d   :  { %v4506_v33 = vpack.c.bf16 %v2573_v25, %v2573_v25  ;;  %3728 = vst.msk [vmem:[%s6611_s2 + $0x88] sm:$0xf] %vm3693_vm0, %v4380_v28  ;;  %3856 = vst.msk [vmem:[%s6611_s2 + $0x288] sm:$0xf] %vm3693_vm0, %v4508_v29  ;;  %v4381_v36 = vpack.c.bf16 %v2448_v30, %v2448_v30  ;;  %v4792_v40 = vpop.f32.mrb[36].mxu0  ;;  %v4920_v41 = vpop.f32.mrb[36].mxu1 }
 0x13e   :  { %v2446_v34 = vmax.f32 %v1265_v22, %v2190_v26  ;;  %v2574_v35 = vmax.f32 %v1777_v23, %v2318_v27  ;;  %v4509_v37 = vpack.c.bf16 %v2576_v31, %v2576_v31  ;;  %3726 = vst.msk [vmem:[%s6611_s2 + $0x80] sm:$0xf] %vm3693_vm0, %v4378_v32  ;;  %v2195_v42 = vmul.f32 0.2, %v4792_v40  ;;  %v1278_v44 = vpop.f32.mrb[37].mxu0  ;;  %v1790_v45 = vpop.f32.mrb[37].mxu1 }
 0x13f   :  { %3854 = vst.msk [vmem:[%s6611_s2 + $0x280] sm:$0xf] %vm3693_vm0, %v4506_v33  ;;  %3729 = vst.msk [vmem:[%s6611_s2 + $0x8c] sm:$0xf] %vm3693_vm0, %v4381_v36  ;;  %v2323_v43 = vmul.f32 0.2, %v4920_v41 }
 0x140   :  { %v4379_v38 = vpack.c.bf16 %v2446_v34, %v2446_v34  ;;  %v4507_v39 = vpack.c.bf16 %v2574_v35, %v2574_v35  ;;  %3857 = vst.msk [vmem:[%s6611_s2 + $0x28c] sm:$0xf] %vm3693_vm0, %v4509_v37  ;;  %v2193_v46 = vmul.f32 0.2, %v1278_v44  ;;  %v2321_v47 = vmul.f32 0.2, %v1790_v45 }
 0x141   :  { %v4793_v48 = vpop.f32.mrb[38].mxu0  ;;  %v4921_v49 = vpop.f32.mrb[38].mxu1  ;;  %v2451_v50 = vmax.f32 %v4792_v40, %v2195_v42  ;;  %v2579_v51 = vmax.f32 %v4920_v41, %v2323_v43 }
 0x142   :  { %3727 = vst.msk [vmem:[%s6611_s2 + $0x84] sm:$0xf] %vm3693_vm0, %v4379_v38  ;;  %3855 = vst.msk [vmem:[%s6611_s2 + $0x284] sm:$0xf] %vm3693_vm0, %v4507_v39  ;;  %v2196_v52 = vmul.f32 0.2, %v4793_v48  ;;  %v2449_v56 = vmax.f32 %v1278_v44, %v2193_v46  ;;  %v2577_v57 = vmax.f32 %v1790_v45, %v2321_v47 }
 0x143   :  { %v2324_v53 = vmul.f32 0.2, %v4921_v49  ;;  %v1281_v54 = vpop.f32.mrb[39].mxu0  ;;  %v1793_v55 = vpop.f32.mrb[39].mxu1  ;;  %v4384_v60 = vpack.c.bf16 %v2451_v50, %v2451_v50  ;;  %v4512_v61 = vpack.c.bf16 %v2579_v51, %v2579_v51 }
 0x144   :  { %v2194_v58 = vmul.f32 0.2, %v1281_v54  ;;  %v2322_v59 = vmul.f32 0.2, %v1793_v55  ;;  %v2452_v62 = vmax.f32 %v4793_v48, %v2196_v52  ;;  %v4382_v0 = vpack.c.bf16 %v2449_v56, %v2449_v56 }
 0x145   :  { %v2580_v63 = vmax.f32 %v4921_v49, %v2324_v53  ;;  %v4510_v1 = vpack.c.bf16 %v2577_v57, %v2577_v57  ;;  %3732 = vst.msk [vmem:[%s6611_s2 + $0x98] sm:$0xf] %vm3693_vm0, %v4384_v60  ;;  %3860 = vst.msk [vmem:[%s6611_s2 + $0x298] sm:$0xf] %vm3693_vm0, %v4512_v61  ;;  %v4796_v8 = vpop.f32.mrb[40].mxu0  ;;  %v4924_v9 = vpop.f32.mrb[40].mxu1 }
 0x146   :  { %v2450_v2 = vmax.f32 %v1281_v54, %v2194_v58  ;;  %v2578_v3 = vmax.f32 %v1793_v55, %v2322_v59  ;;  %v4385_v4 = vpack.c.bf16 %v2452_v62, %v2452_v62  ;;  %3730 = vst.msk [vmem:[%s6611_s2 + $0x90] sm:$0xf] %vm3693_vm0, %v4382_v0  ;;  %v2199_v10 = vmul.f32 0.2, %v4796_v8  ;;  %v1294_v12 = vpop.f32.mrb[41].mxu0  ;;  %v1806_v13 = vpop.f32.mrb[41].mxu1 }
 0x147   :  { %v4513_v5 = vpack.c.bf16 %v2580_v63, %v2580_v63  ;;  %3858 = vst.msk [vmem:[%s6611_s2 + $0x290] sm:$0xf] %vm3693_vm0, %v4510_v1  ;;  %v2327_v11 = vmul.f32 0.2, %v4924_v9  ;;  %v2197_v14 = vmul.f32 0.2, %v1294_v12 }
 0x148   :  { %v4383_v6 = vpack.c.bf16 %v2450_v2, %v2450_v2  ;;  %v4511_v7 = vpack.c.bf16 %v2578_v3, %v2578_v3  ;;  %3733 = vst.msk [vmem:[%s6611_s2 + $0x9c] sm:$0xf] %vm3693_vm0, %v4385_v4  ;;  %v2325_v15 = vmul.f32 0.2, %v1806_v13  ;;  %v4797_v16 = vpop.f32.mrb[42].mxu0  ;;  %v4925_v17 = vpop.f32.mrb[42].mxu1  ;;  %v2455_v18 = vmax.f32 %v4796_v8, %v2199_v10 }
 0x149   :  { %3861 = vst.msk [vmem:[%s6611_s2 + $0x29c] sm:$0xf] %vm3693_vm0, %v4513_v5  ;;  %v2583_v19 = vmax.f32 %v4924_v9, %v2327_v11  ;;  %v2200_v20 = vmul.f32 0.2, %v4797_v16  ;;  %v2328_v21 = vmul.f32 0.2, %v4925_v17  ;;  %v2453_v24 = vmax.f32 %v1294_v12, %v2197_v14 }
 0x14a   :  { %3731 = vst.msk [vmem:[%s6611_s2 + $0x94] sm:$0xf] %vm3693_vm0, %v4383_v6  ;;  %3859 = vst.msk [vmem:[%s6611_s2 + $0x294] sm:$0xf] %vm3693_vm0, %v4511_v7  ;;  %v1297_v22 = vpop.f32.mrb[43].mxu0  ;;  %v1809_v23 = vpop.f32.mrb[43].mxu1  ;;  %v2581_v25 = vmax.f32 %v1806_v13, %v2325_v15  ;;  %v4388_v28 = vpack.c.bf16 %v2455_v18, %v2455_v18 }
 0x14b   :  { %v2198_v26 = vmul.f32 0.2, %v1297_v22  ;;  %v2326_v27 = vmul.f32 0.2, %v1809_v23  ;;  %v4516_v29 = vpack.c.bf16 %v2583_v19, %v2583_v19  ;;  %v2456_v30 = vmax.f32 %v4797_v16, %v2200_v20 }
 0x14c   :  { %v2584_v31 = vmax.f32 %v4925_v17, %v2328_v21  ;;  %v4386_v32 = vpack.c.bf16 %v2453_v24, %v2453_v24  ;;  %v4514_v33 = vpack.c.bf16 %v2581_v25, %v2581_v25  ;;  %3736 = vst.msk [vmem:[%s6611_s2 + $0xa8] sm:$0xf] %vm3693_vm0, %v4388_v28 }
 0x14d   :  { %v2454_v34 = vmax.f32 %v1297_v22, %v2198_v26  ;;  %v2582_v35 = vmax.f32 %v1809_v23, %v2326_v27  ;;  %3864 = vst.msk [vmem:[%s6611_s2 + $0x2a8] sm:$0xf] %vm3693_vm0, %v4516_v29  ;;  %v4389_v36 = vpack.c.bf16 %v2456_v30, %v2456_v30  ;;  %v4800_v40 = vpop.f32.mrb[44].mxu0  ;;  %v4928_v41 = vpop.f32.mrb[44].mxu1 }
 0x14e   :  { %v4517_v37 = vpack.c.bf16 %v2584_v31, %v2584_v31  ;;  %3734 = vst.msk [vmem:[%s6611_s2 + $0xa0] sm:$0xf] %vm3693_vm0, %v4386_v32  ;;  %3862 = vst.msk [vmem:[%s6611_s2 + $0x2a0] sm:$0xf] %vm3693_vm0, %v4514_v33  ;;  %v2203_v42 = vmul.f32 0.2, %v4800_v40 }
 0x14f   :  { %v4387_v38 = vpack.c.bf16 %v2454_v34, %v2454_v34  ;;  %v4515_v39 = vpack.c.bf16 %v2582_v35, %v2582_v35  ;;  %3737 = vst.msk [vmem:[%s6611_s2 + $0xac] sm:$0xf] %vm3693_vm0, %v4389_v36  ;;  %v2331_v43 = vmul.f32 0.2, %v4928_v41  ;;  %v1310_v44 = vpop.f32.mrb[45].mxu0  ;;  %v1822_v45 = vpop.f32.mrb[45].mxu1 }
 0x150   :  { %3865 = vst.msk [vmem:[%s6611_s2 + $0x2ac] sm:$0xf] %vm3693_vm0, %v4517_v37  ;;  %v2201_v46 = vmul.f32 0.2, %v1310_v44  ;;  %v2329_v47 = vmul.f32 0.2, %v1822_v45  ;;  %v2459_v50 = vmax.f32 %v4800_v40, %v2203_v42 }
 0x151   :  { %3735 = vst.msk [vmem:[%s6611_s2 + $0xa4] sm:$0xf] %vm3693_vm0, %v4387_v38  ;;  %3863 = vst.msk [vmem:[%s6611_s2 + $0x2a4] sm:$0xf] %vm3693_vm0, %v4515_v39  ;;  %v4801_v48 = vpop.f32.mrb[46].mxu0  ;;  %v4929_v49 = vpop.f32.mrb[46].mxu1  ;;  %v2587_v51 = vmax.f32 %v4928_v41, %v2331_v43 }
 0x152   :  { %v2204_v52 = vmul.f32 0.2, %v4801_v48  ;;  %v2332_v53 = vmul.f32 0.2, %v4929_v49  ;;  %v1313_v54 = vpop.f32.mrb[47].mxu0  ;;  %v1825_v55 = vpop.f32.mrb[47].mxu1  ;;  %v2457_v56 = vmax.f32 %v1310_v44, %v2201_v46  ;;  %v2585_v57 = vmax.f32 %v1822_v45, %v2329_v47 }
 0x153   :  { %v2202_v58 = vmul.f32 0.2, %v1313_v54  ;;  %v2330_v59 = vmul.f32 0.2, %v1825_v55  ;;  %v4392_v60 = vpack.c.bf16 %v2459_v50, %v2459_v50  ;;  %v4520_v61 = vpack.c.bf16 %v2587_v51, %v2587_v51 }
 0x154   :  { %v2460_v62 = vmax.f32 %v4801_v48, %v2204_v52  ;;  %v2588_v63 = vmax.f32 %v4929_v49, %v2332_v53  ;;  %v4390_v0 = vpack.c.bf16 %v2457_v56, %v2457_v56  ;;  %v4518_v1 = vpack.c.bf16 %v2585_v57, %v2585_v57 }
 0x155   :  { %v2458_v2 = vmax.f32 %v1313_v54, %v2202_v58  ;;  %v2586_v3 = vmax.f32 %v1825_v55, %v2330_v59  ;;  %3740 = vst.msk [vmem:[%s6611_s2 + $0xb8] sm:$0xf] %vm3693_vm0, %v4392_v60  ;;  %3868 = vst.msk [vmem:[%s6611_s2 + $0x2b8] sm:$0xf] %vm3693_vm0, %v4520_v61  ;;  %v4804_v8 = vpop.f32.mrb[48].mxu0  ;;  %v4932_v9 = vpop.f32.mrb[48].mxu1 }
 0x156   :  { %v4393_v4 = vpack.c.bf16 %v2460_v62, %v2460_v62  ;;  %v4521_v5 = vpack.c.bf16 %v2588_v63, %v2588_v63  ;;  %3738 = vst.msk [vmem:[%s6611_s2 + $0xb0] sm:$0xf] %vm3693_vm0, %v4390_v0  ;;  %3866 = vst.msk [vmem:[%s6611_s2 + $0x2b0] sm:$0xf] %vm3693_vm0, %v4518_v1  ;;  %v2207_v10 = vmul.f32 0.2, %v4804_v8 }
 0x157   :  { %v4391_v6 = vpack.c.bf16 %v2458_v2, %v2458_v2  ;;  %v4519_v7 = vpack.c.bf16 %v2586_v3, %v2586_v3  ;;  %v2335_v11 = vmul.f32 0.2, %v4932_v9  ;;  %v1326_v12 = vpop.f32.mrb[49].mxu0  ;;  %v1838_v13 = vpop.f32.mrb[49].mxu1 }
 0x158   :  { %3741 = vst.msk [vmem:[%s6611_s2 + $0xbc] sm:$0xf] %vm3693_vm0, %v4393_v4  ;;  %3869 = vst.msk [vmem:[%s6611_s2 + $0x2bc] sm:$0xf] %vm3693_vm0, %v4521_v5  ;;  %v2205_v14 = vmul.f32 0.2, %v1326_v12  ;;  %v2463_v18 = vmax.f32 %v4804_v8, %v2207_v10 }
 0x159   :  { %3739 = vst.msk [vmem:[%s6611_s2 + $0xb4] sm:$0xf] %vm3693_vm0, %v4391_v6  ;;  %3867 = vst.msk [vmem:[%s6611_s2 + $0x2b4] sm:$0xf] %vm3693_vm0, %v4519_v7  ;;  %v2333_v15 = vmul.f32 0.2, %v1838_v13  ;;  %v2591_v19 = vmax.f32 %v4932_v9, %v2335_v11 }
 0x15a   :  { %v4805_v16 = vpop.f32.mrb[50].mxu0  ;;  %v4933_v17 = vpop.f32.mrb[50].mxu1  ;;  %v2461_v24 = vmax.f32 %v1326_v12, %v2205_v14  ;;  %v4396_v28 = vpack.c.bf16 %v2463_v18, %v2463_v18 }
 0x15b   :  { %v2208_v20 = vmul.f32 0.2, %v4805_v16  ;;  %v2336_v21 = vmul.f32 0.2, %v4933_v17  ;;  %v1329_v22 = vpop.f32.mrb[51].mxu0  ;;  %v1841_v23 = vpop.f32.mrb[51].mxu1  ;;  %v2589_v25 = vmax.f32 %v1838_v13, %v2333_v15  ;;  %v4524_v29 = vpack.c.bf16 %v2591_v19, %v2591_v19 }
 0x15c   :  { %v2206_v26 = vmul.f32 0.2, %v1329_v22  ;;  %v2334_v27 = vmul.f32 0.2, %v1841_v23  ;;  %v4394_v32 = vpack.c.bf16 %v2461_v24, %v2461_v24  ;;  %3744 = vst.msk [vmem:[%s6611_s2 + $0xc8] sm:$0xf] %vm3693_vm0, %v4396_v28 }
 0x15d   :  { %v2464_v30 = vmax.f32 %v4805_v16, %v2208_v20  ;;  %v2592_v31 = vmax.f32 %v4933_v17, %v2336_v21  ;;  %v4522_v33 = vpack.c.bf16 %v2589_v25, %v2589_v25  ;;  %3872 = vst.msk [vmem:[%s6611_s2 + $0x2c8] sm:$0xf] %vm3693_vm0, %v4524_v29  ;;  %v4808_v40 = vpop.f32.mrb[52].mxu0  ;;  %v4936_v41 = vpop.f32.mrb[52].mxu1 }
 0x15e   :  { %v2462_v34 = vmax.f32 %v1329_v22, %v2206_v26  ;;  %v2590_v35 = vmax.f32 %v1841_v23, %v2334_v27  ;;  %3742 = vst.msk [vmem:[%s6611_s2 + $0xc0] sm:$0xf] %vm3693_vm0, %v4394_v32  ;;  %v2211_v42 = vmul.f32 0.2, %v4808_v40  ;;  %v2339_v43 = vmul.f32 0.2, %v4936_v41 }
 0x15f   :  { %v4397_v36 = vpack.c.bf16 %v2464_v30, %v2464_v30  ;;  %v4525_v37 = vpack.c.bf16 %v2592_v31, %v2592_v31  ;;  %3870 = vst.msk [vmem:[%s6611_s2 + $0x2c0] sm:$0xf] %vm3693_vm0, %v4522_v33  ;;  %v1342_v44 = vpop.f32.mrb[53].mxu0  ;;  %v1854_v45 = vpop.f32.mrb[53].mxu1 }
 0x160   :  { %v4395_v38 = vpack.c.bf16 %v2462_v34, %v2462_v34  ;;  %v4523_v39 = vpack.c.bf16 %v2590_v35, %v2590_v35  ;;  %v2209_v46 = vmul.f32 0.2, %v1342_v44  ;;  %v2337_v47 = vmul.f32 0.2, %v1854_v45  ;;  %v4809_v48 = vpop.f32.mrb[54].mxu0  ;;  %v4937_v49 = vpop.f32.mrb[54].mxu1 }
 0x161   :  { %3745 = vst.msk [vmem:[%s6611_s2 + $0xcc] sm:$0xf] %vm3693_vm0, %v4397_v36  ;;  %3873 = vst.msk [vmem:[%s6611_s2 + $0x2cc] sm:$0xf] %vm3693_vm0, %v4525_v37  ;;  %v2467_v50 = vmax.f32 %v4808_v40, %v2211_v42  ;;  %v2595_v51 = vmax.f32 %v4936_v41, %v2339_v43  ;;  %v2212_v52 = vmul.f32 0.2, %v4809_v48 }
 0x162   :  { %3743 = vst.msk [vmem:[%s6611_s2 + $0xc4] sm:$0xf] %vm3693_vm0, %v4395_v38  ;;  %3871 = vst.msk [vmem:[%s6611_s2 + $0x2c4] sm:$0xf] %vm3693_vm0, %v4523_v39  ;;  %v2340_v53 = vmul.f32 0.2, %v4937_v49  ;;  %v2465_v56 = vmax.f32 %v1342_v44, %v2209_v46  ;;  %v2593_v57 = vmax.f32 %v1854_v45, %v2337_v47 }
 0x163   :  { %v1345_v54 = vpop.f32.mrb[55].mxu0  ;;  %v1857_v55 = vpop.f32.mrb[55].mxu1  ;;  %v4400_v60 = vpack.c.bf16 %v2467_v50, %v2467_v50  ;;  %v4528_v61 = vpack.c.bf16 %v2595_v51, %v2595_v51  ;;  %v2468_v62 = vmax.f32 %v4809_v48, %v2212_v52 }
 0x164   :  { %v2210_v58 = vmul.f32 0.2, %v1345_v54  ;;  %v2338_v59 = vmul.f32 0.2, %v1857_v55  ;;  %v2596_v63 = vmax.f32 %v4937_v49, %v2340_v53  ;;  %v4398_v0 = vpack.c.bf16 %v2465_v56, %v2465_v56 }
 0x165   :  { %v4526_v1 = vpack.c.bf16 %v2593_v57, %v2593_v57  ;;  %3748 = vst.msk [vmem:[%s6611_s2 + $0xd8] sm:$0xf] %vm3693_vm0, %v4400_v60  ;;  %3876 = vst.msk [vmem:[%s6611_s2 + $0x2d8] sm:$0xf] %vm3693_vm0, %v4528_v61  ;;  %v4401_v4 = vpack.c.bf16 %v2468_v62, %v2468_v62  ;;  %v4812_v8 = vpop.f32.mrb[56].mxu0  ;;  %v4940_v9 = vpop.f32.mrb[56].mxu1 }
 0x166   :  { %v2466_v2 = vmax.f32 %v1345_v54, %v2210_v58  ;;  %v2594_v3 = vmax.f32 %v1857_v55, %v2338_v59  ;;  %v4529_v5 = vpack.c.bf16 %v2596_v63, %v2596_v63  ;;  %3746 = vst.msk [vmem:[%s6611_s2 + $0xd0] sm:$0xf] %vm3693_vm0, %v4398_v0  ;;  %v2215_v10 = vmul.f32 0.2, %v4812_v8  ;;  %v1358_v12 = vpop.f32.mrb[57].mxu0  ;;  %v1870_v13 = vpop.f32.mrb[57].mxu1 }
 0x167   :  { %3874 = vst.msk [vmem:[%s6611_s2 + $0x2d0] sm:$0xf] %vm3693_vm0, %v4526_v1  ;;  %3749 = vst.msk [vmem:[%s6611_s2 + $0xdc] sm:$0xf] %vm3693_vm0, %v4401_v4  ;;  %v2343_v11 = vmul.f32 0.2, %v4940_v9 }
 0x168   :  { %v4399_v6 = vpack.c.bf16 %v2466_v2, %v2466_v2  ;;  %v4527_v7 = vpack.c.bf16 %v2594_v3, %v2594_v3  ;;  %3877 = vst.msk [vmem:[%s6611_s2 + $0x2dc] sm:$0xf] %vm3693_vm0, %v4529_v5  ;;  %v2213_v14 = vmul.f32 0.2, %v1358_v12  ;;  %v2341_v15 = vmul.f32 0.2, %v1870_v13 }
 0x169   :  { %v4813_v16 = vpop.f32.mrb[58].mxu0  ;;  %v4941_v17 = vpop.f32.mrb[58].mxu1  ;;  %v2471_v18 = vmax.f32 %v4812_v8, %v2215_v10  ;;  %v2599_v19 = vmax.f32 %v4940_v9, %v2343_v11 }
 0x16a   :  { %3747 = vst.msk [vmem:[%s6611_s2 + $0xd4] sm:$0xf] %vm3693_vm0, %v4399_v6  ;;  %3875 = vst.msk [vmem:[%s6611_s2 + $0x2d4] sm:$0xf] %vm3693_vm0, %v4527_v7  ;;  %v2216_v20 = vmul.f32 0.2, %v4813_v16  ;;  %v2469_v24 = vmax.f32 %v1358_v12, %v2213_v14  ;;  %v2597_v25 = vmax.f32 %v1870_v13, %v2341_v15 }
 0x16b   :  { %v2344_v21 = vmul.f32 0.2, %v4941_v17  ;;  %v1361_v22 = vpop.f32.mrb[59].mxu0  ;;  %v1873_v23 = vpop.f32.mrb[59].mxu1  ;;  %v4404_v28 = vpack.c.bf16 %v2471_v18, %v2471_v18  ;;  %v4532_v29 = vpack.c.bf16 %v2599_v19, %v2599_v19 }
 0x16c   :  { %v2214_v26 = vmul.f32 0.2, %v1361_v22  ;;  %v2342_v27 = vmul.f32 0.2, %v1873_v23  ;;  %v2472_v30 = vmax.f32 %v4813_v16, %v2216_v20  ;;  %v4402_v32 = vpack.c.bf16 %v2469_v24, %v2469_v24 }
 0x16d   :  { %v2600_v31 = vmax.f32 %v4941_v17, %v2344_v21  ;;  %v4530_v33 = vpack.c.bf16 %v2597_v25, %v2597_v25  ;;  %3752 = vst.msk [vmem:[%s6611_s2 + $0xe8] sm:$0xf] %vm3693_vm0, %v4404_v28  ;;  %3880 = vst.msk [vmem:[%s6611_s2 + $0x2e8] sm:$0xf] %vm3693_vm0, %v4532_v29  ;;  %v4816_v40 = vpop.f32.mrb[60].mxu0  ;;  %v4944_v41 = vpop.f32.mrb[60].mxu1 }
 0x16e   :  { %v2470_v34 = vmax.f32 %v1361_v22, %v2214_v26  ;;  %v2598_v35 = vmax.f32 %v1873_v23, %v2342_v27  ;;  %v4405_v36 = vpack.c.bf16 %v2472_v30, %v2472_v30  ;;  %3750 = vst.msk [vmem:[%s6611_s2 + $0xe0] sm:$0xf] %vm3693_vm0, %v4402_v32  ;;  %v2219_v42 = vmul.f32 0.2, %v4816_v40  ;;  %v1374_v44 = vpop.f32.mrb[61].mxu0  ;;  %v1886_v45 = vpop.f32.mrb[61].mxu1 }
 0x16f   :  { %v4533_v37 = vpack.c.bf16 %v2600_v31, %v2600_v31  ;;  %3878 = vst.msk [vmem:[%s6611_s2 + $0x2e0] sm:$0xf] %vm3693_vm0, %v4530_v33  ;;  %v2347_v43 = vmul.f32 0.2, %v4944_v41  ;;  %v2217_v46 = vmul.f32 0.2, %v1374_v44 }
 0x170   :  { %v4403_v38 = vpack.c.bf16 %v2470_v34, %v2470_v34  ;;  %v4531_v39 = vpack.c.bf16 %v2598_v35, %v2598_v35  ;;  %3753 = vst.msk [vmem:[%s6611_s2 + $0xec] sm:$0xf] %vm3693_vm0, %v4405_v36  ;;  %v2345_v47 = vmul.f32 0.2, %v1886_v45  ;;  %v4817_v48 = vpop.f32.mrb[62].mxu0  ;;  %v4945_v49 = vpop.f32.mrb[62].mxu1  ;;  %v2475_v50 = vmax.f32 %v4816_v40, %v2219_v42 }
 0x171   :  { %3881 = vst.msk [vmem:[%s6611_s2 + $0x2ec] sm:$0xf] %vm3693_vm0, %v4533_v37  ;;  %v2603_v51 = vmax.f32 %v4944_v41, %v2347_v43  ;;  %v2220_v52 = vmul.f32 0.2, %v4817_v48  ;;  %v2348_v53 = vmul.f32 0.2, %v4945_v49  ;;  %v2473_v56 = vmax.f32 %v1374_v44, %v2217_v46 }
 0x172   :  { %3751 = vst.msk [vmem:[%s6611_s2 + $0xe4] sm:$0xf] %vm3693_vm0, %v4403_v38  ;;  %3879 = vst.msk [vmem:[%s6611_s2 + $0x2e4] sm:$0xf] %vm3693_vm0, %v4531_v39  ;;  %v1377_v54 = vpop.f32.mrb[63].mxu0  ;;  %v1889_v55 = vpop.f32.mrb[63].mxu1  ;;  %v2601_v57 = vmax.f32 %v1886_v45, %v2345_v47  ;;  %v4408_v60 = vpack.c.bf16 %v2475_v50, %v2475_v50 }
 0x173   :  { %v2218_v58 = vmul.f32 0.2, %v1377_v54  ;;  %v2346_v59 = vmul.f32 0.2, %v1889_v55  ;;  %v4536_v61 = vpack.c.bf16 %v2603_v51, %v2603_v51  ;;  %v2476_v62 = vmax.f32 %v4817_v48, %v2220_v52 }
 0x174   :  { %v2604_v63 = vmax.f32 %v4945_v49, %v2348_v53  ;;  %v4406_v0 = vpack.c.bf16 %v2473_v56, %v2473_v56  ;;  %v4534_v1 = vpack.c.bf16 %v2601_v57, %v2601_v57  ;;  %3756 = vst.msk [vmem:[%s6611_s2 + $0xf8] sm:$0xf] %vm3693_vm0, %v4408_v60 }
 0x175   :  { %v2474_v2 = vmax.f32 %v1377_v54, %v2218_v58  ;;  %v2602_v3 = vmax.f32 %v1889_v55, %v2346_v59  ;;  %3884 = vst.msk [vmem:[%s6611_s2 + $0x2f8] sm:$0xf] %vm3693_vm0, %v4536_v61  ;;  %v4409_v4 = vpack.c.bf16 %v2476_v62, %v2476_v62  ;;  %v4820_v8 = vpop.f32.mrb[64].mxu0  ;;  %v4948_v9 = vpop.f32.mrb[64].mxu1 }
 0x176   :  { %v4537_v5 = vpack.c.bf16 %v2604_v63, %v2604_v63  ;;  %3754 = vst.msk [vmem:[%s6611_s2 + $0xf0] sm:$0xf] %vm3693_vm0, %v4406_v0  ;;  %3882 = vst.msk [vmem:[%s6611_s2 + $0x2f0] sm:$0xf] %vm3693_vm0, %v4534_v1  ;;  %v2223_v10 = vmul.f32 0.2, %v4820_v8 }
 0x177   :  { %v4407_v6 = vpack.c.bf16 %v2474_v2, %v2474_v2  ;;  %v4535_v7 = vpack.c.bf16 %v2602_v3, %v2602_v3  ;;  %3757 = vst.msk [vmem:[%s6611_s2 + $0xfc] sm:$0xf] %vm3693_vm0, %v4409_v4  ;;  %v2351_v11 = vmul.f32 0.2, %v4948_v9  ;;  %v1390_v12 = vpop.f32.mrb[65].mxu0  ;;  %v1902_v13 = vpop.f32.mrb[65].mxu1 }
 0x178   :  { %3885 = vst.msk [vmem:[%s6611_s2 + $0x2fc] sm:$0xf] %vm3693_vm0, %v4537_v5  ;;  %v2221_v14 = vmul.f32 0.2, %v1390_v12  ;;  %v2349_v15 = vmul.f32 0.2, %v1902_v13  ;;  %v2479_v18 = vmax.f32 %v4820_v8, %v2223_v10 }
 0x179   :  { %3755 = vst.msk [vmem:[%s6611_s2 + $0xf4] sm:$0xf] %vm3693_vm0, %v4407_v6  ;;  %3883 = vst.msk [vmem:[%s6611_s2 + $0x2f4] sm:$0xf] %vm3693_vm0, %v4535_v7  ;;  %v4821_v16 = vpop.f32.mrb[66].mxu0  ;;  %v4949_v17 = vpop.f32.mrb[66].mxu1  ;;  %v2607_v19 = vmax.f32 %v4948_v9, %v2351_v11 }
 0x17a   :  { %v2224_v20 = vmul.f32 0.2, %v4821_v16  ;;  %v2352_v21 = vmul.f32 0.2, %v4949_v17  ;;  %v1393_v22 = vpop.f32.mrb[67].mxu0  ;;  %v1905_v23 = vpop.f32.mrb[67].mxu1  ;;  %v2477_v24 = vmax.f32 %v1390_v12, %v2221_v14  ;;  %v2605_v25 = vmax.f32 %v1902_v13, %v2349_v15 }
 0x17b   :  { %v2222_v26 = vmul.f32 0.2, %v1393_v22  ;;  %v2350_v27 = vmul.f32 0.2, %v1905_v23  ;;  %v4412_v28 = vpack.c.bf16 %v2479_v18, %v2479_v18  ;;  %v4540_v29 = vpack.c.bf16 %v2607_v19, %v2607_v19 }
 0x17c   :  { %v2480_v30 = vmax.f32 %v4821_v16, %v2224_v20  ;;  %v2608_v31 = vmax.f32 %v4949_v17, %v2352_v21  ;;  %v4410_v32 = vpack.c.bf16 %v2477_v24, %v2477_v24  ;;  %v4538_v33 = vpack.c.bf16 %v2605_v25, %v2605_v25 }
 0x17d   :  { %v2478_v34 = vmax.f32 %v1393_v22, %v2222_v26  ;;  %v2606_v35 = vmax.f32 %v1905_v23, %v2350_v27  ;;  %3760 = vst.msk [vmem:[%s6611_s2 + $0x108] sm:$0xf] %vm3693_vm0, %v4412_v28  ;;  %3888 = vst.msk [vmem:[%s6611_s2 + $0x308] sm:$0xf] %vm3693_vm0, %v4540_v29  ;;  %v4824_v40 = vpop.f32.mrb[68].mxu0  ;;  %v4952_v41 = vpop.f32.mrb[68].mxu1 }
 0x17e   :  { %v4413_v36 = vpack.c.bf16 %v2480_v30, %v2480_v30  ;;  %v4541_v37 = vpack.c.bf16 %v2608_v31, %v2608_v31  ;;  %3758 = vst.msk [vmem:[%s6611_s2 + $0x100] sm:$0xf] %vm3693_vm0, %v4410_v32  ;;  %3886 = vst.msk [vmem:[%s6611_s2 + $0x300] sm:$0xf] %vm3693_vm0, %v4538_v33  ;;  %v2227_v42 = vmul.f32 0.2, %v4824_v40 }
 0x17f   :  { %v4411_v38 = vpack.c.bf16 %v2478_v34, %v2478_v34  ;;  %v4539_v39 = vpack.c.bf16 %v2606_v35, %v2606_v35  ;;  %v2355_v43 = vmul.f32 0.2, %v4952_v41  ;;  %v1406_v44 = vpop.f32.mrb[69].mxu0  ;;  %v1918_v45 = vpop.f32.mrb[69].mxu1 }
 0x180   :  { %3761 = vst.msk [vmem:[%s6611_s2 + $0x10c] sm:$0xf] %vm3693_vm0, %v4413_v36  ;;  %3889 = vst.msk [vmem:[%s6611_s2 + $0x30c] sm:$0xf] %vm3693_vm0, %v4541_v37  ;;  %v2225_v46 = vmul.f32 0.2, %v1406_v44  ;;  %v2483_v50 = vmax.f32 %v4824_v40, %v2227_v42 }
 0x181   :  { %3759 = vst.msk [vmem:[%s6611_s2 + $0x104] sm:$0xf] %vm3693_vm0, %v4411_v38  ;;  %3887 = vst.msk [vmem:[%s6611_s2 + $0x304] sm:$0xf] %vm3693_vm0, %v4539_v39  ;;  %v2353_v47 = vmul.f32 0.2, %v1918_v45  ;;  %v2611_v51 = vmax.f32 %v4952_v41, %v2355_v43 }
 0x182   :  { %v4825_v48 = vpop.f32.mrb[70].mxu0  ;;  %v4953_v49 = vpop.f32.mrb[70].mxu1  ;;  %v2481_v56 = vmax.f32 %v1406_v44, %v2225_v46  ;;  %v4416_v60 = vpack.c.bf16 %v2483_v50, %v2483_v50 }
 0x183   :  { %v2228_v52 = vmul.f32 0.2, %v4825_v48  ;;  %v2356_v53 = vmul.f32 0.2, %v4953_v49  ;;  %v1409_v54 = vpop.f32.mrb[71].mxu0  ;;  %v1921_v55 = vpop.f32.mrb[71].mxu1  ;;  %v2609_v57 = vmax.f32 %v1918_v45, %v2353_v47  ;;  %v4544_v61 = vpack.c.bf16 %v2611_v51, %v2611_v51 }
 0x184   :  { %v2226_v58 = vmul.f32 0.2, %v1409_v54  ;;  %v2354_v59 = vmul.f32 0.2, %v1921_v55  ;;  %v4414_v0 = vpack.c.bf16 %v2481_v56, %v2481_v56  ;;  %3764 = vst.msk [vmem:[%s6611_s2 + $0x118] sm:$0xf] %vm3693_vm0, %v4416_v60 }
 0x185   :  { %v2484_v62 = vmax.f32 %v4825_v48, %v2228_v52  ;;  %v2612_v63 = vmax.f32 %v4953_v49, %v2356_v53  ;;  %v4542_v1 = vpack.c.bf16 %v2609_v57, %v2609_v57  ;;  %3892 = vst.msk [vmem:[%s6611_s2 + $0x318] sm:$0xf] %vm3693_vm0, %v4544_v61  ;;  %v4828_v8 = vpop.f32.mrb[72].mxu0  ;;  %v4956_v9 = vpop.f32.mrb[72].mxu1 }
 0x186   :  { %v2482_v2 = vmax.f32 %v1409_v54, %v2226_v58  ;;  %v2610_v3 = vmax.f32 %v1921_v55, %v2354_v59  ;;  %3762 = vst.msk [vmem:[%s6611_s2 + $0x110] sm:$0xf] %vm3693_vm0, %v4414_v0  ;;  %v2231_v10 = vmul.f32 0.2, %v4828_v8  ;;  %v2359_v11 = vmul.f32 0.2, %v4956_v9 }
 0x187   :  { %v4417_v4 = vpack.c.bf16 %v2484_v62, %v2484_v62  ;;  %v4545_v5 = vpack.c.bf16 %v2612_v63, %v2612_v63  ;;  %3890 = vst.msk [vmem:[%s6611_s2 + $0x310] sm:$0xf] %vm3693_vm0, %v4542_v1  ;;  %v1422_v12 = vpop.f32.mrb[73].mxu0  ;;  %v1934_v13 = vpop.f32.mrb[73].mxu1 }
 0x188   :  { %v4415_v6 = vpack.c.bf16 %v2482_v2, %v2482_v2  ;;  %v4543_v7 = vpack.c.bf16 %v2610_v3, %v2610_v3  ;;  %v2229_v14 = vmul.f32 0.2, %v1422_v12  ;;  %v2357_v15 = vmul.f32 0.2, %v1934_v13  ;;  %v4829_v16 = vpop.f32.mrb[74].mxu0  ;;  %v4957_v17 = vpop.f32.mrb[74].mxu1 }
 0x189   :  { %3765 = vst.msk [vmem:[%s6611_s2 + $0x11c] sm:$0xf] %vm3693_vm0, %v4417_v4  ;;  %3893 = vst.msk [vmem:[%s6611_s2 + $0x31c] sm:$0xf] %vm3693_vm0, %v4545_v5  ;;  %v2487_v18 = vmax.f32 %v4828_v8, %v2231_v10  ;;  %v2615_v19 = vmax.f32 %v4956_v9, %v2359_v11  ;;  %v2232_v20 = vmul.f32 0.2, %v4829_v16 }
 0x18a   :  { %3763 = vst.msk [vmem:[%s6611_s2 + $0x114] sm:$0xf] %vm3693_vm0, %v4415_v6  ;;  %3891 = vst.msk [vmem:[%s6611_s2 + $0x314] sm:$0xf] %vm3693_vm0, %v4543_v7  ;;  %v2360_v21 = vmul.f32 0.2, %v4957_v17  ;;  %v2485_v24 = vmax.f32 %v1422_v12, %v2229_v14  ;;  %v2613_v25 = vmax.f32 %v1934_v13, %v2357_v15 }
 0x18b   :  { %v1425_v22 = vpop.f32.mrb[75].mxu0  ;;  %v1937_v23 = vpop.f32.mrb[75].mxu1  ;;  %v4420_v28 = vpack.c.bf16 %v2487_v18, %v2487_v18  ;;  %v4548_v29 = vpack.c.bf16 %v2615_v19, %v2615_v19  ;;  %v2488_v30 = vmax.f32 %v4829_v16, %v2232_v20 }
 0x18c   :  { %v2230_v26 = vmul.f32 0.2, %v1425_v22  ;;  %v2358_v27 = vmul.f32 0.2, %v1937_v23  ;;  %v2616_v31 = vmax.f32 %v4957_v17, %v2360_v21  ;;  %v4418_v32 = vpack.c.bf16 %v2485_v24, %v2485_v24 }
 0x18d   :  { %v4546_v33 = vpack.c.bf16 %v2613_v25, %v2613_v25  ;;  %3768 = vst.msk [vmem:[%s6611_s2 + $0x128] sm:$0xf] %vm3693_vm0, %v4420_v28  ;;  %3896 = vst.msk [vmem:[%s6611_s2 + $0x328] sm:$0xf] %vm3693_vm0, %v4548_v29  ;;  %v4421_v36 = vpack.c.bf16 %v2488_v30, %v2488_v30  ;;  %v4832_v40 = vpop.f32.mrb[76].mxu0  ;;  %v4960_v41 = vpop.f32.mrb[76].mxu1 }
 0x18e   :  { %v2486_v34 = vmax.f32 %v1425_v22, %v2230_v26  ;;  %v2614_v35 = vmax.f32 %v1937_v23, %v2358_v27  ;;  %v4549_v37 = vpack.c.bf16 %v2616_v31, %v2616_v31  ;;  %3766 = vst.msk [vmem:[%s6611_s2 + $0x120] sm:$0xf] %vm3693_vm0, %v4418_v32  ;;  %v2235_v42 = vmul.f32 0.2, %v4832_v40  ;;  %v1438_v44 = vpop.f32.mrb[77].mxu0  ;;  %v1950_v45 = vpop.f32.mrb[77].mxu1 }
 0x18f   :  { %3894 = vst.msk [vmem:[%s6611_s2 + $0x320] sm:$0xf] %vm3693_vm0, %v4546_v33  ;;  %3769 = vst.msk [vmem:[%s6611_s2 + $0x12c] sm:$0xf] %vm3693_vm0, %v4421_v36  ;;  %v2363_v43 = vmul.f32 0.2, %v4960_v41 }
 0x190   :  { %v4419_v38 = vpack.c.bf16 %v2486_v34, %v2486_v34  ;;  %v4547_v39 = vpack.c.bf16 %v2614_v35, %v2614_v35  ;;  %3897 = vst.msk [vmem:[%s6611_s2 + $0x32c] sm:$0xf] %vm3693_vm0, %v4549_v37  ;;  %v2233_v46 = vmul.f32 0.2, %v1438_v44  ;;  %v2361_v47 = vmul.f32 0.2, %v1950_v45 }
 0x191   :  { %v4833_v48 = vpop.f32.mrb[78].mxu0  ;;  %v4961_v49 = vpop.f32.mrb[78].mxu1  ;;  %v2491_v50 = vmax.f32 %v4832_v40, %v2235_v42  ;;  %v2619_v51 = vmax.f32 %v4960_v41, %v2363_v43 }
 0x192   :  { %3767 = vst.msk [vmem:[%s6611_s2 + $0x124] sm:$0xf] %vm3693_vm0, %v4419_v38  ;;  %3895 = vst.msk [vmem:[%s6611_s2 + $0x324] sm:$0xf] %vm3693_vm0, %v4547_v39  ;;  %v2236_v52 = vmul.f32 0.2, %v4833_v48  ;;  %v2489_v56 = vmax.f32 %v1438_v44, %v2233_v46  ;;  %v2617_v57 = vmax.f32 %v1950_v45, %v2361_v47 }
 0x193   :  { %v2364_v53 = vmul.f32 0.2, %v4961_v49  ;;  %v1441_v54 = vpop.f32.mrb[79].mxu0  ;;  %v1953_v55 = vpop.f32.mrb[79].mxu1  ;;  %v4424_v60 = vpack.c.bf16 %v2491_v50, %v2491_v50  ;;  %v4552_v61 = vpack.c.bf16 %v2619_v51, %v2619_v51 }
 0x194   :  { %v2234_v58 = vmul.f32 0.2, %v1441_v54  ;;  %v2362_v59 = vmul.f32 0.2, %v1953_v55  ;;  %v2492_v62 = vmax.f32 %v4833_v48, %v2236_v52  ;;  %v4422_v0 = vpack.c.bf16 %v2489_v56, %v2489_v56 }
 0x195   :  { %v2620_v63 = vmax.f32 %v4961_v49, %v2364_v53  ;;  %v4550_v1 = vpack.c.bf16 %v2617_v57, %v2617_v57  ;;  %3772 = vst.msk [vmem:[%s6611_s2 + $0x138] sm:$0xf] %vm3693_vm0, %v4424_v60  ;;  %3900 = vst.msk [vmem:[%s6611_s2 + $0x338] sm:$0xf] %vm3693_vm0, %v4552_v61  ;;  %v4836_v8 = vpop.f32.mrb[80].mxu0  ;;  %v4964_v9 = vpop.f32.mrb[80].mxu1 }
 0x196   :  { %v2490_v2 = vmax.f32 %v1441_v54, %v2234_v58  ;;  %v2618_v3 = vmax.f32 %v1953_v55, %v2362_v59  ;;  %v4425_v4 = vpack.c.bf16 %v2492_v62, %v2492_v62  ;;  %3770 = vst.msk [vmem:[%s6611_s2 + $0x130] sm:$0xf] %vm3693_vm0, %v4422_v0  ;;  %v2239_v10 = vmul.f32 0.2, %v4836_v8  ;;  %v1454_v12 = vpop.f32.mrb[81].mxu0  ;;  %v1966_v13 = vpop.f32.mrb[81].mxu1 }
 0x197   :  { %v4553_v5 = vpack.c.bf16 %v2620_v63, %v2620_v63  ;;  %3898 = vst.msk [vmem:[%s6611_s2 + $0x330] sm:$0xf] %vm3693_vm0, %v4550_v1  ;;  %v2367_v11 = vmul.f32 0.2, %v4964_v9  ;;  %v2237_v14 = vmul.f32 0.2, %v1454_v12 }
 0x198   :  { %v4423_v6 = vpack.c.bf16 %v2490_v2, %v2490_v2  ;;  %v4551_v7 = vpack.c.bf16 %v2618_v3, %v2618_v3  ;;  %3773 = vst.msk [vmem:[%s6611_s2 + $0x13c] sm:$0xf] %vm3693_vm0, %v4425_v4  ;;  %v2365_v15 = vmul.f32 0.2, %v1966_v13  ;;  %v4837_v16 = vpop.f32.mrb[82].mxu0  ;;  %v4965_v17 = vpop.f32.mrb[82].mxu1  ;;  %v2495_v18 = vmax.f32 %v4836_v8, %v2239_v10 }
 0x199   :  { %3901 = vst.msk [vmem:[%s6611_s2 + $0x33c] sm:$0xf] %vm3693_vm0, %v4553_v5  ;;  %v2623_v19 = vmax.f32 %v4964_v9, %v2367_v11  ;;  %v2240_v20 = vmul.f32 0.2, %v4837_v16  ;;  %v2368_v21 = vmul.f32 0.2, %v4965_v17  ;;  %v2493_v24 = vmax.f32 %v1454_v12, %v2237_v14 }
 0x19a   :  { %3771 = vst.msk [vmem:[%s6611_s2 + $0x134] sm:$0xf] %vm3693_vm0, %v4423_v6  ;;  %3899 = vst.msk [vmem:[%s6611_s2 + $0x334] sm:$0xf] %vm3693_vm0, %v4551_v7  ;;  %v1457_v22 = vpop.f32.mrb[83].mxu0  ;;  %v1969_v23 = vpop.f32.mrb[83].mxu1  ;;  %v2621_v25 = vmax.f32 %v1966_v13, %v2365_v15  ;;  %v4428_v28 = vpack.c.bf16 %v2495_v18, %v2495_v18 }
 0x19b   :  { %v2238_v26 = vmul.f32 0.2, %v1457_v22  ;;  %v2366_v27 = vmul.f32 0.2, %v1969_v23  ;;  %v4556_v29 = vpack.c.bf16 %v2623_v19, %v2623_v19  ;;  %v2496_v30 = vmax.f32 %v4837_v16, %v2240_v20 }
 0x19c   :  { %v2624_v31 = vmax.f32 %v4965_v17, %v2368_v21  ;;  %v4426_v32 = vpack.c.bf16 %v2493_v24, %v2493_v24  ;;  %v4554_v33 = vpack.c.bf16 %v2621_v25, %v2621_v25  ;;  %3776 = vst.msk [vmem:[%s6611_s2 + $0x148] sm:$0xf] %vm3693_vm0, %v4428_v28 }
 0x19d   :  { %v2494_v34 = vmax.f32 %v1457_v22, %v2238_v26  ;;  %v2622_v35 = vmax.f32 %v1969_v23, %v2366_v27  ;;  %3904 = vst.msk [vmem:[%s6611_s2 + $0x348] sm:$0xf] %vm3693_vm0, %v4556_v29  ;;  %v4429_v36 = vpack.c.bf16 %v2496_v30, %v2496_v30  ;;  %v4840_v40 = vpop.f32.mrb[84].mxu0  ;;  %v4968_v41 = vpop.f32.mrb[84].mxu1 }
 0x19e   :  { %v4557_v37 = vpack.c.bf16 %v2624_v31, %v2624_v31  ;;  %3774 = vst.msk [vmem:[%s6611_s2 + $0x140] sm:$0xf] %vm3693_vm0, %v4426_v32  ;;  %3902 = vst.msk [vmem:[%s6611_s2 + $0x340] sm:$0xf] %vm3693_vm0, %v4554_v33  ;;  %v2243_v42 = vmul.f32 0.2, %v4840_v40 }
 0x19f   :  { %v4427_v38 = vpack.c.bf16 %v2494_v34, %v2494_v34  ;;  %v4555_v39 = vpack.c.bf16 %v2622_v35, %v2622_v35  ;;  %3777 = vst.msk [vmem:[%s6611_s2 + $0x14c] sm:$0xf] %vm3693_vm0, %v4429_v36  ;;  %v2371_v43 = vmul.f32 0.2, %v4968_v41  ;;  %v1470_v44 = vpop.f32.mrb[85].mxu0  ;;  %v1982_v45 = vpop.f32.mrb[85].mxu1 }
 0x1a0   :  { %3905 = vst.msk [vmem:[%s6611_s2 + $0x34c] sm:$0xf] %vm3693_vm0, %v4557_v37  ;;  %v2241_v46 = vmul.f32 0.2, %v1470_v44  ;;  %v2369_v47 = vmul.f32 0.2, %v1982_v45  ;;  %v2499_v50 = vmax.f32 %v4840_v40, %v2243_v42 }
 0x1a1   :  { %3775 = vst.msk [vmem:[%s6611_s2 + $0x144] sm:$0xf] %vm3693_vm0, %v4427_v38  ;;  %3903 = vst.msk [vmem:[%s6611_s2 + $0x344] sm:$0xf] %vm3693_vm0, %v4555_v39  ;;  %v4841_v48 = vpop.f32.mrb[86].mxu0  ;;  %v4969_v49 = vpop.f32.mrb[86].mxu1  ;;  %v2627_v51 = vmax.f32 %v4968_v41, %v2371_v43 }
 0x1a2   :  { %v2244_v52 = vmul.f32 0.2, %v4841_v48  ;;  %v2372_v53 = vmul.f32 0.2, %v4969_v49  ;;  %v1473_v54 = vpop.f32.mrb[87].mxu0  ;;  %v1985_v55 = vpop.f32.mrb[87].mxu1  ;;  %v2497_v56 = vmax.f32 %v1470_v44, %v2241_v46  ;;  %v2625_v57 = vmax.f32 %v1982_v45, %v2369_v47 }
 0x1a3   :  { %v2242_v58 = vmul.f32 0.2, %v1473_v54  ;;  %v2370_v59 = vmul.f32 0.2, %v1985_v55  ;;  %v4432_v60 = vpack.c.bf16 %v2499_v50, %v2499_v50  ;;  %v4560_v61 = vpack.c.bf16 %v2627_v51, %v2627_v51 }
 0x1a4   :  { %v2500_v62 = vmax.f32 %v4841_v48, %v2244_v52  ;;  %v2628_v63 = vmax.f32 %v4969_v49, %v2372_v53  ;;  %v4430_v0 = vpack.c.bf16 %v2497_v56, %v2497_v56  ;;  %v4558_v1 = vpack.c.bf16 %v2625_v57, %v2625_v57 }
 0x1a5   :  { %v2498_v2 = vmax.f32 %v1473_v54, %v2242_v58  ;;  %v2626_v3 = vmax.f32 %v1985_v55, %v2370_v59  ;;  %3780 = vst.msk [vmem:[%s6611_s2 + $0x158] sm:$0xf] %vm3693_vm0, %v4432_v60  ;;  %3908 = vst.msk [vmem:[%s6611_s2 + $0x358] sm:$0xf] %vm3693_vm0, %v4560_v61  ;;  %v4844_v8 = vpop.f32.mrb[88].mxu0  ;;  %v4972_v9 = vpop.f32.mrb[88].mxu1 }
 0x1a6   :  { %v4433_v4 = vpack.c.bf16 %v2500_v62, %v2500_v62  ;;  %v4561_v5 = vpack.c.bf16 %v2628_v63, %v2628_v63  ;;  %3778 = vst.msk [vmem:[%s6611_s2 + $0x150] sm:$0xf] %vm3693_vm0, %v4430_v0  ;;  %3906 = vst.msk [vmem:[%s6611_s2 + $0x350] sm:$0xf] %vm3693_vm0, %v4558_v1  ;;  %v2247_v10 = vmul.f32 0.2, %v4844_v8 }
 0x1a7   :  { %v4431_v6 = vpack.c.bf16 %v2498_v2, %v2498_v2  ;;  %v4559_v7 = vpack.c.bf16 %v2626_v3, %v2626_v3  ;;  %v2375_v11 = vmul.f32 0.2, %v4972_v9  ;;  %v1486_v12 = vpop.f32.mrb[89].mxu0  ;;  %v1998_v13 = vpop.f32.mrb[89].mxu1 }
 0x1a8   :  { %3781 = vst.msk [vmem:[%s6611_s2 + $0x15c] sm:$0xf] %vm3693_vm0, %v4433_v4  ;;  %3909 = vst.msk [vmem:[%s6611_s2 + $0x35c] sm:$0xf] %vm3693_vm0, %v4561_v5  ;;  %v2245_v14 = vmul.f32 0.2, %v1486_v12  ;;  %v2503_v18 = vmax.f32 %v4844_v8, %v2247_v10 }
 0x1a9   :  { %3779 = vst.msk [vmem:[%s6611_s2 + $0x154] sm:$0xf] %vm3693_vm0, %v4431_v6  ;;  %3907 = vst.msk [vmem:[%s6611_s2 + $0x354] sm:$0xf] %vm3693_vm0, %v4559_v7  ;;  %v2373_v15 = vmul.f32 0.2, %v1998_v13  ;;  %v2631_v19 = vmax.f32 %v4972_v9, %v2375_v11 }
 0x1aa   :  { %v4845_v16 = vpop.f32.mrb[90].mxu0  ;;  %v4973_v17 = vpop.f32.mrb[90].mxu1  ;;  %v2501_v24 = vmax.f32 %v1486_v12, %v2245_v14  ;;  %v4436_v28 = vpack.c.bf16 %v2503_v18, %v2503_v18 }
 0x1ab   :  { %v2248_v20 = vmul.f32 0.2, %v4845_v16  ;;  %v2376_v21 = vmul.f32 0.2, %v4973_v17  ;;  %v1489_v22 = vpop.f32.mrb[91].mxu0  ;;  %v2001_v23 = vpop.f32.mrb[91].mxu1  ;;  %v2629_v25 = vmax.f32 %v1998_v13, %v2373_v15  ;;  %v4564_v29 = vpack.c.bf16 %v2631_v19, %v2631_v19 }
 0x1ac   :  { %v2246_v26 = vmul.f32 0.2, %v1489_v22  ;;  %v2374_v27 = vmul.f32 0.2, %v2001_v23  ;;  %v4434_v32 = vpack.c.bf16 %v2501_v24, %v2501_v24  ;;  %3784 = vst.msk [vmem:[%s6611_s2 + $0x168] sm:$0xf] %vm3693_vm0, %v4436_v28 }
 0x1ad   :  { %v2504_v30 = vmax.f32 %v4845_v16, %v2248_v20  ;;  %v2632_v31 = vmax.f32 %v4973_v17, %v2376_v21  ;;  %v4562_v33 = vpack.c.bf16 %v2629_v25, %v2629_v25  ;;  %3912 = vst.msk [vmem:[%s6611_s2 + $0x368] sm:$0xf] %vm3693_vm0, %v4564_v29  ;;  %v4848_v40 = vpop.f32.mrb[92].mxu0  ;;  %v4976_v41 = vpop.f32.mrb[92].mxu1 }
 0x1ae   :  { %v2502_v34 = vmax.f32 %v1489_v22, %v2246_v26  ;;  %v2630_v35 = vmax.f32 %v2001_v23, %v2374_v27  ;;  %3782 = vst.msk [vmem:[%s6611_s2 + $0x160] sm:$0xf] %vm3693_vm0, %v4434_v32  ;;  %v2251_v42 = vmul.f32 0.2, %v4848_v40  ;;  %v2379_v43 = vmul.f32 0.2, %v4976_v41 }
 0x1af   :  { %v4437_v36 = vpack.c.bf16 %v2504_v30, %v2504_v30  ;;  %v4565_v37 = vpack.c.bf16 %v2632_v31, %v2632_v31  ;;  %3910 = vst.msk [vmem:[%s6611_s2 + $0x360] sm:$0xf] %vm3693_vm0, %v4562_v33  ;;  %v1502_v44 = vpop.f32.mrb[93].mxu0  ;;  %v2014_v45 = vpop.f32.mrb[93].mxu1 }
 0x1b0   :  { %v4435_v38 = vpack.c.bf16 %v2502_v34, %v2502_v34  ;;  %v4563_v39 = vpack.c.bf16 %v2630_v35, %v2630_v35  ;;  %v2249_v46 = vmul.f32 0.2, %v1502_v44  ;;  %v2377_v47 = vmul.f32 0.2, %v2014_v45  ;;  %v4849_v48 = vpop.f32.mrb[94].mxu0  ;;  %v4977_v49 = vpop.f32.mrb[94].mxu1 }
 0x1b1   :  { %3785 = vst.msk [vmem:[%s6611_s2 + $0x16c] sm:$0xf] %vm3693_vm0, %v4437_v36  ;;  %3913 = vst.msk [vmem:[%s6611_s2 + $0x36c] sm:$0xf] %vm3693_vm0, %v4565_v37  ;;  %v2507_v50 = vmax.f32 %v4848_v40, %v2251_v42  ;;  %v2635_v51 = vmax.f32 %v4976_v41, %v2379_v43  ;;  %v2252_v52 = vmul.f32 0.2, %v4849_v48 }
 0x1b2   :  { %3783 = vst.msk [vmem:[%s6611_s2 + $0x164] sm:$0xf] %vm3693_vm0, %v4435_v38  ;;  %3911 = vst.msk [vmem:[%s6611_s2 + $0x364] sm:$0xf] %vm3693_vm0, %v4563_v39  ;;  %v2380_v53 = vmul.f32 0.2, %v4977_v49  ;;  %v2505_v56 = vmax.f32 %v1502_v44, %v2249_v46  ;;  %v2633_v57 = vmax.f32 %v2014_v45, %v2377_v47 }
 0x1b3   :  { %v1505_v54 = vpop.f32.mrb[95].mxu0  ;;  %v2017_v55 = vpop.f32.mrb[95].mxu1  ;;  %v4440_v60 = vpack.c.bf16 %v2507_v50, %v2507_v50  ;;  %v4568_v61 = vpack.c.bf16 %v2635_v51, %v2635_v51  ;;  %v2508_v62 = vmax.f32 %v4849_v48, %v2252_v52 }
 0x1b4   :  { %v2250_v58 = vmul.f32 0.2, %v1505_v54  ;;  %v2378_v59 = vmul.f32 0.2, %v2017_v55  ;;  %v2636_v63 = vmax.f32 %v4977_v49, %v2380_v53  ;;  %v4438_v0 = vpack.c.bf16 %v2505_v56, %v2505_v56 }
 0x1b5   :  { %v4566_v1 = vpack.c.bf16 %v2633_v57, %v2633_v57  ;;  %3788 = vst.msk [vmem:[%s6611_s2 + $0x178] sm:$0xf] %vm3693_vm0, %v4440_v60  ;;  %3916 = vst.msk [vmem:[%s6611_s2 + $0x378] sm:$0xf] %vm3693_vm0, %v4568_v61  ;;  %v4441_v4 = vpack.c.bf16 %v2508_v62, %v2508_v62  ;;  %v4852_v8 = vpop.f32.mrb[96].mxu0  ;;  %v4980_v9 = vpop.f32.mrb[96].mxu1 }
 0x1b6   :  { %v2506_v2 = vmax.f32 %v1505_v54, %v2250_v58  ;;  %v2634_v3 = vmax.f32 %v2017_v55, %v2378_v59  ;;  %v4569_v5 = vpack.c.bf16 %v2636_v63, %v2636_v63  ;;  %3786 = vst.msk [vmem:[%s6611_s2 + $0x170] sm:$0xf] %vm3693_vm0, %v4438_v0  ;;  %v2255_v10 = vmul.f32 0.2, %v4852_v8  ;;  %v1518_v12 = vpop.f32.mrb[97].mxu0  ;;  %v2030_v13 = vpop.f32.mrb[97].mxu1 }
 0x1b7   :  { %3914 = vst.msk [vmem:[%s6611_s2 + $0x370] sm:$0xf] %vm3693_vm0, %v4566_v1  ;;  %3789 = vst.msk [vmem:[%s6611_s2 + $0x17c] sm:$0xf] %vm3693_vm0, %v4441_v4  ;;  %v2383_v11 = vmul.f32 0.2, %v4980_v9 }
 0x1b8   :  { %v4439_v6 = vpack.c.bf16 %v2506_v2, %v2506_v2  ;;  %v4567_v7 = vpack.c.bf16 %v2634_v3, %v2634_v3  ;;  %3917 = vst.msk [vmem:[%s6611_s2 + $0x37c] sm:$0xf] %vm3693_vm0, %v4569_v5  ;;  %v2253_v14 = vmul.f32 0.2, %v1518_v12  ;;  %v2381_v15 = vmul.f32 0.2, %v2030_v13 }
 0x1b9   :  { %v4853_v16 = vpop.f32.mrb[98].mxu0  ;;  %v4981_v17 = vpop.f32.mrb[98].mxu1  ;;  %v2511_v18 = vmax.f32 %v4852_v8, %v2255_v10  ;;  %v2639_v19 = vmax.f32 %v4980_v9, %v2383_v11 }
 0x1ba   :  { %3787 = vst.msk [vmem:[%s6611_s2 + $0x174] sm:$0xf] %vm3693_vm0, %v4439_v6  ;;  %3915 = vst.msk [vmem:[%s6611_s2 + $0x374] sm:$0xf] %vm3693_vm0, %v4567_v7  ;;  %v2256_v20 = vmul.f32 0.2, %v4853_v16  ;;  %v2509_v24 = vmax.f32 %v1518_v12, %v2253_v14  ;;  %v2637_v25 = vmax.f32 %v2030_v13, %v2381_v15 }
 0x1bb   :  { %v2384_v21 = vmul.f32 0.2, %v4981_v17  ;;  %v1521_v22 = vpop.f32.mrb[99].mxu0  ;;  %v2033_v23 = vpop.f32.mrb[99].mxu1  ;;  %v4444_v28 = vpack.c.bf16 %v2511_v18, %v2511_v18  ;;  %v4572_v29 = vpack.c.bf16 %v2639_v19, %v2639_v19 }
 0x1bc   :  { %v2254_v26 = vmul.f32 0.2, %v1521_v22  ;;  %v2382_v27 = vmul.f32 0.2, %v2033_v23  ;;  %v2512_v30 = vmax.f32 %v4853_v16, %v2256_v20  ;;  %v4442_v32 = vpack.c.bf16 %v2509_v24, %v2509_v24 }
 0x1bd   :  { %v2640_v31 = vmax.f32 %v4981_v17, %v2384_v21  ;;  %v4570_v33 = vpack.c.bf16 %v2637_v25, %v2637_v25  ;;  %3792 = vst.msk [vmem:[%s6611_s2 + $0x188] sm:$0xf] %vm3693_vm0, %v4444_v28  ;;  %3920 = vst.msk [vmem:[%s6611_s2 + $0x388] sm:$0xf] %vm3693_vm0, %v4572_v29  ;;  %v4856_v40 = vpop.f32.mrb[100].mxu0  ;;  %v4984_v41 = vpop.f32.mrb[100].mxu1 }
 0x1be   :  { %v2510_v34 = vmax.f32 %v1521_v22, %v2254_v26  ;;  %v2638_v35 = vmax.f32 %v2033_v23, %v2382_v27  ;;  %v4445_v36 = vpack.c.bf16 %v2512_v30, %v2512_v30  ;;  %3790 = vst.msk [vmem:[%s6611_s2 + $0x180] sm:$0xf] %vm3693_vm0, %v4442_v32  ;;  %v2259_v42 = vmul.f32 0.2, %v4856_v40  ;;  %v1534_v44 = vpop.f32.mrb[101].mxu0  ;;  %v2046_v45 = vpop.f32.mrb[101].mxu1 }
 0x1bf   :  { %v4573_v37 = vpack.c.bf16 %v2640_v31, %v2640_v31  ;;  %3918 = vst.msk [vmem:[%s6611_s2 + $0x380] sm:$0xf] %vm3693_vm0, %v4570_v33  ;;  %v2387_v43 = vmul.f32 0.2, %v4984_v41  ;;  %v2257_v46 = vmul.f32 0.2, %v1534_v44 }
 0x1c0   :  { %v4443_v38 = vpack.c.bf16 %v2510_v34, %v2510_v34  ;;  %v4571_v39 = vpack.c.bf16 %v2638_v35, %v2638_v35  ;;  %3793 = vst.msk [vmem:[%s6611_s2 + $0x18c] sm:$0xf] %vm3693_vm0, %v4445_v36  ;;  %v2385_v47 = vmul.f32 0.2, %v2046_v45  ;;  %v4857_v48 = vpop.f32.mrb[102].mxu0  ;;  %v4985_v49 = vpop.f32.mrb[102].mxu1  ;;  %v2515_v50 = vmax.f32 %v4856_v40, %v2259_v42 }
 0x1c1   :  { %3921 = vst.msk [vmem:[%s6611_s2 + $0x38c] sm:$0xf] %vm3693_vm0, %v4573_v37  ;;  %v2643_v51 = vmax.f32 %v4984_v41, %v2387_v43  ;;  %v2260_v52 = vmul.f32 0.2, %v4857_v48  ;;  %v2388_v53 = vmul.f32 0.2, %v4985_v49  ;;  %v2513_v56 = vmax.f32 %v1534_v44, %v2257_v46 }
 0x1c2   :  { %3791 = vst.msk [vmem:[%s6611_s2 + $0x184] sm:$0xf] %vm3693_vm0, %v4443_v38  ;;  %3919 = vst.msk [vmem:[%s6611_s2 + $0x384] sm:$0xf] %vm3693_vm0, %v4571_v39  ;;  %v1537_v54 = vpop.f32.mrb[103].mxu0  ;;  %v2049_v55 = vpop.f32.mrb[103].mxu1  ;;  %v2641_v57 = vmax.f32 %v2046_v45, %v2385_v47  ;;  %v4448_v60 = vpack.c.bf16 %v2515_v50, %v2515_v50 }
 0x1c3   :  { %v2258_v58 = vmul.f32 0.2, %v1537_v54  ;;  %v2386_v59 = vmul.f32 0.2, %v2049_v55  ;;  %v4576_v61 = vpack.c.bf16 %v2643_v51, %v2643_v51  ;;  %v2516_v62 = vmax.f32 %v4857_v48, %v2260_v52 }
 0x1c4   :  { %v2644_v63 = vmax.f32 %v4985_v49, %v2388_v53  ;;  %v4446_v0 = vpack.c.bf16 %v2513_v56, %v2513_v56  ;;  %v4574_v1 = vpack.c.bf16 %v2641_v57, %v2641_v57  ;;  %3796 = vst.msk [vmem:[%s6611_s2 + $0x198] sm:$0xf] %vm3693_vm0, %v4448_v60 }
 0x1c5   :  { %v2514_v2 = vmax.f32 %v1537_v54, %v2258_v58  ;;  %v2642_v3 = vmax.f32 %v2049_v55, %v2386_v59  ;;  %3924 = vst.msk [vmem:[%s6611_s2 + $0x398] sm:$0xf] %vm3693_vm0, %v4576_v61  ;;  %v4449_v4 = vpack.c.bf16 %v2516_v62, %v2516_v62  ;;  %v4860_v8 = vpop.f32.mrb[104].mxu0  ;;  %v4988_v9 = vpop.f32.mrb[104].mxu1 }
 0x1c6   :  { %v4577_v5 = vpack.c.bf16 %v2644_v63, %v2644_v63  ;;  %3794 = vst.msk [vmem:[%s6611_s2 + $0x190] sm:$0xf] %vm3693_vm0, %v4446_v0  ;;  %3922 = vst.msk [vmem:[%s6611_s2 + $0x390] sm:$0xf] %vm3693_vm0, %v4574_v1  ;;  %v2263_v10 = vmul.f32 0.2, %v4860_v8 }
 0x1c7   :  { %v4447_v6 = vpack.c.bf16 %v2514_v2, %v2514_v2  ;;  %v4575_v7 = vpack.c.bf16 %v2642_v3, %v2642_v3  ;;  %3797 = vst.msk [vmem:[%s6611_s2 + $0x19c] sm:$0xf] %vm3693_vm0, %v4449_v4  ;;  %v2391_v11 = vmul.f32 0.2, %v4988_v9  ;;  %v1550_v12 = vpop.f32.mrb[105].mxu0  ;;  %v2062_v13 = vpop.f32.mrb[105].mxu1 }
 0x1c8   :  { %3925 = vst.msk [vmem:[%s6611_s2 + $0x39c] sm:$0xf] %vm3693_vm0, %v4577_v5  ;;  %v2261_v14 = vmul.f32 0.2, %v1550_v12  ;;  %v2389_v15 = vmul.f32 0.2, %v2062_v13  ;;  %v2519_v18 = vmax.f32 %v4860_v8, %v2263_v10 }
 0x1c9   :  { %3795 = vst.msk [vmem:[%s6611_s2 + $0x194] sm:$0xf] %vm3693_vm0, %v4447_v6  ;;  %3923 = vst.msk [vmem:[%s6611_s2 + $0x394] sm:$0xf] %vm3693_vm0, %v4575_v7  ;;  %v4861_v16 = vpop.f32.mrb[106].mxu0  ;;  %v4989_v17 = vpop.f32.mrb[106].mxu1  ;;  %v2647_v19 = vmax.f32 %v4988_v9, %v2391_v11 }
 0x1ca   :  { %v2264_v20 = vmul.f32 0.2, %v4861_v16  ;;  %v2392_v21 = vmul.f32 0.2, %v4989_v17  ;;  %v1553_v22 = vpop.f32.mrb[107].mxu0  ;;  %v2065_v23 = vpop.f32.mrb[107].mxu1  ;;  %v2517_v24 = vmax.f32 %v1550_v12, %v2261_v14  ;;  %v2645_v25 = vmax.f32 %v2062_v13, %v2389_v15 }
 0x1cb   :  { %v2262_v26 = vmul.f32 0.2, %v1553_v22  ;;  %v2390_v27 = vmul.f32 0.2, %v2065_v23  ;;  %v4452_v28 = vpack.c.bf16 %v2519_v18, %v2519_v18  ;;  %v4580_v29 = vpack.c.bf16 %v2647_v19, %v2647_v19 }
 0x1cc   :  { %v2520_v30 = vmax.f32 %v4861_v16, %v2264_v20  ;;  %v2648_v31 = vmax.f32 %v4989_v17, %v2392_v21  ;;  %v4450_v32 = vpack.c.bf16 %v2517_v24, %v2517_v24  ;;  %v4578_v33 = vpack.c.bf16 %v2645_v25, %v2645_v25 }
 0x1cd   :  { %v2518_v34 = vmax.f32 %v1553_v22, %v2262_v26  ;;  %v2646_v35 = vmax.f32 %v2065_v23, %v2390_v27  ;;  %3800 = vst.msk [vmem:[%s6611_s2 + $0x1a8] sm:$0xf] %vm3693_vm0, %v4452_v28  ;;  %3928 = vst.msk [vmem:[%s6611_s2 + $0x3a8] sm:$0xf] %vm3693_vm0, %v4580_v29  ;;  %v4864_v40 = vpop.f32.mrb[108].mxu0 }
 0x1ce   :  { %v4453_v36 = vpack.c.bf16 %v2520_v30, %v2520_v30  ;;  %v4581_v37 = vpack.c.bf16 %v2648_v31, %v2648_v31  ;;  %3798 = vst.msk [vmem:[%s6611_s2 + $0x1a0] sm:$0xf] %vm3693_vm0, %v4450_v32  ;;  %3926 = vst.msk [vmem:[%s6611_s2 + $0x3a0] sm:$0xf] %vm3693_vm0, %v4578_v33  ;;  %v2267_v41 = vmul.f32 0.2, %v4864_v40 }
 0x1cf   :  { %v4451_v38 = vpack.c.bf16 %v2518_v34, %v2518_v34  ;;  %v4579_v39 = vpack.c.bf16 %v2646_v35, %v2646_v35  ;;  %v4992_v42 = vpop.f32.mrb[108].mxu1  ;;  %v1566_v43 = vpop.f32.mrb[109].mxu0 }
 0x1d0   :  { %3801 = vst.msk [vmem:[%s6611_s2 + $0x1ac] sm:$0xf] %vm3693_vm0, %v4453_v36  ;;  %3929 = vst.msk [vmem:[%s6611_s2 + $0x3ac] sm:$0xf] %vm3693_vm0, %v4581_v37  ;;  %v2395_v44 = vmul.f32 0.2, %v4992_v42  ;;  %v2523_v48 = vmax.f32 %v4864_v40, %v2267_v41 }
 0x1d1   :  { %3799 = vst.msk [vmem:[%s6611_s2 + $0x1a4] sm:$0xf] %vm3693_vm0, %v4451_v38  ;;  %3927 = vst.msk [vmem:[%s6611_s2 + $0x3a4] sm:$0xf] %vm3693_vm0, %v4579_v39  ;;  %v2265_v45 = vmul.f32 0.2, %v1566_v43 }
 0x1d2   :  { %v2078_v46 = vpop.f32.mrb[109].mxu1  ;;  %v4865_v47 = vpop.f32.mrb[110].mxu0  ;;  %v2651_v53 = vmax.f32 %v4992_v42, %v2395_v44  ;;  %v4456_v58 = vpack.c.bf16 %v2523_v48, %v2523_v48 }
 0x1d3   :  { %v2393_v49 = vmul.f32 0.2, %v2078_v46  ;;  %v2268_v50 = vmul.f32 0.2, %v4865_v47  ;;  %v4993_v51 = vpop.f32.mrb[110].mxu1  ;;  %v1569_v52 = vpop.f32.mrb[111].mxu0  ;;  %v2521_v54 = vmax.f32 %v1566_v43, %v2265_v45 }
 0x1d4   :  { %v2396_v55 = vmul.f32 0.2, %v4993_v51  ;;  %v2266_v56 = vmul.f32 0.2, %v1569_v52  ;;  %v2081_v57 = vpop.f32.mrb[111].mxu1  ;;  %v4584_v62 = vpack.c.bf16 %v2651_v53, %v2651_v53 }
 0x1d5   :  { %v2649_v59 = vmax.f32 %v2078_v46, %v2393_v49  ;;  %v2524_v60 = vmax.f32 %v4865_v47, %v2268_v50  ;;  %v2394_v61 = vmul.f32 0.2, %v2081_v57  ;;  %v4454_v63 = vpack.c.bf16 %v2521_v54, %v2521_v54  ;;  %3804 = vst.msk [vmem:[%s6611_s2 + $0x1b8] sm:$0xf] %vm3693_vm0, %v4456_v58  ;;  %v4868_v7 = vpop.f32.mrb[112].mxu0 }
 0x1d6   :  { %v2652_v0 = vmax.f32 %v4993_v51, %v2396_v55  ;;  %v2522_v1 = vmax.f32 %v1569_v52, %v2266_v56  ;;  %3932 = vst.msk [vmem:[%s6611_s2 + $0x3b8] sm:$0xf] %vm3693_vm0, %v4584_v62  ;;  %v2271_v9 = vmul.f32 0.2, %v4868_v7  ;;  %v4996_v10 = vpop.f32.mrb[112].mxu1  ;;  %v1582_v11 = vpop.f32.mrb[113].mxu0 }
 0x1d7   :  { %v4582_v2 = vpack.c.bf16 %v2649_v59, %v2649_v59  ;;  %v4457_v3 = vpack.c.bf16 %v2524_v60, %v2524_v60  ;;  %v2650_v4 = vmax.f32 %v2081_v57, %v2394_v61  ;;  %3802 = vst.msk [vmem:[%s6611_s2 + $0x1b0] sm:$0xf] %vm3693_vm0, %v4454_v63  ;;  %v2399_v12 = vmul.f32 0.2, %v4996_v10  ;;  %v2094_v14 = vpop.f32.mrb[113].mxu1  ;;  %v4869_v15 = vpop.f32.mrb[114].mxu0 }
 0x1d8   :  { %v4585_v5 = vpack.c.bf16 %v2652_v0, %v2652_v0  ;;  %v4455_v6 = vpack.c.bf16 %v2522_v1, %v2522_v1  ;;  %v2269_v13 = vmul.f32 0.2, %v1582_v11  ;;  %v2527_v16 = vmax.f32 %v4868_v7, %v2271_v9  ;;  %v4997_v19 = vpop.f32.mrb[114].mxu1  ;;  %v1585_v20 = vpop.f32.mrb[115].mxu0 }
 0x1d9   :  { %3930 = vst.msk [vmem:[%s6611_s2 + $0x3b0] sm:$0xf] %vm3693_vm0, %v4582_v2  ;;  %3805 = vst.msk [vmem:[%s6611_s2 + $0x1bc] sm:$0xf] %vm3693_vm0, %v4457_v3  ;;  %v4583_v8 = vpack.c.bf16 %v2650_v4, %v2650_v4  ;;  %v2397_v17 = vmul.f32 0.2, %v2094_v14  ;;  %v2655_v21 = vmax.f32 %v4996_v10, %v2399_v12 }
 0x1da   :  { %3933 = vst.msk [vmem:[%s6611_s2 + $0x3bc] sm:$0xf] %vm3693_vm0, %v4585_v5  ;;  %3803 = vst.msk [vmem:[%s6611_s2 + $0x1b4] sm:$0xf] %vm3693_vm0, %v4455_v6  ;;  %v2272_v18 = vmul.f32 0.2, %v4869_v15  ;;  %v2525_v22 = vmax.f32 %v1582_v11, %v2269_v13  ;;  %v4460_v26 = vpack.c.bf16 %v2527_v16, %v2527_v16 }
 0x1db   :  { %3931 = vst.msk [vmem:[%s6611_s2 + $0x3b4] sm:$0xf] %vm3693_vm0, %v4583_v8  ;;  %v2400_v23 = vmul.f32 0.2, %v4997_v19  ;;  %v2270_v24 = vmul.f32 0.2, %v1585_v20  ;;  %v2653_v27 = vmax.f32 %v2094_v14, %v2397_v17  ;;  %v4588_v30 = vpack.c.bf16 %v2655_v21, %v2655_v21 }
 0x1dc   :  { %v2097_v25 = vpop.f32.mrb[115].mxu1  ;;  %v2528_v28 = vmax.f32 %v4869_v15, %v2272_v18  ;;  %v4458_v31 = vpack.c.bf16 %v2525_v22, %v2525_v22  ;;  %3808 = vst.msk [vmem:[%s6611_s2 + $0x1c8] sm:$0xf] %vm3693_vm0, %v4460_v26 }
 0x1dd   :  { %v2398_v29 = vmul.f32 0.2, %v2097_v25  ;;  %v2656_v32 = vmax.f32 %v4997_v19, %v2400_v23  ;;  %v2526_v33 = vmax.f32 %v1585_v20, %v2270_v24  ;;  %v4586_v34 = vpack.c.bf16 %v2653_v27, %v2653_v27  ;;  %3936 = vst.msk [vmem:[%s6611_s2 + $0x3c8] sm:$0xf] %vm3693_vm0, %v4588_v30  ;;  %v4872_v39 = vpop.f32.mrb[116].mxu0 }
 0x1de   :  { %v4461_v35 = vpack.c.bf16 %v2528_v28, %v2528_v28  ;;  %3806 = vst.msk [vmem:[%s6611_s2 + $0x1c0] sm:$0xf] %vm3693_vm0, %v4458_v31  ;;  %v2275_v41 = vmul.f32 0.2, %v4872_v39  ;;  %v5000_v42 = vpop.f32.mrb[116].mxu1  ;;  %v1598_v43 = vpop.f32.mrb[117].mxu0 }
 0x1df   :  { %v2654_v36 = vmax.f32 %v2097_v25, %v2398_v29  ;;  %v4589_v37 = vpack.c.bf16 %v2656_v32, %v2656_v32  ;;  %v4459_v38 = vpack.c.bf16 %v2526_v33, %v2526_v33  ;;  %3934 = vst.msk [vmem:[%s6611_s2 + $0x3c0] sm:$0xf] %vm3693_vm0, %v4586_v34  ;;  %v2403_v44 = vmul.f32 0.2, %v5000_v42  ;;  %v2110_v46 = vpop.f32.mrb[117].mxu1  ;;  %v4873_v47 = vpop.f32.mrb[118].mxu0 }
 0x1e0   :  { %3809 = vst.msk [vmem:[%s6611_s2 + $0x1cc] sm:$0xf] %vm3693_vm0, %v4461_v35  ;;  %v2273_v45 = vmul.f32 0.2, %v1598_v43  ;;  %v2531_v48 = vmax.f32 %v4872_v39, %v2275_v41  ;;  %v2401_v49 = vmul.f32 0.2, %v2110_v46 }
 0x1e1   :  { %v4587_v40 = vpack.c.bf16 %v2654_v36, %v2654_v36  ;;  %3937 = vst.msk [vmem:[%s6611_s2 + $0x3cc] sm:$0xf] %vm3693_vm0, %v4589_v37  ;;  %3807 = vst.msk [vmem:[%s6611_s2 + $0x1c4] sm:$0xf] %vm3693_vm0, %v4459_v38  ;;  %v2276_v50 = vmul.f32 0.2, %v4873_v47  ;;  %v2659_v53 = vmax.f32 %v5000_v42, %v2403_v44 }
 0x1e2   :  { %v5001_v51 = vpop.f32.mrb[118].mxu1  ;;  %v1601_v52 = vpop.f32.mrb[119].mxu0  ;;  %v2529_v54 = vmax.f32 %v1598_v43, %v2273_v45  ;;  %v4464_v58 = vpack.c.bf16 %v2531_v48, %v2531_v48  ;;  %v2657_v59 = vmax.f32 %v2110_v46, %v2401_v49 }
 0x1e3   :  { %3935 = vst.msk [vmem:[%s6611_s2 + $0x3c4] sm:$0xf] %vm3693_vm0, %v4587_v40  ;;  %v2404_v55 = vmul.f32 0.2, %v5001_v51  ;;  %v2274_v56 = vmul.f32 0.2, %v1601_v52  ;;  %v2532_v60 = vmax.f32 %v4873_v47, %v2276_v50  ;;  %v4592_v62 = vpack.c.bf16 %v2659_v53, %v2659_v53 }
 0x1e4   :  { %v2113_v57 = vpop.f32.mrb[119].mxu1  ;;  %v4462_v63 = vpack.c.bf16 %v2529_v54, %v2529_v54  ;;  %3812 = vst.msk [vmem:[%s6611_s2 + $0x1d8] sm:$0xf] %vm3693_vm0, %v4464_v58  ;;  %v4590_v2 = vpack.c.bf16 %v2657_v59, %v2657_v59 }
 0x1e5   :  { %v2402_v61 = vmul.f32 0.2, %v2113_v57  ;;  %v2660_v0 = vmax.f32 %v5001_v51, %v2404_v55  ;;  %v2530_v1 = vmax.f32 %v1601_v52, %v2274_v56  ;;  %v4465_v3 = vpack.c.bf16 %v2532_v60, %v2532_v60  ;;  %3940 = vst.msk [vmem:[%s6611_s2 + $0x3d8] sm:$0xf] %vm3693_vm0, %v4592_v62  ;;  %v4876_v7 = vpop.f32.mrb[120].mxu0 }
 0x1e6   :  { %3810 = vst.msk [vmem:[%s6611_s2 + $0x1d0] sm:$0xf] %vm3693_vm0, %v4462_v63  ;;  %3938 = vst.msk [vmem:[%s6611_s2 + $0x3d0] sm:$0xf] %vm3693_vm0, %v4590_v2  ;;  %v2279_v9 = vmul.f32 0.2, %v4876_v7 }
 0x1e7   :  { %v2658_v4 = vmax.f32 %v2113_v57, %v2402_v61  ;;  %v4593_v5 = vpack.c.bf16 %v2660_v0, %v2660_v0  ;;  %v4463_v6 = vpack.c.bf16 %v2530_v1, %v2530_v1  ;;  %3813 = vst.msk [vmem:[%s6611_s2 + $0x1dc] sm:$0xf] %vm3693_vm0, %v4465_v3  ;;  %v5004_v10 = vpop.f32.mrb[120].mxu1  ;;  %v1614_v11 = vpop.f32.mrb[121].mxu0 }
 0x1e8   :  { %v2407_v12 = vmul.f32 0.2, %v5004_v10  ;;  %v2277_v13 = vmul.f32 0.2, %v1614_v11  ;;  %v2126_v14 = vpop.f32.mrb[121].mxu1  ;;  %v4877_v15 = vpop.f32.mrb[122].mxu0  ;;  %v2535_v16 = vmax.f32 %v4876_v7, %v2279_v9 }
 0x1e9   :  { %v4591_v8 = vpack.c.bf16 %v2658_v4, %v2658_v4  ;;  %3941 = vst.msk [vmem:[%s6611_s2 + $0x3dc] sm:$0xf] %vm3693_vm0, %v4593_v5  ;;  %3811 = vst.msk [vmem:[%s6611_s2 + $0x1d4] sm:$0xf] %vm3693_vm0, %v4463_v6  ;;  %v2405_v17 = vmul.f32 0.2, %v2126_v14 }
 0x1ea   :  { %v2280_v18 = vmul.f32 0.2, %v4877_v15  ;;  %v5005_v19 = vpop.f32.mrb[122].mxu1  ;;  %v1617_v20 = vpop.f32.mrb[123].mxu0  ;;  %v2663_v21 = vmax.f32 %v5004_v10, %v2407_v12  ;;  %v2533_v22 = vmax.f32 %v1614_v11, %v2277_v13  ;;  %v4468_v26 = vpack.c.bf16 %v2535_v16, %v2535_v16 }
 0x1eb   :  { %3939 = vst.msk [vmem:[%s6611_s2 + $0x3d4] sm:$0xf] %vm3693_vm0, %v4591_v8  ;;  %v2408_v23 = vmul.f32 0.2, %v5005_v19  ;;  %v2278_v24 = vmul.f32 0.2, %v1617_v20  ;;  %v2661_v27 = vmax.f32 %v2126_v14, %v2405_v17 }
 0x1ec   :  { %v2129_v25 = vpop.f32.mrb[123].mxu1  ;;  %v2536_v28 = vmax.f32 %v4877_v15, %v2280_v18  ;;  %v4596_v30 = vpack.c.bf16 %v2663_v21, %v2663_v21  ;;  %v4466_v31 = vpack.c.bf16 %v2533_v22, %v2533_v22  ;;  %3816 = vst.msk [vmem:[%s6611_s2 + $0x1e8] sm:$0xf] %vm3693_vm0, %v4468_v26 }
 0x1ed   :  { %v2406_v29 = vmul.f32 0.2, %v2129_v25  ;;  %v2664_v32 = vmax.f32 %v5005_v19, %v2408_v23  ;;  %v2534_v33 = vmax.f32 %v1617_v20, %v2278_v24  ;;  %v4594_v34 = vpack.c.bf16 %v2661_v27, %v2661_v27  ;;  %v4880_v39 = vpop.f32.mrb[124].mxu0 }
 0x1ee   :  { %v4469_v35 = vpack.c.bf16 %v2536_v28, %v2536_v28  ;;  %3944 = vst.msk [vmem:[%s6611_s2 + $0x3e8] sm:$0xf] %vm3693_vm0, %v4596_v30  ;;  %3814 = vst.msk [vmem:[%s6611_s2 + $0x1e0] sm:$0xf] %vm3693_vm0, %v4466_v31  ;;  %v2283_v41 = vmul.f32 0.2, %v4880_v39 }
 0x1ef   :  { %v2662_v36 = vmax.f32 %v2129_v25, %v2406_v29  ;;  %v4597_v37 = vpack.c.bf16 %v2664_v32, %v2664_v32  ;;  %v4467_v38 = vpack.c.bf16 %v2534_v33, %v2534_v33  ;;  %3942 = vst.msk [vmem:[%s6611_s2 + $0x3e0] sm:$0xf] %vm3693_vm0, %v4594_v34  ;;  %v5008_v42 = vpop.f32.mrb[124].mxu1  ;;  %v1630_v43 = vpop.f32.mrb[125].mxu0 }
 0x1f0   :  { %3817 = vst.msk [vmem:[%s6611_s2 + $0x1ec] sm:$0xf] %vm3693_vm0, %v4469_v35  ;;  %v2411_v44 = vmul.f32 0.2, %v5008_v42  ;;  %v2281_v45 = vmul.f32 0.2, %v1630_v43  ;;  %v2539_v48 = vmax.f32 %v4880_v39, %v2283_v41 }
 0x1f1   :  { %v4595_v40 = vpack.c.bf16 %v2662_v36, %v2662_v36  ;;  %3945 = vst.msk [vmem:[%s6611_s2 + $0x3ec] sm:$0xf] %vm3693_vm0, %v4597_v37  ;;  %3815 = vst.msk [vmem:[%s6611_s2 + $0x1e4] sm:$0xf] %vm3693_vm0, %v4467_v38  ;;  %v2142_v46 = vpop.f32.mrb[125].mxu1  ;;  %v4881_v47 = vpop.f32.mrb[126].mxu0 }
 0x1f2   :  { %v2409_v49 = vmul.f32 0.2, %v2142_v46  ;;  %v2284_v50 = vmul.f32 0.2, %v4881_v47  ;;  %v5009_v51 = vpop.f32.mrb[126].mxu1  ;;  %v1633_v52 = vpop.f32.mrb[127].mxu0  ;;  %v2667_v53 = vmax.f32 %v5008_v42, %v2411_v44  ;;  %v2537_v54 = vmax.f32 %v1630_v43, %v2281_v45 }
 0x1f3   :  { %3943 = vst.msk [vmem:[%s6611_s2 + $0x3e4] sm:$0xf] %vm3693_vm0, %v4595_v40  ;;  %v2412_v55 = vmul.f32 0.2, %v5009_v51  ;;  %v2282_v56 = vmul.f32 0.2, %v1633_v52  ;;  %v4472_v58 = vpack.c.bf16 %v2539_v48, %v2539_v48 }
 0x1f4   :  { %v2145_v57 = vpop.f32.mrb[127].mxu1  ;;  %v2665_v59 = vmax.f32 %v2142_v46, %v2409_v49  ;;  %v2540_v60 = vmax.f32 %v4881_v47, %v2284_v50  ;;  %v4600_v62 = vpack.c.bf16 %v2667_v53, %v2667_v53  ;;  %v4470_v63 = vpack.c.bf16 %v2537_v54, %v2537_v54 }
 0x1f5   :  { %v2410_v61 = vmul.f32 0.2, %v2145_v57  ;;  %v2668_v0 = vmax.f32 %v5009_v51, %v2412_v55  ;;  %v2538_v1 = vmax.f32 %v1633_v52, %v2282_v56  ;;  %3820 = vst.msk [vmem:[%s6611_s2 + $0x1f8] sm:$0xf] %vm3693_vm0, %v4472_v58 }
 0x1f6   :  { %v4598_v2 = vpack.c.bf16 %v2665_v59, %v2665_v59  ;;  %v4473_v3 = vpack.c.bf16 %v2540_v60, %v2540_v60  ;;  %3948 = vst.msk [vmem:[%s6611_s2 + $0x3f8] sm:$0xf] %vm3693_vm0, %v4600_v62  ;;  %3818 = vst.msk [vmem:[%s6611_s2 + $0x1f0] sm:$0xf] %vm3693_vm0, %v4470_v63 }
 0x1f7   :  { %v2666_v4 = vmax.f32 %v2145_v57, %v2410_v61  ;;  %v4601_v5 = vpack.c.bf16 %v2668_v0, %v2668_v0  ;;  %v4471_v6 = vpack.c.bf16 %v2538_v1, %v2538_v1 }
 0x1f8   :  { %3946 = vst.msk [vmem:[%s6611_s2 + $0x3f0] sm:$0xf] %vm3693_vm0, %v4598_v2  ;;  %3821 = vst.msk [vmem:[%s6611_s2 + $0x1fc] sm:$0xf] %vm3693_vm0, %v4473_v3 }
 0x1f9   :  { %v4599_v7 = vpack.c.bf16 %v2666_v4, %v2666_v4  ;;  %3949 = vst.msk [vmem:[%s6611_s2 + $0x3fc] sm:$0xf] %vm3693_vm0, %v4601_v5  ;;  %3819 = vst.msk [vmem:[%s6611_s2 + $0x1f4] sm:$0xf] %vm3693_vm0, %v4471_v6 }
 0x1fb   :  { %3947 = vst.msk [vmem:[%s6611_s2 + $0x3f4] sm:$0xf] %vm3693_vm0, %v4599_v7 }

// kernel: celeba_encoder_forward.5
= control target key start
LH: loop header
LB: loop body
LE: loop exit
PB: predicated region body
PF: predicated region fallthrough
CT: control target
= control target key end

     0   :  { %v1630_v0 = vmov 0   ;;  %vm1207_vm0 = vcmask 257024   ;;  %s2248_s1 = inlined_call_operand.vmem [shape: bf16[256,32], index: 1, kind: input, shape index: {}]   ;;  %s2249_s0 = inlined_call_operand.vmem [shape: bf16[512,256], index: 0, kind: input, shape index: {}]   ;;  %s2250_s2 = inlined_call_operand.vmem [shape: f32[1,32], index: 2, kind: input, shape index: {}]   ;;  %s2251_s3 = inlined_call_operand.vmem [shape: bf16[512,32], index: 3, kind: output, shape index: {}]  }
   0x1   :  { %534 = vmatprep.subr.bf16.mxu0 %v1630_v0  ;;  %1485 = vmatprep.subr.bf16.mxu1 %v1630_v0  ;;  %v1518_v1 = vld [vmem:[%s2248_s1] sm:$0xff]   ;;  %v1519_v2 = vld [vmem:[%s2248_s1 + $0x8] sm:$0xff]   ;;  %v1520_v3 = vld [vmem:[%s2248_s1 + $0x10] sm:$0xff]  }
   0x2   :  { %535 = vmatpush1.bf16.msra.mxu0 %v1518_v1  ;;  %1501 = vmatpush1.bf16.msra.mxu1 %v1518_v1  ;;  %v1521_v4 = vld [vmem:[%s2248_s1 + $0x18] sm:$0xff]   ;;  %v1522_v5 = vld [vmem:[%s2248_s1 + $0x20] sm:$0xff]   ;;  %v1523_v7 = vld [vmem:[%s2248_s1 + $0x28] sm:$0xff]  }
   0x3   :  { %536 = vmatprep.subr.bf16.mxu0 %v1630_v0  ;;  %1486 = vmatprep.subr.bf16.mxu1 %v1630_v0  ;;  %v1536_v6 = vld [vmem:[%s2249_s0 + $0x4] ss:$8 sps:$4 sm:$0xff]   ;;  %v1524_v9 = vld [vmem:[%s2248_s1 + $0x30] sm:$0xff]   ;;  %v1525_v10 = vld [vmem:[%s2248_s1 + $0x38] sm:$0xff]  }
   0x4   :  { %v1539_v8 = vld [vmem:[%s2249_s0 + $0x104] ss:$8 sps:$4 sm:$0xff]   ;;  %566 = vmatprep.mubr.bf16.mxu0 %v1536_v6  ;;  %v1528_v13 = vld [vmem:[%s2248_s1 + $0x50] sm:$0xff]   ;;  %v1529_v14 = vld [vmem:[%s2248_s1 + $0x58] sm:$0xff]  }
   0x5   :  { %694 = vmatprep.mubr.bf16.mxu1 %v1539_v8  ;;  %v1526_v11 = vld [vmem:[%s2248_s1 + $0x40] sm:$0xff]   ;;  %v1527_v12 = vld [vmem:[%s2248_s1 + $0x48] sm:$0xff]   ;;  %v1532_v17 = vld [vmem:[%s2248_s1 + $0x70] sm:$0xff]  }
   0x6   :  { %537 = vmatpush1.bf16.msra.mxu0 %v1519_v2  ;;  %1502 = vmatpush1.bf16.msra.mxu1 %v1519_v2  ;;  %v1530_v15 = vld [vmem:[%s2248_s1 + $0x60] sm:$0xff]   ;;  %v1531_v16 = vld [vmem:[%s2248_s1 + $0x68] sm:$0xff]   ;;  %v1533_v18 = vld [vmem:[%s2248_s1 + $0x78] sm:$0xff]  }
   0x7   :  { %538 = vmatprep.subr.bf16.mxu0 %v1630_v0  ;;  %1487 = vmatprep.subr.bf16.mxu1 %v1630_v0  ;;  %v1534_v19 = vld [vmem:[%s2249_s0] ss:$8 sps:$4 sm:$0xff]   ;;  %v1540_v21 = vld [vmem:[%s2249_s0 + $0x14] ss:$8 sps:$4 sm:$0xff]   ;;  %v1544_v23 = vld [vmem:[%s2249_s0 + $0x10] ss:$8 sps:$4 sm:$0xff]  }
   0x8   :  { %v1537_v20 = vld [vmem:[%s2249_s0 + $0x100] ss:$8 sps:$4 sm:$0xff]   ;;  %v1542_v22 = vld [vmem:[%s2249_s0 + $0x114] ss:$8 sps:$4 sm:$0xff]   ;;  %v1545_v24 = vld [vmem:[%s2249_s0 + $0x110] ss:$8 sps:$4 sm:$0xff]  }
   0x9   :  { %v1546_v25 = vld [vmem:[%s2249_s0 + $0x24] ss:$8 sps:$4 sm:$0xff]   ;;  %v1550_v27 = vld [vmem:[%s2249_s0 + $0x20] ss:$8 sps:$4 sm:$0xff]   ;;  %v1552_v29 = vld [vmem:[%s2249_s0 + $0x34] ss:$8 sps:$4 sm:$0xff]  }
   0xa   :  { %539 = vmatpush1.bf16.msra.mxu0 %v1520_v3  ;;  %1503 = vmatpush1.bf16.msra.mxu1 %v1520_v3  ;;  %v1548_v26 = vld [vmem:[%s2249_s0 + $0x124] ss:$8 sps:$4 sm:$0xff]   ;;  %v1551_v28 = vld [vmem:[%s2249_s0 + $0x120] ss:$8 sps:$4 sm:$0xff]   ;;  %v1554_v30 = vld [vmem:[%s2249_s0 + $0x134] ss:$8 sps:$4 sm:$0xff]  }
   0xb   :  { %540 = vmatprep.subr.bf16.mxu0 %v1630_v0  ;;  %1488 = vmatprep.subr.bf16.mxu1 %v1630_v0  ;;  %v1556_v31 = vld [vmem:[%s2249_s0 + $0x30] ss:$8 sps:$4 sm:$0xff]   ;;  %v1558_v33 = vld [vmem:[%s2249_s0 + $0x44] ss:$8 sps:$4 sm:$0xff]   ;;  %v1562_v35 = vld [vmem:[%s2249_s0 + $0x40] ss:$8 sps:$4 sm:$0xff]  }
   0xc   :  { %v1557_v32 = vld [vmem:[%s2249_s0 + $0x130] ss:$8 sps:$4 sm:$0xff]   ;;  %v1560_v34 = vld [vmem:[%s2249_s0 + $0x144] ss:$8 sps:$4 sm:$0xff]   ;;  %v1563_v36 = vld [vmem:[%s2249_s0 + $0x140] ss:$8 sps:$4 sm:$0xff]  }
   0xd   :  { %v1564_v37 = vld [vmem:[%s2249_s0 + $0x54] ss:$8 sps:$4 sm:$0xff]   ;;  %v1568_v39 = vld [vmem:[%s2249_s0 + $0x50] ss:$8 sps:$4 sm:$0xff]   ;;  %v1570_v41 = vld [vmem:[%s2249_s0 + $0x64] ss:$8 sps:$4 sm:$0xff]  }
   0xe   :  { %541 = vmatpush1.bf16.msra.mxu0 %v1521_v4  ;;  %1504 = vmatpush1.bf16.msra.mxu1 %v1521_v4  ;;  %v1566_v38 = vld [vmem:[%s2249_s0 + $0x154] ss:$8 sps:$4 sm:$0xff]   ;;  %v1569_v40 = vld [vmem:[%s2249_s0 + $0x150] ss:$8 sps:$4 sm:$0xff]   ;;  %v1572_v42 = vld [vmem:[%s2249_s0 + $0x164] ss:$8 sps:$4 sm:$0xff]  }
   0xf   :  { %542 = vmatprep.subr.bf16.mxu0 %v1630_v0  ;;  %1489 = vmatprep.subr.bf16.mxu1 %v1630_v0  ;;  %v1574_v43 = vld [vmem:[%s2249_s0 + $0x60] ss:$8 sps:$4 sm:$0xff]   ;;  %v1576_v45 = vld [vmem:[%s2249_s0 + $0x74] ss:$8 sps:$4 sm:$0xff]   ;;  %v1580_v47 = vld [vmem:[%s2249_s0 + $0x70] ss:$8 sps:$4 sm:$0xff]  }
  0x10   :  { %v1575_v44 = vld [vmem:[%s2249_s0 + $0x160] ss:$8 sps:$4 sm:$0xff]   ;;  %v1578_v46 = vld [vmem:[%s2249_s0 + $0x174] ss:$8 sps:$4 sm:$0xff]   ;;  %v1581_v48 = vld [vmem:[%s2249_s0 + $0x170] ss:$8 sps:$4 sm:$0xff]  }
  0x11   :  { %v1582_v49 = vld [vmem:[%s2249_s0 + $0x84] ss:$8 sps:$4 sm:$0xff]   ;;  %v1586_v51 = vld [vmem:[%s2249_s0 + $0x80] ss:$8 sps:$4 sm:$0xff]   ;;  %v1588_v53 = vld [vmem:[%s2249_s0 + $0x94] ss:$8 sps:$4 sm:$0xff]  }
  0x12   :  { %543 = vmatpush1.bf16.msra.mxu0 %v1522_v5  ;;  %1505 = vmatpush1.bf16.msra.mxu1 %v1522_v5  ;;  %v1584_v50 = vld [vmem:[%s2249_s0 + $0x184] ss:$8 sps:$4 sm:$0xff]   ;;  %v1587_v52 = vld [vmem:[%s2249_s0 + $0x180] ss:$8 sps:$4 sm:$0xff]   ;;  %v1590_v54 = vld [vmem:[%s2249_s0 + $0x194] ss:$8 sps:$4 sm:$0xff]  }
  0x13   :  { %544 = vmatprep.subr.bf16.mxu0 %v1630_v0  ;;  %1490 = vmatprep.subr.bf16.mxu1 %v1630_v0  ;;  %v1592_v55 = vld [vmem:[%s2249_s0 + $0x90] ss:$8 sps:$4 sm:$0xff]   ;;  %v1594_v57 = vld [vmem:[%s2249_s0 + $0xa4] ss:$8 sps:$4 sm:$0xff]   ;;  %v1598_v59 = vld [vmem:[%s2249_s0 + $0xa0] ss:$8 sps:$4 sm:$0xff]  }
  0x14   :  { %v1593_v56 = vld [vmem:[%s2249_s0 + $0x190] ss:$8 sps:$4 sm:$0xff]   ;;  %v1596_v58 = vld [vmem:[%s2249_s0 + $0x1a4] ss:$8 sps:$4 sm:$0xff]   ;;  %v1599_v60 = vld [vmem:[%s2249_s0 + $0x1a0] ss:$8 sps:$4 sm:$0xff]  }
  0x15   :  { %v1600_v61 = vld [vmem:[%s2249_s0 + $0xb4] ss:$8 sps:$4 sm:$0xff]   ;;  %v1604_v63 = vld [vmem:[%s2249_s0 + $0xb0] ss:$8 sps:$4 sm:$0xff]   ;;  %v1606_v1 = vld [vmem:[%s2249_s0 + $0xc4] ss:$8 sps:$4 sm:$0xff]  }
  0x16   :  { %545 = vmatpush1.bf16.msra.mxu0 %v1523_v7  ;;  %1506 = vmatpush1.bf16.msra.mxu1 %v1523_v7  ;;  %v1602_v62 = vld [vmem:[%s2249_s0 + $0x1b4] ss:$8 sps:$4 sm:$0xff]   ;;  %v1608_v2 = vld [vmem:[%s2249_s0 + $0x1c4] ss:$8 sps:$4 sm:$0xff]   ;;  %v1610_v3 = vld [vmem:[%s2249_s0 + $0xc0] ss:$8 sps:$4 sm:$0xff]  }
  0x17   :  { %546 = vmatprep.subr.bf16.mxu0 %v1630_v0  ;;  %1491 = vmatprep.subr.bf16.mxu1 %v1630_v0  ;;  %v1611_v4 = vld [vmem:[%s2249_s0 + $0x1c0] ss:$8 sps:$4 sm:$0xff]   ;;  %v1612_v5 = vld [vmem:[%s2249_s0 + $0xd4] ss:$8 sps:$4 sm:$0xff]   ;;  %v1616_v7 = vld [vmem:[%s2249_s0 + $0xd0] ss:$8 sps:$4 sm:$0xff]  }
  0x18   :  { %v1614_v6 = vld [vmem:[%s2249_s0 + $0x1d4] ss:$8 sps:$4 sm:$0xff]   ;;  %v1617_v8 = vld [vmem:[%s2249_s0 + $0x1d0] ss:$8 sps:$4 sm:$0xff]  }
  0x1a   :  { %547 = vmatpush1.bf16.msra.mxu0 %v1524_v9  ;;  %1507 = vmatpush1.bf16.msra.mxu1 %v1524_v9  ;;  %v1618_v9 = vld [vmem:[%s2249_s0 + $0xe4] ss:$8 sps:$4 sm:$0xff]  }
  0x1b   :  { %548 = vmatprep.subr.bf16.mxu0 %v1630_v0  ;;  %1492 = vmatprep.subr.bf16.mxu1 %v1630_v0 }
  0x1e   :  { %549 = vmatpush1.bf16.msra.mxu0 %v1525_v10  ;;  %1508 = vmatpush1.bf16.msra.mxu1 %v1525_v10  ;;  %v1620_v10 = vld [vmem:[%s2249_s0 + $0x1e4] ss:$8 sps:$4 sm:$0xff]  }
  0x1f   :  { %550 = vmatprep.subr.bf16.mxu0 %v1630_v0  ;;  %1493 = vmatprep.subr.bf16.mxu1 %v1630_v0 }
  0x22   :  { %551 = vmatpush1.bf16.msra.mxu0 %v1526_v11  ;;  %1509 = vmatpush1.bf16.msra.mxu1 %v1526_v11  ;;  %v1622_v11 = vld [vmem:[%s2249_s0 + $0xe0] ss:$8 sps:$4 sm:$0xff]  }
  0x23   :  { %552 = vmatprep.subr.bf16.mxu0 %v1630_v0  ;;  %1494 = vmatprep.subr.bf16.mxu1 %v1630_v0 }
  0x26   :  { %553 = vmatpush1.bf16.msra.mxu0 %v1527_v12  ;;  %1510 = vmatpush1.bf16.msra.mxu1 %v1527_v12  ;;  %v1623_v12 = vld [vmem:[%s2249_s0 + $0x1e0] ss:$8 sps:$4 sm:$0xff]  }
  0x27   :  { %554 = vmatprep.subr.bf16.mxu0 %v1630_v0  ;;  %1495 = vmatprep.subr.bf16.mxu1 %v1630_v0 }
  0x2a   :  { %555 = vmatpush1.bf16.msra.mxu0 %v1528_v13  ;;  %1511 = vmatpush1.bf16.msra.mxu1 %v1528_v13  ;;  %v1624_v13 = vld [vmem:[%s2249_s0 + $0xf4] ss:$8 sps:$4 sm:$0xff]  }
  0x2b   :  { %556 = vmatprep.subr.bf16.mxu0 %v1630_v0  ;;  %1496 = vmatprep.subr.bf16.mxu1 %v1630_v0 }
  0x2e   :  { %557 = vmatpush1.bf16.msra.mxu0 %v1529_v14  ;;  %1512 = vmatpush1.bf16.msra.mxu1 %v1529_v14  ;;  %v1626_v14 = vld [vmem:[%s2249_s0 + $0x1f4] ss:$8 sps:$4 sm:$0xff]  }
  0x2f   :  { %558 = vmatprep.subr.bf16.mxu0 %v1630_v0  ;;  %1497 = vmatprep.subr.bf16.mxu1 %v1630_v0 }
  0x32   :  { %559 = vmatpush1.bf16.msra.mxu0 %v1530_v15  ;;  %1513 = vmatpush1.bf16.msra.mxu1 %v1530_v15  ;;  %v1628_v15 = vld [vmem:[%s2249_s0 + $0xf0] ss:$8 sps:$4 sm:$0xff]  }
  0x33   :  { %560 = vmatprep.subr.bf16.mxu0 %v1630_v0  ;;  %1498 = vmatprep.subr.bf16.mxu1 %v1630_v0 }
  0x36   :  { %561 = vmatpush1.bf16.msra.mxu0 %v1531_v16  ;;  %1514 = vmatpush1.bf16.msra.mxu1 %v1531_v16  ;;  %v1629_v16 = vld [vmem:[%s2249_s0 + $0x1f0] ss:$8 sps:$4 sm:$0xff]  }
  0x37   :  { %562 = vmatprep.subr.bf16.mxu0 %v1630_v0  ;;  %1499 = vmatprep.subr.bf16.mxu1 %v1630_v0 }
  0x3a   :  { %563 = vmatpush1.bf16.msra.mxu0 %v1532_v17  ;;  %1515 = vmatpush1.bf16.msra.mxu1 %v1532_v17  ;;  %v1926_v17 = vld [vmem:[%s2250_s2] ss:$0 sm:$0xff] }
  0x3b   :  { %564 = vmatprep.subr.bf16.mxu0 %v1630_v0  ;;  %1500 = vmatprep.subr.bf16.mxu1 %v1630_v0  ;;  %v1605_v0 = vld [vmem:[%s2249_s0 + $0x1b0] ss:$8 sps:$4 sm:$0xff]  }
  0x3e   :  { %565 = vmatpush1.bf16.msra.mxu0 %v1533_v18  ;;  %1516 = vmatpush1.bf16.msra.mxu1 %v1533_v18 }
  0x41   :  { %567 = vmatmul.mubr.bf16.vlgmr.msra.gmra.mrb[0].mxu0 %v1534_v19  ;;  %695 = vmatmul.mubr.bf16.vlgmr.msra.gmra.mrb[0].mxu1 %v1537_v20 }
  0x42   :  { %574 = vmatprep.mubr.bf16.mxu0 %v1540_v21  ;;  %702 = vmatprep.mubr.bf16.mxu1 %v1542_v22 }
  0x49   :  { %575 = vmatmul.mubr.bf16.gmra.mrb[4].mxu0 %v1544_v23  ;;  %703 = vmatmul.mubr.bf16.gmra.mrb[4].mxu1 %v1545_v24 }
  0x4a   :  { %582 = vmatprep.mubr.bf16.mxu0 %v1546_v25  ;;  %710 = vmatprep.mubr.bf16.mxu1 %v1548_v26 }
  0x51   :  { %583 = vmatmul.mubr.bf16.gmra.mrb[8].mxu0 %v1550_v27  ;;  %711 = vmatmul.mubr.bf16.gmra.mrb[8].mxu1 %v1551_v28 }
  0x52   :  { %590 = vmatprep.mubr.bf16.mxu0 %v1552_v29  ;;  %718 = vmatprep.mubr.bf16.mxu1 %v1554_v30 }
  0x59   :  { %591 = vmatmul.mubr.bf16.gmra.mrb[12].mxu0 %v1556_v31  ;;  %719 = vmatmul.mubr.bf16.gmra.mrb[12].mxu1 %v1557_v32 }
  0x5a   :  { %598 = vmatprep.mubr.bf16.mxu0 %v1558_v33  ;;  %726 = vmatprep.mubr.bf16.mxu1 %v1560_v34 }
  0x61   :  { %599 = vmatmul.mubr.bf16.gmra.mrb[16].mxu0 %v1562_v35  ;;  %727 = vmatmul.mubr.bf16.gmra.mrb[16].mxu1 %v1563_v36 }
  0x62   :  { %606 = vmatprep.mubr.bf16.mxu0 %v1564_v37  ;;  %734 = vmatprep.mubr.bf16.mxu1 %v1566_v38 }
  0x69   :  { %607 = vmatmul.mubr.bf16.gmra.mrb[20].mxu0 %v1568_v39  ;;  %735 = vmatmul.mubr.bf16.gmra.mrb[20].mxu1 %v1569_v40 }
  0x6a   :  { %614 = vmatprep.mubr.bf16.mxu0 %v1570_v41  ;;  %742 = vmatprep.mubr.bf16.mxu1 %v1572_v42 }
  0x71   :  { %615 = vmatmul.mubr.bf16.gmra.mrb[24].mxu0 %v1574_v43  ;;  %743 = vmatmul.mubr.bf16.gmra.mrb[24].mxu1 %v1575_v44 }
  0x72   :  { %622 = vmatprep.mubr.bf16.mxu0 %v1576_v45  ;;  %750 = vmatprep.mubr.bf16.mxu1 %v1578_v46 }
  0x79   :  { %623 = vmatmul.mubr.bf16.gmra.mrb[28].mxu0 %v1580_v47  ;;  %751 = vmatmul.mubr.bf16.gmra.mrb[28].mxu1 %v1581_v48 }
  0x7a   :  { %630 = vmatprep.mubr.bf16.mxu0 %v1582_v49  ;;  %758 = vmatprep.mubr.bf16.mxu1 %v1584_v50 }
  0x81   :  { %631 = vmatmul.mubr.bf16.gmra.mrb[32].mxu0 %v1586_v51  ;;  %759 = vmatmul.mubr.bf16.gmra.mrb[32].mxu1 %v1587_v52 }
  0x82   :  { %638 = vmatprep.mubr.bf16.mxu0 %v1588_v53  ;;  %766 = vmatprep.mubr.bf16.mxu1 %v1590_v54 }
  0x89   :  { %639 = vmatmul.mubr.bf16.gmra.mrb[36].mxu0 %v1592_v55  ;;  %767 = vmatmul.mubr.bf16.gmra.mrb[36].mxu1 %v1593_v56 }
  0x8a   :  { %646 = vmatprep.mubr.bf16.mxu0 %v1594_v57  ;;  %774 = vmatprep.mubr.bf16.mxu1 %v1596_v58 }
  0x91   :  { %647 = vmatmul.mubr.bf16.gmra.mrb[40].mxu0 %v1598_v59  ;;  %775 = vmatmul.mubr.bf16.gmra.mrb[40].mxu1 %v1599_v60 }
  0x92   :  { %654 = vmatprep.mubr.bf16.mxu0 %v1600_v61  ;;  %782 = vmatprep.mubr.bf16.mxu1 %v1602_v62 }
  0x99   :  { %655 = vmatmul.mubr.bf16.gmra.mrb[44].mxu0 %v1604_v63  ;;  %783 = vmatmul.mubr.bf16.gmra.mrb[44].mxu1 %v1605_v0 }
  0x9a   :  { %662 = vmatprep.mubr.bf16.mxu0 %v1606_v1  ;;  %790 = vmatprep.mubr.bf16.mxu1 %v1608_v2 }
  0xa1   :  { %663 = vmatmul.mubr.bf16.gmra.mrb[48].mxu0 %v1610_v3  ;;  %791 = vmatmul.mubr.bf16.gmra.mrb[48].mxu1 %v1611_v4 }
  0xa2   :  { %670 = vmatprep.mubr.bf16.mxu0 %v1612_v5  ;;  %798 = vmatprep.mubr.bf16.mxu1 %v1614_v6 }
  0xa9   :  { %671 = vmatmul.mubr.bf16.gmra.mrb[52].mxu0 %v1616_v7  ;;  %799 = vmatmul.mubr.bf16.gmra.mrb[52].mxu1 %v1617_v8 }
  0xaa   :  { %678 = vmatprep.mubr.bf16.mxu0 %v1618_v9  ;;  %806 = vmatprep.mubr.bf16.mxu1 %v1620_v10 }
  0xb1   :  { %679 = vmatmul.mubr.bf16.gmra.mrb[56].mxu0 %v1622_v11  ;;  %807 = vmatmul.mubr.bf16.gmra.mrb[56].mxu1 %v1623_v12 }
  0xb2   :  { %686 = vmatprep.mubr.bf16.mxu0 %v1624_v13  ;;  %814 = vmatprep.mubr.bf16.mxu1 %v1626_v14 }
  0xb9   :  { %687 = vmatmul.mubr.bf16.gmra.mrb[60].mxu0 %v1628_v15  ;;  %815 = vmatmul.mubr.bf16.gmra.mrb[60].mxu1 %v1629_v16 }
 0x114   :  { %v568_v18 = vpop.f32.mrb[0].mxu0  ;;  %v696_v19 = vpop.f32.mrb[0].mxu1 }
 0x115   :  { %v569_v20 = vadd.f32 %v1926_v17, %v568_v18  ;;  %v697_v21 = vadd.f32 %v1926_v17, %v696_v19  ;;  %v570_v22 = vpop.f32.mrb[1].mxu0  ;;  %v698_v23 = vpop.f32.mrb[1].mxu1 }
 0x116   :  { %v571_v24 = vpop.f32.mrb[2].mxu0  ;;  %v699_v25 = vpop.f32.mrb[2].mxu1 }
 0x117   :  { %v823_v26 = vmul.f32 0.2, %v569_v20  ;;  %v855_v27 = vmul.f32 0.2, %v697_v21  ;;  %v572_v28 = vadd.f32 %v1926_v17, %v571_v24  ;;  %v700_v29 = vadd.f32 %v1926_v17, %v699_v25  ;;  %v573_v30 = vpop.f32.mrb[3].mxu0  ;;  %v701_v31 = vpop.f32.mrb[3].mxu1 }
 0x119   :  { %v887_v32 = vmax.f32 %v569_v20, %v823_v26  ;;  %v919_v33 = vmax.f32 %v697_v21, %v855_v27  ;;  %v824_v34 = vmul.f32 0.2, %v572_v28  ;;  %v856_v35 = vmul.f32 0.2, %v700_v29 }
 0x11b   :  { %v1421_v36 = vpack.c.bf16 %v887_v32, %v887_v32  ;;  %v1453_v37 = vpack.c.bf16 %v919_v33, %v919_v33  ;;  %v888_v38 = vmax.f32 %v572_v28, %v824_v34  ;;  %v920_v39 = vmax.f32 %v700_v29, %v856_v35 }
 0x11c   :  { %v576_v40 = vpop.f32.mrb[4].mxu0  ;;  %v704_v41 = vpop.f32.mrb[4].mxu1 }
 0x11d   :  { %1208 = vst.msk [vmem:[%s2251_s3] sm:$0xf] %vm1207_vm0, %v1421_v36  ;;  %1240 = vst.msk [vmem:[%s2251_s3 + $0x80] sm:$0xf] %vm1207_vm0, %v1453_v37  ;;  %v1422_v42 = vpack.c.bf16 %v888_v38, %v888_v38  ;;  %v1454_v43 = vpack.c.bf16 %v920_v39, %v920_v39  ;;  %v577_v44 = vadd.f32 %v1926_v17, %v576_v40  ;;  %v578_v46 = vpop.f32.mrb[5].mxu0  ;;  %v706_v47 = vpop.f32.mrb[5].mxu1 }
 0x11e   :  { %v705_v45 = vadd.f32 %v1926_v17, %v704_v41  ;;  %v579_v48 = vpop.f32.mrb[6].mxu0  ;;  %v707_v49 = vpop.f32.mrb[6].mxu1 }
 0x11f   :  { %1209 = vst.msk [vmem:[%s2251_s3 + $0x4] sm:$0xf] %vm1207_vm0, %v1422_v42  ;;  %1241 = vst.msk [vmem:[%s2251_s3 + $0x84] sm:$0xf] %vm1207_vm0, %v1454_v43  ;;  %v825_v50 = vmul.f32 0.2, %v577_v44  ;;  %v580_v52 = vadd.f32 %v1926_v17, %v579_v48  ;;  %v708_v53 = vadd.f32 %v1926_v17, %v707_v49 }
 0x120   :  { %v857_v51 = vmul.f32 0.2, %v705_v45  ;;  %v581_v54 = vpop.f32.mrb[7].mxu0  ;;  %v709_v55 = vpop.f32.mrb[7].mxu1 }
 0x121   :  { %v889_v56 = vmax.f32 %v577_v44, %v825_v50  ;;  %v826_v58 = vmul.f32 0.2, %v580_v52  ;;  %v858_v59 = vmul.f32 0.2, %v708_v53 }
 0x122   :  { %v921_v57 = vmax.f32 %v705_v45, %v857_v51 }
 0x123   :  { %v1423_v60 = vpack.c.bf16 %v889_v56, %v889_v56  ;;  %v890_v62 = vmax.f32 %v580_v52, %v826_v58  ;;  %v922_v63 = vmax.f32 %v708_v53, %v858_v59 }
 0x124   :  { %v1455_v61 = vpack.c.bf16 %v921_v57, %v921_v57  ;;  %v584_v0 = vpop.f32.mrb[8].mxu0  ;;  %v712_v1 = vpop.f32.mrb[8].mxu1 }
 0x125   :  { %1210 = vst.msk [vmem:[%s2251_s3 + $0x8] sm:$0xf] %vm1207_vm0, %v1423_v60  ;;  %v1424_v2 = vpack.c.bf16 %v890_v62, %v890_v62  ;;  %v1456_v3 = vpack.c.bf16 %v922_v63, %v922_v63  ;;  %v585_v4 = vadd.f32 %v1926_v17, %v584_v0  ;;  %v713_v5 = vadd.f32 %v1926_v17, %v712_v1  ;;  %v586_v6 = vpop.f32.mrb[9].mxu0  ;;  %v714_v7 = vpop.f32.mrb[9].mxu1 }
 0x126   :  { %1242 = vst.msk [vmem:[%s2251_s3 + $0x88] sm:$0xf] %vm1207_vm0, %v1455_v61  ;;  %v587_v8 = vpop.f32.mrb[10].mxu0  ;;  %v715_v9 = vpop.f32.mrb[10].mxu1 }
 0x127   :  { %1211 = vst.msk [vmem:[%s2251_s3 + $0xc] sm:$0xf] %vm1207_vm0, %v1424_v2  ;;  %1243 = vst.msk [vmem:[%s2251_s3 + $0x8c] sm:$0xf] %vm1207_vm0, %v1456_v3  ;;  %v827_v10 = vmul.f32 0.2, %v585_v4  ;;  %v588_v12 = vadd.f32 %v1926_v17, %v587_v8  ;;  %v716_v13 = vadd.f32 %v1926_v17, %v715_v9 }
 0x128   :  { %v859_v11 = vmul.f32 0.2, %v713_v5  ;;  %v589_v14 = vpop.f32.mrb[11].mxu0  ;;  %v717_v15 = vpop.f32.mrb[11].mxu1 }
 0x129   :  { %v891_v16 = vmax.f32 %v585_v4, %v827_v10  ;;  %v828_v19 = vmul.f32 0.2, %v588_v12  ;;  %v860_v20 = vmul.f32 0.2, %v716_v13 }
 0x12a   :  { %v923_v18 = vmax.f32 %v713_v5, %v859_v11 }
 0x12b   :  { %v1425_v21 = vpack.c.bf16 %v891_v16, %v891_v16  ;;  %v892_v23 = vmax.f32 %v588_v12, %v828_v19  ;;  %v924_v24 = vmax.f32 %v716_v13, %v860_v20 }
 0x12c   :  { %v1457_v22 = vpack.c.bf16 %v923_v18, %v923_v18  ;;  %v592_v25 = vpop.f32.mrb[12].mxu0  ;;  %v720_v26 = vpop.f32.mrb[12].mxu1 }
 0x12d   :  { %1212 = vst.msk [vmem:[%s2251_s3 + $0x10] sm:$0xf] %vm1207_vm0, %v1425_v21  ;;  %v1426_v27 = vpack.c.bf16 %v892_v23, %v892_v23  ;;  %v1458_v28 = vpack.c.bf16 %v924_v24, %v924_v24  ;;  %v593_v29 = vadd.f32 %v1926_v17, %v592_v25  ;;  %v721_v30 = vadd.f32 %v1926_v17, %v720_v26  ;;  %v594_v31 = vpop.f32.mrb[13].mxu0  ;;  %v722_v32 = vpop.f32.mrb[13].mxu1 }
 0x12e   :  { %1244 = vst.msk [vmem:[%s2251_s3 + $0x90] sm:$0xf] %vm1207_vm0, %v1457_v22  ;;  %v595_v33 = vpop.f32.mrb[14].mxu0  ;;  %v723_v34 = vpop.f32.mrb[14].mxu1 }
 0x12f   :  { %1213 = vst.msk [vmem:[%s2251_s3 + $0x14] sm:$0xf] %vm1207_vm0, %v1426_v27  ;;  %1245 = vst.msk [vmem:[%s2251_s3 + $0x94] sm:$0xf] %vm1207_vm0, %v1458_v28  ;;  %v829_v35 = vmul.f32 0.2, %v593_v29  ;;  %v596_v37 = vadd.f32 %v1926_v17, %v595_v33  ;;  %v724_v38 = vadd.f32 %v1926_v17, %v723_v34 }
 0x130   :  { %v861_v36 = vmul.f32 0.2, %v721_v30  ;;  %v597_v39 = vpop.f32.mrb[15].mxu0  ;;  %v725_v40 = vpop.f32.mrb[15].mxu1 }
 0x131   :  { %v893_v41 = vmax.f32 %v593_v29, %v829_v35  ;;  %v830_v43 = vmul.f32 0.2, %v596_v37  ;;  %v862_v44 = vmul.f32 0.2, %v724_v38 }
 0x132   :  { %v925_v42 = vmax.f32 %v721_v30, %v861_v36 }
 0x133   :  { %v1427_v45 = vpack.c.bf16 %v893_v41, %v893_v41  ;;  %v894_v47 = vmax.f32 %v596_v37, %v830_v43  ;;  %v926_v48 = vmax.f32 %v724_v38, %v862_v44 }
 0x134   :  { %v1459_v46 = vpack.c.bf16 %v925_v42, %v925_v42  ;;  %v600_v49 = vpop.f32.mrb[16].mxu0  ;;  %v728_v50 = vpop.f32.mrb[16].mxu1 }
 0x135   :  { %1214 = vst.msk [vmem:[%s2251_s3 + $0x18] sm:$0xf] %vm1207_vm0, %v1427_v45  ;;  %v1428_v51 = vpack.c.bf16 %v894_v47, %v894_v47  ;;  %v1460_v52 = vpack.c.bf16 %v926_v48, %v926_v48  ;;  %v601_v53 = vadd.f32 %v1926_v17, %v600_v49  ;;  %v729_v54 = vadd.f32 %v1926_v17, %v728_v50  ;;  %v602_v55 = vpop.f32.mrb[17].mxu0  ;;  %v730_v56 = vpop.f32.mrb[17].mxu1 }
 0x136   :  { %1246 = vst.msk [vmem:[%s2251_s3 + $0x98] sm:$0xf] %vm1207_vm0, %v1459_v46  ;;  %v603_v57 = vpop.f32.mrb[18].mxu0  ;;  %v731_v58 = vpop.f32.mrb[18].mxu1 }
 0x137   :  { %1215 = vst.msk [vmem:[%s2251_s3 + $0x1c] sm:$0xf] %vm1207_vm0, %v1428_v51  ;;  %1247 = vst.msk [vmem:[%s2251_s3 + $0x9c] sm:$0xf] %vm1207_vm0, %v1460_v52  ;;  %v831_v59 = vmul.f32 0.2, %v601_v53  ;;  %v604_v61 = vadd.f32 %v1926_v17, %v603_v57  ;;  %v732_v62 = vadd.f32 %v1926_v17, %v731_v58 }
 0x138   :  { %v863_v60 = vmul.f32 0.2, %v729_v54  ;;  %v605_v63 = vpop.f32.mrb[19].mxu0  ;;  %v733_v0 = vpop.f32.mrb[19].mxu1 }
 0x139   :  { %v895_v1 = vmax.f32 %v601_v53, %v831_v59  ;;  %v832_v3 = vmul.f32 0.2, %v604_v61  ;;  %v864_v4 = vmul.f32 0.2, %v732_v62 }
 0x13a   :  { %v927_v2 = vmax.f32 %v729_v54, %v863_v60 }
 0x13b   :  { %v1429_v5 = vpack.c.bf16 %v895_v1, %v895_v1  ;;  %v896_v7 = vmax.f32 %v604_v61, %v832_v3  ;;  %v928_v8 = vmax.f32 %v732_v62, %v864_v4 }
 0x13c   :  { %v1461_v6 = vpack.c.bf16 %v927_v2, %v927_v2  ;;  %v608_v9 = vpop.f32.mrb[20].mxu0  ;;  %v736_v10 = vpop.f32.mrb[20].mxu1 }
 0x13d   :  { %1216 = vst.msk [vmem:[%s2251_s3 + $0x20] sm:$0xf] %vm1207_vm0, %v1429_v5  ;;  %v1430_v11 = vpack.c.bf16 %v896_v7, %v896_v7  ;;  %v1462_v12 = vpack.c.bf16 %v928_v8, %v928_v8  ;;  %v609_v13 = vadd.f32 %v1926_v17, %v608_v9  ;;  %v737_v14 = vadd.f32 %v1926_v17, %v736_v10  ;;  %v610_v15 = vpop.f32.mrb[21].mxu0  ;;  %v738_v16 = vpop.f32.mrb[21].mxu1 }
 0x13e   :  { %1248 = vst.msk [vmem:[%s2251_s3 + $0xa0] sm:$0xf] %vm1207_vm0, %v1461_v6  ;;  %v611_v18 = vpop.f32.mrb[22].mxu0  ;;  %v739_v19 = vpop.f32.mrb[22].mxu1 }
 0x13f   :  { %1217 = vst.msk [vmem:[%s2251_s3 + $0x24] sm:$0xf] %vm1207_vm0, %v1430_v11  ;;  %1249 = vst.msk [vmem:[%s2251_s3 + $0xa4] sm:$0xf] %vm1207_vm0, %v1462_v12  ;;  %v833_v20 = vmul.f32 0.2, %v609_v13  ;;  %v612_v22 = vadd.f32 %v1926_v17, %v611_v18  ;;  %v740_v23 = vadd.f32 %v1926_v17, %v739_v19 }
 0x140   :  { %v865_v21 = vmul.f32 0.2, %v737_v14  ;;  %v613_v24 = vpop.f32.mrb[23].mxu0  ;;  %v741_v25 = vpop.f32.mrb[23].mxu1 }
 0x141   :  { %v897_v26 = vmax.f32 %v609_v13, %v833_v20  ;;  %v834_v28 = vmul.f32 0.2, %v612_v22  ;;  %v866_v29 = vmul.f32 0.2, %v740_v23 }
 0x142   :  { %v929_v27 = vmax.f32 %v737_v14, %v865_v21 }
 0x143   :  { %v1431_v30 = vpack.c.bf16 %v897_v26, %v897_v26  ;;  %v898_v32 = vmax.f32 %v612_v22, %v834_v28  ;;  %v930_v33 = vmax.f32 %v740_v23, %v866_v29 }
 0x144   :  { %v1463_v31 = vpack.c.bf16 %v929_v27, %v929_v27  ;;  %v616_v34 = vpop.f32.mrb[24].mxu0  ;;  %v744_v35 = vpop.f32.mrb[24].mxu1 }
 0x145   :  { %1218 = vst.msk [vmem:[%s2251_s3 + $0x28] sm:$0xf] %vm1207_vm0, %v1431_v30  ;;  %v1432_v36 = vpack.c.bf16 %v898_v32, %v898_v32  ;;  %v1464_v37 = vpack.c.bf16 %v930_v33, %v930_v33  ;;  %v617_v38 = vadd.f32 %v1926_v17, %v616_v34  ;;  %v745_v39 = vadd.f32 %v1926_v17, %v744_v35  ;;  %v618_v40 = vpop.f32.mrb[25].mxu0  ;;  %v746_v41 = vpop.f32.mrb[25].mxu1 }
 0x146   :  { %1250 = vst.msk [vmem:[%s2251_s3 + $0xa8] sm:$0xf] %vm1207_vm0, %v1463_v31  ;;  %v619_v42 = vpop.f32.mrb[26].mxu0  ;;  %v747_v43 = vpop.f32.mrb[26].mxu1 }
 0x147   :  { %1219 = vst.msk [vmem:[%s2251_s3 + $0x2c] sm:$0xf] %vm1207_vm0, %v1432_v36  ;;  %1251 = vst.msk [vmem:[%s2251_s3 + $0xac] sm:$0xf] %vm1207_vm0, %v1464_v37  ;;  %v835_v44 = vmul.f32 0.2, %v617_v38  ;;  %v620_v46 = vadd.f32 %v1926_v17, %v619_v42  ;;  %v748_v47 = vadd.f32 %v1926_v17, %v747_v43 }
 0x148   :  { %v867_v45 = vmul.f32 0.2, %v745_v39  ;;  %v621_v48 = vpop.f32.mrb[27].mxu0  ;;  %v749_v49 = vpop.f32.mrb[27].mxu1 }
 0x149   :  { %v899_v50 = vmax.f32 %v617_v38, %v835_v44  ;;  %v836_v52 = vmul.f32 0.2, %v620_v46  ;;  %v868_v53 = vmul.f32 0.2, %v748_v47 }
 0x14a   :  { %v931_v51 = vmax.f32 %v745_v39, %v867_v45 }
 0x14b   :  { %v1433_v54 = vpack.c.bf16 %v899_v50, %v899_v50  ;;  %v900_v56 = vmax.f32 %v620_v46, %v836_v52  ;;  %v932_v57 = vmax.f32 %v748_v47, %v868_v53 }
 0x14c   :  { %v1465_v55 = vpack.c.bf16 %v931_v51, %v931_v51  ;;  %v624_v58 = vpop.f32.mrb[28].mxu0  ;;  %v752_v59 = vpop.f32.mrb[28].mxu1 }
 0x14d   :  { %1220 = vst.msk [vmem:[%s2251_s3 + $0x30] sm:$0xf] %vm1207_vm0, %v1433_v54  ;;  %v1434_v60 = vpack.c.bf16 %v900_v56, %v900_v56  ;;  %v1466_v61 = vpack.c.bf16 %v932_v57, %v932_v57  ;;  %v625_v62 = vadd.f32 %v1926_v17, %v624_v58  ;;  %v753_v63 = vadd.f32 %v1926_v17, %v752_v59  ;;  %v626_v0 = vpop.f32.mrb[29].mxu0  ;;  %v754_v1 = vpop.f32.mrb[29].mxu1 }
 0x14e   :  { %1252 = vst.msk [vmem:[%s2251_s3 + $0xb0] sm:$0xf] %vm1207_vm0, %v1465_v55  ;;  %v627_v2 = vpop.f32.mrb[30].mxu0  ;;  %v755_v3 = vpop.f32.mrb[30].mxu1 }
 0x14f   :  { %1221 = vst.msk [vmem:[%s2251_s3 + $0x34] sm:$0xf] %vm1207_vm0, %v1434_v60  ;;  %1253 = vst.msk [vmem:[%s2251_s3 + $0xb4] sm:$0xf] %vm1207_vm0, %v1466_v61  ;;  %v837_v4 = vmul.f32 0.2, %v625_v62  ;;  %v628_v6 = vadd.f32 %v1926_v17, %v627_v2  ;;  %v756_v7 = vadd.f32 %v1926_v17, %v755_v3 }
 0x150   :  { %v869_v5 = vmul.f32 0.2, %v753_v63  ;;  %v629_v8 = vpop.f32.mrb[31].mxu0  ;;  %v757_v9 = vpop.f32.mrb[31].mxu1 }
 0x151   :  { %v901_v10 = vmax.f32 %v625_v62, %v837_v4  ;;  %v838_v12 = vmul.f32 0.2, %v628_v6  ;;  %v870_v13 = vmul.f32 0.2, %v756_v7 }
 0x152   :  { %v933_v11 = vmax.f32 %v753_v63, %v869_v5 }
 0x153   :  { %v1435_v14 = vpack.c.bf16 %v901_v10, %v901_v10  ;;  %v902_v16 = vmax.f32 %v628_v6, %v838_v12  ;;  %v934_v18 = vmax.f32 %v756_v7, %v870_v13 }
 0x154   :  { %v1467_v15 = vpack.c.bf16 %v933_v11, %v933_v11  ;;  %v632_v19 = vpop.f32.mrb[32].mxu0  ;;  %v760_v20 = vpop.f32.mrb[32].mxu1 }
 0x155   :  { %1222 = vst.msk [vmem:[%s2251_s3 + $0x38] sm:$0xf] %vm1207_vm0, %v1435_v14  ;;  %v1436_v21 = vpack.c.bf16 %v902_v16, %v902_v16  ;;  %v1468_v22 = vpack.c.bf16 %v934_v18, %v934_v18  ;;  %v633_v23 = vadd.f32 %v1926_v17, %v632_v19  ;;  %v761_v24 = vadd.f32 %v1926_v17, %v760_v20  ;;  %v634_v25 = vpop.f32.mrb[33].mxu0  ;;  %v762_v26 = vpop.f32.mrb[33].mxu1 }
 0x156   :  { %1254 = vst.msk [vmem:[%s2251_s3 + $0xb8] sm:$0xf] %vm1207_vm0, %v1467_v15  ;;  %v635_v27 = vpop.f32.mrb[34].mxu0  ;;  %v763_v28 = vpop.f32.mrb[34].mxu1 }
 0x157   :  { %1223 = vst.msk [vmem:[%s2251_s3 + $0x3c] sm:$0xf] %vm1207_vm0, %v1436_v21  ;;  %1255 = vst.msk [vmem:[%s2251_s3 + $0xbc] sm:$0xf] %vm1207_vm0, %v1468_v22  ;;  %v839_v29 = vmul.f32 0.2, %v633_v23  ;;  %v636_v31 = vadd.f32 %v1926_v17, %v635_v27  ;;  %v764_v32 = vadd.f32 %v1926_v17, %v763_v28 }
 0x158   :  { %v871_v30 = vmul.f32 0.2, %v761_v24  ;;  %v637_v33 = vpop.f32.mrb[35].mxu0  ;;  %v765_v34 = vpop.f32.mrb[35].mxu1 }
 0x159   :  { %v903_v35 = vmax.f32 %v633_v23, %v839_v29  ;;  %v840_v37 = vmul.f32 0.2, %v636_v31  ;;  %v872_v38 = vmul.f32 0.2, %v764_v32 }
 0x15a   :  { %v935_v36 = vmax.f32 %v761_v24, %v871_v30 }
 0x15b   :  { %v1437_v39 = vpack.c.bf16 %v903_v35, %v903_v35  ;;  %v904_v41 = vmax.f32 %v636_v31, %v840_v37  ;;  %v936_v42 = vmax.f32 %v764_v32, %v872_v38 }
 0x15c   :  { %v1469_v40 = vpack.c.bf16 %v935_v36, %v935_v36  ;;  %v640_v43 = vpop.f32.mrb[36].mxu0  ;;  %v768_v44 = vpop.f32.mrb[36].mxu1 }
 0x15d   :  { %1224 = vst.msk [vmem:[%s2251_s3 + $0x40] sm:$0xf] %vm1207_vm0, %v1437_v39  ;;  %v1438_v45 = vpack.c.bf16 %v904_v41, %v904_v41  ;;  %v1470_v46 = vpack.c.bf16 %v936_v42, %v936_v42  ;;  %v641_v47 = vadd.f32 %v1926_v17, %v640_v43  ;;  %v769_v48 = vadd.f32 %v1926_v17, %v768_v44  ;;  %v642_v49 = vpop.f32.mrb[37].mxu0  ;;  %v770_v50 = vpop.f32.mrb[37].mxu1 }
 0x15e   :  { %1256 = vst.msk [vmem:[%s2251_s3 + $0xc0] sm:$0xf] %vm1207_vm0, %v1469_v40  ;;  %v643_v51 = vpop.f32.mrb[38].mxu0  ;;  %v771_v52 = vpop.f32.mrb[38].mxu1 }
 0x15f   :  { %1225 = vst.msk [vmem:[%s2251_s3 + $0x44] sm:$0xf] %vm1207_vm0, %v1438_v45  ;;  %1257 = vst.msk [vmem:[%s2251_s3 + $0xc4] sm:$0xf] %vm1207_vm0, %v1470_v46  ;;  %v841_v53 = vmul.f32 0.2, %v641_v47  ;;  %v644_v55 = vadd.f32 %v1926_v17, %v643_v51  ;;  %v772_v56 = vadd.f32 %v1926_v17, %v771_v52 }
 0x160   :  { %v873_v54 = vmul.f32 0.2, %v769_v48  ;;  %v645_v57 = vpop.f32.mrb[39].mxu0  ;;  %v773_v58 = vpop.f32.mrb[39].mxu1 }
 0x161   :  { %v905_v59 = vmax.f32 %v641_v47, %v841_v53  ;;  %v842_v61 = vmul.f32 0.2, %v644_v55  ;;  %v874_v62 = vmul.f32 0.2, %v772_v56 }
 0x162   :  { %v937_v60 = vmax.f32 %v769_v48, %v873_v54 }
 0x163   :  { %v1439_v63 = vpack.c.bf16 %v905_v59, %v905_v59  ;;  %v906_v1 = vmax.f32 %v644_v55, %v842_v61  ;;  %v938_v2 = vmax.f32 %v772_v56, %v874_v62 }
 0x164   :  { %v1471_v0 = vpack.c.bf16 %v937_v60, %v937_v60  ;;  %v648_v3 = vpop.f32.mrb[40].mxu0  ;;  %v776_v4 = vpop.f32.mrb[40].mxu1 }
 0x165   :  { %1226 = vst.msk [vmem:[%s2251_s3 + $0x48] sm:$0xf] %vm1207_vm0, %v1439_v63  ;;  %v1440_v5 = vpack.c.bf16 %v906_v1, %v906_v1  ;;  %v1472_v6 = vpack.c.bf16 %v938_v2, %v938_v2  ;;  %v649_v7 = vadd.f32 %v1926_v17, %v648_v3  ;;  %v777_v8 = vadd.f32 %v1926_v17, %v776_v4  ;;  %v650_v9 = vpop.f32.mrb[41].mxu0  ;;  %v778_v10 = vpop.f32.mrb[41].mxu1 }
 0x166   :  { %1258 = vst.msk [vmem:[%s2251_s3 + $0xc8] sm:$0xf] %vm1207_vm0, %v1471_v0  ;;  %v651_v11 = vpop.f32.mrb[42].mxu0  ;;  %v779_v12 = vpop.f32.mrb[42].mxu1 }
 0x167   :  { %1227 = vst.msk [vmem:[%s2251_s3 + $0x4c] sm:$0xf] %vm1207_vm0, %v1440_v5  ;;  %1259 = vst.msk [vmem:[%s2251_s3 + $0xcc] sm:$0xf] %vm1207_vm0, %v1472_v6  ;;  %v843_v13 = vmul.f32 0.2, %v649_v7  ;;  %v652_v15 = vadd.f32 %v1926_v17, %v651_v11  ;;  %v780_v16 = vadd.f32 %v1926_v17, %v779_v12 }
 0x168   :  { %v875_v14 = vmul.f32 0.2, %v777_v8  ;;  %v653_v18 = vpop.f32.mrb[43].mxu0  ;;  %v781_v19 = vpop.f32.mrb[43].mxu1 }
 0x169   :  { %v907_v20 = vmax.f32 %v649_v7, %v843_v13  ;;  %v844_v22 = vmul.f32 0.2, %v652_v15  ;;  %v876_v23 = vmul.f32 0.2, %v780_v16 }
 0x16a   :  { %v939_v21 = vmax.f32 %v777_v8, %v875_v14 }
 0x16b   :  { %v1441_v24 = vpack.c.bf16 %v907_v20, %v907_v20  ;;  %v908_v26 = vmax.f32 %v652_v15, %v844_v22  ;;  %v940_v27 = vmax.f32 %v780_v16, %v876_v23 }
 0x16c   :  { %v1473_v25 = vpack.c.bf16 %v939_v21, %v939_v21  ;;  %v656_v28 = vpop.f32.mrb[44].mxu0  ;;  %v784_v29 = vpop.f32.mrb[44].mxu1 }
 0x16d   :  { %1228 = vst.msk [vmem:[%s2251_s3 + $0x50] sm:$0xf] %vm1207_vm0, %v1441_v24  ;;  %v1442_v30 = vpack.c.bf16 %v908_v26, %v908_v26  ;;  %v1474_v31 = vpack.c.bf16 %v940_v27, %v940_v27  ;;  %v657_v32 = vadd.f32 %v1926_v17, %v656_v28  ;;  %v785_v33 = vadd.f32 %v1926_v17, %v784_v29  ;;  %v658_v34 = vpop.f32.mrb[45].mxu0  ;;  %v786_v35 = vpop.f32.mrb[45].mxu1 }
 0x16e   :  { %1260 = vst.msk [vmem:[%s2251_s3 + $0xd0] sm:$0xf] %vm1207_vm0, %v1473_v25  ;;  %v659_v36 = vpop.f32.mrb[46].mxu0  ;;  %v787_v37 = vpop.f32.mrb[46].mxu1 }
 0x16f   :  { %1229 = vst.msk [vmem:[%s2251_s3 + $0x54] sm:$0xf] %vm1207_vm0, %v1442_v30  ;;  %1261 = vst.msk [vmem:[%s2251_s3 + $0xd4] sm:$0xf] %vm1207_vm0, %v1474_v31  ;;  %v845_v38 = vmul.f32 0.2, %v657_v32  ;;  %v660_v40 = vadd.f32 %v1926_v17, %v659_v36  ;;  %v788_v41 = vadd.f32 %v1926_v17, %v787_v37 }
 0x170   :  { %v877_v39 = vmul.f32 0.2, %v785_v33  ;;  %v661_v42 = vpop.f32.mrb[47].mxu0  ;;  %v789_v43 = vpop.f32.mrb[47].mxu1 }
 0x171   :  { %v909_v44 = vmax.f32 %v657_v32, %v845_v38  ;;  %v846_v46 = vmul.f32 0.2, %v660_v40  ;;  %v878_v47 = vmul.f32 0.2, %v788_v41 }
 0x172   :  { %v941_v45 = vmax.f32 %v785_v33, %v877_v39 }
 0x173   :  { %v1443_v48 = vpack.c.bf16 %v909_v44, %v909_v44  ;;  %v910_v50 = vmax.f32 %v660_v40, %v846_v46  ;;  %v942_v51 = vmax.f32 %v788_v41, %v878_v47 }
 0x174   :  { %v1475_v49 = vpack.c.bf16 %v941_v45, %v941_v45  ;;  %v664_v52 = vpop.f32.mrb[48].mxu0  ;;  %v792_v53 = vpop.f32.mrb[48].mxu1 }
 0x175   :  { %1230 = vst.msk [vmem:[%s2251_s3 + $0x58] sm:$0xf] %vm1207_vm0, %v1443_v48  ;;  %v1444_v54 = vpack.c.bf16 %v910_v50, %v910_v50  ;;  %v1476_v55 = vpack.c.bf16 %v942_v51, %v942_v51  ;;  %v665_v56 = vadd.f32 %v1926_v17, %v664_v52  ;;  %v793_v57 = vadd.f32 %v1926_v17, %v792_v53  ;;  %v666_v58 = vpop.f32.mrb[49].mxu0  ;;  %v794_v59 = vpop.f32.mrb[49].mxu1 }
 0x176   :  { %1262 = vst.msk [vmem:[%s2251_s3 + $0xd8] sm:$0xf] %vm1207_vm0, %v1475_v49  ;;  %v667_v60 = vpop.f32.mrb[50].mxu0  ;;  %v795_v61 = vpop.f32.mrb[50].mxu1 }
 0x177   :  { %1231 = vst.msk [vmem:[%s2251_s3 + $0x5c] sm:$0xf] %vm1207_vm0, %v1444_v54  ;;  %1263 = vst.msk [vmem:[%s2251_s3 + $0xdc] sm:$0xf] %vm1207_vm0, %v1476_v55  ;;  %v847_v62 = vmul.f32 0.2, %v665_v56  ;;  %v668_v0 = vadd.f32 %v1926_v17, %v667_v60  ;;  %v796_v1 = vadd.f32 %v1926_v17, %v795_v61 }
 0x178   :  { %v879_v63 = vmul.f32 0.2, %v793_v57  ;;  %v669_v2 = vpop.f32.mrb[51].mxu0  ;;  %v797_v3 = vpop.f32.mrb[51].mxu1 }
 0x179   :  { %v911_v4 = vmax.f32 %v665_v56, %v847_v62  ;;  %v848_v6 = vmul.f32 0.2, %v668_v0  ;;  %v880_v7 = vmul.f32 0.2, %v796_v1 }
 0x17a   :  { %v943_v5 = vmax.f32 %v793_v57, %v879_v63 }
 0x17b   :  { %v1445_v8 = vpack.c.bf16 %v911_v4, %v911_v4  ;;  %v912_v10 = vmax.f32 %v668_v0, %v848_v6  ;;  %v944_v11 = vmax.f32 %v796_v1, %v880_v7 }
 0x17c   :  { %v1477_v9 = vpack.c.bf16 %v943_v5, %v943_v5  ;;  %v672_v12 = vpop.f32.mrb[52].mxu0  ;;  %v800_v13 = vpop.f32.mrb[52].mxu1 }
 0x17d   :  { %1232 = vst.msk [vmem:[%s2251_s3 + $0x60] sm:$0xf] %vm1207_vm0, %v1445_v8  ;;  %v1446_v14 = vpack.c.bf16 %v912_v10, %v912_v10  ;;  %v1478_v15 = vpack.c.bf16 %v944_v11, %v944_v11  ;;  %v673_v16 = vadd.f32 %v1926_v17, %v672_v12  ;;  %v801_v18 = vadd.f32 %v1926_v17, %v800_v13  ;;  %v674_v19 = vpop.f32.mrb[53].mxu0  ;;  %v802_v20 = vpop.f32.mrb[53].mxu1 }
 0x17e   :  { %1264 = vst.msk [vmem:[%s2251_s3 + $0xe0] sm:$0xf] %vm1207_vm0, %v1477_v9  ;;  %v675_v21 = vpop.f32.mrb[54].mxu0  ;;  %v803_v22 = vpop.f32.mrb[54].mxu1 }
 0x17f   :  { %1233 = vst.msk [vmem:[%s2251_s3 + $0x64] sm:$0xf] %vm1207_vm0, %v1446_v14  ;;  %1265 = vst.msk [vmem:[%s2251_s3 + $0xe4] sm:$0xf] %vm1207_vm0, %v1478_v15  ;;  %v849_v23 = vmul.f32 0.2, %v673_v16  ;;  %v676_v25 = vadd.f32 %v1926_v17, %v675_v21  ;;  %v804_v26 = vadd.f32 %v1926_v17, %v803_v22 }
 0x180   :  { %v881_v24 = vmul.f32 0.2, %v801_v18  ;;  %v677_v27 = vpop.f32.mrb[55].mxu0  ;;  %v805_v28 = vpop.f32.mrb[55].mxu1 }
 0x181   :  { %v913_v29 = vmax.f32 %v673_v16, %v849_v23  ;;  %v850_v31 = vmul.f32 0.2, %v676_v25  ;;  %v882_v32 = vmul.f32 0.2, %v804_v26 }
 0x182   :  { %v945_v30 = vmax.f32 %v801_v18, %v881_v24 }
 0x183   :  { %v1447_v33 = vpack.c.bf16 %v913_v29, %v913_v29  ;;  %v914_v35 = vmax.f32 %v676_v25, %v850_v31  ;;  %v946_v36 = vmax.f32 %v804_v26, %v882_v32 }
 0x184   :  { %v1479_v34 = vpack.c.bf16 %v945_v30, %v945_v30  ;;  %v680_v37 = vpop.f32.mrb[56].mxu0  ;;  %v808_v38 = vpop.f32.mrb[56].mxu1 }
 0x185   :  { %1234 = vst.msk [vmem:[%s2251_s3 + $0x68] sm:$0xf] %vm1207_vm0, %v1447_v33  ;;  %v1448_v39 = vpack.c.bf16 %v914_v35, %v914_v35  ;;  %v1480_v40 = vpack.c.bf16 %v946_v36, %v946_v36  ;;  %v681_v41 = vadd.f32 %v1926_v17, %v680_v37  ;;  %v809_v42 = vadd.f32 %v1926_v17, %v808_v38  ;;  %v682_v43 = vpop.f32.mrb[57].mxu0  ;;  %v810_v44 = vpop.f32.mrb[57].mxu1 }
 0x186   :  { %1266 = vst.msk [vmem:[%s2251_s3 + $0xe8] sm:$0xf] %vm1207_vm0, %v1479_v34  ;;  %v683_v45 = vpop.f32.mrb[58].mxu0  ;;  %v811_v46 = vpop.f32.mrb[58].mxu1 }
 0x187   :  { %1235 = vst.msk [vmem:[%s2251_s3 + $0x6c] sm:$0xf] %vm1207_vm0, %v1448_v39  ;;  %1267 = vst.msk [vmem:[%s2251_s3 + $0xec] sm:$0xf] %vm1207_vm0, %v1480_v40  ;;  %v851_v47 = vmul.f32 0.2, %v681_v41  ;;  %v684_v49 = vadd.f32 %v1926_v17, %v683_v45  ;;  %v812_v50 = vadd.f32 %v1926_v17, %v811_v46 }
 0x188   :  { %v883_v48 = vmul.f32 0.2, %v809_v42  ;;  %v685_v51 = vpop.f32.mrb[59].mxu0  ;;  %v813_v52 = vpop.f32.mrb[59].mxu1 }
 0x189   :  { %v915_v53 = vmax.f32 %v681_v41, %v851_v47  ;;  %v852_v55 = vmul.f32 0.2, %v684_v49  ;;  %v884_v56 = vmul.f32 0.2, %v812_v50 }
 0x18a   :  { %v947_v54 = vmax.f32 %v809_v42, %v883_v48 }
 0x18b   :  { %v1449_v57 = vpack.c.bf16 %v915_v53, %v915_v53  ;;  %v916_v59 = vmax.f32 %v684_v49, %v852_v55  ;;  %v948_v60 = vmax.f32 %v812_v50, %v884_v56 }
 0x18c   :  { %v1481_v58 = vpack.c.bf16 %v947_v54, %v947_v54  ;;  %v688_v61 = vpop.f32.mrb[60].mxu0  ;;  %v816_v62 = vpop.f32.mrb[60].mxu1 }
 0x18d   :  { %1236 = vst.msk [vmem:[%s2251_s3 + $0x70] sm:$0xf] %vm1207_vm0, %v1449_v57  ;;  %v1450_v63 = vpack.c.bf16 %v916_v59, %v916_v59  ;;  %v1482_v0 = vpack.c.bf16 %v948_v60, %v948_v60  ;;  %v689_v1 = vadd.f32 %v1926_v17, %v688_v61  ;;  %v817_v2 = vadd.f32 %v1926_v17, %v816_v62  ;;  %v690_v3 = vpop.f32.mrb[61].mxu0  ;;  %v818_v4 = vpop.f32.mrb[61].mxu1 }
 0x18e   :  { %1268 = vst.msk [vmem:[%s2251_s3 + $0xf0] sm:$0xf] %vm1207_vm0, %v1481_v58  ;;  %v691_v5 = vpop.f32.mrb[62].mxu0  ;;  %v819_v6 = vpop.f32.mrb[62].mxu1 }
 0x18f   :  { %1237 = vst.msk [vmem:[%s2251_s3 + $0x74] sm:$0xf] %vm1207_vm0, %v1450_v63  ;;  %1269 = vst.msk [vmem:[%s2251_s3 + $0xf4] sm:$0xf] %vm1207_vm0, %v1482_v0  ;;  %v853_v7 = vmul.f32 0.2, %v689_v1  ;;  %v692_v9 = vadd.f32 %v1926_v17, %v691_v5  ;;  %v820_v10 = vadd.f32 %v1926_v17, %v819_v6 }
 0x190   :  { %v885_v8 = vmul.f32 0.2, %v817_v2  ;;  %v693_v11 = vpop.f32.mrb[63].mxu0  ;;  %v821_v12 = vpop.f32.mrb[63].mxu1 }
 0x191   :  { %v917_v13 = vmax.f32 %v689_v1, %v853_v7  ;;  %v854_v15 = vmul.f32 0.2, %v692_v9  ;;  %v886_v16 = vmul.f32 0.2, %v820_v10 }
 0x192   :  { %v949_v14 = vmax.f32 %v817_v2, %v885_v8 }
 0x193   :  { %v1451_v18 = vpack.c.bf16 %v917_v13, %v917_v13  ;;  %v918_v20 = vmax.f32 %v692_v9, %v854_v15  ;;  %v950_v21 = vmax.f32 %v820_v10, %v886_v16 }
 0x194   :  { %v1483_v19 = vpack.c.bf16 %v949_v14, %v949_v14 }
 0x195   :  { %1238 = vst.msk [vmem:[%s2251_s3 + $0x78] sm:$0xf] %vm1207_vm0, %v1451_v18  ;;  %v1452_v17 = vpack.c.bf16 %v918_v20, %v918_v20  ;;  %v1484_v22 = vpack.c.bf16 %v950_v21, %v950_v21 }
 0x196   :  { %1270 = vst.msk [vmem:[%s2251_s3 + $0xf8] sm:$0xf] %vm1207_vm0, %v1483_v19 }
 0x197   :  { %1239 = vst.msk [vmem:[%s2251_s3 + $0x7c] sm:$0xf] %vm1207_vm0, %v1452_v17  ;;  %1271 = vst.msk [vmem:[%s2251_s3 + $0xfc] sm:$0xf] %vm1207_vm0, %v1484_v22 }

// kernel: celeba_encoder_forward.6
= control target key start
LH: loop header
LB: loop body
LE: loop exit
PB: predicated region body
PF: predicated region fallthrough
CT: control target
= control target key end

     0   :  { %vm760_vm0 = vcmask 519168   ;;  %s1383_s1 = inlined_call_operand.vmem [shape: bf16[512,64], index: 1, kind: input, shape index: {}]   ;;  %s1384_s0 = inlined_call_operand.vmem [shape: bf16[128,512], index: 0, kind: input, shape index: {}]   ;;  %s1385_s2 = inlined_call_operand.vmem [shape: f32[1,64], index: 2, kind: input, shape index: {}]   ;;  %s1386_s3 = inlined_call_operand.vmem [shape: bf16[128,64], index: 3, kind: output, shape index: {}]  }
   0x1   :  { %v1006_v0 = vld [vmem:[%s1383_s1 + $0x40] sm:$0xff]   ;;  %v1010_v4 = vld [vmem:[%s1383_s1 + $0x48] sm:$0xff]   ;;  %v1014_v8 = vld [vmem:[%s1383_s1 + $0x50] sm:$0xff]  }
   0x2   :  { %v1007_v1 = vld [vmem:[%s1383_s1 + $0xc0] sm:$0xff]   ;;  %878 = vmatprep.subr.bf16.mxu0 %v1006_v0  ;;  %v1011_v5 = vld [vmem:[%s1383_s1 + $0xc8] sm:$0xff]   ;;  %v1015_v9 = vld [vmem:[%s1383_s1 + $0xd0] sm:$0xff]  }
   0x3   :  { %v1008_v2 = vld [vmem:[%s1383_s1] sm:$0xff]   ;;  %942 = vmatprep.subr.bf16.mxu1 %v1007_v1  ;;  %v1012_v6 = vld [vmem:[%s1383_s1 + $0x8] sm:$0xff]   ;;  %v1016_v10 = vld [vmem:[%s1383_s1 + $0x10] sm:$0xff]  }
   0x4   :  { %v1009_v3 = vld [vmem:[%s1383_s1 + $0x80] sm:$0xff]   ;;  %879 = vmatpush3.bf16.msra.mxu0 %v1008_v2  ;;  %v1013_v7 = vld [vmem:[%s1383_s1 + $0x88] sm:$0xff]   ;;  %v1017_v11 = vld [vmem:[%s1383_s1 + $0x90] sm:$0xff]  }
   0x5   :  { %943 = vmatpush3.bf16.msra.mxu1 %v1009_v3  ;;  %880 = vmatprep.subr.bf16.mxu0 %v1010_v4  ;;  %v1018_v12 = vld [vmem:[%s1383_s1 + $0x58] sm:$0xff]   ;;  %v1022_v16 = vld [vmem:[%s1383_s1 + $0x60] sm:$0xff]   ;;  %v1026_v20 = vld [vmem:[%s1383_s1 + $0x68] sm:$0xff]  }
   0x6   :  { %944 = vmatprep.subr.bf16.mxu1 %v1011_v5  ;;  %v1019_v13 = vld [vmem:[%s1383_s1 + $0xd8] sm:$0xff]   ;;  %v1023_v17 = vld [vmem:[%s1383_s1 + $0xe0] sm:$0xff]   ;;  %v1027_v21 = vld [vmem:[%s1383_s1 + $0xe8] sm:$0xff]  }
   0x7   :  { %v1020_v14 = vld [vmem:[%s1383_s1 + $0x18] sm:$0xff]   ;;  %v1024_v18 = vld [vmem:[%s1383_s1 + $0x20] sm:$0xff]   ;;  %v1028_v22 = vld [vmem:[%s1383_s1 + $0x28] sm:$0xff]  }
   0x8   :  { %881 = vmatpush3.bf16.msra.mxu0 %v1012_v6  ;;  %v1021_v15 = vld [vmem:[%s1383_s1 + $0x98] sm:$0xff]   ;;  %v1025_v19 = vld [vmem:[%s1383_s1 + $0xa0] sm:$0xff]   ;;  %v1029_v23 = vld [vmem:[%s1383_s1 + $0xa8] sm:$0xff]  }
   0x9   :  { %945 = vmatpush3.bf16.msra.mxu1 %v1013_v7  ;;  %882 = vmatprep.subr.bf16.mxu0 %v1014_v8  ;;  %v1030_v24 = vld [vmem:[%s1383_s1 + $0x70] sm:$0xff]   ;;  %v1034_v28 = vld [vmem:[%s1383_s1 + $0x78] sm:$0xff]   ;;  %v1301_v2 = vld [vmem:[%s1385_s2] ss:$0 sm:$0xff] }
   0xa   :  { %946 = vmatprep.subr.bf16.mxu1 %v1015_v9  ;;  %v1031_v25 = vld [vmem:[%s1383_s1 + $0xf0] sm:$0xff]   ;;  %v1035_v29 = vld [vmem:[%s1383_s1 + $0xf8] sm:$0xff]  }
   0xb   :  { %v1032_v26 = vld [vmem:[%s1383_s1 + $0x30] sm:$0xff]   ;;  %v1036_v30 = vld [vmem:[%s1383_s1 + $0x38] sm:$0xff]  }
   0xc   :  { %883 = vmatpush3.bf16.msra.mxu0 %v1016_v10  ;;  %v1033_v27 = vld [vmem:[%s1383_s1 + $0xb0] sm:$0xff]   ;;  %v1037_v31 = vld [vmem:[%s1383_s1 + $0xb8] sm:$0xff]  }
   0xd   :  { %947 = vmatpush3.bf16.msra.mxu1 %v1017_v11  ;;  %884 = vmatprep.subr.bf16.mxu0 %v1018_v12  ;;  %v1038_v32 = vld [vmem:[%s1384_s0] ss:$16 sps:$4 sm:$0xff]   ;;  %v1040_v33 = vld [vmem:[%s1384_s0 + $0x4] ss:$16 sps:$4 sm:$0xff]   ;;  %v1041_v34 = vld [vmem:[%s1384_s0 + $0x8] ss:$16 sps:$4 sm:$0xff]  }
   0xe   :  { %948 = vmatprep.subr.bf16.mxu1 %v1019_v13  ;;  %v1043_v35 = vld [vmem:[%s1384_s0 + $0xc] ss:$16 sps:$4 sm:$0xff]   ;;  %502 = vmatprep.mubr.bf16.mxu0 %v1040_v33  ;;  %v1044_v36 = vld [vmem:[%s1384_s0 + $0x24] ss:$16 sps:$4 sm:$0xff]   ;;  %v1048_v38 = vld [vmem:[%s1384_s0 + $0x20] ss:$16 sps:$4 sm:$0xff]  }
   0xf   :  { %599 = vmatprep.mubr.bf16.mxu1 %v1043_v35  ;;  %v1046_v37 = vld [vmem:[%s1384_s0 + $0x2c] ss:$16 sps:$4 sm:$0xff]   ;;  %v1049_v39 = vld [vmem:[%s1384_s0 + $0x28] ss:$16 sps:$4 sm:$0xff]   ;;  %v1050_v40 = vld [vmem:[%s1384_s0 + $0x44] ss:$16 sps:$4 sm:$0xff]  }
  0x10   :  { %885 = vmatpush3.bf16.msra.mxu0 %v1020_v14  ;;  %v1052_v41 = vld [vmem:[%s1384_s0 + $0x4c] ss:$16 sps:$4 sm:$0xff]   ;;  %v1054_v42 = vld [vmem:[%s1384_s0 + $0x40] ss:$16 sps:$4 sm:$0xff]   ;;  %v1055_v43 = vld [vmem:[%s1384_s0 + $0x48] ss:$16 sps:$4 sm:$0xff]  }
  0x11   :  { %949 = vmatpush3.bf16.msra.mxu1 %v1021_v15  ;;  %886 = vmatprep.subr.bf16.mxu0 %v1022_v16  ;;  %v1056_v44 = vld [vmem:[%s1384_s0 + $0x64] ss:$16 sps:$4 sm:$0xff]   ;;  %v1058_v45 = vld [vmem:[%s1384_s0 + $0x6c] ss:$16 sps:$4 sm:$0xff]   ;;  %v1060_v46 = vld [vmem:[%s1384_s0 + $0x60] ss:$16 sps:$4 sm:$0xff]  }
  0x12   :  { %950 = vmatprep.subr.bf16.mxu1 %v1023_v17  ;;  %v1061_v47 = vld [vmem:[%s1384_s0 + $0x68] ss:$16 sps:$4 sm:$0xff]   ;;  %v1062_v48 = vld [vmem:[%s1384_s0 + $0x84] ss:$16 sps:$4 sm:$0xff]   ;;  %v1064_v49 = vld [vmem:[%s1384_s0 + $0x8c] ss:$16 sps:$4 sm:$0xff]  }
  0x13   :  { %v1066_v50 = vld [vmem:[%s1384_s0 + $0x80] ss:$16 sps:$4 sm:$0xff]   ;;  %v1067_v51 = vld [vmem:[%s1384_s0 + $0x88] ss:$16 sps:$4 sm:$0xff]   ;;  %v1068_v52 = vld [vmem:[%s1384_s0 + $0xa4] ss:$16 sps:$4 sm:$0xff]  }
  0x14   :  { %887 = vmatpush3.bf16.msra.mxu0 %v1024_v18  ;;  %v1070_v53 = vld [vmem:[%s1384_s0 + $0xac] ss:$16 sps:$4 sm:$0xff]   ;;  %v1072_v54 = vld [vmem:[%s1384_s0 + $0xa0] ss:$16 sps:$4 sm:$0xff]   ;;  %v1073_v55 = vld [vmem:[%s1384_s0 + $0xa8] ss:$16 sps:$4 sm:$0xff]  }
  0x15   :  { %951 = vmatpush3.bf16.msra.mxu1 %v1025_v19  ;;  %888 = vmatprep.subr.bf16.mxu0 %v1026_v20  ;;  %v1074_v56 = vld [vmem:[%s1384_s0 + $0xc4] ss:$16 sps:$4 sm:$0xff]   ;;  %v1076_v57 = vld [vmem:[%s1384_s0 + $0xcc] ss:$16 sps:$4 sm:$0xff]   ;;  %v1078_v58 = vld [vmem:[%s1384_s0 + $0xc0] ss:$16 sps:$4 sm:$0xff]  }
  0x16   :  { %952 = vmatprep.subr.bf16.mxu1 %v1027_v21  ;;  %v1079_v59 = vld [vmem:[%s1384_s0 + $0xc8] ss:$16 sps:$4 sm:$0xff]   ;;  %v1080_v60 = vld [vmem:[%s1384_s0 + $0xe4] ss:$16 sps:$4 sm:$0xff]   ;;  %v1082_v61 = vld [vmem:[%s1384_s0 + $0xec] ss:$16 sps:$4 sm:$0xff]  }
  0x17   :  { %v1084_v62 = vld [vmem:[%s1384_s0 + $0xe0] ss:$16 sps:$4 sm:$0xff]   ;;  %v1085_v63 = vld [vmem:[%s1384_s0 + $0xe8] ss:$16 sps:$4 sm:$0xff]  }
  0x18   :  { %889 = vmatpush3.bf16.msra.mxu0 %v1028_v22 }
  0x19   :  { %953 = vmatpush3.bf16.msra.mxu1 %v1029_v23  ;;  %890 = vmatprep.subr.bf16.mxu0 %v1030_v24 }
  0x1a   :  { %954 = vmatprep.subr.bf16.mxu1 %v1031_v25 }
  0x1c   :  { %891 = vmatpush3.bf16.msra.mxu0 %v1032_v26 }
  0x1d   :  { %955 = vmatpush3.bf16.msra.mxu1 %v1033_v27  ;;  %892 = vmatprep.subr.bf16.mxu0 %v1034_v28 }
  0x1e   :  { %956 = vmatprep.subr.bf16.mxu1 %v1035_v29 }
  0x20   :  { %893 = vmatpush3.bf16.msra.mxu0 %v1036_v30 }
  0x21   :  { %957 = vmatpush3.bf16.msra.mxu1 %v1037_v31 }
  0x23   :  { %503 = vmatmul.mubr.bf16.vlgmr.msra.gmra.mrb[0].mxu0 %v1038_v32 }
  0x24   :  { %600 = vmatmul.mubr.bf16.vlgmr.msra.gmra.mrb[0].mxu1 %v1041_v34  ;;  %510 = vmatprep.mubr.bf16.mxu0 %v1044_v36 }
  0x25   :  { %607 = vmatprep.mubr.bf16.mxu1 %v1046_v37 }
  0x2b   :  { %511 = vmatmul.mubr.bf16.gmra.mrb[4].mxu0 %v1048_v38 }
  0x2c   :  { %608 = vmatmul.mubr.bf16.gmra.mrb[4].mxu1 %v1049_v39  ;;  %518 = vmatprep.mubr.bf16.mxu0 %v1050_v40 }
  0x2d   :  { %615 = vmatprep.mubr.bf16.mxu1 %v1052_v41 }
  0x33   :  { %519 = vmatmul.mubr.bf16.gmra.mrb[8].mxu0 %v1054_v42 }
  0x34   :  { %616 = vmatmul.mubr.bf16.gmra.mrb[8].mxu1 %v1055_v43  ;;  %526 = vmatprep.mubr.bf16.mxu0 %v1056_v44 }
  0x35   :  { %623 = vmatprep.mubr.bf16.mxu1 %v1058_v45 }
  0x3b   :  { %527 = vmatmul.mubr.bf16.gmra.mrb[12].mxu0 %v1060_v46 }
  0x3c   :  { %624 = vmatmul.mubr.bf16.gmra.mrb[12].mxu1 %v1061_v47  ;;  %534 = vmatprep.mubr.bf16.mxu0 %v1062_v48 }
  0x3d   :  { %631 = vmatprep.mubr.bf16.mxu1 %v1064_v49 }
  0x43   :  { %535 = vmatmul.mubr.bf16.gmra.mrb[16].mxu0 %v1066_v50 }
  0x44   :  { %632 = vmatmul.mubr.bf16.gmra.mrb[16].mxu1 %v1067_v51  ;;  %542 = vmatprep.mubr.bf16.mxu0 %v1068_v52 }
  0x45   :  { %639 = vmatprep.mubr.bf16.mxu1 %v1070_v53 }
  0x4b   :  { %543 = vmatmul.mubr.bf16.gmra.mrb[20].mxu0 %v1072_v54 }
  0x4c   :  { %640 = vmatmul.mubr.bf16.gmra.mrb[20].mxu1 %v1073_v55  ;;  %550 = vmatprep.mubr.bf16.mxu0 %v1074_v56 }
  0x4d   :  { %647 = vmatprep.mubr.bf16.mxu1 %v1076_v57 }
  0x53   :  { %551 = vmatmul.mubr.bf16.gmra.mrb[24].mxu0 %v1078_v58 }
  0x54   :  { %648 = vmatmul.mubr.bf16.gmra.mrb[24].mxu1 %v1079_v59  ;;  %558 = vmatprep.mubr.bf16.mxu0 %v1080_v60 }
  0x55   :  { %655 = vmatprep.mubr.bf16.mxu1 %v1082_v61 }
  0x5b   :  { %559 = vmatmul.mubr.bf16.gmra.mrb[28].mxu0 %v1084_v62 }
  0x5c   :  { %656 = vmatmul.mubr.bf16.gmra.mrb[28].mxu1 %v1085_v63 }
  0xf6   :  { %v894_v0 = vpop.f32.mrb[0].mxu0 }
  0xf7   :  { %v958_v1 = vpop.f32.mrb[0].mxu1  ;;  %v895_v3 = vpop.f32.mrb[1].mxu0 }
  0xf8   :  { %v896_v4 = vadd.f32 %v895_v3, %v894_v0  ;;  %v959_v5 = vpop.f32.mrb[1].mxu1  ;;  %v897_v6 = vpop.f32.mrb[2].mxu0 }
  0xf9   :  { %v960_v7 = vadd.f32 %v959_v5, %v958_v1  ;;  %v961_v8 = vpop.f32.mrb[2].mxu1  ;;  %v898_v9 = vpop.f32.mrb[3].mxu0 }
  0xfa   :  { %v505_v10 = vadd.f32 %v896_v4, %v1301_v2  ;;  %v899_v11 = vadd.f32 %v898_v9, %v897_v6  ;;  %v962_v12 = vpop.f32.mrb[3].mxu1 }
  0xfb   :  { %v963_v13 = vadd.f32 %v962_v12, %v961_v8 }
  0xfc   :  { %v602_v14 = vadd.f32 %v960_v7, %v505_v10  ;;  %v508_v15 = vadd.f32 %v899_v11, %v1301_v2 }
  0xfe   :  { %v664_v16 = vmul.f32 0.2, %v602_v14  ;;  %v605_v17 = vadd.f32 %v963_v13, %v508_v15  ;;  %v900_v18 = vpop.f32.mrb[4].mxu0 }
  0xff   :  { %v964_v19 = vpop.f32.mrb[4].mxu1  ;;  %v901_v20 = vpop.f32.mrb[5].mxu0 }
 0x100   :  { %v680_v21 = vmax.f32 %v602_v14, %v664_v16  ;;  %v665_v22 = vmul.f32 0.2, %v605_v17  ;;  %v902_v23 = vadd.f32 %v901_v20, %v900_v18  ;;  %v965_v24 = vpop.f32.mrb[5].mxu1  ;;  %v903_v25 = vpop.f32.mrb[6].mxu0 }
 0x101   :  { %v966_v26 = vadd.f32 %v965_v24, %v964_v19  ;;  %v967_v27 = vpop.f32.mrb[6].mxu1  ;;  %v904_v28 = vpop.f32.mrb[7].mxu0 }
 0x102   :  { %v862_v29 = vpack.c.bf16 %v680_v21, %v680_v21  ;;  %v681_v30 = vmax.f32 %v605_v17, %v665_v22  ;;  %v513_v31 = vadd.f32 %v902_v23, %v1301_v2  ;;  %v905_v32 = vadd.f32 %v904_v28, %v903_v25  ;;  %v968_v33 = vpop.f32.mrb[7].mxu1 }
 0x103   :  { %v969_v34 = vadd.f32 %v968_v33, %v967_v27 }
 0x104   :  { %761 = vst.msk [vmem:[%s1386_s3] sm:$0xf] %vm760_vm0, %v862_v29  ;;  %v863_v35 = vpack.c.bf16 %v681_v30, %v681_v30  ;;  %v610_v36 = vadd.f32 %v966_v26, %v513_v31  ;;  %v516_v37 = vadd.f32 %v905_v32, %v1301_v2 }
 0x106   :  { %762 = vst.msk [vmem:[%s1386_s3 + $0x4] sm:$0xf] %vm760_vm0, %v863_v35  ;;  %v666_v38 = vmul.f32 0.2, %v610_v36  ;;  %v613_v39 = vadd.f32 %v969_v34, %v516_v37  ;;  %v906_v40 = vpop.f32.mrb[8].mxu0 }
 0x107   :  { %v970_v41 = vpop.f32.mrb[8].mxu1  ;;  %v907_v42 = vpop.f32.mrb[9].mxu0 }
 0x108   :  { %v682_v43 = vmax.f32 %v610_v36, %v666_v38  ;;  %v667_v44 = vmul.f32 0.2, %v613_v39  ;;  %v908_v45 = vadd.f32 %v907_v42, %v906_v40  ;;  %v971_v46 = vpop.f32.mrb[9].mxu1  ;;  %v909_v47 = vpop.f32.mrb[10].mxu0 }
 0x109   :  { %v972_v48 = vadd.f32 %v971_v46, %v970_v41  ;;  %v973_v49 = vpop.f32.mrb[10].mxu1  ;;  %v910_v50 = vpop.f32.mrb[11].mxu0 }
 0x10a   :  { %v864_v51 = vpack.c.bf16 %v682_v43, %v682_v43  ;;  %v683_v52 = vmax.f32 %v613_v39, %v667_v44  ;;  %v521_v53 = vadd.f32 %v908_v45, %v1301_v2  ;;  %v911_v54 = vadd.f32 %v910_v50, %v909_v47  ;;  %v974_v55 = vpop.f32.mrb[11].mxu1 }
 0x10b   :  { %v975_v56 = vadd.f32 %v974_v55, %v973_v49 }
 0x10c   :  { %763 = vst.msk [vmem:[%s1386_s3 + $0x8] sm:$0xf] %vm760_vm0, %v864_v51  ;;  %v865_v57 = vpack.c.bf16 %v683_v52, %v683_v52  ;;  %v618_v58 = vadd.f32 %v972_v48, %v521_v53  ;;  %v524_v59 = vadd.f32 %v911_v54, %v1301_v2 }
 0x10e   :  { %764 = vst.msk [vmem:[%s1386_s3 + $0xc] sm:$0xf] %vm760_vm0, %v865_v57  ;;  %v668_v60 = vmul.f32 0.2, %v618_v58  ;;  %v621_v61 = vadd.f32 %v975_v56, %v524_v59  ;;  %v912_v62 = vpop.f32.mrb[12].mxu0 }
 0x10f   :  { %v976_v63 = vpop.f32.mrb[12].mxu1  ;;  %v913_v0 = vpop.f32.mrb[13].mxu0 }
 0x110   :  { %v684_v1 = vmax.f32 %v618_v58, %v668_v60  ;;  %v669_v3 = vmul.f32 0.2, %v621_v61  ;;  %v914_v4 = vadd.f32 %v913_v0, %v912_v62  ;;  %v977_v5 = vpop.f32.mrb[13].mxu1  ;;  %v915_v6 = vpop.f32.mrb[14].mxu0 }
 0x111   :  { %v978_v7 = vadd.f32 %v977_v5, %v976_v63  ;;  %v979_v8 = vpop.f32.mrb[14].mxu1  ;;  %v916_v9 = vpop.f32.mrb[15].mxu0 }
 0x112   :  { %v866_v10 = vpack.c.bf16 %v684_v1, %v684_v1  ;;  %v685_v11 = vmax.f32 %v621_v61, %v669_v3  ;;  %v529_v12 = vadd.f32 %v914_v4, %v1301_v2  ;;  %v917_v13 = vadd.f32 %v916_v9, %v915_v6  ;;  %v980_v14 = vpop.f32.mrb[15].mxu1 }
 0x113   :  { %v981_v15 = vadd.f32 %v980_v14, %v979_v8 }
 0x114   :  { %765 = vst.msk [vmem:[%s1386_s3 + $0x10] sm:$0xf] %vm760_vm0, %v866_v10  ;;  %v867_v16 = vpack.c.bf16 %v685_v11, %v685_v11  ;;  %v626_v17 = vadd.f32 %v978_v7, %v529_v12  ;;  %v532_v18 = vadd.f32 %v917_v13, %v1301_v2 }
 0x116   :  { %766 = vst.msk [vmem:[%s1386_s3 + $0x14] sm:$0xf] %vm760_vm0, %v867_v16  ;;  %v670_v19 = vmul.f32 0.2, %v626_v17  ;;  %v629_v20 = vadd.f32 %v981_v15, %v532_v18  ;;  %v918_v21 = vpop.f32.mrb[16].mxu0 }
 0x117   :  { %v982_v22 = vpop.f32.mrb[16].mxu1  ;;  %v919_v23 = vpop.f32.mrb[17].mxu0 }
 0x118   :  { %v686_v24 = vmax.f32 %v626_v17, %v670_v19  ;;  %v671_v25 = vmul.f32 0.2, %v629_v20  ;;  %v920_v26 = vadd.f32 %v919_v23, %v918_v21  ;;  %v983_v27 = vpop.f32.mrb[17].mxu1  ;;  %v921_v28 = vpop.f32.mrb[18].mxu0 }
 0x119   :  { %v984_v29 = vadd.f32 %v983_v27, %v982_v22  ;;  %v985_v30 = vpop.f32.mrb[18].mxu1  ;;  %v922_v31 = vpop.f32.mrb[19].mxu0 }
 0x11a   :  { %v868_v32 = vpack.c.bf16 %v686_v24, %v686_v24  ;;  %v687_v33 = vmax.f32 %v629_v20, %v671_v25  ;;  %v537_v34 = vadd.f32 %v920_v26, %v1301_v2  ;;  %v923_v35 = vadd.f32 %v922_v31, %v921_v28  ;;  %v986_v36 = vpop.f32.mrb[19].mxu1 }
 0x11b   :  { %v987_v37 = vadd.f32 %v986_v36, %v985_v30 }
 0x11c   :  { %767 = vst.msk [vmem:[%s1386_s3 + $0x18] sm:$0xf] %vm760_vm0, %v868_v32  ;;  %v869_v38 = vpack.c.bf16 %v687_v33, %v687_v33  ;;  %v634_v39 = vadd.f32 %v984_v29, %v537_v34  ;;  %v540_v40 = vadd.f32 %v923_v35, %v1301_v2 }
 0x11e   :  { %768 = vst.msk [vmem:[%s1386_s3 + $0x1c] sm:$0xf] %vm760_vm0, %v869_v38  ;;  %v672_v41 = vmul.f32 0.2, %v634_v39  ;;  %v637_v42 = vadd.f32 %v987_v37, %v540_v40  ;;  %v924_v43 = vpop.f32.mrb[20].mxu0 }
 0x11f   :  { %v988_v44 = vpop.f32.mrb[20].mxu1  ;;  %v925_v45 = vpop.f32.mrb[21].mxu0 }
 0x120   :  { %v688_v46 = vmax.f32 %v634_v39, %v672_v41  ;;  %v673_v47 = vmul.f32 0.2, %v637_v42  ;;  %v926_v48 = vadd.f32 %v925_v45, %v924_v43  ;;  %v989_v49 = vpop.f32.mrb[21].mxu1  ;;  %v927_v50 = vpop.f32.mrb[22].mxu0 }
 0x121   :  { %v990_v51 = vadd.f32 %v989_v49, %v988_v44  ;;  %v991_v52 = vpop.f32.mrb[22].mxu1  ;;  %v928_v53 = vpop.f32.mrb[23].mxu0 }
 0x122   :  { %v870_v54 = vpack.c.bf16 %v688_v46, %v688_v46  ;;  %v689_v55 = vmax.f32 %v637_v42, %v673_v47  ;;  %v545_v56 = vadd.f32 %v926_v48, %v1301_v2  ;;  %v929_v57 = vadd.f32 %v928_v53, %v927_v50  ;;  %v992_v58 = vpop.f32.mrb[23].mxu1 }
 0x123   :  { %v993_v59 = vadd.f32 %v992_v58, %v991_v52 }
 0x124   :  { %769 = vst.msk [vmem:[%s1386_s3 + $0x20] sm:$0xf] %vm760_vm0, %v870_v54  ;;  %v871_v60 = vpack.c.bf16 %v689_v55, %v689_v55  ;;  %v642_v61 = vadd.f32 %v990_v51, %v545_v56  ;;  %v548_v62 = vadd.f32 %v929_v57, %v1301_v2 }
 0x126   :  { %770 = vst.msk [vmem:[%s1386_s3 + $0x24] sm:$0xf] %vm760_vm0, %v871_v60  ;;  %v674_v63 = vmul.f32 0.2, %v642_v61  ;;  %v645_v0 = vadd.f32 %v993_v59, %v548_v62  ;;  %v930_v1 = vpop.f32.mrb[24].mxu0 }
 0x127   :  { %v994_v3 = vpop.f32.mrb[24].mxu1  ;;  %v931_v4 = vpop.f32.mrb[25].mxu0 }
 0x128   :  { %v690_v5 = vmax.f32 %v642_v61, %v674_v63  ;;  %v675_v6 = vmul.f32 0.2, %v645_v0  ;;  %v932_v7 = vadd.f32 %v931_v4, %v930_v1  ;;  %v995_v8 = vpop.f32.mrb[25].mxu1  ;;  %v933_v9 = vpop.f32.mrb[26].mxu0 }
 0x129   :  { %v996_v10 = vadd.f32 %v995_v8, %v994_v3  ;;  %v997_v11 = vpop.f32.mrb[26].mxu1  ;;  %v934_v12 = vpop.f32.mrb[27].mxu0 }
 0x12a   :  { %v872_v13 = vpack.c.bf16 %v690_v5, %v690_v5  ;;  %v691_v14 = vmax.f32 %v645_v0, %v675_v6  ;;  %v553_v15 = vadd.f32 %v932_v7, %v1301_v2  ;;  %v935_v16 = vadd.f32 %v934_v12, %v933_v9  ;;  %v998_v17 = vpop.f32.mrb[27].mxu1 }
 0x12b   :  { %v999_v18 = vadd.f32 %v998_v17, %v997_v11 }
 0x12c   :  { %771 = vst.msk [vmem:[%s1386_s3 + $0x28] sm:$0xf] %vm760_vm0, %v872_v13  ;;  %v873_v19 = vpack.c.bf16 %v691_v14, %v691_v14  ;;  %v650_v20 = vadd.f32 %v996_v10, %v553_v15  ;;  %v556_v21 = vadd.f32 %v935_v16, %v1301_v2 }
 0x12e   :  { %772 = vst.msk [vmem:[%s1386_s3 + $0x2c] sm:$0xf] %vm760_vm0, %v873_v19  ;;  %v676_v22 = vmul.f32 0.2, %v650_v20  ;;  %v653_v23 = vadd.f32 %v999_v18, %v556_v21  ;;  %v936_v24 = vpop.f32.mrb[28].mxu0 }
 0x12f   :  { %v1000_v25 = vpop.f32.mrb[28].mxu1  ;;  %v937_v26 = vpop.f32.mrb[29].mxu0 }
 0x130   :  { %v692_v27 = vmax.f32 %v650_v20, %v676_v22  ;;  %v677_v28 = vmul.f32 0.2, %v653_v23  ;;  %v938_v29 = vadd.f32 %v937_v26, %v936_v24  ;;  %v1001_v30 = vpop.f32.mrb[29].mxu1  ;;  %v939_v31 = vpop.f32.mrb[30].mxu0 }
 0x131   :  { %v1002_v32 = vadd.f32 %v1001_v30, %v1000_v25  ;;  %v1003_v33 = vpop.f32.mrb[30].mxu1  ;;  %v940_v34 = vpop.f32.mrb[31].mxu0 }
 0x132   :  { %v874_v35 = vpack.c.bf16 %v692_v27, %v692_v27  ;;  %v693_v36 = vmax.f32 %v653_v23, %v677_v28  ;;  %v561_v37 = vadd.f32 %v938_v29, %v1301_v2  ;;  %v941_v38 = vadd.f32 %v940_v34, %v939_v31  ;;  %v1004_v39 = vpop.f32.mrb[31].mxu1 }
 0x133   :  { %v1005_v40 = vadd.f32 %v1004_v39, %v1003_v33 }
 0x134   :  { %773 = vst.msk [vmem:[%s1386_s3 + $0x30] sm:$0xf] %vm760_vm0, %v874_v35  ;;  %v875_v41 = vpack.c.bf16 %v693_v36, %v693_v36  ;;  %v658_v42 = vadd.f32 %v1002_v32, %v561_v37  ;;  %v564_v43 = vadd.f32 %v941_v38, %v1301_v2 }
 0x136   :  { %774 = vst.msk [vmem:[%s1386_s3 + $0x34] sm:$0xf] %vm760_vm0, %v875_v41  ;;  %v678_v44 = vmul.f32 0.2, %v658_v42  ;;  %v661_v45 = vadd.f32 %v1005_v40, %v564_v43 }
 0x138   :  { %v694_v46 = vmax.f32 %v658_v42, %v678_v44  ;;  %v679_v47 = vmul.f32 0.2, %v661_v45 }
 0x13a   :  { %v876_v48 = vpack.c.bf16 %v694_v46, %v694_v46  ;;  %v695_v49 = vmax.f32 %v661_v45, %v679_v47 }
 0x13c   :  { %775 = vst.msk [vmem:[%s1386_s3 + $0x38] sm:$0xf] %vm760_vm0, %v876_v48  ;;  %v877_v50 = vpack.c.bf16 %v695_v49, %v695_v49 }
 0x13e   :  { %776 = vst.msk [vmem:[%s1386_s3 + $0x3c] sm:$0xf] %vm760_vm0, %v877_v50 }

// kernel: celeba_encoder_forward.7
= control target key start
LH: loop header
LB: loop body
LE: loop exit
PB: predicated region body
PF: predicated region fallthrough
CT: control target
= control target key end

     0   :  { %vm4698_vm0 = vmmov 0   ;;  %s6189_s1 = inlined_call_operand.vmem [shape: bf16[1024,128], index: 1, kind: input, shape index: {}]   ;;  %s6190_s0 = inlined_call_operand.vmem [shape: bf16[128,1024], index: 0, kind: input, shape index: {}]   ;;  %s6191_s3 = inlined_call_operand.vmem [shape: f32[16,128,128], index: 3, kind: input, shape index: {}]   ;;  %s6192_s2 = inlined_call_operand.vmem [shape: f32[1,128], index: 2, kind: input, shape index: {}]   ;;  %s6193_s4 = inlined_call_operand.vmem [shape: f32[1,128], index: 4, kind: input, shape index: {}]   ;;  %s6194_s5 = inlined_call_operand.vmem [shape: f32[1,128], index: 5, kind: input, shape index: {}]   ;;  %s6195_s6 = inlined_call_operand.vmem [shape: f32[1,128], index: 6, kind: input, shape index: {}]   ;;  %s6196_s7 = inlined_call_operand.vmem [shape: f32[8,128], index: 7, kind: output, shape index: {}]  }
   0x1   :  { %v4633_v0 = vld [vmem:[%s6189_s1 + $0x40] sm:$0xff]   ;;  %v4637_v4 = vld [vmem:[%s6189_s1 + $0x48] sm:$0xff]   ;;  %v4641_v8 = vld [vmem:[%s6189_s1 + $0x50] sm:$0xff]  }
   0x2   :  { %v4634_v1 = vld [vmem:[%s6189_s1 + $0xc0] sm:$0xff]   ;;  %3158 = vmatprep.subr.bf16.mxu0 %v4633_v0  ;;  %v4638_v5 = vld [vmem:[%s6189_s1 + $0xc8] sm:$0xff]   ;;  %v4642_v9 = vld [vmem:[%s6189_s1 + $0xd0] sm:$0xff]  }
   0x3   :  { %v4635_v2 = vld [vmem:[%s6189_s1] sm:$0xff]   ;;  %3222 = vmatprep.subr.bf16.mxu1 %v4634_v1  ;;  %v4639_v6 = vld [vmem:[%s6189_s1 + $0x8] sm:$0xff]   ;;  %v4643_v10 = vld [vmem:[%s6189_s1 + $0x10] sm:$0xff]  }
   0x4   :  { %v4636_v3 = vld [vmem:[%s6189_s1 + $0x80] sm:$0xff]   ;;  %3159 = vmatpush3.bf16.msra.mxu0 %v4635_v2  ;;  %v4640_v7 = vld [vmem:[%s6189_s1 + $0x88] sm:$0xff]   ;;  %v4644_v11 = vld [vmem:[%s6189_s1 + $0x90] sm:$0xff]  }
   0x5   :  { %3223 = vmatpush3.bf16.msra.mxu1 %v4636_v3  ;;  %3160 = vmatprep.subr.bf16.mxu0 %v4637_v4  ;;  %v4645_v12 = vld [vmem:[%s6189_s1 + $0x58] sm:$0xff]   ;;  %v4649_v16 = vld [vmem:[%s6189_s1 + $0x60] sm:$0xff]   ;;  %v4653_v20 = vld [vmem:[%s6189_s1 + $0x68] sm:$0xff]  }
   0x6   :  { %3224 = vmatprep.subr.bf16.mxu1 %v4638_v5  ;;  %v4646_v13 = vld [vmem:[%s6189_s1 + $0xd8] sm:$0xff]   ;;  %v4650_v17 = vld [vmem:[%s6189_s1 + $0xe0] sm:$0xff]   ;;  %v4654_v21 = vld [vmem:[%s6189_s1 + $0xe8] sm:$0xff]  }
   0x7   :  { %v4647_v14 = vld [vmem:[%s6189_s1 + $0x18] sm:$0xff]   ;;  %v4651_v18 = vld [vmem:[%s6189_s1 + $0x20] sm:$0xff]   ;;  %v4655_v22 = vld [vmem:[%s6189_s1 + $0x28] sm:$0xff]  }
   0x8   :  { %3161 = vmatpush3.bf16.msra.mxu0 %v4639_v6  ;;  %v4648_v15 = vld [vmem:[%s6189_s1 + $0x98] sm:$0xff]   ;;  %v4652_v19 = vld [vmem:[%s6189_s1 + $0xa0] sm:$0xff]   ;;  %v4656_v23 = vld [vmem:[%s6189_s1 + $0xa8] sm:$0xff]  }
   0x9   :  { %3225 = vmatpush3.bf16.msra.mxu1 %v4640_v7  ;;  %3162 = vmatprep.subr.bf16.mxu0 %v4641_v8  ;;  %v4657_v24 = vld [vmem:[%s6189_s1 + $0x70] sm:$0xff]   ;;  %v4661_v28 = vld [vmem:[%s6189_s1 + $0x78] sm:$0xff]   ;;  %v27_v32 = vld [vmem:[%s6190_s0] sm:$0xff] }
   0xa   :  { %3226 = vmatprep.subr.bf16.mxu1 %v4642_v9  ;;  %v4658_v25 = vld [vmem:[%s6189_s1 + $0xf0] sm:$0xff]   ;;  %v4662_v29 = vld [vmem:[%s6189_s1 + $0xf8] sm:$0xff]   ;;  %v31_v33 = vld [vmem:[%s6190_s0 + $0x20] sm:$0xff] }
   0xb   :  { %v4659_v26 = vld [vmem:[%s6189_s1 + $0x30] sm:$0xff]   ;;  %v4663_v30 = vld [vmem:[%s6189_s1 + $0x38] sm:$0xff]   ;;  %v28_v34 = vld [vmem:[%s6190_s0 + $0x8] sm:$0xff]  ;;  %v2787_v35 = vcombine.low %v27_v32, %v31_v33  ;;  %v2788_v36 = vcombine.high %v27_v32, %v31_v33 }
   0xc   :  { %3163 = vmatpush3.bf16.msra.mxu0 %v4643_v10  ;;  %v4660_v27 = vld [vmem:[%s6189_s1 + $0xb0] sm:$0xff]   ;;  %v4664_v31 = vld [vmem:[%s6189_s1 + $0xb8] sm:$0xff]   ;;  %v32_v37 = vld [vmem:[%s6190_s0 + $0x28] sm:$0xff] }
   0xd   :  { %3227 = vmatpush3.bf16.msra.mxu1 %v4644_v11  ;;  %3164 = vmatprep.subr.bf16.mxu0 %v4645_v12  ;;  %v2789_v38 = vcombine.low %v28_v34, %v32_v37  ;;  %v2790_v39 = vcombine.high %v28_v34, %v32_v37  ;;  %v4665_v40 = vld [vmem:[%s6189_s1 + $0x140] sm:$0xff]   ;;  %v36_v47 = vld [vmem:[%s6190_s0 + $0x48] sm:$0xff]  ;;  %v4673_v62 = vld [vmem:[%s6189_s1 + $0x150] sm:$0xff]  }
   0xe   :  { %3228 = vmatprep.subr.bf16.mxu1 %v4646_v13  ;;  %962 = vmatprep.mubr.bf16.mxu0 %v2788_v36  ;;  %v4666_v41 = vld [vmem:[%s6189_s1 + $0x100] sm:$0xff]   ;;  %v40_v48 = vld [vmem:[%s6190_s0 + $0x68] sm:$0xff]  ;;  %v4674_v63 = vld [vmem:[%s6189_s1 + $0x110] sm:$0xff]  }
   0xf   :  { %1059 = vmatprep.mubr.bf16.mxu1 %v2790_v39  ;;  %v4667_v42 = vld [vmem:[%s6189_s1 + $0x1c0] sm:$0xff]   ;;  %v2798_v49 = vcombine.high %v36_v47, %v40_v48  ;;  %v4669_v50 = vld [vmem:[%s6189_s1 + $0x148] sm:$0xff]   ;;  %v2797_v53 = vcombine.low %v36_v47, %v40_v48  ;;  %v4675_v0 = vld [vmem:[%s6189_s1 + $0x1d0] sm:$0xff]  }
  0x10   :  { %3165 = vmatpush3.bf16.msra.mxu0 %v4647_v14  ;;  %v4668_v43 = vld [vmem:[%s6189_s1 + $0x180] sm:$0xff]   ;;  %v4670_v52 = vld [vmem:[%s6189_s1 + $0x108] sm:$0xff]   ;;  %v4676_v1 = vld [vmem:[%s6189_s1 + $0x190] sm:$0xff]  }
  0x11   :  { %3229 = vmatpush3.bf16.msra.mxu1 %v4648_v15  ;;  %3166 = vmatprep.subr.bf16.mxu0 %v4649_v16  ;;  %v35_v44 = vld [vmem:[%s6190_s0 + $0x40] sm:$0xff]  ;;  %v4671_v54 = vld [vmem:[%s6189_s1 + $0x1c8] sm:$0xff]   ;;  %v4677_v10 = vld [vmem:[%s6189_s1 + $0x158] sm:$0xff]  }
  0x12   :  { %3230 = vmatprep.subr.bf16.mxu1 %v4650_v17  ;;  %v39_v45 = vld [vmem:[%s6190_s0 + $0x60] sm:$0xff]  ;;  %v4672_v55 = vld [vmem:[%s6189_s1 + $0x188] sm:$0xff]   ;;  %v4678_v11 = vld [vmem:[%s6189_s1 + $0x118] sm:$0xff]  }
  0x13   :  { %v2796_v46 = vcombine.high %v35_v44, %v39_v45  ;;  %v2795_v51 = vcombine.low %v35_v44, %v39_v45  ;;  %v43_v56 = vld [vmem:[%s6190_s0 + $0x80] sm:$0xff]  ;;  %v44_v58 = vld [vmem:[%s6190_s0 + $0x88] sm:$0xff]  ;;  %v4679_v12 = vld [vmem:[%s6189_s1 + $0x1d8] sm:$0xff]  }
  0x14   :  { %3167 = vmatpush3.bf16.msra.mxu0 %v4651_v18  ;;  %v47_v57 = vld [vmem:[%s6190_s0 + $0xa0] sm:$0xff]  ;;  %v48_v59 = vld [vmem:[%s6190_s0 + $0xa8] sm:$0xff]  ;;  %v4680_v13 = vld [vmem:[%s6189_s1 + $0x198] sm:$0xff]  }
  0x15   :  { %3231 = vmatpush3.bf16.msra.mxu1 %v4652_v19  ;;  %3168 = vmatprep.subr.bf16.mxu0 %v4653_v20  ;;  %v2804_v60 = vcombine.high %v43_v56, %v47_v57  ;;  %v2806_v61 = vcombine.high %v44_v58, %v48_v59  ;;  %v2803_v2 = vcombine.low %v43_v56, %v47_v57  ;;  %v51_v3 = vld [vmem:[%s6190_s0 + $0xc0] sm:$0xff]  ;;  %v52_v5 = vld [vmem:[%s6190_s0 + $0xc8] sm:$0xff]  ;;  %v4690_v39 = vld [vmem:[%s6189_s1 + $0x130] sm:$0xff]  }
  0x16   :  { %3232 = vmatprep.subr.bf16.mxu1 %v4654_v21  ;;  %v55_v4 = vld [vmem:[%s6190_s0 + $0xe0] sm:$0xff]  ;;  %v2805_v6 = vcombine.low %v44_v58, %v48_v59  ;;  %v56_v8 = vld [vmem:[%s6190_s0 + $0xe8] sm:$0xff]  ;;  %v4694_v48 = vld [vmem:[%s6189_s1 + $0x138] sm:$0xff]  }
  0x17   :  { %v2812_v7 = vcombine.high %v51_v3, %v55_v4  ;;  %v2814_v9 = vcombine.high %v52_v5, %v56_v8  ;;  %v59_v14 = vld [vmem:[%s6190_s0 + $0x100] sm:$0xff]  ;;  %v60_v16 = vld [vmem:[%s6190_s0 + $0x108] sm:$0xff]  ;;  %v2811_v19 = vcombine.low %v51_v3, %v55_v4  ;;  %v2813_v21 = vcombine.low %v52_v5, %v56_v8  ;;  %v38_v8 = vld [vmem:[%s6190_s0 + $0x58] sm:$0xff] }
  0x18   :  { %3169 = vmatpush3.bf16.msra.mxu0 %v4655_v22  ;;  %v63_v15 = vld [vmem:[%s6190_s0 + $0x120] sm:$0xff]  ;;  %v64_v17 = vld [vmem:[%s6190_s0 + $0x128] sm:$0xff] }
  0x19   :  { %3233 = vmatpush3.bf16.msra.mxu1 %v4656_v23  ;;  %3170 = vmatprep.subr.bf16.mxu0 %v4657_v24  ;;  %v4681_v18 = vld [vmem:[%s6189_s1 + $0x160] sm:$0xff]   ;;  %v2820_v22 = vcombine.high %v59_v14, %v63_v15  ;;  %v2822_v24 = vcombine.high %v60_v16, %v64_v17  ;;  %v4687_v32 = vld [vmem:[%s6189_s1 + $0x1e8] sm:$0xff]   ;;  %v2819_v34 = vcombine.low %v59_v14, %v63_v15  ;;  %v45_v14 = vld [vmem:[%s6190_s0 + $0x90] sm:$0xff] }
  0x1a   :  { %3234 = vmatprep.subr.bf16.mxu1 %v4658_v25  ;;  %v4682_v20 = vld [vmem:[%s6189_s1 + $0x120] sm:$0xff]   ;;  %v4688_v33 = vld [vmem:[%s6189_s1 + $0x1a8] sm:$0xff]   ;;  %v49_v15 = vld [vmem:[%s6190_s0 + $0xb0] sm:$0xff] }
  0x1b   :  { %v4683_v23 = vld [vmem:[%s6189_s1 + $0x1e0] sm:$0xff]   ;;  %v76_v44 = vld [vmem:[%s6190_s0 + $0x188] sm:$0xff] }
  0x1c   :  { %3171 = vmatpush3.bf16.msra.mxu0 %v4659_v26  ;;  %v4684_v25 = vld [vmem:[%s6189_s1 + $0x1a0] sm:$0xff]   ;;  %v80_v45 = vld [vmem:[%s6190_s0 + $0x1a8] sm:$0xff] }
  0x1d   :  { %3235 = vmatpush3.bf16.msra.mxu1 %v4660_v27  ;;  %3172 = vmatprep.subr.bf16.mxu0 %v4661_v28  ;;  %v67_v26 = vld [vmem:[%s6190_s0 + $0x140] sm:$0xff]  ;;  %v4685_v28 = vld [vmem:[%s6189_s1 + $0x168] sm:$0xff]   ;;  %v2837_v59 = vcombine.low %v76_v44, %v80_v45 }
  0x1e   :  { %3236 = vmatprep.subr.bf16.mxu1 %v4662_v29  ;;  %v71_v27 = vld [vmem:[%s6190_s0 + $0x160] sm:$0xff]  ;;  %v68_v29 = vld [vmem:[%s6190_s0 + $0x148] sm:$0xff] }
  0x1f   :  { %v2828_v36 = vcombine.high %v67_v26, %v71_v27  ;;  %v2827_v47 = vcombine.low %v67_v26, %v71_v27  ;;  %v84_v56 = vld [vmem:[%s6190_s0 + $0x1c8] sm:$0xff]  ;;  %v2807_v26 = vcombine.low %v45_v14, %v49_v15 }
  0x20   :  { %3173 = vmatpush3.bf16.msra.mxu0 %v4663_v30  ;;  %v72_v30 = vld [vmem:[%s6190_s0 + $0x168] sm:$0xff] }
  0x21   :  { %3237 = vmatpush3.bf16.msra.mxu1 %v4664_v31  ;;  %3286 = vmatprep.subr.bf16.mxu0 %v4665_v40  ;;  %v4686_v31 = vld [vmem:[%s6189_s1 + $0x128] sm:$0xff]   ;;  %v2830_v37 = vcombine.high %v68_v29, %v72_v30  ;;  %v4691_v40 = vld [vmem:[%s6189_s1 + $0x1f0] sm:$0xff]  }
  0x22   :  { %3350 = vmatprep.subr.bf16.mxu1 %v4667_v42  ;;  %v79_v42 = vld [vmem:[%s6190_s0 + $0x1a0] sm:$0xff]  ;;  %v88_v57 = vld [vmem:[%s6190_s0 + $0x1e8] sm:$0xff] }
  0x23   :  { %963 = vmatmul.mubr.bf16.vlgmr.msra.gmra.mrb[0].mxu0 %v2787_v35  ;;  %v2821_v35 = vcombine.low %v60_v16, %v64_v17  ;;  %v2845_v3 = vcombine.low %v84_v56, %v88_v57  ;;  %v46_v16 = vld [vmem:[%s6190_s0 + $0x98] sm:$0xff] }
  0x24   :  { %1060 = vmatmul.mubr.bf16.vlgmr.msra.gmra.mrb[0].mxu1 %v2789_v38  ;;  %3287 = vmatpush3.bf16.msra.mxu0 %v4666_v41  ;;  %v4689_v38 = vld [vmem:[%s6189_s1 + $0x170] sm:$0xff]   ;;  %v75_v41 = vld [vmem:[%s6190_s0 + $0x180] sm:$0xff]  ;;  %v50_v17 = vld [vmem:[%s6190_s0 + $0xb8] sm:$0xff] }
  0x25   :  { %3351 = vmatpush3.bf16.msra.mxu1 %v4668_v43  ;;  %970 = vmatprep.mubr.bf16.mxu0 %v2796_v46  ;;  %v4692_v43 = vld [vmem:[%s6189_s1 + $0x1b0] sm:$0xff]   ;;  %v4693_v46 = vld [vmem:[%s6189_s1 + $0x178] sm:$0xff]   ;;  %v2835_v58 = vcombine.low %v75_v41, %v79_v42  ;;  %v2809_v27 = vcombine.low %v46_v16, %v50_v17 }
  0x26   :  { %1067 = vmatprep.mubr.bf16.mxu1 %v2798_v49  ;;  %3288 = vmatprep.subr.bf16.mxu0 %v4669_v50  ;;  %v2829_v49 = vcombine.low %v68_v29, %v72_v30  ;;  %v2836_v50 = vcombine.high %v75_v41, %v79_v42  ;;  %v61_v30 = vld [vmem:[%s6190_s0 + $0x110] sm:$0xff]  ;;  %v74_v41 = vld [vmem:[%s6190_s0 + $0x178] sm:$0xff] }
  0x27   :  { %3352 = vmatprep.subr.bf16.mxu1 %v4671_v54  ;;  %v83_v54 = vld [vmem:[%s6190_s0 + $0x1c0] sm:$0xff] }
  0x28   :  { %3289 = vmatpush3.bf16.msra.mxu0 %v4670_v52  ;;  %v2838_v52 = vcombine.high %v76_v44, %v80_v45 }
  0x29   :  { %3353 = vmatpush3.bf16.msra.mxu1 %v4672_v55  ;;  %3290 = vmatprep.subr.bf16.mxu0 %v4673_v62  ;;  %v87_v55 = vld [vmem:[%s6190_s0 + $0x1e0] sm:$0xff]  ;;  %v29_v62 = vld [vmem:[%s6190_s0 + $0x10] sm:$0xff] }
  0x2a   :  { %3354 = vmatprep.subr.bf16.mxu1 %v4675_v0  ;;  %v30_v0 = vld [vmem:[%s6190_s0 + $0x18] sm:$0xff] }
  0x2b   :  { %971 = vmatmul.mubr.bf16.gmra.mrb[4].mxu0 %v2795_v51  ;;  %v4695_v51 = vld [vmem:[%s6189_s1 + $0x1f8] sm:$0xff]  }
  0x2c   :  { %1068 = vmatmul.mubr.bf16.gmra.mrb[4].mxu1 %v2797_v53  ;;  %978 = vmatprep.mubr.bf16.mxu0 %v2804_v60  ;;  %v4696_v53 = vld [vmem:[%s6189_s1 + $0x1b8] sm:$0xff]   ;;  %v2844_v60 = vcombine.high %v83_v54, %v87_v55 }
  0x2d   :  { %1075 = vmatprep.mubr.bf16.mxu1 %v2806_v61  ;;  %3291 = vmatpush3.bf16.msra.mxu0 %v4674_v63  ;;  %v2846_v61 = vcombine.high %v84_v56, %v88_v57  ;;  %v33_v63 = vld [vmem:[%s6190_s0 + $0x30] sm:$0xff] }
  0x2e   :  { %3355 = vmatpush3.bf16.msra.mxu1 %v4676_v1  ;;  %3292 = vmatprep.subr.bf16.mxu0 %v4677_v10  ;;  %v34_v1 = vld [vmem:[%s6190_s0 + $0x38] sm:$0xff]  ;;  %v2792_v4 = vcombine.high %v29_v62, %v33_v63  ;;  %v2791_v10 = vcombine.low %v29_v62, %v33_v63 }
  0x2f   :  { %3356 = vmatprep.subr.bf16.mxu1 %v4679_v12  ;;  %v2794_v5 = vcombine.high %v30_v0, %v34_v1  ;;  %v86_v62 = vld [vmem:[%s6190_s0 + $0x1d8] sm:$0xff] }
  0x31   :  { %3293 = vmatpush3.bf16.msra.mxu0 %v4678_v11  ;;  %v2793_v11 = vcombine.low %v30_v0, %v34_v1  ;;  %v90_v0 = vld [vmem:[%s6190_s0 + $0x1f8] sm:$0xff]  ;;  %v2917_v1 = vld [vmem:[%s6191_s3 + $0x90] sm:$0xff] }
  0x32   :  { %3357 = vmatpush3.bf16.msra.mxu1 %v4680_v13  ;;  %3294 = vmatprep.subr.bf16.mxu0 %v4681_v18 }
  0x33   :  { %979 = vmatmul.mubr.bf16.gmra.mrb[8].mxu0 %v2803_v2  ;;  %3358 = vmatprep.subr.bf16.mxu1 %v4683_v23  ;;  %v2843_v2 = vcombine.low %v83_v54, %v87_v55  ;;  %v57_v23 = vld [vmem:[%s6190_s0 + $0xf0] sm:$0xff] }
  0x34   :  { %1076 = vmatmul.mubr.bf16.gmra.mrb[8].mxu1 %v2805_v6  ;;  %986 = vmatprep.mubr.bf16.mxu0 %v2812_v7  ;;  %v37_v6 = vld [vmem:[%s6190_s0 + $0x50] sm:$0xff] }
  0x35   :  { %1083 = vmatprep.mubr.bf16.mxu1 %v2814_v9  ;;  %3295 = vmatpush3.bf16.msra.mxu0 %v4682_v20  ;;  %v41_v7 = vld [vmem:[%s6190_s0 + $0x70] sm:$0xff]  ;;  %v42_v9 = vld [vmem:[%s6190_s0 + $0x78] sm:$0xff]  ;;  %v2808_v20 = vcombine.high %v45_v14, %v49_v15  ;;  %v2849_v15 = vcombine.low %v86_v62, %v90_v0 }
  0x36   :  { %3359 = vmatpush3.bf16.msra.mxu1 %v4684_v25  ;;  %3296 = vmatprep.subr.bf16.mxu0 %v4685_v28  ;;  %v2800_v12 = vcombine.high %v37_v6, %v41_v7  ;;  %v2802_v13 = vcombine.high %v38_v8, %v42_v9  ;;  %v2799_v18 = vcombine.low %v37_v6, %v41_v7  ;;  %v58_v25 = vld [vmem:[%s6190_s0 + $0xf8] sm:$0xff] }
  0x37   :  { %3360 = vmatprep.subr.bf16.mxu1 %v4687_v32  ;;  %v62_v32 = vld [vmem:[%s6190_s0 + $0x118] sm:$0xff]  ;;  %v2850_v7 = vcombine.high %v86_v62, %v90_v0 }
  0x39   :  { %3297 = vmatpush3.bf16.msra.mxu0 %v4686_v31  ;;  %v65_v31 = vld [vmem:[%s6190_s0 + $0x130] sm:$0xff] }
  0x3a   :  { %3361 = vmatpush3.bf16.msra.mxu1 %v4688_v33  ;;  %3298 = vmatprep.subr.bf16.mxu0 %v4689_v38  ;;  %v66_v33 = vld [vmem:[%s6190_s0 + $0x138] sm:$0xff]  ;;  %v69_v38 = vld [vmem:[%s6190_s0 + $0x150] sm:$0xff]  ;;  %v2823_v42 = vcombine.low %v61_v30, %v65_v31 }
  0x3b   :  { %987 = vmatmul.mubr.bf16.gmra.mrb[12].mxu0 %v2811_v19  ;;  %3362 = vmatprep.subr.bf16.mxu1 %v4691_v40  ;;  %v2801_v19 = vcombine.low %v38_v8, %v42_v9  ;;  %v70_v40 = vld [vmem:[%s6190_s0 + $0x158] sm:$0xff]  ;;  %v1352_v8 = vld [vmem:[%s6191_s3 + $0x10] sm:$0xff] }
  0x3c   :  { %1084 = vmatmul.mubr.bf16.gmra.mrb[12].mxu1 %v2813_v21  ;;  %994 = vmatprep.mubr.bf16.mxu0 %v2820_v22  ;;  %v2810_v21 = vcombine.high %v46_v16, %v50_v17  ;;  %v53_v22 = vld [vmem:[%s6190_s0 + $0xd0] sm:$0xff]  ;;  %v2834_v45 = vcombine.high %v70_v40, %v74_v41  ;;  %v2833_v54 = vcombine.low %v70_v40, %v74_v41  ;;  %v1353_v9 = vld [vmem:[%s6191_s3 + $0x18] sm:$0xff]  ;;  %v1354_v16 = vld [vmem:[%s6191_s3 + $0x20] sm:$0xff] }
  0x3d   :  { %1091 = vmatprep.mubr.bf16.mxu1 %v2822_v24  ;;  %3299 = vmatpush3.bf16.msra.mxu0 %v4690_v39  ;;  %v54_v24 = vld [vmem:[%s6190_s0 + $0xd8] sm:$0xff]  ;;  %v2816_v28 = vcombine.high %v53_v22, %v57_v23  ;;  %v73_v39 = vld [vmem:[%s6190_s0 + $0x170] sm:$0xff]  ;;  %v1355_v17 = vld [vmem:[%s6191_s3 + $0x28] sm:$0xff] }
  0x3e   :  { %3363 = vmatpush3.bf16.msra.mxu1 %v4692_v43  ;;  %3300 = vmatprep.subr.bf16.mxu0 %v4693_v46  ;;  %v2818_v29 = vcombine.high %v54_v24, %v58_v25  ;;  %v2825_v43 = vcombine.low %v62_v32, %v66_v33  ;;  %v2832_v44 = vcombine.high %v69_v38, %v73_v39  ;;  %v77_v46 = vld [vmem:[%s6190_s0 + $0x190] sm:$0xff]  ;;  %v1362_v40 = vld [vmem:[%s6191_s3 + $0x60] sm:$0xff]  ;;  %v1363_v41 = vld [vmem:[%s6191_s3 + $0x68] sm:$0xff] }
  0x3f   :  { %3364 = vmatprep.subr.bf16.mxu1 %v4695_v51  ;;  %v4697_v51 = vmov 0.0|0.0  }
  0x41   :  { %3301 = vmatpush3.bf16.msra.mxu0 %v4694_v48  ;;  %v78_v48 = vld [vmem:[%s6190_s0 + $0x198] sm:$0xff] }
  0x42   :  { %3365 = vmatpush3.bf16.msra.mxu1 %v4696_v53  ;;  %4246 = vmatprep.subr.bf16.mxu0 %v4697_v51  ;;  %v2916_v53 = vld [vmem:[%s6191_s3 + $0x88] sm:$0xff] }
  0x43   :  { %995 = vmatmul.mubr.bf16.gmra.mrb[16].mxu0 %v2819_v34  ;;  %v2815_v34 = vcombine.low %v53_v22, %v57_v23  ;;  %4270 = vmatprep.subr.bf16.mxu1 %v4697_v51  ;;  %v1356_v22 = vld [vmem:[%s6191_s3 + $0x30] sm:$0xff]  ;;  %v1357_v23 = vld [vmem:[%s6191_s3 + $0x38] sm:$0xff] }
  0x44   :  { %1092 = vmatmul.mubr.bf16.gmra.mrb[16].mxu1 %v2821_v35  ;;  %1002 = vmatprep.mubr.bf16.mxu0 %v2828_v36  ;;  %v2817_v35 = vcombine.low %v54_v24, %v58_v25  ;;  %v2824_v36 = vcombine.high %v61_v30, %v65_v31  ;;  %v4280_v24 = vpack.c.bf16 %v1357_v23, %v1356_v22  ;;  %v2923_v25 = vld [vmem:[%s6191_s3 + $0xc0] sm:$0xff]  ;;  %v2925_v31 = vld [vmem:[%s6191_s3 + $0xd0] sm:$0xff] }
  0x45   :  { %1099 = vmatprep.mubr.bf16.mxu1 %v2830_v37  ;;  %v2826_v37 = vcombine.high %v62_v32, %v66_v33  ;;  %v2926_v32 = vld [vmem:[%s6191_s3 + $0xd8] sm:$0xff] }
  0x46   :  { %v4262_v33 = vpack.c.bf16 %v2926_v32, %v2925_v31 }
  0x4b   :  { %1003 = vmatmul.mubr.bf16.gmra.mrb[20].mxu0 %v2827_v47  ;;  %v81_v47 = vld [vmem:[%s6190_s0 + $0x1b0] sm:$0xff] }
  0x4c   :  { %1100 = vmatmul.mubr.bf16.gmra.mrb[20].mxu1 %v2829_v49  ;;  %1010 = vmatprep.mubr.bf16.mxu0 %v2836_v50  ;;  %v82_v49 = vld [vmem:[%s6190_s0 + $0x1b8] sm:$0xff]  ;;  %v2831_v50 = vcombine.low %v69_v38, %v73_v39  ;;  %v2840_v55 = vcombine.high %v77_v46, %v81_v47  ;;  %v2928_v38 = vld [vmem:[%s6191_s3 + $0xe8] sm:$0xff] }
  0x4d   :  { %1107 = vmatprep.mubr.bf16.mxu1 %v2838_v52  ;;  %v2915_v52 = vld [vmem:[%s6191_s3 + $0x80] sm:$0xff]  ;;  %v2842_v57 = vcombine.high %v78_v48, %v82_v49 }
  0x4e   :  { %v4247_v56 = vpack.c.bf16 %v2916_v53, %v2915_v52  ;;  %v5245_v53 = vld [vmem:[%s6192_s2] ss:$0 sm:$0xff] }
  0x53   :  { %1011 = vmatmul.mubr.bf16.gmra.mrb[24].mxu0 %v2835_v58  ;;  %v1350_v58 = vld [vmem:[%s6191_s3] sm:$0xff] }
  0x54   :  { %1108 = vmatmul.mubr.bf16.gmra.mrb[24].mxu1 %v2837_v59  ;;  %1018 = vmatprep.mubr.bf16.mxu0 %v2844_v60  ;;  %v1351_v59 = vld [vmem:[%s6191_s3 + $0x8] sm:$0xff]  ;;  %v85_v60 = vld [vmem:[%s6190_s0 + $0x1d0] sm:$0xff] }
  0x55   :  { %1115 = vmatprep.mubr.bf16.mxu1 %v2846_v61  ;;  %v89_v61 = vld [vmem:[%s6190_s0 + $0x1f0] sm:$0xff]  ;;  %v4271_v63 = vpack.c.bf16 %v1351_v59, %v1350_v58 }
  0x56   :  { %v2848_v6 = vcombine.high %v85_v60, %v89_v61 }
  0x5b   :  { %1019 = vmatmul.mubr.bf16.gmra.mrb[28].mxu0 %v2843_v2  ;;  %v2918_v2 = vld [vmem:[%s6191_s3 + $0x98] sm:$0xff] }
  0x5c   :  { %1116 = vmatmul.mubr.bf16.gmra.mrb[28].mxu1 %v2845_v3  ;;  %1156 = vmatprep.mubr.bf16.mxu0 %v2792_v4  ;;  %v2839_v3 = vcombine.low %v77_v46, %v81_v47  ;;  %v4250_v4 = vpack.c.bf16 %v2918_v2, %v2917_v1  ;;  %v2929_v46 = vld [vmem:[%s6191_s3 + $0xf0] sm:$0xff]  ;;  %v2930_v47 = vld [vmem:[%s6191_s3 + $0xf8] sm:$0xff] }
  0x5d   :  { %1253 = vmatprep.mubr.bf16.mxu1 %v2794_v5  ;;  %v2841_v5 = vcombine.low %v78_v48, %v82_v49  ;;  %v4268_v48 = vpack.c.bf16 %v2930_v47, %v2929_v46  ;;  %v4699_v49 = vmov 0.0  }
  0x63   :  { %1157 = vmatmul.mubr.bf16.vlgmr.msra.gmra.mrb[32].mxu0 %v2791_v10  ;;  %v4274_v10 = vpack.c.bf16 %v1353_v9, %v1352_v8 }
  0x64   :  { %1254 = vmatmul.mubr.bf16.vlgmr.msra.gmra.mrb[32].mxu1 %v2793_v11  ;;  %1164 = vmatprep.mubr.bf16.mxu0 %v2800_v12  ;;  %v2919_v11 = vld [vmem:[%s6191_s3 + $0xa0] sm:$0xff]  ;;  %v2920_v12 = vld [vmem:[%s6191_s3 + $0xa8] sm:$0xff] }
  0x65   :  { %1261 = vmatprep.mubr.bf16.mxu1 %v2802_v13  ;;  %4248 = vmatpush3.bf16.msra.mxu0 %v4247_v56  ;;  %v2847_v13 = vcombine.low %v85_v60, %v89_v61  ;;  %v4253_v14 = vpack.c.bf16 %v2920_v12, %v2919_v11 }
  0x66   :  { %4249 = vmatprep.subr.bf16.mxu0 %v4697_v51  ;;  %4272 = vmatpush3.bf16.msra.mxu1 %v4271_v63 }
  0x67   :  { %4273 = vmatprep.subr.bf16.mxu1 %v4697_v51 }
  0x69   :  { %4251 = vmatpush3.bf16.msra.mxu0 %v4250_v4 }
  0x6a   :  { %4252 = vmatprep.subr.bf16.mxu0 %v4697_v51  ;;  %4275 = vmatpush3.bf16.msra.mxu1 %v4274_v10 }
  0x6b   :  { %1165 = vmatmul.mubr.bf16.gmra.mrb[36].mxu0 %v2799_v18  ;;  %4276 = vmatprep.subr.bf16.mxu1 %v4697_v51  ;;  %v4277_v18 = vpack.c.bf16 %v1355_v17, %v1354_v16 }
  0x6c   :  { %1262 = vmatmul.mubr.bf16.gmra.mrb[36].mxu1 %v2801_v19  ;;  %1172 = vmatprep.mubr.bf16.mxu0 %v2808_v20  ;;  %v2921_v19 = vld [vmem:[%s6191_s3 + $0xb0] sm:$0xff]  ;;  %v2922_v20 = vld [vmem:[%s6191_s3 + $0xb8] sm:$0xff] }
  0x6d   :  { %1269 = vmatprep.mubr.bf16.mxu1 %v2810_v21  ;;  %4254 = vmatpush3.bf16.msra.mxu0 %v4253_v14  ;;  %v4256_v21 = vpack.c.bf16 %v2922_v20, %v2921_v19 }
  0x6e   :  { %4255 = vmatprep.subr.bf16.mxu0 %v4697_v51  ;;  %4278 = vmatpush3.bf16.msra.mxu1 %v4277_v18 }
  0x6f   :  { %4279 = vmatprep.subr.bf16.mxu1 %v4697_v51 }
  0x71   :  { %4257 = vmatpush3.bf16.msra.mxu0 %v4256_v21 }
  0x72   :  { %4258 = vmatprep.subr.bf16.mxu0 %v4697_v51  ;;  %4281 = vmatpush3.bf16.msra.mxu1 %v4280_v24 }
  0x73   :  { %1173 = vmatmul.mubr.bf16.gmra.mrb[40].mxu0 %v2807_v26  ;;  %v2924_v26 = vld [vmem:[%s6191_s3 + $0xc8] sm:$0xff]  ;;  %4282 = vmatprep.subr.bf16.mxu1 %v4697_v51 }
  0x74   :  { %1270 = vmatmul.mubr.bf16.gmra.mrb[40].mxu1 %v2809_v27  ;;  %1180 = vmatprep.mubr.bf16.mxu0 %v2816_v28  ;;  %v4259_v27 = vpack.c.bf16 %v2924_v26, %v2923_v25  ;;  %v1358_v28 = vld [vmem:[%s6191_s3 + $0x40] sm:$0xff] }
  0x75   :  { %1277 = vmatprep.mubr.bf16.mxu1 %v2818_v29  ;;  %v1359_v29 = vld [vmem:[%s6191_s3 + $0x48] sm:$0xff] }
  0x76   :  { %4260 = vmatpush3.bf16.msra.mxu0 %v4259_v27  ;;  %v4283_v30 = vpack.c.bf16 %v1359_v29, %v1358_v28 }
  0x77   :  { %4261 = vmatprep.subr.bf16.mxu0 %v4697_v51 }
  0x78   :  { %4284 = vmatpush3.bf16.msra.mxu1 %v4283_v30 }
  0x79   :  { %4285 = vmatprep.subr.bf16.mxu1 %v4697_v51 }
  0x7a   :  { %4263 = vmatpush3.bf16.msra.mxu0 %v4262_v33 }
  0x7b   :  { %1181 = vmatmul.mubr.bf16.gmra.mrb[44].mxu0 %v2815_v34  ;;  %4264 = vmatprep.subr.bf16.mxu0 %v4697_v51  ;;  %v1360_v34 = vld [vmem:[%s6191_s3 + $0x50] sm:$0xff] }
  0x7c   :  { %1278 = vmatmul.mubr.bf16.gmra.mrb[44].mxu1 %v2817_v35  ;;  %1188 = vmatprep.mubr.bf16.mxu0 %v2824_v36  ;;  %v1361_v35 = vld [vmem:[%s6191_s3 + $0x58] sm:$0xff] }
  0x7d   :  { %1285 = vmatprep.mubr.bf16.mxu1 %v2826_v37  ;;  %v4286_v36 = vpack.c.bf16 %v1361_v35, %v1360_v34  ;;  %v2927_v37 = vld [vmem:[%s6191_s3 + $0xe0] sm:$0xff] }
  0x7e   :  { %v4265_v39 = vpack.c.bf16 %v2928_v38, %v2927_v37 }
  0x7f   :  { %4287 = vmatpush3.bf16.msra.mxu1 %v4286_v36 }
  0x80   :  { %4288 = vmatprep.subr.bf16.mxu1 %v4697_v51  ;;  %4266 = vmatpush3.bf16.msra.mxu0 %v4265_v39 }
  0x81   :  { %4267 = vmatprep.subr.bf16.mxu0 %v4697_v51 }
  0x83   :  { %1189 = vmatmul.mubr.bf16.gmra.mrb[48].mxu0 %v2823_v42  ;;  %v4289_v42 = vpack.c.bf16 %v1363_v41, %v1362_v40 }
  0x84   :  { %1286 = vmatmul.mubr.bf16.gmra.mrb[48].mxu1 %v2825_v43  ;;  %1196 = vmatprep.mubr.bf16.mxu0 %v2832_v44  ;;  %v1364_v43 = vld [vmem:[%s6191_s3 + $0x70] sm:$0xff]  ;;  %v1365_v44 = vld [vmem:[%s6191_s3 + $0x78] sm:$0xff] }
  0x85   :  { %1293 = vmatprep.mubr.bf16.mxu1 %v2834_v45  ;;  %4290 = vmatpush3.bf16.msra.mxu1 %v4289_v42  ;;  %v4292_v45 = vpack.c.bf16 %v1365_v44, %v1364_v43 }
  0x86   :  { %4291 = vmatprep.subr.bf16.mxu1 %v4697_v51  ;;  %4269 = vmatpush3.bf16.msra.mxu0 %v4268_v48 }
  0x87   :  { %4294 = vmatprep.subr.bf16.mxu0 %v4697_v51 }
  0x89   :  { %4293 = vmatpush3.bf16.msra.mxu1 %v4292_v45 }
  0x8a   :  { %4318 = vmatprep.subr.bf16.mxu1 %v4697_v51 }
  0x8b   :  { %1197 = vmatmul.mubr.bf16.gmra.mrb[52].mxu0 %v2831_v50 }
  0x8c   :  { %1294 = vmatmul.mubr.bf16.gmra.mrb[52].mxu1 %v2833_v54  ;;  %1204 = vmatprep.mubr.bf16.mxu0 %v2840_v55 }
  0x8d   :  { %1301 = vmatprep.mubr.bf16.mxu1 %v2842_v57 }
  0x93   :  { %1205 = vmatmul.mubr.bf16.gmra.mrb[56].mxu0 %v2839_v3 }
  0x94   :  { %1302 = vmatmul.mubr.bf16.gmra.mrb[56].mxu1 %v2841_v5  ;;  %1212 = vmatprep.mubr.bf16.mxu0 %v2848_v6 }
  0x95   :  { %1309 = vmatprep.mubr.bf16.mxu1 %v2850_v7 }
  0x9b   :  { %1213 = vmatmul.mubr.bf16.gmra.mrb[60].mxu0 %v2847_v13 }
  0x9c   :  { %1310 = vmatmul.mubr.bf16.gmra.mrb[60].mxu1 %v2849_v15  ;;  %3718 = vmatprep.mubr.msk.f32.mxu0 %vm4698_vm0, %v4699_v49 }
  0x9d   :  { %3753 = vmatprep.mubr.msk.f32.mxu1 %vm4698_vm0, %v4699_v49 }
  0xf6   :  { %v3174_v50 = vpop.f32.mrb[0].mxu0 }
  0xf7   :  { %v3238_v52 = vpop.f32.mrb[0].mxu1  ;;  %v3175_v54 = vpop.f32.mrb[1].mxu0 }
  0xf8   :  { %v3176_v55 = vadd.f32 %v3175_v54, %v3174_v50  ;;  %v3239_v56 = vpop.f32.mrb[1].mxu1  ;;  %v3177_v57 = vpop.f32.mrb[2].mxu0 }
  0xf9   :  { %v3240_v58 = vadd.f32 %v3239_v56, %v3238_v52  ;;  %v3241_v59 = vpop.f32.mrb[2].mxu1  ;;  %v3178_v60 = vpop.f32.mrb[3].mxu0 }
  0xfa   :  { %v965_v61 = vadd.f32 %v3176_v55, %v5245_v53  ;;  %v3179_v62 = vadd.f32 %v3178_v60, %v3177_v57  ;;  %v3242_v63 = vpop.f32.mrb[3].mxu1 }
  0xfb   :  { %v3243_v0 = vadd.f32 %v3242_v63, %v3241_v59 }
  0xfc   :  { %v5248_v1 = vadd.f32 %v3240_v58, %v965_v61  ;;  %v968_v2 = vadd.f32 %v3179_v62, %v5245_v53 }
  0xfe   :  { %v5251_v3 = vadd.f32 %v3243_v0, %v968_v2  ;;  %v3180_v4 = vpop.f32.mrb[4].mxu0 }
  0xff   :  { %v3244_v5 = vpop.f32.mrb[4].mxu1  ;;  %v3181_v6 = vpop.f32.mrb[5].mxu0 }
 0x100   :  { %v3182_v7 = vadd.f32 %v3181_v6, %v3180_v4  ;;  %v3245_v8 = vpop.f32.mrb[5].mxu1  ;;  %v3183_v9 = vpop.f32.mrb[6].mxu0 }
 0x101   :  { %v3246_v10 = vadd.f32 %v3245_v8, %v3244_v5  ;;  %v3247_v11 = vpop.f32.mrb[6].mxu1  ;;  %v3184_v12 = vpop.f32.mrb[7].mxu0 }
 0x102   :  { %v973_v13 = vadd.f32 %v3182_v7, %v5245_v53  ;;  %v3185_v14 = vadd.f32 %v3184_v12, %v3183_v9  ;;  %v3248_v15 = vpop.f32.mrb[7].mxu1 }
 0x103   :  { %v3249_v16 = vadd.f32 %v3248_v15, %v3247_v11 }
 0x104   :  { %v5254_v17 = vadd.f32 %v3246_v10, %v973_v13  ;;  %v976_v18 = vadd.f32 %v3185_v14, %v5245_v53 }
 0x106   :  { %v5257_v19 = vadd.f32 %v3249_v16, %v976_v18  ;;  %v3186_v20 = vpop.f32.mrb[8].mxu0 }
 0x107   :  { %v3250_v21 = vpop.f32.mrb[8].mxu1  ;;  %v3187_v22 = vpop.f32.mrb[9].mxu0 }
 0x108   :  { %v3188_v23 = vadd.f32 %v3187_v22, %v3186_v20  ;;  %v3251_v24 = vpop.f32.mrb[9].mxu1  ;;  %v3189_v25 = vpop.f32.mrb[10].mxu0 }
 0x109   :  { %v3252_v26 = vadd.f32 %v3251_v24, %v3250_v21  ;;  %v3253_v27 = vpop.f32.mrb[10].mxu1  ;;  %v3190_v28 = vpop.f32.mrb[11].mxu0 }
 0x10a   :  { %v981_v29 = vadd.f32 %v3188_v23, %v5245_v53  ;;  %v3191_v30 = vadd.f32 %v3190_v28, %v3189_v25  ;;  %v3254_v31 = vpop.f32.mrb[11].mxu1 }
 0x10b   :  { %v3255_v32 = vadd.f32 %v3254_v31, %v3253_v27 }
 0x10c   :  { %v5260_v33 = vadd.f32 %v3252_v26, %v981_v29  ;;  %v984_v34 = vadd.f32 %v3191_v30, %v5245_v53 }
 0x10e   :  { %v5263_v35 = vadd.f32 %v3255_v32, %v984_v34  ;;  %v3192_v36 = vpop.f32.mrb[12].mxu0 }
 0x10f   :  { %v3256_v37 = vpop.f32.mrb[12].mxu1  ;;  %v3193_v38 = vpop.f32.mrb[13].mxu0 }
 0x110   :  { %v3194_v39 = vadd.f32 %v3193_v38, %v3192_v36  ;;  %v3257_v40 = vpop.f32.mrb[13].mxu1  ;;  %v3195_v41 = vpop.f32.mrb[14].mxu0 }
 0x111   :  { %v3258_v42 = vadd.f32 %v3257_v40, %v3256_v37  ;;  %v3259_v43 = vpop.f32.mrb[14].mxu1  ;;  %v3196_v44 = vpop.f32.mrb[15].mxu0 }
 0x112   :  { %v989_v45 = vadd.f32 %v3194_v39, %v5245_v53  ;;  %v3197_v46 = vadd.f32 %v3196_v44, %v3195_v41  ;;  %v3260_v47 = vpop.f32.mrb[15].mxu1 }
 0x113   :  { %v3261_v48 = vadd.f32 %v3260_v47, %v3259_v43 }
 0x114   :  { %v5266_v50 = vadd.f32 %v3258_v42, %v989_v45  ;;  %v992_v52 = vadd.f32 %v3197_v46, %v5245_v53 }
 0x116   :  { %v5269_v54 = vadd.f32 %v3261_v48, %v992_v52  ;;  %v3198_v55 = vpop.f32.mrb[16].mxu0 }
 0x117   :  { %v3262_v56 = vpop.f32.mrb[16].mxu1  ;;  %v3199_v57 = vpop.f32.mrb[17].mxu0 }
 0x118   :  { %v3200_v58 = vadd.f32 %v3199_v57, %v3198_v55  ;;  %v3263_v59 = vpop.f32.mrb[17].mxu1  ;;  %v3201_v60 = vpop.f32.mrb[18].mxu0 }
 0x119   :  { %v3264_v61 = vadd.f32 %v3263_v59, %v3262_v56  ;;  %v3265_v62 = vpop.f32.mrb[18].mxu1  ;;  %v3202_v63 = vpop.f32.mrb[19].mxu0 }
 0x11a   :  { %v997_v0 = vadd.f32 %v3200_v58, %v5245_v53  ;;  %v3203_v2 = vadd.f32 %v3202_v63, %v3201_v60  ;;  %v3266_v4 = vpop.f32.mrb[19].mxu1 }
 0x11b   :  { %v3267_v5 = vadd.f32 %v3266_v4, %v3265_v62 }
 0x11c   :  { %v5272_v6 = vadd.f32 %v3264_v61, %v997_v0  ;;  %v1000_v7 = vadd.f32 %v3203_v2, %v5245_v53 }
 0x11e   :  { %v5275_v8 = vadd.f32 %v3267_v5, %v1000_v7  ;;  %v3204_v9 = vpop.f32.mrb[20].mxu0 }
 0x11f   :  { %v3268_v10 = vpop.f32.mrb[20].mxu1  ;;  %v3205_v11 = vpop.f32.mrb[21].mxu0 }
 0x120   :  { %v3206_v12 = vadd.f32 %v3205_v11, %v3204_v9  ;;  %v3269_v13 = vpop.f32.mrb[21].mxu1  ;;  %v3207_v14 = vpop.f32.mrb[22].mxu0 }
 0x121   :  { %v3270_v15 = vadd.f32 %v3269_v13, %v3268_v10  ;;  %v3271_v16 = vpop.f32.mrb[22].mxu1  ;;  %v3208_v18 = vpop.f32.mrb[23].mxu0 }
 0x122   :  { %v1005_v20 = vadd.f32 %v3206_v12, %v5245_v53  ;;  %v3209_v21 = vadd.f32 %v3208_v18, %v3207_v14  ;;  %v3272_v22 = vpop.f32.mrb[23].mxu1 }
 0x123   :  { %v3273_v23 = vadd.f32 %v3272_v22, %v3271_v16 }
 0x124   :  { %v5278_v24 = vadd.f32 %v3270_v15, %v1005_v20  ;;  %v1008_v25 = vadd.f32 %v3209_v21, %v5245_v53 }
 0x126   :  { %v5281_v26 = vadd.f32 %v3273_v23, %v1008_v25  ;;  %v3210_v27 = vpop.f32.mrb[24].mxu0  ;;  %v2948_v23 = vld [vmem:[%s6191_s3 + $0x188] sm:$0xff] }
 0x127   :  { %v3274_v28 = vpop.f32.mrb[24].mxu1  ;;  %v3211_v29 = vpop.f32.mrb[25].mxu0 }
 0x128   :  { %v3212_v30 = vadd.f32 %v3211_v29, %v3210_v27  ;;  %v3275_v31 = vpop.f32.mrb[25].mxu1  ;;  %v3213_v32 = vpop.f32.mrb[26].mxu0  ;;  %v2932_v29 = vld [vmem:[%s6191_s3 + $0x108] sm:$0xff] }
 0x129   :  { %v3276_v34 = vadd.f32 %v3275_v31, %v3274_v28  ;;  %v3277_v36 = vpop.f32.mrb[26].mxu1  ;;  %v3214_v37 = vpop.f32.mrb[27].mxu0 }
 0x12a   :  { %v1013_v38 = vadd.f32 %v3212_v30, %v5245_v53  ;;  %v3215_v39 = vadd.f32 %v3214_v37, %v3213_v32  ;;  %v3278_v40 = vpop.f32.mrb[27].mxu1 }
 0x12b   :  { %v3279_v41 = vadd.f32 %v3278_v40, %v3277_v36  ;;  %v2950_v40 = vld [vmem:[%s6191_s3 + $0x198] sm:$0xff] }
 0x12c   :  { %v5284_v42 = vadd.f32 %v3276_v34, %v1013_v38  ;;  %v1016_v43 = vadd.f32 %v3215_v39, %v5245_v53  ;;  %v2949_v39 = vld [vmem:[%s6191_s3 + $0x190] sm:$0xff] }
 0x12e   :  { %v5287_v44 = vadd.f32 %v3279_v41, %v1016_v43  ;;  %v3216_v45 = vpop.f32.mrb[28].mxu0 }
 0x12f   :  { %v3280_v46 = vpop.f32.mrb[28].mxu1  ;;  %v3217_v47 = vpop.f32.mrb[29].mxu0 }
 0x130   :  { %v3218_v48 = vadd.f32 %v3217_v47, %v3216_v45  ;;  %v3281_v52 = vpop.f32.mrb[29].mxu1  ;;  %v3219_v55 = vpop.f32.mrb[30].mxu0 }
 0x131   :  { %v3282_v56 = vadd.f32 %v3281_v52, %v3280_v46  ;;  %v3283_v57 = vpop.f32.mrb[30].mxu1  ;;  %v3220_v58 = vpop.f32.mrb[31].mxu0 }
 0x132   :  { %v1021_v59 = vadd.f32 %v3218_v48, %v5245_v53  ;;  %v3221_v60 = vadd.f32 %v3220_v58, %v3219_v55  ;;  %v3284_v61 = vpop.f32.mrb[31].mxu1 }
 0x133   :  { %v3285_v62 = vadd.f32 %v3284_v61, %v3283_v57  ;;  %v2934_v57 = vld [vmem:[%s6191_s3 + $0x118] sm:$0xff]  ;;  %v2951_v61 = vld [vmem:[%s6191_s3 + $0x1a0] sm:$0xff] }
 0x134   :  { %v5290_v63 = vadd.f32 %v3282_v56, %v1021_v59  ;;  %v1024_v0 = vadd.f32 %v3221_v60, %v5245_v53  ;;  %v2947_v53 = vld [vmem:[%s6191_s3 + $0x180] sm:$0xff]  ;;  %v2933_v56 = vld [vmem:[%s6191_s3 + $0x110] sm:$0xff]  ;;  %v4322_v59 = vpack.c.bf16 %v2950_v40, %v2949_v39 }
 0x135   :  { %v4319_v31 = vpack.c.bf16 %v2948_v23, %v2947_v53 }
 0x136   :  { %v5293_v2 = vadd.f32 %v3285_v62, %v1024_v0  ;;  %v3302_v4 = vpop.f32.mrb[32].mxu0  ;;  %v2952_v62 = vld [vmem:[%s6191_s3 + $0x1a8] sm:$0xff]  ;;  %v4298_v0 = vpack.c.bf16 %v2934_v57, %v2933_v56 }
 0x137   :  { %v3366_v5 = vpop.f32.mrb[32].mxu1  ;;  %v3303_v7 = vpop.f32.mrb[33].mxu0 }
 0x138   :  { %v3304_v9 = vadd.f32 %v3303_v7, %v3302_v4  ;;  %v3367_v10 = vpop.f32.mrb[33].mxu1  ;;  %v3305_v11 = vpop.f32.mrb[34].mxu0  ;;  %v2936_v7 = vld [vmem:[%s6191_s3 + $0x128] sm:$0xff] }
 0x139   :  { %v3368_v12 = vadd.f32 %v3367_v10, %v3366_v5  ;;  %v3369_v13 = vpop.f32.mrb[34].mxu1  ;;  %v3306_v14 = vpop.f32.mrb[35].mxu0  ;;  %v2935_v5 = vld [vmem:[%s6191_s3 + $0x120] sm:$0xff] }
 0x13a   :  { %v1159_v15 = vadd.f32 %v3304_v9, %v5248_v1  ;;  %v3307_v16 = vadd.f32 %v3306_v14, %v3305_v11  ;;  %v3370_v18 = vpop.f32.mrb[35].mxu1  ;;  %v2931_v1 = vld [vmem:[%s6191_s3 + $0x100] sm:$0xff]  ;;  %v4325_v11 = vpack.c.bf16 %v2952_v62, %v2951_v61  ;;  %v2942_v61 = vld [vmem:[%s6191_s3 + $0x158] sm:$0xff] }
 0x13b   :  { %v3371_v20 = vadd.f32 %v3370_v18, %v3369_v13  ;;  %v4295_v46 = vpack.c.bf16 %v2932_v29, %v2931_v1 }
 0x13c   :  { %v1256_v21 = vadd.f32 %v3368_v12, %v1159_v15  ;;  %v1162_v22 = vadd.f32 %v3307_v16, %v5251_v3  ;;  %v2953_v15 = vld [vmem:[%s6191_s3 + $0x1b0] sm:$0xff]  ;;  %v2954_v16 = vld [vmem:[%s6191_s3 + $0x1b8] sm:$0xff] }
 0x13d   :  { %v4328_v29 = vpack.c.bf16 %v2954_v16, %v2953_v15 }
 0x13e   :  { %v1318_v25 = vmul.f32 0.2, %v1256_v21  ;;  %v1259_v27 = vadd.f32 %v3371_v20, %v1162_v22  ;;  %v3308_v28 = vpop.f32.mrb[36].mxu0  ;;  %v4301_v22 = vpack.c.bf16 %v2936_v7, %v2935_v5  ;;  %v2960_v7 = vld [vmem:[%s6191_s3 + $0x1e8] sm:$0xff] }
 0x13f   :  { %v3309_v3 = vpop.f32.mrb[37].mxu0  ;;  %v3372_v30 = vpop.f32.mrb[36].mxu1 }
 0x140   :  { %v1334_v32 = vmax.f32 %v1256_v21, %v1318_v25  ;;  %v1319_v34 = vmul.f32 0.2, %v1259_v27  ;;  %v3310_v36 = vadd.f32 %v3309_v3, %v3308_v28  ;;  %v3311_v37 = vpop.f32.mrb[38].mxu0  ;;  %v3373_v38 = vpop.f32.mrb[37].mxu1  ;;  %v2938_v28 = vld [vmem:[%s6191_s3 + $0x138] sm:$0xff] }
 0x141   :  { %v3312_v41 = vpop.f32.mrb[39].mxu0  ;;  %v3374_v43 = vadd.f32 %v3373_v38, %v3372_v30  ;;  %v3375_v45 = vpop.f32.mrb[38].mxu1 }
 0x142   :  { %v1335_v47 = vmax.f32 %v1259_v27, %v1319_v34  ;;  %v1167_v48 = vadd.f32 %v3310_v36, %v5254_v17  ;;  %v3313_v52 = vadd.f32 %v3312_v41, %v3311_v37  ;;  %3754 = vmatmul.mubr.f32.vlgmr.msra.gmra.mrb[64].mxu1 %v1334_v32  ;;  %v3376_v55 = vpop.f32.mrb[39].mxu1  ;;  %v2937_v27 = vld [vmem:[%s6191_s3 + $0x130] sm:$0xff]  ;;  %v2940_v37 = vld [vmem:[%s6191_s3 + $0x148] sm:$0xff] }
 0x143   :  { %4320 = vmatpush3.bf16.msra.mxu1 %v4319_v31  ;;  %v3377_v58 = vadd.f32 %v3376_v55, %v3375_v45  ;;  %3823 = vmatprep.mubr.msk.f32.mxu1 %vm4698_vm0, %v4699_v49  ;;  %v2956_v31 = vld [vmem:[%s6191_s3 + $0x1c8] sm:$0xff]  ;;  %v4304_v32 = vpack.c.bf16 %v2938_v28, %v2937_v27 }
 0x144   :  { %v1170_v60 = vadd.f32 %v3313_v52, %v5257_v19  ;;  %v5325_v17 = vadd.f32 %v3374_v43, %v1167_v48  ;;  %3719 = vmatmul.mubr.f32.vlgmr.msra.gmra.mrb[64].mxu0 %v1335_v47  ;;  %4321 = vmatprep.subr.bf16.mxu1 %v4697_v51  ;;  %v2958_v47 = vld [vmem:[%s6191_s3 + $0x1d8] sm:$0xff] }
 0x145   :  { %4296 = vmatpush3.bf16.msra.mxu0 %v4295_v46  ;;  %3788 = vmatprep.mubr.msk.f32.mxu0 %vm4698_vm0, %v4699_v49  ;;  %v2957_v46 = vld [vmem:[%s6191_s3 + $0x1d0] sm:$0xff] }
 0x146   :  { %v5336_v4 = vadd.f32 %v3377_v58, %v1170_v60  ;;  %v3314_v19 = vpop.f32.mrb[40].mxu0  ;;  %4297 = vmatprep.subr.bf16.mxu0 %v4697_v51  ;;  %v2941_v60 = vld [vmem:[%s6191_s3 + $0x150] sm:$0xff] }
 0x147   :  { %4323 = vmatpush3.bf16.msra.mxu1 %v4322_v59  ;;  %v3315_v9 = vpop.f32.mrb[41].mxu0  ;;  %v3378_v10 = vpop.f32.mrb[40].mxu1 }
 0x148   :  { %v3316_v12 = vadd.f32 %v3315_v9, %v3314_v19  ;;  %v3317_v13 = vpop.f32.mrb[42].mxu0  ;;  %v3379_v14 = vpop.f32.mrb[41].mxu1  ;;  %4324 = vmatprep.subr.bf16.mxu1 %v4697_v51  ;;  %v4310_v9 = vpack.c.bf16 %v2942_v61, %v2941_v60 }
 0x149   :  { %4299 = vmatpush3.bf16.msra.mxu0 %v4298_v0  ;;  %v3318_v18 = vpop.f32.mrb[43].mxu0  ;;  %v3380_v20 = vadd.f32 %v3379_v14, %v3378_v10  ;;  %v3381_v21 = vpop.f32.mrb[42].mxu1  ;;  %v4334_v0 = vpack.c.bf16 %v2958_v47, %v2957_v46 }
 0x14a   :  { %v1175_v53 = vadd.f32 %v3316_v12, %v5260_v33  ;;  %v3319_v23 = vadd.f32 %v3318_v18, %v3317_v13  ;;  %v3382_v25 = vpop.f32.mrb[43].mxu1  ;;  %4300 = vmatprep.subr.bf16.mxu0 %v4697_v51  ;;  %v2955_v33 = vld [vmem:[%s6191_s3 + $0x1c0] sm:$0xff]  ;;  %v2944_v12 = vld [vmem:[%s6191_s3 + $0x168] sm:$0xff] }
 0x14b   :  { %4326 = vmatpush3.bf16.msra.mxu1 %v4325_v11  ;;  %v3383_v1 = vadd.f32 %v3382_v25, %v3381_v21  ;;  %v4331_v40 = vpack.c.bf16 %v2956_v31, %v2955_v33  ;;  %v2961_v21 = vld [vmem:[%s6191_s3 + $0x1f0] sm:$0xff]  ;;  %v2946_v33 = vld [vmem:[%s6191_s3 + $0x178] sm:$0xff] }
 0x14c   :  { %v1178_v3 = vadd.f32 %v3319_v23, %v5263_v35  ;;  %v5361_v30 = vadd.f32 %v3380_v20, %v1175_v53  ;;  %4327 = vmatprep.subr.bf16.mxu1 %v4697_v51  ;;  %v2939_v35 = vld [vmem:[%s6191_s3 + $0x140] sm:$0xff] }
 0x14d   :  { %4302 = vmatpush3.bf16.msra.mxu0 %v4301_v22  ;;  %v4307_v56 = vpack.c.bf16 %v2940_v37, %v2939_v35  ;;  %v2962_v22 = vld [vmem:[%s6191_s3 + $0x1f8] sm:$0xff]  ;;  %v2979_v37 = vld [vmem:[%s6191_s3 + $0x280] sm:$0xff] }
 0x14e   :  { %v5370_v34 = vadd.f32 %v3383_v1, %v1178_v3  ;;  %v3320_v36 = vpop.f32.mrb[44].mxu0  ;;  %4303 = vmatprep.subr.bf16.mxu0 %v4697_v51  ;;  %v2945_v3 = vld [vmem:[%s6191_s3 + $0x170] sm:$0xff] }
 0x14f   :  { %4329 = vmatpush3.bf16.msra.mxu1 %v4328_v29  ;;  %v3321_v38 = vpop.f32.mrb[45].mxu0  ;;  %v3384_v39 = vpop.f32.mrb[44].mxu1 }
 0x150   :  { %v3322_v41 = vadd.f32 %v3321_v38, %v3320_v36  ;;  %v3323_v43 = vpop.f32.mrb[46].mxu0  ;;  %v3385_v45 = vpop.f32.mrb[45].mxu1  ;;  %4330 = vmatprep.subr.bf16.mxu1 %v4697_v51  ;;  %v1321_v36 = vmul.f32 0.2, %v5336_v4  ;;  %v2980_v38 = vld [vmem:[%s6191_s3 + $0x288] sm:$0xff] }
 0x151   :  { %4305 = vmatpush3.bf16.msra.mxu0 %v4304_v32  ;;  %v3324_v48 = vpop.f32.mrb[47].mxu0  ;;  %v3386_v52 = vadd.f32 %v3385_v45, %v3384_v39  ;;  %v3387_v55 = vpop.f32.mrb[46].mxu1  ;;  %v4340_v32 = vpack.c.bf16 %v2962_v22, %v2961_v21  ;;  %v4316_v39 = vpack.c.bf16 %v2946_v33, %v2945_v3  ;;  %v2964_v45 = vld [vmem:[%s6191_s3 + $0x208] sm:$0xff] }
 0x152   :  { %v1183_v57 = vadd.f32 %v3322_v41, %v5266_v50  ;;  %v3325_v58 = vadd.f32 %v3324_v48, %v3323_v43  ;;  %v3388_v59 = vpop.f32.mrb[47].mxu1  ;;  %4306 = vmatprep.subr.bf16.mxu0 %v4697_v51  ;;  %v2959_v50 = vld [vmem:[%s6191_s3 + $0x1e0] sm:$0xff]  ;;  %v4367_v48 = vpack.c.bf16 %v2980_v38, %v2979_v37  ;;  %v2969_v37 = vld [vmem:[%s6191_s3 + $0x230] sm:$0xff]  ;;  %v2970_v38 = vld [vmem:[%s6191_s3 + $0x238] sm:$0xff] }
 0x153   :  { %4332 = vmatpush3.bf16.msra.mxu1 %v4331_v40  ;;  %v3389_v62 = vadd.f32 %v3388_v59, %v3387_v55  ;;  %v4337_v15 = vpack.c.bf16 %v2960_v7, %v2959_v50  ;;  %v1320_v40 = vmul.f32 0.2, %v5325_v17  ;;  %v2982_v59 = vld [vmem:[%s6191_s3 + $0x298] sm:$0xff] }
 0x154   :  { %v1186_v19 = vadd.f32 %v3325_v58, %v5269_v54  ;;  %v5395_v5 = vadd.f32 %v3386_v52, %v1183_v57  ;;  %4333 = vmatprep.subr.bf16.mxu1 %v4697_v51  ;;  %v2943_v54 = vld [vmem:[%s6191_s3 + $0x160] sm:$0xff]  ;;  %v1337_v52 = vmax.f32 %v5336_v4, %v1321_v36  ;;  %v2981_v58 = vld [vmem:[%s6191_s3 + $0x290] sm:$0xff] }
 0x155   :  { %4308 = vmatpush3.bf16.msra.mxu0 %v4307_v56  ;;  %v4313_v27 = vpack.c.bf16 %v2944_v12, %v2943_v54  ;;  %v1336_v4 = vmax.f32 %v5325_v17, %v1320_v40  ;;  %v4370_v12 = vpack.c.bf16 %v2982_v59, %v2981_v58 }
 0x156   :  { %v5404_v10 = vadd.f32 %v3389_v62, %v1186_v19  ;;  %v3326_v11 = vpop.f32.mrb[48].mxu0  ;;  %4309 = vmatprep.subr.bf16.mxu0 %v4697_v51 }
 0x157   :  { %4335 = vmatpush3.bf16.msra.mxu1 %v4334_v0  ;;  %v3327_v13 = vpop.f32.mrb[49].mxu0  ;;  %v3390_v14 = vpop.f32.mrb[48].mxu1 }
 0x158   :  { %v3328_v16 = vadd.f32 %v3327_v13, %v3326_v11  ;;  %v3329_v18 = vpop.f32.mrb[50].mxu0  ;;  %v3391_v20 = vpop.f32.mrb[49].mxu1  ;;  %4336 = vmatprep.subr.bf16.mxu1 %v4697_v51  ;;  %v2966_v11 = vld [vmem:[%s6191_s3 + $0x218] sm:$0xff]  ;;  %v2983_v13 = vld [vmem:[%s6191_s3 + $0x2a0] sm:$0xff] }
 0x159   :  { %4311 = vmatpush3.bf16.msra.mxu0 %v4310_v9  ;;  %v3330_v53 = vpop.f32.mrb[51].mxu0  ;;  %v3392_v23 = vadd.f32 %v3391_v20, %v3390_v14  ;;  %v3393_v25 = vpop.f32.mrb[50].mxu1  ;;  %v2965_v9 = vld [vmem:[%s6191_s3 + $0x210] sm:$0xff]  ;;  %v2984_v14 = vld [vmem:[%s6191_s3 + $0x2a8] sm:$0xff] }
 0x15a   :  { %v1191_v28 = vadd.f32 %v3328_v16, %v5272_v6  ;;  %v3331_v1 = vadd.f32 %v3330_v53, %v3329_v18  ;;  %v3394_v29 = vpop.f32.mrb[51].mxu1  ;;  %4312 = vmatprep.subr.bf16.mxu0 %v4697_v51  ;;  %v2967_v18 = vld [vmem:[%s6191_s3 + $0x220] sm:$0xff]  ;;  %v2968_v20 = vld [vmem:[%s6191_s3 + $0x228] sm:$0xff]  ;;  %v4373_v53 = vpack.c.bf16 %v2984_v14, %v2983_v13 }
 0x15b   :  { %4338 = vmatpush3.bf16.msra.mxu1 %v4337_v15  ;;  %v3395_v31 = vadd.f32 %v3394_v29, %v3393_v25  ;;  %v4346_v15 = vpack.c.bf16 %v2966_v11, %v2965_v9 }
 0x15c   :  { %v1194_v35 = vadd.f32 %v3331_v1, %v5275_v8  ;;  %v5430_v6 = vadd.f32 %v3392_v23, %v1191_v28  ;;  %4339 = vmatprep.subr.bf16.mxu1 %v4697_v51  ;;  %v2963_v8 = vld [vmem:[%s6191_s3 + $0x200] sm:$0xff]  ;;  %v2985_v28 = vld [vmem:[%s6191_s3 + $0x2b0] sm:$0xff]  ;;  %v2986_v1 = vld [vmem:[%s6191_s3 + $0x2b8] sm:$0xff] }
 0x15d   :  { %4314 = vmatpush3.bf16.msra.mxu0 %v4313_v27  ;;  %v4343_v0 = vpack.c.bf16 %v2964_v45, %v2963_v8  ;;  %v4376_v40 = vpack.c.bf16 %v2986_v1, %v2985_v28  ;;  %v2988_v45 = vld [vmem:[%s6191_s3 + $0x2c8] sm:$0xff]  ;;  %v2978_v28 = vld [vmem:[%s6191_s3 + $0x278] sm:$0xff] }
 0x15e   :  { %v5440_v41 = vadd.f32 %v3395_v31, %v1194_v35  ;;  %v3332_v43 = vpop.f32.mrb[52].mxu0  ;;  %4315 = vmatprep.subr.bf16.mxu0 %v4697_v51  ;;  %v4349_v31 = vpack.c.bf16 %v2968_v20, %v2967_v18 }
 0x15f   :  { %4341 = vmatpush3.bf16.msra.mxu1 %v4340_v32  ;;  %v3333_v46 = vpop.f32.mrb[53].mxu0  ;;  %v3396_v47 = vpop.f32.mrb[52].mxu1 }
 0x160   :  { %v3334_v55 = vadd.f32 %v3333_v46, %v3332_v43  ;;  %v3335_v56 = vpop.f32.mrb[54].mxu0  ;;  %v3397_v57 = vpop.f32.mrb[53].mxu1  ;;  %4366 = vmatprep.subr.bf16.mxu1 %v4697_v51  ;;  %v4352_v46 = vpack.c.bf16 %v2970_v38, %v2969_v37 }
 0x161   :  { %4317 = vmatpush3.bf16.msra.mxu0 %v4316_v39  ;;  %v3336_v60 = vpop.f32.mrb[55].mxu0  ;;  %v3398_v61 = vadd.f32 %v3397_v57, %v3396_v47  ;;  %v3399_v62 = vpop.f32.mrb[54].mxu1 }
 0x162   :  { %v1199_v19 = vadd.f32 %v3334_v55, %v5278_v24  ;;  %v3337_v50 = vadd.f32 %v3336_v60, %v3335_v56  ;;  %3824 = vmatmul.mubr.f32.vlgmr.msra.gmra.mrb[66].mxu1 %v1337_v52  ;;  %v3400_v7 = vpop.f32.mrb[55].mxu1  ;;  %4342 = vmatprep.subr.bf16.mxu0 %v4697_v51  ;;  %v2972_v52 = vld [vmem:[%s6191_s3 + $0x248] sm:$0xff] }
 0x163   :  { %4368 = vmatpush3.bf16.msra.mxu1 %v4367_v48  ;;  %v3401_v54 = vadd.f32 %v3400_v7, %v3399_v62  ;;  %3893 = vmatprep.mubr.msk.f32.mxu1 %vm4698_vm0, %v4699_v49  ;;  %v2990_v62 = vld [vmem:[%s6191_s3 + $0x2d8] sm:$0xff] }
 0x164   :  { %v1202_v24 = vadd.f32 %v3337_v50, %v5281_v26  ;;  %v5469_v17 = vadd.f32 %v3398_v61, %v1199_v19  ;;  %3789 = vmatmul.mubr.f32.vlgmr.msra.gmra.mrb[66].mxu0 %v1336_v4  ;;  %4369 = vmatprep.subr.bf16.mxu1 %v4697_v51  ;;  %v2989_v61 = vld [vmem:[%s6191_s3 + $0x2d0] sm:$0xff] }
 0x165   :  { %4344 = vmatpush3.bf16.msra.mxu0 %v4343_v0  ;;  %3858 = vmatprep.mubr.msk.f32.mxu0 %vm4698_vm0, %v4699_v49  ;;  %v4382_v13 = vpack.c.bf16 %v2990_v62, %v2989_v61  ;;  %v3002_v61 = vld [vmem:[%s6191_s3 + $0x338] sm:$0xff] }
 0x166   :  { %v5480_v16 = vadd.f32 %v3401_v54, %v1202_v24  ;;  %v3338_v26 = vpop.f32.mrb[56].mxu0  ;;  %4345 = vmatprep.subr.bf16.mxu0 %v4697_v51  ;;  %v2973_v54 = vld [vmem:[%s6191_s3 + $0x250] sm:$0xff] }
 0x167   :  { %4371 = vmatpush3.bf16.msra.mxu1 %v4370_v12  ;;  %v3339_v21 = vpop.f32.mrb[57].mxu0  ;;  %v3402_v22 = vpop.f32.mrb[56].mxu1  ;;  %v2974_v12 = vld [vmem:[%s6191_s3 + $0x258] sm:$0xff] }
 0x168   :  { %v3340_v23 = vadd.f32 %v3339_v21, %v3338_v26  ;;  %v3341_v25 = vpop.f32.mrb[58].mxu0  ;;  %v3403_v27 = vpop.f32.mrb[57].mxu1  ;;  %4372 = vmatprep.subr.bf16.mxu1 %v4697_v51  ;;  %v2992_v26 = vld [vmem:[%s6191_s3 + $0x2e8] sm:$0xff]  ;;  %v4358_v18 = vpack.c.bf16 %v2974_v12, %v2973_v54  ;;  %v3022_v54 = vld [vmem:[%s6191_s3 + $0x3d8] sm:$0xff] }
 0x169   :  { %4347 = vmatpush3.bf16.msra.mxu0 %v4346_v15  ;;  %v3342_v29 = vpop.f32.mrb[59].mxu0  ;;  %v3404_v3 = vadd.f32 %v3403_v27, %v3402_v22  ;;  %v3405_v33 = vpop.f32.mrb[58].mxu1  ;;  %v2976_v21 = vld [vmem:[%s6191_s3 + $0x268] sm:$0xff]  ;;  %v2977_v27 = vld [vmem:[%s6191_s3 + $0x270] sm:$0xff] }
 0x16a   :  { %v1207_v32 = vadd.f32 %v3340_v23, %v5284_v42  ;;  %v3343_v36 = vadd.f32 %v3342_v29, %v3341_v25  ;;  %v3406_v35 = vpop.f32.mrb[59].mxu1  ;;  %4348 = vmatprep.subr.bf16.mxu0 %v4697_v51  ;;  %v2987_v42 = vld [vmem:[%s6191_s3 + $0x2c0] sm:$0xff]  ;;  %v2994_v23 = vld [vmem:[%s6191_s3 + $0x2f8] sm:$0xff]  ;;  %v1323_v29 = vmul.f32 0.2, %v5370_v34 }
 0x16b   :  { %4374 = vmatpush3.bf16.msra.mxu1 %v4373_v53  ;;  %v3407_v39 = vadd.f32 %v3406_v35, %v3405_v33  ;;  %v4379_v57 = vpack.c.bf16 %v2988_v45, %v2987_v42  ;;  %v2993_v53 = vld [vmem:[%s6191_s3 + $0x2f0] sm:$0xff]  ;;  %v3012_v33 = vld [vmem:[%s6191_s3 + $0x388] sm:$0xff]  ;;  %v2998_v45 = vld [vmem:[%s6191_s3 + $0x318] sm:$0xff] }
 0x16c   :  { %v1210_v43 = vadd.f32 %v3343_v36, %v5287_v44  ;;  %v5505_v8 = vadd.f32 %v3404_v3, %v1207_v32  ;;  %4375 = vmatprep.subr.bf16.mxu1 %v4697_v51  ;;  %v2971_v44 = vld [vmem:[%s6191_s3 + $0x240] sm:$0xff]  ;;  %v4388_v1 = vpack.c.bf16 %v2994_v23, %v2993_v53  ;;  %v1322_v32 = vmul.f32 0.2, %v5361_v30  ;;  %v2996_v35 = vld [vmem:[%s6191_s3 + $0x308] sm:$0xff]  ;;  %v3025_v53 = vld [vmem:[%s6191_s3 + $0x3f0] sm:$0xff] }
 0x16d   :  { %4350 = vmatpush3.bf16.msra.mxu0 %v4349_v31  ;;  %v4355_v50 = vpack.c.bf16 %v2972_v52, %v2971_v44  ;;  %v3011_v3 = vld [vmem:[%s6191_s3 + $0x380] sm:$0xff]  ;;  %v4364_v31 = vpack.c.bf16 %v2978_v28, %v2977_v27  ;;  %v1339_v38 = vmax.f32 %v5370_v34, %v1323_v29  ;;  %v2997_v34 = vld [vmem:[%s6191_s3 + $0x310] sm:$0xff]  ;;  %v3026_v23 = vld [vmem:[%s6191_s3 + $0x3f8] sm:$0xff]  ;;  %v1325_v29 = vmul.f32 0.2, %v5404_v10 }
 0x16e   :  { %v5514_v47 = vadd.f32 %v3407_v39, %v1210_v43  ;;  %v3344_v48 = vpop.f32.mrb[60].mxu0  ;;  %4351 = vmatprep.subr.bf16.mxu0 %v4697_v51  ;;  %v2995_v36 = vld [vmem:[%s6191_s3 + $0x300] sm:$0xff]  ;;  %v4415_v37 = vpack.c.bf16 %v3012_v33, %v3011_v3  ;;  %v3013_v39 = vld [vmem:[%s6191_s3 + $0x390] sm:$0xff]  ;;  %v1338_v42 = vmax.f32 %v5361_v30, %v1322_v32  ;;  %v4394_v44 = vpack.c.bf16 %v2998_v45, %v2997_v34  ;;  %v3010_v28 = vld [vmem:[%s6191_s3 + $0x378] sm:$0xff] }
 0x16f   :  { %4377 = vmatpush3.bf16.msra.mxu1 %v4376_v40  ;;  %v3345_v55 = vpop.f32.mrb[61].mxu0  ;;  %v3408_v56 = vpop.f32.mrb[60].mxu1  ;;  %v3014_v40 = vld [vmem:[%s6191_s3 + $0x398] sm:$0xff]  ;;  %v4391_v43 = vpack.c.bf16 %v2996_v35, %v2995_v36  ;;  %v3015_v30 = vld [vmem:[%s6191_s3 + $0x3a0] sm:$0xff]  ;;  %v3009_v27 = vld [vmem:[%s6191_s3 + $0x370] sm:$0xff] }
 0x170   :  { %v3346_v58 = vadd.f32 %v3345_v55, %v3344_v48  ;;  %v3347_v59 = vpop.f32.mrb[62].mxu0  ;;  %v3409_v60 = vpop.f32.mrb[61].mxu1  ;;  %4378 = vmatprep.subr.bf16.mxu1 %v4697_v51  ;;  %v3016_v48 = vld [vmem:[%s6191_s3 + $0x3a8] sm:$0xff]  ;;  %v2999_v52 = vld [vmem:[%s6191_s3 + $0x320] sm:$0xff]  ;;  %v1324_v32 = vmul.f32 0.2, %v5395_v5 }
 0x171   :  { %4353 = vmatpush3.bf16.msra.mxu0 %v4352_v46  ;;  %v3348_v0 = vpop.f32.mrb[63].mxu0  ;;  %v3410_v4 = vadd.f32 %v3409_v60, %v3408_v56  ;;  %v3411_v19 = vpop.f32.mrb[62].mxu1  ;;  %v4418_v46 = vpack.c.bf16 %v3014_v40, %v3013_v39  ;;  %v3000_v55 = vld [vmem:[%s6191_s3 + $0x328] sm:$0xff]  ;;  %v4421_v56 = vpack.c.bf16 %v3016_v48, %v3015_v30  ;;  %v3001_v60 = vld [vmem:[%s6191_s3 + $0x330] sm:$0xff]  ;;  %v3043_v3 = vld [vmem:[%s6191_s3 + $0x480] sm:$0xff] }
 0x172   :  { %v1215_v7 = vadd.f32 %v3346_v58, %v5290_v63  ;;  %v3349_v9 = vadd.f32 %v3348_v0, %v3347_v59  ;;  %v3412_v11 = vpop.f32.mrb[63].mxu1  ;;  %4354 = vmatprep.subr.bf16.mxu0 %v4697_v51  ;;  %v2991_v63 = vld [vmem:[%s6191_s3 + $0x2e0] sm:$0xff]  ;;  %v3018_v58 = vld [vmem:[%s6191_s3 + $0x3b8] sm:$0xff]  ;;  %v4397_v59 = vpack.c.bf16 %v3000_v55, %v2999_v52  ;;  %v3044_v33 = vld [vmem:[%s6191_s3 + $0x488] sm:$0xff] }
 0x173   :  { %4380 = vmatpush3.bf16.msra.mxu1 %v4379_v57  ;;  %v3413_v24 = vadd.f32 %v3412_v11, %v3411_v19  ;;  %v4385_v22 = vpack.c.bf16 %v2992_v26, %v2991_v63  ;;  %v3017_v57 = vld [vmem:[%s6191_s3 + $0x3b0] sm:$0xff]  ;;  %v3019_v0 = vld [vmem:[%s6191_s3 + $0x3c0] sm:$0xff]  ;;  %v4400_v19 = vpack.c.bf16 %v3002_v61, %v3001_v60  ;;  %v3024_v26 = vld [vmem:[%s6191_s3 + $0x3e8] sm:$0xff] }
 0x174   :  { %v1218_v14 = vadd.f32 %v3349_v9, %v5293_v2  ;;  %v5539_v15 = vadd.f32 %v3410_v4, %v1215_v7  ;;  %4381 = vmatprep.subr.bf16.mxu1 %v4697_v51  ;;  %v2975_v2 = vld [vmem:[%s6191_s3 + $0x260] sm:$0xff]  ;;  %v4424_v62 = vpack.c.bf16 %v3018_v58, %v3017_v57  ;;  %v3020_v4 = vld [vmem:[%s6191_s3 + $0x3c8] sm:$0xff]  ;;  %v3021_v11 = vld [vmem:[%s6191_s3 + $0x3d0] sm:$0xff] }
 0x175   :  { %4356 = vmatpush3.bf16.msra.mxu0 %v4355_v50  ;;  %v4361_v25 = vpack.c.bf16 %v2976_v21, %v2975_v2  ;;  %v3003_v50 = vld [vmem:[%s6191_s3 + $0x340] sm:$0xff]  ;;  %v3004_v7 = vld [vmem:[%s6191_s3 + $0x348] sm:$0xff]  ;;  %v4427_v9 = vpack.c.bf16 %v3020_v4, %v3019_v0  ;;  %v3045_v39 = vld [vmem:[%s6191_s3 + $0x490] sm:$0xff] }
 0x176   :  { %v5548_v20 = vadd.f32 %v3413_v24, %v1218_v14  ;;  %4357 = vmatprep.subr.bf16.mxu0 %v4697_v51  ;;  %v4403_v12 = vpack.c.bf16 %v3004_v7, %v3003_v50  ;;  %v3005_v24 = vld [vmem:[%s6191_s3 + $0x350] sm:$0xff]  ;;  %v4430_v14 = vpack.c.bf16 %v3022_v54, %v3021_v11  ;;  %v3023_v63 = vld [vmem:[%s6191_s3 + $0x3e0] sm:$0xff]  ;;  %v3008_v21 = vld [vmem:[%s6191_s3 + $0x368] sm:$0xff] }
 0x177   :  { %4383 = vmatpush3.bf16.msra.mxu1 %v4382_v13  ;;  %v3006_v13 = vld [vmem:[%s6191_s3 + $0x358] sm:$0xff]  ;;  %v3007_v2 = vld [vmem:[%s6191_s3 + $0x360] sm:$0xff]  ;;  %v3028_v35 = vld [vmem:[%s6191_s3 + $0x408] sm:$0xff] }
 0x178   :  { %4384 = vmatprep.subr.bf16.mxu1 %v4697_v51  ;;  %v3027_v36 = vld [vmem:[%s6191_s3 + $0x400] sm:$0xff]  ;;  %v3046_v40 = vld [vmem:[%s6191_s3 + $0x498] sm:$0xff]  ;;  %v3049_v55 = vld [vmem:[%s6191_s3 + $0x4b0] sm:$0xff] }
 0x179   :  { %4359 = vmatpush3.bf16.msra.mxu0 %v4358_v18  ;;  %v4406_v18 = vpack.c.bf16 %v3006_v13, %v3005_v24  ;;  %v3030_v34 = vld [vmem:[%s6191_s3 + $0x418] sm:$0xff]  ;;  %v4466_v45 = vpack.c.bf16 %v3046_v40, %v3045_v39  ;;  %v3031_v48 = vld [vmem:[%s6191_s3 + $0x420] sm:$0xff]  ;;  %v3033_v58 = vld [vmem:[%s6191_s3 + $0x430] sm:$0xff] }
 0x17a   :  { %4360 = vmatprep.subr.bf16.mxu0 %v4697_v51  ;;  %v3051_v61 = vld [vmem:[%s6191_s3 + $0x4c0] sm:$0xff]  ;;  %v3053_v7 = vld [vmem:[%s6191_s3 + $0x4d0] sm:$0xff] }
 0x17b   :  { %4386 = vmatpush3.bf16.msra.mxu1 %v4385_v22  ;;  %v4433_v22 = vpack.c.bf16 %v3024_v26, %v3023_v63  ;;  %v3035_v4 = vld [vmem:[%s6191_s3 + $0x440] sm:$0xff]  ;;  %v3037_v54 = vld [vmem:[%s6191_s3 + $0x450] sm:$0xff] }
 0x17c   :  { %4387 = vmatprep.subr.bf16.mxu1 %v4697_v51  ;;  %v3055_v13 = vld [vmem:[%s6191_s3 + $0x4e0] sm:$0xff] }
 0x17d   :  { %4362 = vmatpush3.bf16.msra.mxu0 %v4361_v25  ;;  %v4409_v25 = vpack.c.bf16 %v3008_v21, %v3007_v2  ;;  %v3039_v26 = vld [vmem:[%s6191_s3 + $0x460] sm:$0xff]  ;;  %v3057_v21 = vld [vmem:[%s6191_s3 + $0x4f0] sm:$0xff] }
 0x17e   :  { %4363 = vmatprep.subr.bf16.mxu0 %v4697_v51 }
 0x17f   :  { %4389 = vmatpush3.bf16.msra.mxu1 %v4388_v1  ;;  %v4436_v1 = vpack.c.bf16 %v3026_v23, %v3025_v53  ;;  %v3041_v23 = vld [vmem:[%s6191_s3 + $0x470] sm:$0xff] }
 0x180   :  { %4414 = vmatprep.subr.bf16.mxu1 %v4697_v51 }
 0x181   :  { %4365 = vmatpush3.bf16.msra.mxu0 %v4364_v31  ;;  %v4412_v31 = vpack.c.bf16 %v3010_v28, %v3009_v27  ;;  %v1327_v28 = vmul.f32 0.2, %v5440_v41 }
 0x182   :  { %3894 = vmatmul.mubr.f32.vlgmr.msra.gmra.mrb[68].mxu1 %v1339_v38  ;;  %4390 = vmatprep.subr.bf16.mxu0 %v4697_v51  ;;  %v1341_v38 = vmax.f32 %v5404_v10, %v1325_v29  ;;  %v3029_v10 = vld [vmem:[%s6191_s3 + $0x410] sm:$0xff]  ;;  %v3076_v29 = vld [vmem:[%s6191_s3 + $0x588] sm:$0xff] }
 0x183   :  { %4416 = vmatpush3.bf16.msra.mxu1 %v4415_v37  ;;  %3963 = vmatprep.mubr.msk.f32.mxu1 %vm4698_vm0, %v4699_v49  ;;  %v4463_v37 = vpack.c.bf16 %v3044_v33, %v3043_v3  ;;  %v4442_v30 = vpack.c.bf16 %v3030_v34, %v3029_v10  ;;  %v1326_v33 = vmul.f32 0.2, %v5430_v6  ;;  %v3080_v10 = vld [vmem:[%s6191_s3 + $0x5a8] sm:$0xff] }
 0x184   :  { %3859 = vmatmul.mubr.f32.vlgmr.msra.gmra.mrb[68].mxu0 %v1338_v42  ;;  %4417 = vmatprep.subr.bf16.mxu1 %v4697_v51  ;;  %v1340_v42 = vmax.f32 %v5395_v5, %v1324_v32  ;;  %v3047_v5 = vld [vmem:[%s6191_s3 + $0x4a0] sm:$0xff]  ;;  %v3060_v32 = vld [vmem:[%s6191_s3 + $0x508] sm:$0xff] }
 0x185   :  { %4392 = vmatpush3.bf16.msra.mxu0 %v4391_v43  ;;  %3928 = vmatprep.mubr.msk.f32.mxu0 %vm4698_vm0, %v4699_v49  ;;  %v4439_v43 = vpack.c.bf16 %v3028_v35, %v3027_v36  ;;  %v1343_v35 = vmax.f32 %v5440_v41, %v1327_v28  ;;  %v1342_v40 = vmax.f32 %v5430_v6, %v1326_v33  ;;  %v3061_v41 = vld [vmem:[%s6191_s3 + $0x510] sm:$0xff]  ;;  %v3079_v6 = vld [vmem:[%s6191_s3 + $0x5a0] sm:$0xff]  ;;  %v1328_v28 = vmul.f32 0.2, %v5469_v17 }
 0x186   :  { %4393 = vmatprep.subr.bf16.mxu0 %v4697_v51 }
 0x187   :  { %4419 = vmatpush3.bf16.msra.mxu1 %v4418_v46  ;;  %v3048_v46 = vld [vmem:[%s6191_s3 + $0x4a8] sm:$0xff] }
 0x188   :  { %4420 = vmatprep.subr.bf16.mxu1 %v4697_v51  ;;  %v4469_v52 = vpack.c.bf16 %v3048_v46, %v3047_v5  ;;  %v3064_v5 = vld [vmem:[%s6191_s3 + $0x528] sm:$0xff]  ;;  %v4517_v46 = vpack.c.bf16 %v3080_v10, %v3079_v6  ;;  %v3113_v6 = vld [vmem:[%s6191_s3 + $0x6b0] sm:$0xff]  ;;  %v3114_v10 = vld [vmem:[%s6191_s3 + $0x6b8] sm:$0xff] }
 0x189   :  { %4395 = vmatpush3.bf16.msra.mxu0 %v4394_v44  ;;  %v3032_v44 = vld [vmem:[%s6191_s3 + $0x428] sm:$0xff] }
 0x18a   :  { %4396 = vmatprep.subr.bf16.mxu0 %v4697_v51  ;;  %v4445_v57 = vpack.c.bf16 %v3032_v44, %v3031_v48  ;;  %v3082_v48 = vld [vmem:[%s6191_s3 + $0x5b8] sm:$0xff] }
 0x18b   :  { %4422 = vmatpush3.bf16.msra.mxu1 %v4421_v56  ;;  %v3050_v56 = vld [vmem:[%s6191_s3 + $0x4b8] sm:$0xff] }
 0x18c   :  { %4423 = vmatprep.subr.bf16.mxu1 %v4697_v51  ;;  %v4472_v60 = vpack.c.bf16 %v3050_v56, %v3049_v55  ;;  %v3066_v55 = vld [vmem:[%s6191_s3 + $0x538] sm:$0xff] }
 0x18d   :  { %4398 = vmatpush3.bf16.msra.mxu0 %v4397_v59  ;;  %v3034_v59 = vld [vmem:[%s6191_s3 + $0x438] sm:$0xff] }
 0x18e   :  { %4399 = vmatprep.subr.bf16.mxu0 %v4697_v51  ;;  %v4448_v0 = vpack.c.bf16 %v3034_v59, %v3033_v58  ;;  %v3084_v58 = vld [vmem:[%s6191_s3 + $0x5c8] sm:$0xff] }
 0x18f   :  { %4425 = vmatpush3.bf16.msra.mxu1 %v4424_v62  ;;  %v3052_v62 = vld [vmem:[%s6191_s3 + $0x4c8] sm:$0xff] }
 0x190   :  { %4426 = vmatprep.subr.bf16.mxu1 %v4697_v51  ;;  %v4475_v50 = vpack.c.bf16 %v3052_v62, %v3051_v61  ;;  %v3068_v61 = vld [vmem:[%s6191_s3 + $0x548] sm:$0xff] }
 0x191   :  { %4401 = vmatpush3.bf16.msra.mxu0 %v4400_v19  ;;  %v3036_v19 = vld [vmem:[%s6191_s3 + $0x448] sm:$0xff] }
 0x192   :  { %4402 = vmatprep.subr.bf16.mxu0 %v4697_v51  ;;  %v4451_v11 = vpack.c.bf16 %v3036_v19, %v3035_v4  ;;  %v3086_v4 = vld [vmem:[%s6191_s3 + $0x5d8] sm:$0xff] }
 0x193   :  { %4428 = vmatpush3.bf16.msra.mxu1 %v4427_v9  ;;  %v3054_v9 = vld [vmem:[%s6191_s3 + $0x4d8] sm:$0xff] }
 0x194   :  { %4429 = vmatprep.subr.bf16.mxu1 %v4697_v51  ;;  %v4478_v24 = vpack.c.bf16 %v3054_v9, %v3053_v7  ;;  %v3070_v7 = vld [vmem:[%s6191_s3 + $0x558] sm:$0xff] }
 0x195   :  { %4404 = vmatpush3.bf16.msra.mxu0 %v4403_v12  ;;  %v3038_v12 = vld [vmem:[%s6191_s3 + $0x458] sm:$0xff] }
 0x196   :  { %4405 = vmatprep.subr.bf16.mxu0 %v4697_v51  ;;  %v4454_v63 = vpack.c.bf16 %v3038_v12, %v3037_v54  ;;  %v3088_v54 = vld [vmem:[%s6191_s3 + $0x5e8] sm:$0xff] }
 0x197   :  { %4431 = vmatpush3.bf16.msra.mxu1 %v4430_v14  ;;  %v3056_v14 = vld [vmem:[%s6191_s3 + $0x4e8] sm:$0xff] }
 0x198   :  { %4432 = vmatprep.subr.bf16.mxu1 %v4697_v51  ;;  %v4481_v2 = vpack.c.bf16 %v3056_v14, %v3055_v13  ;;  %v3072_v13 = vld [vmem:[%s6191_s3 + $0x568] sm:$0xff] }
 0x199   :  { %4407 = vmatpush3.bf16.msra.mxu0 %v4406_v18  ;;  %v3040_v18 = vld [vmem:[%s6191_s3 + $0x468] sm:$0xff] }
 0x19a   :  { %4408 = vmatprep.subr.bf16.mxu0 %v4697_v51  ;;  %v4457_v53 = vpack.c.bf16 %v3040_v18, %v3039_v26  ;;  %v3090_v26 = vld [vmem:[%s6191_s3 + $0x5f8] sm:$0xff] }
 0x19b   :  { %4434 = vmatpush3.bf16.msra.mxu1 %v4433_v22  ;;  %v3058_v22 = vld [vmem:[%s6191_s3 + $0x4f8] sm:$0xff] }
 0x19c   :  { %4435 = vmatprep.subr.bf16.mxu1 %v4697_v51  ;;  %v4484_v27 = vpack.c.bf16 %v3058_v22, %v3057_v21  ;;  %v3074_v21 = vld [vmem:[%s6191_s3 + $0x578] sm:$0xff] }
 0x19d   :  { %4410 = vmatpush3.bf16.msra.mxu0 %v4409_v25  ;;  %v3042_v25 = vld [vmem:[%s6191_s3 + $0x478] sm:$0xff] }
 0x19e   :  { %4411 = vmatprep.subr.bf16.mxu0 %v4697_v51  ;;  %v4460_v3 = vpack.c.bf16 %v3042_v25, %v3041_v23  ;;  %v3107_v23 = vld [vmem:[%s6191_s3 + $0x680] sm:$0xff]  ;;  %v3108_v25 = vld [vmem:[%s6191_s3 + $0x688] sm:$0xff] }
 0x19f   :  { %4437 = vmatpush3.bf16.msra.mxu1 %v4436_v1  ;;  %v3075_v1 = vld [vmem:[%s6191_s3 + $0x580] sm:$0xff] }
 0x1a0   :  { %4462 = vmatprep.subr.bf16.mxu1 %v4697_v51  ;;  %v4511_v36 = vpack.c.bf16 %v3076_v29, %v3075_v1  ;;  %v3091_v1 = vld [vmem:[%s6191_s3 + $0x600] sm:$0xff]  ;;  %v3092_v29 = vld [vmem:[%s6191_s3 + $0x608] sm:$0xff] }
 0x1a1   :  { %4413 = vmatpush3.bf16.msra.mxu0 %v4412_v31  ;;  %v3059_v31 = vld [vmem:[%s6191_s3 + $0x500] sm:$0xff] }
 0x1a2   :  { %3964 = vmatmul.mubr.f32.vlgmr.msra.gmra.mrb[70].mxu1 %v1341_v38  ;;  %4438 = vmatprep.subr.bf16.mxu0 %v4697_v51  ;;  %v3078_v38 = vld [vmem:[%s6191_s3 + $0x598] sm:$0xff]  ;;  %v4487_v39 = vpack.c.bf16 %v3060_v32, %v3059_v31  ;;  %v3109_v31 = vld [vmem:[%s6191_s3 + $0x690] sm:$0xff] }
 0x1a3   :  { %4464 = vmatpush3.bf16.msra.mxu1 %v4463_v37  ;;  %4033 = vmatprep.mubr.msk.f32.mxu1 %vm4698_vm0, %v4699_v49  ;;  %v3077_v37 = vld [vmem:[%s6191_s3 + $0x590] sm:$0xff]  ;;  %v3110_v32 = vld [vmem:[%s6191_s3 + $0x698] sm:$0xff] }
 0x1a4   :  { %3929 = vmatmul.mubr.f32.vlgmr.msra.gmra.mrb[70].mxu0 %v1340_v42  ;;  %4465 = vmatprep.subr.bf16.mxu1 %v4697_v51  ;;  %v4514_v42 = vpack.c.bf16 %v3078_v38, %v3077_v37  ;;  %v3094_v37 = vld [vmem:[%s6191_s3 + $0x618] sm:$0xff]  ;;  %v4562_v38 = vpack.c.bf16 %v3110_v32, %v3109_v31  ;;  %v3144_v31 = vld [vmem:[%s6191_s3 + $0x7a8] sm:$0xff] }
 0x1a5   :  { %4440 = vmatpush3.bf16.msra.mxu0 %v4439_v43  ;;  %3998 = vmatprep.mubr.msk.f32.mxu0 %vm4698_vm0, %v4699_v49  ;;  %v3062_v43 = vld [vmem:[%s6191_s3 + $0x518] sm:$0xff] }
 0x1a6   :  { %4441 = vmatprep.subr.bf16.mxu0 %v4697_v51  ;;  %v4490_v34 = vpack.c.bf16 %v3062_v43, %v3061_v41  ;;  %v3095_v41 = vld [vmem:[%s6191_s3 + $0x620] sm:$0xff]  ;;  %v3096_v43 = vld [vmem:[%s6191_s3 + $0x628] sm:$0xff] }
 0x1a7   :  { %4467 = vmatpush3.bf16.msra.mxu1 %v4466_v45  ;;  %v3063_v45 = vld [vmem:[%s6191_s3 + $0x520] sm:$0xff] }
 0x1a8   :  { %4468 = vmatprep.subr.bf16.mxu1 %v4697_v51  ;;  %v4493_v44 = vpack.c.bf16 %v3064_v5, %v3063_v45  ;;  %v3097_v45 = vld [vmem:[%s6191_s3 + $0x630] sm:$0xff]  ;;  %v3098_v5 = vld [vmem:[%s6191_s3 + $0x638] sm:$0xff] }
 0x1a9   :  { %4443 = vmatpush3.bf16.msra.mxu0 %v4442_v30  ;;  %v3081_v30 = vld [vmem:[%s6191_s3 + $0x5b0] sm:$0xff] }
 0x1aa   :  { %4444 = vmatprep.subr.bf16.mxu0 %v4697_v51  ;;  %v4520_v56 = vpack.c.bf16 %v3082_v48, %v3081_v30  ;;  %v3115_v30 = vld [vmem:[%s6191_s3 + $0x6c0] sm:$0xff]  ;;  %v3116_v48 = vld [vmem:[%s6191_s3 + $0x6c8] sm:$0xff] }
 0x1ab   :  { %4470 = vmatpush3.bf16.msra.mxu1 %v4469_v52  ;;  %v3065_v52 = vld [vmem:[%s6191_s3 + $0x530] sm:$0xff] }
 0x1ac   :  { %4471 = vmatprep.subr.bf16.mxu1 %v4697_v51  ;;  %v4496_v59 = vpack.c.bf16 %v3066_v55, %v3065_v52  ;;  %v3099_v52 = vld [vmem:[%s6191_s3 + $0x640] sm:$0xff]  ;;  %v3100_v55 = vld [vmem:[%s6191_s3 + $0x648] sm:$0xff] }
 0x1ad   :  { %4446 = vmatpush3.bf16.msra.mxu0 %v4445_v57  ;;  %v3083_v57 = vld [vmem:[%s6191_s3 + $0x5c0] sm:$0xff] }
 0x1ae   :  { %4447 = vmatprep.subr.bf16.mxu0 %v4697_v51  ;;  %v4523_v62 = vpack.c.bf16 %v3084_v58, %v3083_v57  ;;  %v3117_v57 = vld [vmem:[%s6191_s3 + $0x6d0] sm:$0xff]  ;;  %v3118_v58 = vld [vmem:[%s6191_s3 + $0x6d8] sm:$0xff] }
 0x1af   :  { %4473 = vmatpush3.bf16.msra.mxu1 %v4472_v60  ;;  %v3067_v60 = vld [vmem:[%s6191_s3 + $0x540] sm:$0xff] }
 0x1b0   :  { %4474 = vmatprep.subr.bf16.mxu1 %v4697_v51  ;;  %v4499_v19 = vpack.c.bf16 %v3068_v61, %v3067_v60  ;;  %v3101_v60 = vld [vmem:[%s6191_s3 + $0x650] sm:$0xff]  ;;  %v3102_v61 = vld [vmem:[%s6191_s3 + $0x658] sm:$0xff] }
 0x1b1   :  { %4449 = vmatpush3.bf16.msra.mxu0 %v4448_v0  ;;  %v3085_v0 = vld [vmem:[%s6191_s3 + $0x5d0] sm:$0xff] }
 0x1b2   :  { %4450 = vmatprep.subr.bf16.mxu0 %v4697_v51  ;;  %v4526_v9 = vpack.c.bf16 %v3086_v4, %v3085_v0  ;;  %v3119_v0 = vld [vmem:[%s6191_s3 + $0x6e0] sm:$0xff]  ;;  %v3120_v4 = vld [vmem:[%s6191_s3 + $0x6e8] sm:$0xff] }
 0x1b3   :  { %4476 = vmatpush3.bf16.msra.mxu1 %v4475_v50  ;;  %v3069_v50 = vld [vmem:[%s6191_s3 + $0x550] sm:$0xff] }
 0x1b4   :  { %4477 = vmatprep.subr.bf16.mxu1 %v4697_v51  ;;  %v4502_v12 = vpack.c.bf16 %v3070_v7, %v3069_v50  ;;  %v3103_v50 = vld [vmem:[%s6191_s3 + $0x660] sm:$0xff]  ;;  %v3104_v7 = vld [vmem:[%s6191_s3 + $0x668] sm:$0xff] }
 0x1b5   :  { %4452 = vmatpush3.bf16.msra.mxu0 %v4451_v11  ;;  %v3087_v11 = vld [vmem:[%s6191_s3 + $0x5e0] sm:$0xff] }
 0x1b6   :  { %4453 = vmatprep.subr.bf16.mxu0 %v4697_v51  ;;  %v4529_v14 = vpack.c.bf16 %v3088_v54, %v3087_v11  ;;  %v3121_v11 = vld [vmem:[%s6191_s3 + $0x6f0] sm:$0xff]  ;;  %v3122_v54 = vld [vmem:[%s6191_s3 + $0x6f8] sm:$0xff] }
 0x1b7   :  { %4479 = vmatpush3.bf16.msra.mxu1 %v4478_v24  ;;  %v3071_v24 = vld [vmem:[%s6191_s3 + $0x560] sm:$0xff] }
 0x1b8   :  { %4480 = vmatprep.subr.bf16.mxu1 %v4697_v51  ;;  %v4505_v18 = vpack.c.bf16 %v3072_v13, %v3071_v24  ;;  %v3105_v24 = vld [vmem:[%s6191_s3 + $0x670] sm:$0xff]  ;;  %v3106_v13 = vld [vmem:[%s6191_s3 + $0x678] sm:$0xff] }
 0x1b9   :  { %4455 = vmatpush3.bf16.msra.mxu0 %v4454_v63  ;;  %v3089_v63 = vld [vmem:[%s6191_s3 + $0x5f0] sm:$0xff] }
 0x1ba   :  { %4456 = vmatprep.subr.bf16.mxu0 %v4697_v51  ;;  %v4532_v22 = vpack.c.bf16 %v3090_v26, %v3089_v63  ;;  %v1331_v63 = vmul.f32 0.2, %v5514_v47  ;;  %v3139_v26 = vld [vmem:[%s6191_s3 + $0x780] sm:$0xff] }
 0x1bb   :  { %4482 = vmatpush3.bf16.msra.mxu1 %v4481_v2  ;;  %v3073_v2 = vld [vmem:[%s6191_s3 + $0x570] sm:$0xff] }
 0x1bc   :  { %4483 = vmatprep.subr.bf16.mxu1 %v4697_v51 }
 0x1bd   :  { %4458 = vmatpush3.bf16.msra.mxu0 %v4457_v53  ;;  %v1329_v53 = vmul.f32 0.2, %v5480_v16 }
 0x1be   :  { %4459 = vmatprep.subr.bf16.mxu0 %v4697_v51 }
 0x1bf   :  { %4485 = vmatpush3.bf16.msra.mxu1 %v4484_v27  ;;  %v4508_v27 = vpack.c.bf16 %v3074_v21, %v3073_v2  ;;  %v1345_v33 = vmax.f32 %v5480_v16, %v1329_v53  ;;  %v3093_v16 = vld [vmem:[%s6191_s3 + $0x610] sm:$0xff]  ;;  %v4556_v2 = vpack.c.bf16 %v3106_v13, %v3105_v24  ;;  %v1330_v21 = vmul.f32 0.2, %v5505_v8  ;;  %v3124_v53 = vld [vmem:[%s6191_s3 + $0x708] sm:$0xff] }
 0x1c0   :  { %4510 = vmatprep.subr.bf16.mxu1 %v4697_v51  ;;  %v1332_v13 = vmul.f32 0.2, %v5539_v15 }
 0x1c1   :  { %4461 = vmatpush3.bf16.msra.mxu0 %v4460_v3  ;;  %v4559_v3 = vpack.c.bf16 %v3108_v25, %v3107_v23  ;;  %v1347_v25 = vmax.f32 %v5514_v47, %v1331_v63  ;;  %v3125_v47 = vld [vmem:[%s6191_s3 + $0x710] sm:$0xff] }
 0x1c2   :  { %4034 = vmatmul.mubr.f32.vlgmr.msra.gmra.mrb[72].mxu1 %v1343_v35  ;;  %4486 = vmatprep.subr.bf16.mxu0 %v4697_v51  ;;  %v1344_v35 = vmax.f32 %v5469_v17, %v1328_v28  ;;  %v3111_v17 = vld [vmem:[%s6191_s3 + $0x6a0] sm:$0xff]  ;;  %v3142_v28 = vld [vmem:[%s6191_s3 + $0x798] sm:$0xff]  ;;  %v1348_v63 = vmax.f32 %v5539_v15, %v1332_v13 }
 0x1c3   :  { %4512 = vmatpush3.bf16.msra.mxu1 %v4511_v36  ;;  %4103 = vmatprep.mubr.msk.f32.mxu1 %vm4698_vm0, %v4699_v49  ;;  %v4535_v36 = vpack.c.bf16 %v3092_v29, %v3091_v1  ;;  %v1346_v29 = vmax.f32 %v5505_v8, %v1330_v21  ;;  %v3143_v8 = vld [vmem:[%s6191_s3 + $0x7a0] sm:$0xff] }
 0x1c4   :  { %3999 = vmatmul.mubr.f32.vlgmr.msra.gmra.mrb[72].mxu0 %v1342_v40  ;;  %4513 = vmatprep.subr.bf16.mxu1 %v4697_v51  ;;  %v4538_v40 = vpack.c.bf16 %v3094_v37, %v3093_v16  ;;  %v4613_v16 = vpack.c.bf16 %v3144_v31, %v3143_v8  ;;  %v3145_v37 = vld [vmem:[%s6191_s3 + $0x7b0] sm:$0xff] }
 0x1c5   :  { %4488 = vmatpush3.bf16.msra.mxu0 %v4487_v39  ;;  %4068 = vmatprep.mubr.msk.f32.mxu0 %vm4698_vm0, %v4699_v49  ;;  %v3112_v39 = vld [vmem:[%s6191_s3 + $0x6a8] sm:$0xff] }
 0x1c6   :  { %4489 = vmatprep.subr.bf16.mxu0 %v4697_v51 }
 0x1c7   :  { %4515 = vmatpush3.bf16.msra.mxu1 %v4514_v42  ;;  %v4565_v42 = vpack.c.bf16 %v3112_v39, %v3111_v17  ;;  %v3129_v17 = vld [vmem:[%s6191_s3 + $0x730] sm:$0xff]  ;;  %v3130_v39 = vld [vmem:[%s6191_s3 + $0x738] sm:$0xff] }
 0x1c8   :  { %4516 = vmatprep.subr.bf16.mxu1 %v4697_v51 }
 0x1c9   :  { %4491 = vmatpush3.bf16.msra.mxu0 %v4490_v34  ;;  %v4541_v34 = vpack.c.bf16 %v3096_v43, %v3095_v41  ;;  %v3147_v41 = vld [vmem:[%s6191_s3 + $0x7c0] sm:$0xff]  ;;  %v3148_v43 = vld [vmem:[%s6191_s3 + $0x7c8] sm:$0xff] }
 0x1ca   :  { %4492 = vmatprep.subr.bf16.mxu0 %v4697_v51 }
 0x1cb   :  { %4518 = vmatpush3.bf16.msra.mxu1 %v4517_v46  ;;  %v4568_v46 = vpack.c.bf16 %v3114_v10, %v3113_v6  ;;  %v3131_v6 = vld [vmem:[%s6191_s3 + $0x740] sm:$0xff]  ;;  %v3132_v10 = vld [vmem:[%s6191_s3 + $0x748] sm:$0xff] }
 0x1cc   :  { %4519 = vmatprep.subr.bf16.mxu1 %v4697_v51 }
 0x1cd   :  { %4494 = vmatpush3.bf16.msra.mxu0 %v4493_v44  ;;  %v4544_v44 = vpack.c.bf16 %v3098_v5, %v3097_v45  ;;  %v3149_v45 = vld [vmem:[%s6191_s3 + $0x7d0] sm:$0xff]  ;;  %v3150_v5 = vld [vmem:[%s6191_s3 + $0x7d8] sm:$0xff] }
 0x1ce   :  { %4495 = vmatprep.subr.bf16.mxu0 %v4697_v51 }
 0x1cf   :  { %4521 = vmatpush3.bf16.msra.mxu1 %v4520_v56  ;;  %v4571_v56 = vpack.c.bf16 %v3116_v48, %v3115_v30  ;;  %v3133_v30 = vld [vmem:[%s6191_s3 + $0x750] sm:$0xff]  ;;  %v3134_v48 = vld [vmem:[%s6191_s3 + $0x758] sm:$0xff] }
 0x1d0   :  { %4522 = vmatprep.subr.bf16.mxu1 %v4697_v51 }
 0x1d1   :  { %4497 = vmatpush3.bf16.msra.mxu0 %v4496_v59  ;;  %v4547_v59 = vpack.c.bf16 %v3100_v55, %v3099_v52  ;;  %v3151_v52 = vld [vmem:[%s6191_s3 + $0x7e0] sm:$0xff]  ;;  %v3152_v55 = vld [vmem:[%s6191_s3 + $0x7e8] sm:$0xff] }
 0x1d2   :  { %4498 = vmatprep.subr.bf16.mxu0 %v4697_v51 }
 0x1d3   :  { %4524 = vmatpush3.bf16.msra.mxu1 %v4523_v62  ;;  %v4574_v62 = vpack.c.bf16 %v3118_v58, %v3117_v57  ;;  %v4598_v57 = vpack.c.bf16 %v3134_v48, %v3133_v30 }
 0x1d4   :  { %4525 = vmatprep.subr.bf16.mxu1 %v4697_v51 }
 0x1d5   :  { %4500 = vmatpush3.bf16.msra.mxu0 %v4499_v19  ;;  %v4550_v19 = vpack.c.bf16 %v3102_v61, %v3101_v60  ;;  %v3136_v60 = vld [vmem:[%s6191_s3 + $0x768] sm:$0xff] }
 0x1d6   :  { %4501 = vmatprep.subr.bf16.mxu0 %v4697_v51 }
 0x1d7   :  { %4527 = vmatpush3.bf16.msra.mxu1 %v4526_v9  ;;  %v4577_v9 = vpack.c.bf16 %v3120_v4, %v3119_v0 }
 0x1d8   :  { %4528 = vmatprep.subr.bf16.mxu1 %v4697_v51 }
 0x1d9   :  { %4503 = vmatpush3.bf16.msra.mxu0 %v4502_v12  ;;  %v4553_v12 = vpack.c.bf16 %v3104_v7, %v3103_v50  ;;  %v3154_v50 = vld [vmem:[%s6191_s3 + $0x7f8] sm:$0xff] }
 0x1da   :  { %4504 = vmatprep.subr.bf16.mxu0 %v4697_v51 }
 0x1db   :  { %4530 = vmatpush3.bf16.msra.mxu1 %v4529_v14  ;;  %v4580_v14 = vpack.c.bf16 %v3122_v54, %v3121_v11  ;;  %v3138_v11 = vld [vmem:[%s6191_s3 + $0x778] sm:$0xff] }
 0x1dc   :  { %4531 = vmatprep.subr.bf16.mxu1 %v4697_v51 }
 0x1dd   :  { %4506 = vmatpush3.bf16.msra.mxu0 %v4505_v18  ;;  %v3140_v18 = vld [vmem:[%s6191_s3 + $0x788] sm:$0xff] }
 0x1de   :  { %4507 = vmatprep.subr.bf16.mxu0 %v4697_v51  ;;  %v4607_v23 = vpack.c.bf16 %v3140_v18, %v3139_v26 }
 0x1df   :  { %4533 = vmatpush3.bf16.msra.mxu1 %v4532_v22  ;;  %v3123_v22 = vld [vmem:[%s6191_s3 + $0x700] sm:$0xff] }
 0x1e0   :  { %4558 = vmatprep.subr.bf16.mxu1 %v4697_v51  ;;  %v4583_v1 = vpack.c.bf16 %v3124_v53, %v3123_v22 }
 0x1e1   :  { %4509 = vmatpush3.bf16.msra.mxu0 %v4508_v27  ;;  %v3141_v27 = vld [vmem:[%s6191_s3 + $0x790] sm:$0xff] }
 0x1e2   :  { %4104 = vmatmul.mubr.f32.vlgmr.msra.gmra.mrb[74].mxu1 %v1345_v33  ;;  %4534 = vmatprep.subr.bf16.mxu0 %v4697_v51  ;;  %v4610_v33 = vpack.c.bf16 %v3142_v28, %v3141_v27 }
 0x1e3   :  { %4560 = vmatpush3.bf16.msra.mxu1 %v4559_v3  ;;  %4173 = vmatprep.mubr.msk.f32.mxu1 %vm4698_vm0, %v4699_v49  ;;  %v3126_v3 = vld [vmem:[%s6191_s3 + $0x718] sm:$0xff] }
 0x1e4   :  { %4069 = vmatmul.mubr.f32.vlgmr.msra.gmra.mrb[74].mxu0 %v1344_v35  ;;  %4561 = vmatprep.subr.bf16.mxu1 %v4697_v51  ;;  %v4586_v32 = vpack.c.bf16 %v3126_v3, %v3125_v47  ;;  %v3128_v35 = vld [vmem:[%s6191_s3 + $0x728] sm:$0xff] }
 0x1e5   :  { %4536 = vmatpush3.bf16.msra.mxu0 %v4535_v36  ;;  %4138 = vmatprep.mubr.msk.f32.mxu0 %vm4698_vm0, %v4699_v49  ;;  %v3127_v36 = vld [vmem:[%s6191_s3 + $0x720] sm:$0xff] }
 0x1e6   :  { %4537 = vmatprep.subr.bf16.mxu0 %v4697_v51 }
 0x1e7   :  { %4563 = vmatpush3.bf16.msra.mxu1 %v4562_v38  ;;  %v4589_v38 = vpack.c.bf16 %v3128_v35, %v3127_v36 }
 0x1e8   :  { %4564 = vmatprep.subr.bf16.mxu1 %v4697_v51 }
 0x1e9   :  { %4539 = vmatpush3.bf16.msra.mxu0 %v4538_v40 }
 0x1ea   :  { %4540 = vmatprep.subr.bf16.mxu0 %v4697_v51 }
 0x1eb   :  { %4566 = vmatpush3.bf16.msra.mxu1 %v4565_v42  ;;  %v4592_v42 = vpack.c.bf16 %v3130_v39, %v3129_v17 }
 0x1ec   :  { %4567 = vmatprep.subr.bf16.mxu1 %v4697_v51 }
 0x1ed   :  { %4542 = vmatpush3.bf16.msra.mxu0 %v4541_v34  ;;  %v4619_v34 = vpack.c.bf16 %v3148_v43, %v3147_v41 }
 0x1ee   :  { %4543 = vmatprep.subr.bf16.mxu0 %v4697_v51 }
 0x1ef   :  { %4569 = vmatpush3.bf16.msra.mxu1 %v4568_v46  ;;  %v4595_v46 = vpack.c.bf16 %v3132_v10, %v3131_v6 }
 0x1f0   :  { %4570 = vmatprep.subr.bf16.mxu1 %v4697_v51 }
 0x1f1   :  { %4545 = vmatpush3.bf16.msra.mxu0 %v4544_v44  ;;  %v4622_v44 = vpack.c.bf16 %v3150_v5, %v3149_v45 }
 0x1f2   :  { %4546 = vmatprep.subr.bf16.mxu0 %v4697_v51 }
 0x1f3   :  { %4572 = vmatpush3.bf16.msra.mxu1 %v4571_v56 }
 0x1f4   :  { %4573 = vmatprep.subr.bf16.mxu1 %v4697_v51 }
 0x1f5   :  { %4548 = vmatpush3.bf16.msra.mxu0 %v4547_v59  ;;  %v3135_v59 = vld [vmem:[%s6191_s3 + $0x760] sm:$0xff] }
 0x1f6   :  { %4549 = vmatprep.subr.bf16.mxu0 %v4697_v51  ;;  %v4601_v7 = vpack.c.bf16 %v3136_v60, %v3135_v59  ;;  %v3157_v59 = vld [vmem:[%s6195_s6] ss:$0 sm:$0xff] }
 0x1f7   :  { %4575 = vmatpush3.bf16.msra.mxu1 %v4574_v62  ;;  %v4625_v62 = vpack.c.bf16 %v3152_v55, %v3151_v52 }
 0x1f8   :  { %4576 = vmatprep.subr.bf16.mxu1 %v4697_v51 }
 0x1f9   :  { %4551 = vmatpush3.bf16.msra.mxu0 %v4550_v19  ;;  %v3153_v19 = vld [vmem:[%s6191_s3 + $0x7f0] sm:$0xff] }
 0x1fa   :  { %4552 = vmatprep.subr.bf16.mxu0 %v4697_v51  ;;  %v4628_v54 = vpack.c.bf16 %v3154_v50, %v3153_v19 }
 0x1fb   :  { %4578 = vmatpush3.bf16.msra.mxu1 %v4577_v9  ;;  %v3137_v9 = vld [vmem:[%s6191_s3 + $0x770] sm:$0xff] }
 0x1fc   :  { %4579 = vmatprep.subr.bf16.mxu1 %v4697_v51  ;;  %v4604_v24 = vpack.c.bf16 %v3138_v11, %v3137_v9 }
 0x1fd   :  { %4554 = vmatpush3.bf16.msra.mxu0 %v4553_v12  ;;  %v1333_v12 = vmul.f32 0.2, %v5548_v20 }
 0x1fe   :  { %4555 = vmatprep.subr.bf16.mxu0 %v4697_v51 }
 0x1ff   :  { %4581 = vmatpush3.bf16.msra.mxu1 %v4580_v14  ;;  %v1349_v14 = vmax.f32 %v5548_v20, %v1333_v12 }
 0x200   :  { %4606 = vmatprep.subr.bf16.mxu1 %v4697_v51 }
 0x201   :  { %4557 = vmatpush3.bf16.msra.mxu0 %v4556_v2 }
 0x202   :  { %4174 = vmatmul.mubr.f32.vlgmr.msra.gmra.mrb[76].mxu1 %v1347_v25  ;;  %4582 = vmatprep.subr.bf16.mxu0 %v4697_v51 }
 0x203   :  { %4608 = vmatpush3.bf16.msra.mxu1 %v4607_v23  ;;  %4243 = vmatprep.mubr.msk.f32.mxu1 %vm4698_vm0, %v4699_v49 }
 0x204   :  { %4139 = vmatmul.mubr.f32.vlgmr.msra.gmra.mrb[76].mxu0 %v1346_v29  ;;  %4609 = vmatprep.subr.bf16.mxu1 %v4697_v51 }
 0x205   :  { %4584 = vmatpush3.bf16.msra.mxu0 %v4583_v1  ;;  %4208 = vmatprep.mubr.msk.f32.mxu0 %vm4698_vm0, %v4699_v49  ;;  %v3146_v49 = vld [vmem:[%s6191_s3 + $0x7b8] sm:$0xff] }
 0x206   :  { %4585 = vmatprep.subr.bf16.mxu0 %v4697_v51  ;;  %v4616_v40 = vpack.c.bf16 %v3146_v49, %v3145_v37 }
 0x207   :  { %4611 = vmatpush3.bf16.msra.mxu1 %v4610_v33 }
 0x208   :  { %4612 = vmatprep.subr.bf16.mxu1 %v4697_v51 }
 0x209   :  { %4587 = vmatpush3.bf16.msra.mxu0 %v4586_v32 }
 0x20a   :  { %4588 = vmatprep.subr.bf16.mxu0 %v4697_v51 }
 0x20b   :  { %4614 = vmatpush3.bf16.msra.mxu1 %v4613_v16 }
 0x20c   :  { %4615 = vmatprep.subr.bf16.mxu1 %v4697_v51 }
 0x20d   :  { %4590 = vmatpush3.bf16.msra.mxu0 %v4589_v38 }
 0x20e   :  { %4591 = vmatprep.subr.bf16.mxu0 %v4697_v51 }
 0x20f   :  { %4617 = vmatpush3.bf16.msra.mxu1 %v4616_v40 }
 0x210   :  { %4618 = vmatprep.subr.bf16.mxu1 %v4697_v51 }
 0x211   :  { %4593 = vmatpush3.bf16.msra.mxu0 %v4592_v42 }
 0x212   :  { %4594 = vmatprep.subr.bf16.mxu0 %v4697_v51 }
 0x213   :  { %4620 = vmatpush3.bf16.msra.mxu1 %v4619_v34 }
 0x214   :  { %4621 = vmatprep.subr.bf16.mxu1 %v4697_v51 }
 0x215   :  { %4596 = vmatpush3.bf16.msra.mxu0 %v4595_v46  ;;  %v1519_v56 = vpop.f32.mrb[64].mxu1 }
 0x216   :  { %v3755_v58 = vpop.f32.mrb[65].mxu1  ;;  %4597 = vmatprep.subr.bf16.mxu0 %v4697_v51 }
 0x217   :  { %4623 = vmatpush3.bf16.msra.mxu1 %v4622_v44  ;;  %v1449_v61 = vpop.f32.mrb[64].mxu0  ;;  %v3155_v44 = vld [vmem:[%s6193_s4] ss:$0 sm:$0xff] }
 0x218   :  { %v1520_v0 = vadd.f32 %v1519_v56, %v1449_v61  ;;  %v3720_v4 = vpop.f32.mrb[65].mxu0  ;;  %4624 = vmatprep.subr.bf16.mxu1 %v4697_v51 }
 0x219   :  { %4599 = vmatpush3.bf16.msra.mxu0 %v4598_v57  ;;  %v3156_v57 = vld [vmem:[%s6194_s5] ss:$0 sm:$0xff] }
 0x21a   :  { %4600 = vmatprep.subr.bf16.mxu0 %v4697_v51 }
 0x21b   :  { %4626 = vmatpush3.bf16.msra.mxu1 %v4625_v62 }
 0x21c   :  { %4627 = vmatprep.subr.bf16.mxu1 %v4697_v51 }
 0x21d   :  { %4602 = vmatpush3.bf16.msra.mxu0 %v4601_v7 }
 0x21e   :  { %4603 = vmatprep.subr.bf16.mxu0 %v4697_v51 }
 0x21f   :  { %4629 = vmatpush3.bf16.msra.mxu1 %v4628_v54 }
 0x221   :  { %4605 = vmatpush3.bf16.msra.mxu0 %v4604_v24 }
 0x222   :  { %4244 = vmatmul.mubr.f32.vlgmr.msra.gmra.mrb[78].mxu1 %v1349_v14 }
 0x224   :  { %4209 = vmatmul.mubr.f32.vlgmr.msra.gmra.mrb[78].mxu0 %v1348_v63 }
 0x235   :  { %v1694_v26 = vpop.f32.mrb[66].mxu1 }
 0x236   :  { %v3825_v18 = vpop.f32.mrb[67].mxu1 }
 0x237   :  { %v1606_v2 = vpop.f32.mrb[66].mxu0 }
 0x238   :  { %v1610_v21 = vadd.f32 %v1606_v2, %v1520_v0  ;;  %v3790_v22 = vpop.f32.mrb[67].mxu0 }
 0x23a   :  { %v1698_v53 = vadd.f32 %v1694_v26, %v1610_v21 }
 0x255   :  { %v1870_v23 = vpop.f32.mrb[68].mxu1 }
 0x256   :  { %v3895_v25 = vpop.f32.mrb[69].mxu1 }
 0x257   :  { %v1782_v27 = vpop.f32.mrb[68].mxu0 }
 0x258   :  { %v1786_v28 = vadd.f32 %v1782_v27, %v1698_v53  ;;  %v3860_v1 = vpop.f32.mrb[69].mxu0 }
 0x25a   :  { %v1874_v51 = vadd.f32 %v1870_v23, %v1786_v28 }
 0x275   :  { %v2046_v29 = vpop.f32.mrb[70].mxu1 }
 0x276   :  { %v3965_v47 = vpop.f32.mrb[71].mxu1 }
 0x277   :  { %v1958_v20 = vpop.f32.mrb[70].mxu0 }
 0x278   :  { %v1962_v3 = vadd.f32 %v1958_v20, %v1874_v51  ;;  %v3930_v33 = vpop.f32.mrb[71].mxu0 }
 0x27a   :  { %v2050_v15 = vadd.f32 %v2046_v29, %v1962_v3 }
 0x295   :  { %v2222_v8 = vpop.f32.mrb[72].mxu1 }
 0x296   :  { %v4035_v31 = vpop.f32.mrb[73].mxu1 }
 0x297   :  { %v2134_v32 = vpop.f32.mrb[72].mxu0 }
 0x298   :  { %v2138_v36 = vadd.f32 %v2134_v32, %v2050_v15  ;;  %v4000_v35 = vpop.f32.mrb[73].mxu0 }
 0x29a   :  { %v2226_v16 = vadd.f32 %v2222_v8, %v2138_v36 }
 0x2b5   :  { %v2398_v37 = vpop.f32.mrb[74].mxu1 }
 0x2b6   :  { %v4105_v49 = vpop.f32.mrb[75].mxu1 }
 0x2b7   :  { %v2310_v38 = vpop.f32.mrb[74].mxu0 }
 0x2b8   :  { %v2314_v17 = vadd.f32 %v2310_v38, %v2226_v16  ;;  %v4070_v39 = vpop.f32.mrb[75].mxu0 }
 0x2ba   :  { %v2402_v40 = vadd.f32 %v2398_v37, %v2314_v17 }
 0x2d5   :  { %v2574_v41 = vpop.f32.mrb[76].mxu1 }
 0x2d6   :  { %v4175_v43 = vpop.f32.mrb[77].mxu1 }
 0x2d7   :  { %v2486_v42 = vpop.f32.mrb[76].mxu0 }
 0x2d8   :  { %v2490_v6 = vadd.f32 %v2486_v42, %v2402_v40  ;;  %v4140_v10 = vpop.f32.mrb[77].mxu0 }
 0x2da   :  { %v2578_v34 = vadd.f32 %v2574_v41, %v2490_v6 }
 0x2f5   :  { %v2750_v45 = vpop.f32.mrb[78].mxu1 }
 0x2f6   :  { %v4245_v5 = vpop.f32.mrb[79].mxu1 }
 0x2f7   :  { %v2662_v46 = vpop.f32.mrb[78].mxu0 }
 0x2f8   :  { %v2666_v30 = vadd.f32 %v2662_v46, %v2578_v34  ;;  %v4210_v48 = vpop.f32.mrb[79].mxu0 }
 0x2fa   :  { %v2754_v52 = vadd.f32 %v2750_v45, %v2666_v30 }
 0x2fc   :  { %v2762_v55 = vadd.f32 %v3155_v44, %v2754_v52 }
 0x2fe   :  { %v2763_v56 = vmul.f32 0.2, %v2762_v55 }
 0x300   :  { %v2764_v58 = vmax.f32 %v2762_v55, %v2763_v56 }
 0x302   :  { %v2772_v60 = vmul.f32 %v3156_v57, %v2764_v58 }
 0x304   :  { %v2780_v61 = vadd.f32 %v3157_v59, %v2772_v60 }
 0x306   :  { %2781 = vst [vmem:[%s6196_s7] sm:$0xff] %v2780_v61 }

</bundles_post_ra>
